<compile_context>
chip_gen: v5e
topology: v5e:2x2
jax: 0.10.0
libtpu: 0.0.40
codegen_flags: <defaults>
</compile_context>

<pallas_src>
import functools

import jax
import jax.numpy as jnp
from jax import lax
from jax.experimental import pallas as pl
from jax.experimental.pallas import tpu as pltpu

LANE = 128
MIB = 1024 * 1024


def _round_up(x, m):
    return (x + m - 1) // m * m


def _pick_tile(n, cap, fits):
    """Largest divisor of n that is <= cap and passes the VMEM-fit predicate."""
    for cand in range(min(n, cap), 0, -1):
        if n % cand == 0 and fits(cand):
            return cand
    return 1


# --------------------- Kernel 1: ConvTranspose2d(2,2,s=2) fused with the concat ---------------------
def _deconv_cat_kernel(x2_ref, x1_ref, w_ref, b_ref, o_ref):
    """One row band of `cat([pad(inputs1), deconv(inputs2)], channel)`.

    x2_ref: (tu, W, Cin_p)        bf16  coarse features
    x1_ref: (tu, 2, W, 2, Ccat_p) bf16  padded skip features, already placed at channels [0:c1)
    w_ref : (2, 2, Cin_p, Ccat_p) bf16  deconv weights placed at channels [c1:c1+out_size)
    b_ref : (1, Ccat_p)           f32   deconv bias in the same channel slice (zero elsewhere)
    o_ref : (tu, 2, W, 2, Ccat_p) bf16  output rows 2h+dh, cols 2w+dw (interleave is pure layout)
    """
    tu, w, cin_p = x2_ref.shape
    ccat_p = o_ref.shape[-1]
    x = x2_ref[...].reshape(tu * w, cin_p)
    for dh in range(2):
        for dw in range(2):
            y = jnp.dot(x, w_ref[dh, dw], preferred_element_type=jnp.float32) + b_ref[...]
            y = y.reshape(tu, w, ccat_p)
            o_ref[:, dh, :, dw] = (
                y + x1_ref[:, dh, :, dw].astype(jnp.float32)
            ).astype(jnp.bfloat16)


def deconv_into_cat(x2_nchw, x1_nchw, up_w, up_b, pad, cp_in, cp_cat):
    """Returns the torch.cat([F.pad(inputs1), up(inputs2)], 1) tensor as lane-padded bf16 NHWC
    (N, 2H, 2W, cp_cat), produced by a single Pallas kernel (no concat/interleave/re-pad passes)."""
    N, cin, H, W = x2_nchw.shape
    c1 = x1_nchw.shape[1]
    cout = up_w.shape[1]
    Wc = 2 * W

    x2 = jnp.transpose(x2_nchw, (0, 2, 3, 1))
    x2 = jnp.pad(x2, ((0, 0), (0, 0), (0, 0), (0, cp_in - cin))).astype(jnp.bfloat16)

    # Skip connection placed at channels [0:c1) of the cat layout, zero elsewhere.
    x1 = jnp.transpose(x1_nchw, (0, 2, 3, 1))
    x1 = jnp.pad(x1, ((0, 0), (pad, pad), (pad, pad), (0, cp_cat - c1))).astype(jnp.bfloat16)
    x1 = x1.reshape(N, H, 2, W, 2, cp_cat)                      # free reshape, matches out layout

    # ConvTranspose2d weight (Cin, Cout, 2, 2) -> (dh, dw, ci, c1+co); bias in the same slice.
    w4 = jnp.zeros((2, 2, cp_in, cp_cat), jnp.float32)
    w4 = w4.at[:, :, :cin, c1:c1 + cout].set(jnp.transpose(up_w, (2, 3, 0, 1)))
    w4 = w4.astype(jnp.bfloat16)
    brow = jnp.zeros((1, cp_cat), jnp.float32).at[0, c1:c1 + cout].set(up_b)

    def vmem_bytes(tu):
        blocks = (tu * W * cp_in + 2 * (tu * 2 * W * 2 * cp_cat)) * 2  # x2 + x1 + out (bf16)
        return 2 * blocks + (2 * 2 * cp_in * cp_cat) * 2               # double-buffered + weights

    tu = _pick_tile(H, 64, lambda t: vmem_bytes(t) <= 20 * MIB)
    vmem_limit = int(min(max(2 * vmem_bytes(tu), 32 * MIB), 48 * MIB))

    cat = pl.pallas_call(
        _deconv_cat_kernel,
        out_shape=jax.ShapeDtypeStruct((N, H, 2, W, 2, cp_cat), jnp.bfloat16),
        grid=(N, H // tu),
        in_specs=[
            pl.BlockSpec((None, tu, W, cp_in), lambda n, t: (n, t, 0, 0)),
            pl.BlockSpec((None, tu, 2, W, 2, cp_cat), lambda n, t: (n, t, 0, 0, 0, 0)),
            pl.BlockSpec((2, 2, cp_in, cp_cat), lambda n, t: (0, 0, 0, 0)),
            pl.BlockSpec((1, cp_cat), lambda n, t: (0, 0)),
        ],
        out_specs=pl.BlockSpec((None, tu, 2, W, 2, cp_cat), lambda n, t: (n, t, 0, 0, 0, 0)),
        compiler_params=pltpu.CompilerParams(
            dimension_semantics=("parallel", "parallel"),
            vmem_limit_bytes=vmem_limit),
    )(x2, x1, w4, brow)
    # (N, H, 2, W, 2, C) -> (N, 2H, 2W, C) is a contiguous row-major merge (no data movement).
    return cat.reshape(N, 2 * H, Wc, cp_cat)


# --------------------- Kernel 2: fused unetConv2 (two valid 3x3 convs + ReLU) ---------------------
def _fused_conv_kernel(cat_hbm, w1_ref, b1_ref, w2_ref, b2_ref, o_ref,
                       band, sem, acc1, mid, acc2, *, th, wc, wo):
    """Each grid step: DMA one (th+4)-row halo band of `cat` (manually double-buffered),
    run conv1+ReLU into VMEM, run conv2+ReLU on it, write only the final bf16 band to HBM."""
    n = pl.program_id(0)
    b = pl.program_id(1)
    nb = pl.num_programs(1)
    cp_cat = w1_ref.shape[1]
    cp_mid = w1_ref.shape[2]
    cp_out = w2_ref.shape[2]
    th2 = th + 2
    wm1 = wc - 2                      # valid width of the conv1 output

    def start_fetch(band_idx, slot):
        pltpu.make_async_copy(cat_hbm.at[n, pl.ds(band_idx * th, th + 4)],
                              band.at[slot], sem.at[slot]).start()

    @pl.when(b == 0)
    def _():                          # first band of this image: fetch synchronously
        start_fetch(0, 0)

    slot = b % 2
    pltpu.make_async_copy(cat_hbm.at[n, pl.ds(0, th + 4)],     # dummy src; dst/sem define the wait
                          band.at[slot], sem.at[slot]).wait()

    @pl.when(b + 1 < nb)
    def _():                          # prefetch the next band while computing this one
        start_fetch(b + 1, 1 - slot)

    # ---- conv1: 9 full-width MXU dots accumulated per column tap (no per-tap relayouts) ----
    for dh in range(3):
        xs = band[slot, pl.ds(dh, th2)].reshape(th2 * wc, cp_cat)
        for dw in range(3):
            d = jnp.dot(xs, w1_ref[dh * 3 + dw], preferred_element_type=jnp.float32)
            if dh == 0:
                acc1[dw] = d
            else:
                acc1[dw] += d
    m = (acc1[0].reshape(th2, wc, cp_mid)[:, 0:wm1]
         + acc1[1].reshape(th2, wc, cp_mid)[:, 1:1 + wm1]
         + acc1[2].reshape(th2, wc, cp_mid)[:, 2:2 + wm1]
         + b1_ref[...])
    mid[:, 0:wm1] = jnp.maximum(m, 0.0).astype(jnp.bfloat16)   # cols >= wm1 are junk, never read

    # ---- conv2 on the VMEM-resident conv1 result ----
    for dh in range(3):
        ms = mid[dh:dh + th].reshape(th * wc, cp_mid)
        for dw in range(3):
            d = jnp.dot(ms, w2_ref[dh * 3 + dw], preferred_element_type=jnp.float32)
            if dh == 0:
                acc2[dw] = d
            else:
                acc2[dw] += d
    t = (acc2[0].reshape(th, wc, cp_out)[:, 0:wo]
         + acc2[1].reshape(th, wc, cp_out)[:, 1:1 + wo]
         + acc2[2].reshape(th, wc, cp_out)[:, 2:2 + wo]
         + b2_ref[...])
    o_ref[...] = jnp.maximum(t, 0.0).astype(jnp.bfloat16)


def fused_double_conv(cat, w1, b1, w2, b2, cp_mid, cp_out):
    """unetConv2(is_batchnorm=False) on the lane-padded bf16 cat tensor -> bf16 (N, Hc-4, Wc-4, cp_out)."""
    N, Hc, Wc, cp_cat = cat.shape
    cmid, ccat = w1.shape[0], w1.shape[1]
    cout = w2.shape[0]
    assert ccat <= cp_cat and cmid <= cp_mid and cout <= cp_out
    Ho, Wo = Hc - 4, Wc - 4

    # weights (O, I, 3, 3) -> (9, Ipad, Opad)[dh*3+dw, ci, co]; biases as (1, Opad) rows
    w1k = jnp.zeros((3, 3, cp_cat, cp_mid), jnp.float32)
    w1k = w1k.at[:, :, :ccat, :cmid].set(jnp.transpose(w1, (2, 3, 1, 0)))
    w1k = w1k.reshape(9, cp_cat, cp_mid).astype(jnp.bfloat16)
    b1r = jnp.zeros((1, cp_mid), jnp.float32).at[0, :cmid].set(b1)

    w2k = jnp.zeros((3, 3, cp_mid, cp_out), jnp.float32)
    w2k = w2k.at[:, :, :cmid, :cout].set(jnp.transpose(w2, (2, 3, 1, 0)))
    w2k = w2k.reshape(9, cp_mid, cp_out).astype(jnp.bfloat16)
    b2r = jnp.zeros((1, cp_out), jnp.float32).at[0, :cout].set(b2)

    def vmem_bytes(t):
        return (2 * (t + 4) * Wc * cp_cat * 2          # band double buffer (bf16)
                + 3 * (t + 2) * Wc * cp_mid * 4        # conv1 per-tap accumulators (f32)
                + (t + 2) * Wc * cp_mid * 2            # conv1 output (bf16)
                + 3 * t * Wc * cp_out * 4              # conv2 per-tap accumulators (f32)
                + 2 * t * Wo * cp_out * 2              # pipelined output block
                + 9 * (cp_cat * cp_mid + cp_mid * cp_out) * 2)

    th = _pick_tile(Ho, 32, lambda t: vmem_bytes(t) <= 22 * MIB)
    nb = Ho // th
    vmem_limit = int(min(max(2 * vmem_bytes(th), 32 * MIB), 48 * MIB))

    return pl.pallas_call(
        functools.partial(_fused_conv_kernel, th=th, wc=Wc, wo=Wo),
        out_shape=jax.ShapeDtypeStruct((N, Ho, Wo, cp_out), jnp.bfloat16),
        grid=(N, nb),
        in_specs=[
            pl.BlockSpec(memory_space=pl.ANY),                         # cat stays in HBM (manual DMA)
            pl.BlockSpec((9, cp_cat, cp_mid), lambda n, b: (0, 0, 0)),
            pl.BlockSpec((1, cp_mid), lambda n, b: (0, 0)),
            pl.BlockSpec((9, cp_mid, cp_out), lambda n, b: (0, 0, 0)),
            pl.BlockSpec((1, cp_out), lambda n, b: (0, 0)),
        ],
        out_specs=pl.BlockSpec((None, th, Wo, cp_out), lambda n, b: (n, b, 0, 0)),
        scratch_shapes=[
            pltpu.VMEM((2, th + 4, Wc, cp_cat), jnp.bfloat16),         # halo band, double buffered
            pltpu.SemaphoreType.DMA((2,)),
            pltpu.VMEM((3, (th + 2) * Wc, cp_mid), jnp.float32),       # conv1 per-dw accumulators
            pltpu.VMEM((th + 2, Wc, cp_mid), jnp.bfloat16),            # conv1 output band
            pltpu.VMEM((3, th * Wc, cp_out), jnp.float32),             # conv2 per-dw accumulators
        ],
        compiler_params=pltpu.CompilerParams(
            dimension_semantics=("parallel", "arbitrary"),             # batch axis -> megacore
            vmem_limit_bytes=vmem_limit),
    )(cat, w1k, b1r, w2k, b2r)


# ----------------------------------- unetUp forward -----------------------------------
def init_params(key, in_size, out_size):
    ks = jax.random.split(key, 6)

    def u(k, shape, fan_in):
        bound = 1.0 / (fan_in ** 0.5)
        return jax.random.uniform(k, shape, jnp.float32, -bound, bound)

    return {
        "up_w": u(ks[0], (in_size, out_size, 2, 2), in_size * 4),  # ConvTranspose2d (in, out, kh, kw)
        "up_b": u(ks[1], (out_size,), in_size * 4),
        "w1":   u(ks[2], (out_size, in_size, 3, 3), in_size * 9),  # Conv2d (out, in, 3, 3)
        "b1":   u(ks[3], (out_size,), in_size * 9),
        "w2":   u(ks[4], (out_size, out_size, 3, 3), out_size * 9),
        "b2":   u(ks[5], (out_size,), out_size * 9),
    }


def unet_up_forward(inputs1_nchw, inputs2_nchw, params):
    """Matches unetUp(is_deconv=True).forward. Inputs/outputs are NCHW like PyTorch."""
    up_w, up_b = params["up_w"], params["up_b"]
    w1, b1, w2, b2 = params["w1"], params["b1"], params["w2"], params["b2"]

    N, cin, H2, W2 = inputs2_nchw.shape
    _, c1, H1, W1 = inputs1_nchw.shape
    out_size = up_w.shape[1]
    c_cat = c1 + out_size
    assert up_w.shape[0] == cin and w1.shape[1] == c_cat

    Hc, Wc = 2 * H2, 2 * W2
    offset = Hc - H1
    assert offset >= 0 and offset % 2 == 0, "skip / upsample size mismatch"
    p = offset // 2
    assert W1 + 2 * p == Wc, "non-matching width offset (same requirement as the torch module)"

    cp_in = _round_up(cin, LANE)
    cp_cat = _round_up(c_cat, LANE)
    cp_mid = _round_up(out_size, LANE)
    cp_out = _round_up(out_size, LANE)

    cat = deconv_into_cat(inputs2_nchw, inputs1_nchw, up_w, up_b, p, cp_in, cp_cat)
    y = fused_double_conv(cat, w1, b1, w2, b2, cp_mid, cp_out)     # (N, Hc-4, Wc-4, cp_out) bf16
    return jnp.transpose(y[..., :out_size], (0, 3, 1, 2)).astype(jnp.float32)


# ------------------------------- pure-JAX reference ------------------------------------
# Same numerics policy as the kernels: bf16 MXU operands, f32 accumulation / epilogue.
def _ref_deconv2x2(x_nchw, w, b):
    y = jnp.einsum("nchw,codx->nohdwx", x_nchw.astype(jnp.bfloat16), w.astype(jnp.bfloat16),
                   preferred_element_type=jnp.float32)
    N, Co, H, _, W, _ = y.shape
    return y.reshape(N, Co, 2 * H, 2 * W) + b[None, :, None, None]


def _ref_conv3x3_valid_relu(x_nchw, w, b):
    y = lax.conv_general_dilated(x_nchw.astype(jnp.bfloat16), w.astype(jnp.bfloat16),
                                 (1, 1), ((0, 0), (0, 0)),
                                 dimension_numbers=("NCHW", "OIHW", "NCHW"),
                                 preferred_element_type=jnp.float32)
    return jnp.maximum(y + b[None, :, None, None], 0.0)


def _ref_unet_up(inputs1, inputs2, params):
    out2 = _ref_deconv2x2(inputs2, params["up_w"], params["up_b"])
    p = (out2.shape[2] - inputs1.shape[2]) // 2
    out1 = jnp.pad(inputs1, ((0, 0), (0, 0), (p, p), (p, p)))
    cat = jnp.concatenate([out1, out2], axis=1)
    y = _ref_conv3x3_valid_relu(cat, params["w1"], params["b1"])
    y = _ref_conv3x3_valid_relu(y, params["w2"], params["b2"])
    return y


if __name__ == "__main__":
    in_size, out_size = 8, 4
    key = jax.random.PRNGKey(0)
    k1, k2, kp = jax.random.split(key, 3)
    inputs1 = jax.random.normal(k1, (2, in_size - out_size, 14, 14), jnp.float32)  # skip connection
    inputs2 = jax.random.normal(k2, (2, in_size, 8, 8), jnp.float32)               # coarse features
    params = init_params(kp, in_size, out_size)

    fwd = jax.jit(unet_up_forward)
    out = jax.block_until_ready(fwd(inputs1, inputs2, params))

    ref = _ref_unet_up(inputs1, inputs2, params)
    assert out.shape == (2, out_size, 12, 12), out.shape
    max_err = float(jnp.max(jnp.abs(out - ref)))
    assert jnp.allclose(out, ref, atol=4e-2, rtol=4e-2), max_err

    print("KERNEL_OK")
</pallas_src>

<mosaic_0001>
module attributes {stable_mosaic.version = 11 : i64} {
  func.func @_deconv_cat_kernel(%arg0: i32, %arg1: i32, %arg2: memref<1x8x8x128xbf16, #tpu.memory_space<vmem>>, %arg3: memref<1x8x2x8x2x128xbf16, #tpu.memory_space<vmem>>, %arg4: memref<2x2x128x128xbf16, #tpu.memory_space<vmem>>, %arg5: memref<1x128xf32, #tpu.memory_space<vmem>>, %arg6: memref<1x8x2x8x2x128xbf16, #tpu.memory_space<vmem>>) attributes {dimension_semantics = [#tpu.dimension_semantics<parallel>, #tpu.dimension_semantics<parallel>], iteration_bounds = array<i64: 2, 1>, scalar_prefetch = 0 : i64, scratch_operands = 0 : i64, tpu.core_type = #tpu.core_type<tc>, window_params = [{transform_indices = @transform_0, window_bounds = array<i64: 1, 8, 8, 128>}, {transform_indices = @transform_1, window_bounds = array<i64: 1, 8, 2, 8, 2, 128>}, {pipeline_mode = #tpu.pipeline_mode<synchronous>, transform_indices = @transform_2, window_bounds = array<i64: 2, 2, 128, 128>}, {pipeline_mode = #tpu.pipeline_mode<synchronous>, transform_indices = @transform_3, window_bounds = array<i64: 1, 128>}, {transform_indices = @transform_4, window_bounds = array<i64: 1, 8, 2, 8, 2, 128>}]} {
    %c0 = arith.constant 0 : index
    %c0_0 = arith.constant 0 : index
    %c0_1 = arith.constant 0 : index
    %c0_2 = arith.constant 0 : index
    %0 = vector.load %arg2[%c0, %c0_0, %c0_1, %c0_2] : memref<1x8x8x128xbf16, #tpu.memory_space<vmem>>, vector<1x8x8x128xbf16>
    %1 = vector.shape_cast %0 : vector<1x8x8x128xbf16> to vector<8x8x128xbf16>
    %2 = vector.shape_cast %1 : vector<8x8x128xbf16> to vector<64x128xbf16>
    %c0_3 = arith.constant 0 : index
    %c0_4 = arith.constant 0 : index
    %c0_5 = arith.constant 0 : index
    %c0_6 = arith.constant 0 : index
    %3 = vector.load %arg4[%c0_3, %c0_4, %c0_5, %c0_6] : memref<2x2x128x128xbf16, #tpu.memory_space<vmem>>, vector<1x1x128x128xbf16>
    %4 = vector.shape_cast %3 : vector<1x1x128x128xbf16> to vector<128x128xbf16>
    %cst = arith.constant dense<0.000000e+00> : vector<64x128xf32>
    %5 = tpu.matmul %2, %4, %cst {dimension_numbers = #tpu.dot_dimension_numbers<[1], [0], [0], [1], [0, 0, 1, 1], [], []>} : vector<64x128xbf16>, vector<128x128xbf16>, vector<64x128xf32> -> vector<64x128xf32>
    %c0_7 = arith.constant 0 : index
    %c0_8 = arith.constant 0 : index
    %6 = vector.load %arg5[%c0_7, %c0_8] : memref<1x128xf32, #tpu.memory_space<vmem>>, vector<1x128xf32>
    %7 = vector.broadcast %6 : vector<1x128xf32> to vector<64x128xf32>
    %8 = arith.addf %5, %7 : vector<64x128xf32>
    %9 = vector.shape_cast %8 : vector<64x128xf32> to vector<8x8x128xf32>
    %c0_9 = arith.constant 0 : index
    %c0_10 = arith.constant 0 : index
    %c0_11 = arith.constant 0 : index
    %c0_12 = arith.constant 0 : index
    %c0_13 = arith.constant 0 : index
    %c0_14 = arith.constant 0 : index
    %10 = vector.load %arg3[%c0_9, %c0_10, %c0_11, %c0_12, %c0_13, %c0_14] : memref<1x8x2x8x2x128xbf16, #tpu.memory_space<vmem>>, vector<1x8x1x8x1x128xbf16>
    %11 = vector.shape_cast %10 : vector<1x8x1x8x1x128xbf16> to vector<8x8x128xbf16>
    %12 = arith.extf %11 : vector<8x8x128xbf16> to vector<8x8x128xf32>
    %13 = arith.addf %9, %12 : vector<8x8x128xf32>
    %14 = arith.truncf %13 : vector<8x8x128xf32> to vector<8x8x128xbf16>
    %c0_15 = arith.constant 0 : index
    %c0_16 = arith.constant 0 : index
    %c0_17 = arith.constant 0 : index
    %c0_18 = arith.constant 0 : index
    %c0_19 = arith.constant 0 : index
    %c0_20 = arith.constant 0 : index
    %15 = vector.load %arg6[%c0_15, %c0_16, %c0_17, %c0_18, %c0_19, %c0_20] : memref<1x8x2x8x2x128xbf16, #tpu.memory_space<vmem>>, vector<1x8x1x8x1x128xbf16>
    %16 = vector.shape_cast %15 : vector<1x8x1x8x1x128xbf16> to vector<8x8x128xbf16>
    %17 = vector.shape_cast %14 : vector<8x8x128xbf16> to vector<1x8x1x8x1x128xbf16>
    tpu.vector_store %arg6[%c0_15, %c0_16, %c0_17, %c0_18, %c0_19, %c0_20], %17 {strides = array<i32>} : memref<1x8x2x8x2x128xbf16, #tpu.memory_space<vmem>>, vector<1x8x1x8x1x128xbf16>,
    %c0_21 = arith.constant 0 : index
    %c1 = arith.constant 1 : index
    %c0_22 = arith.constant 0 : index
    %c0_23 = arith.constant 0 : index
    %18 = vector.load %arg4[%c0_21, %c1, %c0_22, %c0_23] : memref<2x2x128x128xbf16, #tpu.memory_space<vmem>>, vector<1x1x128x128xbf16>
    %19 = vector.shape_cast %18 : vector<1x1x128x128xbf16> to vector<128x128xbf16>
    %cst_24 = arith.constant dense<0.000000e+00> : vector<64x128xf32>
    %20 = tpu.matmul %2, %19, %cst_24 {dimension_numbers = #tpu.dot_dimension_numbers<[1], [0], [0], [1], [0, 0, 1, 1], [], []>} : vector<64x128xbf16>, vector<128x128xbf16>, vector<64x128xf32> -> vector<64x128xf32>
    %c0_25 = arith.constant 0 : index
    %c0_26 = arith.constant 0 : index
    %21 = vector.load %arg5[%c0_25, %c0_26] : memref<1x128xf32, #tpu.memory_space<vmem>>, vector<1x128xf32>
    %22 = vector.broadcast %21 : vector<1x128xf32> to vector<64x128xf32>
    %23 = arith.addf %20, %22 : vector<64x128xf32>
    %24 = vector.shape_cast %23 : vector<64x128xf32> to vector<8x8x128xf32>
    %c0_27 = arith.constant 0 : index
    %c0_28 = arith.constant 0 : index
    %c0_29 = arith.constant 0 : index
    %c0_30 = arith.constant 0 : index
    %c1_31 = arith.constant 1 : index
    %c0_32 = arith.constant 0 : index
    %25 = vector.load %arg3[%c0_27, %c0_28, %c0_29, %c0_30, %c1_31, %c0_32] : memref<1x8x2x8x2x128xbf16, #tpu.memory_space<vmem>>, vector<1x8x1x8x1x128xbf16>
    %26 = vector.shape_cast %25 : vector<1x8x1x8x1x128xbf16> to vector<8x8x128xbf16>
    %27 = arith.extf %26 : vector<8x8x128xbf16> to vector<8x8x128xf32>
    %28 = arith.addf %24, %27 : vector<8x8x128xf32>
    %29 = arith.truncf %28 : vector<8x8x128xf32> to vector<8x8x128xbf16>
    %c0_33 = arith.constant 0 : index
    %c0_34 = arith.constant 0 : index
    %c0_35 = arith.constant 0 : index
    %c0_36 = arith.constant 0 : index
    %c1_37 = arith.constant 1 : index
    %c0_38 = arith.constant 0 : index
    %30 = vector.load %arg6[%c0_33, %c0_34, %c0_35, %c0_36, %c1_37, %c0_38] : memref<1x8x2x8x2x128xbf16, #tpu.memory_space<vmem>>, vector<1x8x1x8x1x128xbf16>
    %31 = vector.shape_cast %30 : vector<1x8x1x8x1x128xbf16> to vector<8x8x128xbf16>
    %32 = vector.shape_cast %29 : vector<8x8x128xbf16> to vector<1x8x1x8x1x128xbf16>
    tpu.vector_store %arg6[%c0_33, %c0_34, %c0_35, %c0_36, %c1_37, %c0_38], %32 {strides = array<i32>} : memref<1x8x2x8x2x128xbf16, #tpu.memory_space<vmem>>, vector<1x8x1x8x1x128xbf16>,
    %c1_39 = arith.constant 1 : index
    %c0_40 = arith.constant 0 : index
    %c0_41 = arith.constant 0 : index
    %c0_42 = arith.constant 0 : index
    %33 = vector.load %arg4[%c1_39, %c0_40, %c0_41, %c0_42] : memref<2x2x128x128xbf16, #tpu.memory_space<vmem>>, vector<1x1x128x128xbf16>
    %34 = vector.shape_cast %33 : vector<1x1x128x128xbf16> to vector<128x128xbf16>
    %cst_43 = arith.constant dense<0.000000e+00> : vector<64x128xf32>
    %35 = tpu.matmul %2, %34, %cst_43 {dimension_numbers = #tpu.dot_dimension_numbers<[1], [0], [0], [1], [0, 0, 1, 1], [], []>} : vector<64x128xbf16>, vector<128x128xbf16>, vector<64x128xf32> -> vector<64x128xf32>
    %c0_44 = arith.constant 0 : index
    %c0_45 = arith.constant 0 : index
    %36 = vector.load %arg5[%c0_44, %c0_45] : memref<1x128xf32, #tpu.memory_space<vmem>>, vector<1x128xf32>
    %37 = vector.broadcast %36 : vector<1x128xf32> to vector<64x128xf32>
    %38 = arith.addf %35, %37 : vector<64x128xf32>
    %39 = vector.shape_cast %38 : vector<64x128xf32> to vector<8x8x128xf32>
    %c0_46 = arith.constant 0 : index
    %c0_47 = arith.constant 0 : index
    %c1_48 = arith.constant 1 : index
    %c0_49 = arith.constant 0 : index
    %c0_50 = arith.constant 0 : index
    %c0_51 = arith.constant 0 : index
    %40 = vector.load %arg3[%c0_46, %c0_47, %c1_48, %c0_49, %c0_50, %c0_51] : memref<1x8x2x8x2x128xbf16, #tpu.memory_space<vmem>>, vector<1x8x1x8x1x128xbf16>
    %41 = vector.shape_cast %40 : vector<1x8x1x8x1x128xbf16> to vector<8x8x128xbf16>
    %42 = arith.extf %41 : vector<8x8x128xbf16> to vector<8x8x128xf32>
    %43 = arith.addf %39, %42 : vector<8x8x128xf32>
    %44 = arith.truncf %43 : vector<8x8x128xf32> to vector<8x8x128xbf16>
    %c0_52 = arith.constant 0 : index
    %c0_53 = arith.constant 0 : index
    %c1_54 = arith.constant 1 : index
    %c0_55 = arith.constant 0 : index
    %c0_56 = arith.constant 0 : index
    %c0_57 = arith.constant 0 : index
    %45 = vector.load %arg6[%c0_52, %c0_53, %c1_54, %c0_55, %c0_56, %c0_57] : memref<1x8x2x8x2x128xbf16, #tpu.memory_space<vmem>>, vector<1x8x1x8x1x128xbf16>
    %46 = vector.shape_cast %45 : vector<1x8x1x8x1x128xbf16> to vector<8x8x128xbf16>
    %47 = vector.shape_cast %44 : vector<8x8x128xbf16> to vector<1x8x1x8x1x128xbf16>
    tpu.vector_store %arg6[%c0_52, %c0_53, %c1_54, %c0_55, %c0_56, %c0_57], %47 {strides = array<i32>} : memref<1x8x2x8x2x128xbf16, #tpu.memory_space<vmem>>, vector<1x8x1x8x1x128xbf16>,
    %c1_58 = arith.constant 1 : index
    %c1_59 = arith.constant 1 : index
    %c0_60 = arith.constant 0 : index
    %c0_61 = arith.constant 0 : index
    %48 = vector.load %arg4[%c1_58, %c1_59, %c0_60, %c0_61] : memref<2x2x128x128xbf16, #tpu.memory_space<vmem>>, vector<1x1x128x128xbf16>
    %49 = vector.shape_cast %48 : vector<1x1x128x128xbf16> to vector<128x128xbf16>
    %cst_62 = arith.constant dense<0.000000e+00> : vector<64x128xf32>
    %50 = tpu.matmul %2, %49, %cst_62 {dimension_numbers = #tpu.dot_dimension_numbers<[1], [0], [0], [1], [0, 0, 1, 1], [], []>} : vector<64x128xbf16>, vector<128x128xbf16>, vector<64x128xf32> -> vector<64x128xf32>
    %c0_63 = arith.constant 0 : index
    %c0_64 = arith.constant 0 : index
    %51 = vector.load %arg5[%c0_63, %c0_64] : memref<1x128xf32, #tpu.memory_space<vmem>>, vector<1x128xf32>
    %52 = vector.broadcast %51 : vector<1x128xf32> to vector<64x128xf32>
    %53 = arith.addf %50, %52 : vector<64x128xf32>
    %54 = vector.shape_cast %53 : vector<64x128xf32> to vector<8x8x128xf32>
    %c0_65 = arith.constant 0 : index
    %c0_66 = arith.constant 0 : index
    %c1_67 = arith.constant 1 : index
    %c0_68 = arith.constant 0 : index
    %c1_69 = arith.constant 1 : index
    %c0_70 = arith.constant 0 : index
    %55 = vector.load %arg3[%c0_65, %c0_66, %c1_67, %c0_68, %c1_69, %c0_70] : memref<1x8x2x8x2x128xbf16, #tpu.memory_space<vmem>>, vector<1x8x1x8x1x128xbf16>
    %56 = vector.shape_cast %55 : vector<1x8x1x8x1x128xbf16> to vector<8x8x128xbf16>
    %57 = arith.extf %56 : vector<8x8x128xbf16> to vector<8x8x128xf32>
    %58 = arith.addf %54, %57 : vector<8x8x128xf32>
    %59 = arith.truncf %58 : vector<8x8x128xf32> to vector<8x8x128xbf16>
    %c0_71 = arith.constant 0 : index
    %c0_72 = arith.constant 0 : index
    %c1_73 = arith.constant 1 : index
    %c0_74 = arith.constant 0 : index
    %c1_75 = arith.constant 1 : index
    %c0_76 = arith.constant 0 : index
    %60 = vector.load %arg6[%c0_71, %c0_72, %c1_73, %c0_74, %c1_75, %c0_76] : memref<1x8x2x8x2x128xbf16, #tpu.memory_space<vmem>>, vector<1x8x1x8x1x128xbf16>
    %61 = vector.shape_cast %60 : vector<1x8x1x8x1x128xbf16> to vector<8x8x128xbf16>
    %62 = vector.shape_cast %59 : vector<8x8x128xbf16> to vector<1x8x1x8x1x128xbf16>
    tpu.vector_store %arg6[%c0_71, %c0_72, %c1_73, %c0_74, %c1_75, %c0_76], %62 {strides = array<i32>} : memref<1x8x2x8x2x128xbf16, #tpu.memory_space<vmem>>, vector<1x8x1x8x1x128xbf16>,
    return
  }
  func.func @transform_0(%arg0: i32, %arg1: i32) -> (i32, i32, i32, i32) {
    %c0_i32 = arith.constant 0 : i32
    %c0_i32_0 = arith.constant 0 : i32
    %c0_i32_1 = arith.constant 0 : i32
    return %arg0, %arg1, %c0_i32, %c0_i32_0 : i32, i32, i32, i32
  }
  func.func @transform_1(%arg0: i32, %arg1: i32) -> (i32, i32, i32, i32, i32, i32) {
    %c0_i32 = arith.constant 0 : i32
    %c0_i32_0 = arith.constant 0 : i32
    %c0_i32_1 = arith.constant 0 : i32
    %c0_i32_2 = arith.constant 0 : i32
    %c0_i32_3 = arith.constant 0 : i32
    return %arg0, %arg1, %c0_i32, %c0_i32_0, %c0_i32_1, %c0_i32_2 : i32, i32, i32, i32, i32, i32
  }
  func.func @transform_2(%arg0: i32, %arg1: i32) -> (i32, i32, i32, i32) {
    %c0_i32 = arith.constant 0 : i32
    %c0_i32_0 = arith.constant 0 : i32
    %c0_i32_1 = arith.constant 0 : i32
    %c0_i32_2 = arith.constant 0 : i32
    %c0_i32_3 = arith.constant 0 : i32
    return %c0_i32, %c0_i32_0, %c0_i32_1, %c0_i32_2 : i32, i32, i32, i32
  }
  func.func @transform_3(%arg0: i32, %arg1: i32) -> (i32, i32) {
    %c0_i32 = arith.constant 0 : i32
    %c0_i32_0 = arith.constant 0 : i32
    %c0_i32_1 = arith.constant 0 : i32
    return %c0_i32, %c0_i32_0 : i32, i32
  }
  func.func @transform_4(%arg0: i32, %arg1: i32) -> (i32, i32, i32, i32, i32, i32) {
    %c0_i32 = arith.constant 0 : i32
    %c0_i32_0 = arith.constant 0 : i32
    %c0_i32_1 = arith.constant 0 : i32
    %c0_i32_2 = arith.constant 0 : i32
    %c0_i32_3 = arith.constant 0 : i32
    return %arg0, %arg1, %c0_i32, %c0_i32_0, %c0_i32_1, %c0_i32_2 : i32, i32, i32, i32, i32, i32
  }
}

module attributes {stable_mosaic.version = 11 : i64} {
  func.func @_fused_conv_kernel(%arg0: i32, %arg1: i32, %arg2: memref<2x16x16x128xbf16, #tpu.memory_space<any>>, %arg3: memref<9x128x128xbf16, #tpu.memory_space<vmem>>, %arg4: memref<1x128xf32, #tpu.memory_space<vmem>>, %arg5: memref<9x128x128xbf16, #tpu.memory_space<vmem>>, %arg6: memref<1x128xf32, #tpu.memory_space<vmem>>, %arg7: memref<1x12x12x128xbf16, #tpu.memory_space<vmem>>, %arg8: memref<2x16x16x128xbf16, #tpu.memory_space<vmem>>, %arg9: memref<2x!tpu.dma_semaphore, #tpu.memory_space<semaphore_mem>>, %arg10: memref<3x224x128xf32, #tpu.memory_space<vmem>>, %arg11: memref<14x16x128xbf16, #tpu.memory_space<vmem>>, %arg12: memref<3x192x128xf32, #tpu.memory_space<vmem>>) attributes {dimension_semantics = [#tpu.dimension_semantics<parallel>, #tpu.dimension_semantics<arbitrary>], iteration_bounds = array<i64: 2, 1>, scalar_prefetch = 0 : i64, scratch_operands = 5 : i64, tpu.core_type = #tpu.core_type<tc>, window_params = [{}, {pipeline_mode = #tpu.pipeline_mode<synchronous>, transform_indices = @transform_1, window_bounds = array<i64: 9, 128, 128>}, {pipeline_mode = #tpu.pipeline_mode<synchronous>, transform_indices = @transform_2, window_bounds = array<i64: 1, 128>}, {pipeline_mode = #tpu.pipeline_mode<synchronous>, transform_indices = @transform_3, window_bounds = array<i64: 9, 128, 128>}, {pipeline_mode = #tpu.pipeline_mode<synchronous>, transform_indices = @transform_4, window_bounds = array<i64: 1, 128>}, {transform_indices = @transform_5, window_bounds = array<i64: 1, 12, 12, 128>}]} {
    %c0_i32 = arith.constant 0 : i32
    %0 = arith.cmpi eq, %arg1, %c0_i32 : i32
    %1 = arith.extui %0 : i1 to i32
    %c0_i32_0 = arith.constant 0 : i32
    %2 = arith.cmpi ne, %1, %c0_i32_0 : i32
    scf.if %2 {
      %c0_i32_215 = arith.constant 0 : i32
      %c0_i32_216 = arith.constant 0 : i32
      %c0_i32_217 = arith.constant 0 : i32
      %c0_i32_218 = arith.constant 0 : i32
      %c0_i32_219 = arith.constant 0 : i32
      %231 = tpu.memref_slice %arg2[%arg0, %c0_i32_217, %c0_i32_218, %c0_i32_219] : memref<2x16x16x128xbf16, #tpu.memory_space<any>> -> memref<1x16x16x128xbf16, #tpu.memory_space<any>>
      %232 = tpu.memref_squeeze %231 : memref<1x16x16x128xbf16, #tpu.memory_space<any>> -> memref<16x16x128xbf16, #tpu.memory_space<any>>
      %c0_i32_220 = arith.constant 0 : i32
      %c0_i32_221 = arith.constant 0 : i32
      %c0_i32_222 = arith.constant 0 : i32
      %233 = tpu.memref_slice %arg8[%c0_i32_215, %c0_i32_220, %c0_i32_221, %c0_i32_222] : memref<2x16x16x128xbf16, #tpu.memory_space<vmem>> -> memref<1x16x16x128xbf16, #tpu.memory_space<vmem>>
      %234 = tpu.memref_squeeze %233 : memref<1x16x16x128xbf16, #tpu.memory_space<vmem>> -> memref<16x16x128xbf16, #tpu.memory_space<vmem>>
      %235 = tpu.memref_slice %arg9[%c0_i32_216] : memref<2x!tpu.dma_semaphore, #tpu.memory_space<semaphore_mem>> -> memref<1x!tpu.dma_semaphore, #tpu.memory_space<semaphore_mem>>
      %236 = tpu.memref_squeeze %235 : memref<1x!tpu.dma_semaphore, #tpu.memory_space<semaphore_mem>> -> memref<!tpu.dma_semaphore, #tpu.memory_space<semaphore_mem>>
      tpu.enqueue_dma source(%232 : memref<16x16x128xbf16, #tpu.memory_space<any>>) target(%234 : memref<16x16x128xbf16, #tpu.memory_space<vmem>>) target_semaphore(%236 : memref<!tpu.dma_semaphore, #tpu.memory_space<semaphore_mem>>)
    } else {
    }
    %c2_i32 = arith.constant 2 : i32
    %c0_i32_1 = arith.constant 0 : i32
    %3 = arith.cmpi eq, %c2_i32, %c0_i32_1 : i32
    %c1_i32 = arith.constant 1 : i32
    %4 = arith.select %3, %c1_i32, %c2_i32 : i32
    %5 = arith.remsi %arg1, %4 : i32
    %c0_i32_2 = arith.constant 0 : i32
    %6 = arith.cmpi ne, %5, %c0_i32_2 : i32
    %c0_i32_3 = arith.constant 0 : i32
    %7 = arith.cmpi slt, %5, %c0_i32_3 : i32
    %c0_i32_4 = arith.constant 0 : i32
    %8 = arith.cmpi slt, %4, %c0_i32_4 : i32
    %9 = arith.xori %7, %8 : i1
    %10 = arith.andi %9, %6 : i1
    %11 = arith.addi %5, %4 : i32
    %12 = arith.select %10, %11, %5 : i32
    %c0_i32_5 = arith.constant 0 : i32
    %c0_i32_6 = arith.constant 0 : i32
    %c0_i32_7 = arith.constant 0 : i32
    %13 = tpu.memref_slice %arg2[%arg0, %c0_i32_5, %c0_i32_6, %c0_i32_7] : memref<2x16x16x128xbf16, #tpu.memory_space<any>> -> memref<1x16x16x128xbf16, #tpu.memory_space<any>>
    %14 = tpu.memref_squeeze %13 : memref<1x16x16x128xbf16, #tpu.memory_space<any>> -> memref<16x16x128xbf16, #tpu.memory_space<any>>
    %c0_i32_8 = arith.constant 0 : i32
    %c0_i32_9 = arith.constant 0 : i32
    %c0_i32_10 = arith.constant 0 : i32
    %15 = tpu.memref_slice %arg8[%12, %c0_i32_8, %c0_i32_9, %c0_i32_10] : memref<2x16x16x128xbf16, #tpu.memory_space<vmem>> -> memref<1x16x16x128xbf16, #tpu.memory_space<vmem>>
    %16 = tpu.memref_squeeze %15 : memref<1x16x16x128xbf16, #tpu.memory_space<vmem>> -> memref<16x16x128xbf16, #tpu.memory_space<vmem>>
    %17 = tpu.memref_slice %arg9[%12] : memref<2x!tpu.dma_semaphore, #tpu.memory_space<semaphore_mem>> -> memref<1x!tpu.dma_semaphore, #tpu.memory_space<semaphore_mem>>
    %18 = tpu.memref_squeeze %17 : memref<1x!tpu.dma_semaphore, #tpu.memory_space<semaphore_mem>> -> memref<!tpu.dma_semaphore, #tpu.memory_space<semaphore_mem>>
    tpu.wait_dma2 semaphore(%18 : memref<!tpu.dma_semaphore, #tpu.memory_space<semaphore_mem>>) src(%14 : memref<16x16x128xbf16, #tpu.memory_space<any>>) dst(%16 : memref<16x16x128xbf16, #tpu.memory_space<vmem>>)
    %c1_i32_11 = arith.constant 1 : i32
    %19 = arith.addi %arg1, %c1_i32_11 : i32
    %c1_i32_12 = arith.constant 1 : i32
    %20 = arith.cmpi slt, %19, %c1_i32_12 : i32
    %21 = arith.extui %20 : i1 to i32
    %c0_i32_13 = arith.constant 0 : i32
    %22 = arith.cmpi ne, %21, %c0_i32_13 : i32
    scf.if %22 {
      %c1_i32_215 = arith.constant 1 : i32
      %231 = arith.addi %arg1, %c1_i32_215 : i32
      %c1_i32_216 = arith.constant 1 : i32
      %232 = arith.subi %c1_i32_216, %12 : i32
      %c12_i32 = arith.constant 12 : i32
      %233 = arith.muli %231, %c12_i32 : i32
      %c0_i32_217 = arith.constant 0 : i32
      %c0_i32_218 = arith.constant 0 : i32
      %234 = tpu.memref_slice %arg2[%arg0, %233, %c0_i32_217, %c0_i32_218] : memref<2x16x16x128xbf16, #tpu.memory_space<any>> -> memref<1x16x16x128xbf16, #tpu.memory_space<any>>
      %235 = tpu.memref_squeeze %234 : memref<1x16x16x128xbf16, #tpu.memory_space<any>> -> memref<16x16x128xbf16, #tpu.memory_space<any>>
      %c0_i32_219 = arith.constant 0 : i32
      %c0_i32_220 = arith.constant 0 : i32
      %c0_i32_221 = arith.constant 0 : i32
      %236 = tpu.memref_slice %arg8[%232, %c0_i32_219, %c0_i32_220, %c0_i32_221] : memref<2x16x16x128xbf16, #tpu.memory_space<vmem>> -> memref<1x16x16x128xbf16, #tpu.memory_space<vmem>>
      %237 = tpu.memref_squeeze %236 : memref<1x16x16x128xbf16, #tpu.memory_space<vmem>> -> memref<16x16x128xbf16, #tpu.memory_space<vmem>>
      %238 = tpu.memref_slice %arg9[%232] : memref<2x!tpu.dma_semaphore, #tpu.memory_space<semaphore_mem>> -> memref<1x!tpu.dma_semaphore, #tpu.memory_space<semaphore_mem>>
      %239 = tpu.memref_squeeze %238 : memref<1x!tpu.dma_semaphore, #tpu.memory_space<semaphore_mem>> -> memref<!tpu.dma_semaphore, #tpu.memory_space<semaphore_mem>>
      tpu.enqueue_dma source(%235 : memref<16x16x128xbf16, #tpu.memory_space<any>>) target(%237 : memref<16x16x128xbf16, #tpu.memory_space<vmem>>) target_semaphore(%239 : memref<!tpu.dma_semaphore, #tpu.memory_space<semaphore_mem>>)
    } else {
    }
    %23 = arith.index_cast %12 : i32 to index
    %c0 = arith.constant 0 : index
    %c0_14 = arith.constant 0 : index
    %c0_15 = arith.constant 0 : index
    %24 = vector.load %arg8[%23, %c0, %c0_14, %c0_15] : memref<2x16x16x128xbf16, #tpu.memory_space<vmem>>, vector<1x14x16x128xbf16>
    %25 = vector.shape_cast %24 : vector<1x14x16x128xbf16> to vector<14x16x128xbf16>
    %26 = vector.shape_cast %25 : vector<14x16x128xbf16> to vector<224x128xbf16>
    %c0_16 = arith.constant 0 : index
    %c0_17 = arith.constant 0 : index
    %c0_18 = arith.constant 0 : index
    %27 = vector.load %arg3[%c0_16, %c0_17, %c0_18] : memref<9x128x128xbf16, #tpu.memory_space<vmem>>, vector<1x128x128xbf16>
    %28 = vector.shape_cast %27 : vector<1x128x128xbf16> to vector<128x128xbf16>
    %cst = arith.constant dense<0.000000e+00> : vector<224x128xf32>
    %29 = tpu.matmul %26, %28, %cst {dimension_numbers = #tpu.dot_dimension_numbers<[1], [0], [0], [1], [0, 0, 1, 1], [], []>} : vector<224x128xbf16>, vector<128x128xbf16>, vector<224x128xf32> -> vector<224x128xf32>
    %c0_19 = arith.constant 0 : index
    %c0_20 = arith.constant 0 : index
    %c0_21 = arith.constant 0 : index
    %30 = vector.load %arg10[%c0_19, %c0_20, %c0_21] : memref<3x224x128xf32, #tpu.memory_space<vmem>>, vector<1x224x128xf32>
    %31 = vector.shape_cast %30 : vector<1x224x128xf32> to vector<224x128xf32>
    %32 = vector.shape_cast %29 : vector<224x128xf32> to vector<1x224x128xf32>
    tpu.vector_store %arg10[%c0_19, %c0_20, %c0_21], %32 {strides = array<i32>} : memref<3x224x128xf32, #tpu.memory_space<vmem>>, vector<1x224x128xf32>,
    %c1 = arith.constant 1 : index
    %c0_22 = arith.constant 0 : index
    %c0_23 = arith.constant 0 : index
    %33 = vector.load %arg3[%c1, %c0_22, %c0_23] : memref<9x128x128xbf16, #tpu.memory_space<vmem>>, vector<1x128x128xbf16>
    %34 = vector.shape_cast %33 : vector<1x128x128xbf16> to vector<128x128xbf16>
    %cst_24 = arith.constant dense<0.000000e+00> : vector<224x128xf32>
    %35 = tpu.matmul %26, %34, %cst_24 {dimension_numbers = #tpu.dot_dimension_numbers<[1], [0], [0], [1], [0, 0, 1, 1], [], []>} : vector<224x128xbf16>, vector<128x128xbf16>, vector<224x128xf32> -> vector<224x128xf32>
    %c1_25 = arith.constant 1 : index
    %c0_26 = arith.constant 0 : index
    %c0_27 = arith.constant 0 : index
    %36 = vector.load %arg10[%c1_25, %c0_26, %c0_27] : memref<3x224x128xf32, #tpu.memory_space<vmem>>, vector<1x224x128xf32>
    %37 = vector.shape_cast %36 : vector<1x224x128xf32> to vector<224x128xf32>
    %38 = vector.shape_cast %35 : vector<224x128xf32> to vector<1x224x128xf32>
    tpu.vector_store %arg10[%c1_25, %c0_26, %c0_27], %38 {strides = array<i32>} : memref<3x224x128xf32, #tpu.memory_space<vmem>>, vector<1x224x128xf32>,
    %c2 = arith.constant 2 : index
    %c0_28 = arith.constant 0 : index
    %c0_29 = arith.constant 0 : index
    %39 = vector.load %arg3[%c2, %c0_28, %c0_29] : memref<9x128x128xbf16, #tpu.memory_space<vmem>>, vector<1x128x128xbf16>
    %40 = vector.shape_cast %39 : vector<1x128x128xbf16> to vector<128x128xbf16>
    %cst_30 = arith.constant dense<0.000000e+00> : vector<224x128xf32>
    %41 = tpu.matmul %26, %40, %cst_30 {dimension_numbers = #tpu.dot_dimension_numbers<[1], [0], [0], [1], [0, 0, 1, 1], [], []>} : vector<224x128xbf16>, vector<128x128xbf16>, vector<224x128xf32> -> vector<224x128xf32>
    %c2_31 = arith.constant 2 : index
    %c0_32 = arith.constant 0 : index
    %c0_33 = arith.constant 0 : index
    %42 = vector.load %arg10[%c2_31, %c0_32, %c0_33] : memref<3x224x128xf32, #tpu.memory_space<vmem>>, vector<1x224x128xf32>
    %43 = vector.shape_cast %42 : vector<1x224x128xf32> to vector<224x128xf32>
    %44 = vector.shape_cast %41 : vector<224x128xf32> to vector<1x224x128xf32>
    tpu.vector_store %arg10[%c2_31, %c0_32, %c0_33], %44 {strides = array<i32>} : memref<3x224x128xf32, #tpu.memory_space<vmem>>, vector<1x224x128xf32>,
    %45 = arith.index_cast %12 : i32 to index
    %c1_34 = arith.constant 1 : index
    %c0_35 = arith.constant 0 : index
    %c0_36 = arith.constant 0 : index
    %46 = vector.load %arg8[%45, %c1_34, %c0_35, %c0_36] : memref<2x16x16x128xbf16, #tpu.memory_space<vmem>>, vector<1x14x16x128xbf16>
    %47 = vector.shape_cast %46 : vector<1x14x16x128xbf16> to vector<14x16x128xbf16>
    %48 = vector.shape_cast %47 : vector<14x16x128xbf16> to vector<224x128xbf16>
    %c3 = arith.constant 3 : index
    %c0_37 = arith.constant 0 : index
    %c0_38 = arith.constant 0 : index
    %49 = vector.load %arg3[%c3, %c0_37, %c0_38] : memref<9x128x128xbf16, #tpu.memory_space<vmem>>, vector<1x128x128xbf16>
    %50 = vector.shape_cast %49 : vector<1x128x128xbf16> to vector<128x128xbf16>
    %cst_39 = arith.constant dense<0.000000e+00> : vector<224x128xf32>
    %51 = tpu.matmul %48, %50, %cst_39 {dimension_numbers = #tpu.dot_dimension_numbers<[1], [0], [0], [1], [0, 0, 1, 1], [], []>} : vector<224x128xbf16>, vector<128x128xbf16>, vector<224x128xf32> -> vector<224x128xf32>
    %c0_40 = arith.constant 0 : index
    %c0_41 = arith.constant 0 : index
    %c0_42 = arith.constant 0 : index
    %52 = vector.load %arg10[%c0_40, %c0_41, %c0_42] : memref<3x224x128xf32, #tpu.memory_space<vmem>>, vector<1x224x128xf32>
    %53 = vector.shape_cast %52 : vector<1x224x128xf32> to vector<224x128xf32>
    %54 = arith.addf %53, %51 : vector<224x128xf32>
    %c0_43 = arith.constant 0 : index
    %c0_44 = arith.constant 0 : index
    %c0_45 = arith.constant 0 : index
    %55 = vector.load %arg10[%c0_43, %c0_44, %c0_45] : memref<3x224x128xf32, #tpu.memory_space<vmem>>, vector<1x224x128xf32>
    %56 = vector.shape_cast %55 : vector<1x224x128xf32> to vector<224x128xf32>
    %57 = vector.shape_cast %54 : vector<224x128xf32> to vector<1x224x128xf32>
    tpu.vector_store %arg10[%c0_43, %c0_44, %c0_45], %57 {strides = array<i32>} : memref<3x224x128xf32, #tpu.memory_space<vmem>>, vector<1x224x128xf32>,
    %c4 = arith.constant 4 : index
    %c0_46 = arith.constant 0 : index
    %c0_47 = arith.constant 0 : index
    %58 = vector.load %arg3[%c4, %c0_46, %c0_47] : memref<9x128x128xbf16, #tpu.memory_space<vmem>>, vector<1x128x128xbf16>
    %59 = vector.shape_cast %58 : vector<1x128x128xbf16> to vector<128x128xbf16>
    %cst_48 = arith.constant dense<0.000000e+00> : vector<224x128xf32>
    %60 = tpu.matmul %48, %59, %cst_48 {dimension_numbers = #tpu.dot_dimension_numbers<[1], [0], [0], [1], [0, 0, 1, 1], [], []>} : vector<224x128xbf16>, vector<128x128xbf16>, vector<224x128xf32> -> vector<224x128xf32>
    %c1_49 = arith.constant 1 : index
    %c0_50 = arith.constant 0 : index
    %c0_51 = arith.constant 0 : index
    %61 = vector.load %arg10[%c1_49, %c0_50, %c0_51] : memref<3x224x128xf32, #tpu.memory_space<vmem>>, vector<1x224x128xf32>
    %62 = vector.shape_cast %61 : vector<1x224x128xf32> to vector<224x128xf32>
    %63 = arith.addf %62, %60 : vector<224x128xf32>
    %c1_52 = arith.constant 1 : index
    %c0_53 = arith.constant 0 : index
    %c0_54 = arith.constant 0 : index
    %64 = vector.load %arg10[%c1_52, %c0_53, %c0_54] : memref<3x224x128xf32, #tpu.memory_space<vmem>>, vector<1x224x128xf32>
    %65 = vector.shape_cast %64 : vector<1x224x128xf32> to vector<224x128xf32>
    %66 = vector.shape_cast %63 : vector<224x128xf32> to vector<1x224x128xf32>
    tpu.vector_store %arg10[%c1_52, %c0_53, %c0_54], %66 {strides = array<i32>} : memref<3x224x128xf32, #tpu.memory_space<vmem>>, vector<1x224x128xf32>,
    %c5 = arith.constant 5 : index
    %c0_55 = arith.constant 0 : index
    %c0_56 = arith.constant 0 : index
    %67 = vector.load %arg3[%c5, %c0_55, %c0_56] : memref<9x128x128xbf16, #tpu.memory_space<vmem>>, vector<1x128x128xbf16>
    %68 = vector.shape_cast %67 : vector<1x128x128xbf16> to vector<128x128xbf16>
    %cst_57 = arith.constant dense<0.000000e+00> : vector<224x128xf32>
    %69 = tpu.matmul %48, %68, %cst_57 {dimension_numbers = #tpu.dot_dimension_numbers<[1], [0], [0], [1], [0, 0, 1, 1], [], []>} : vector<224x128xbf16>, vector<128x128xbf16>, vector<224x128xf32> -> vector<224x128xf32>
    %c2_58 = arith.constant 2 : index
    %c0_59 = arith.constant 0 : index
    %c0_60 = arith.constant 0 : index
    %70 = vector.load %arg10[%c2_58, %c0_59, %c0_60] : memref<3x224x128xf32, #tpu.memory_space<vmem>>, vector<1x224x128xf32>
    %71 = vector.shape_cast %70 : vector<1x224x128xf32> to vector<224x128xf32>
    %72 = arith.addf %71, %69 : vector<224x128xf32>
    %c2_61 = arith.constant 2 : index
    %c0_62 = arith.constant 0 : index
    %c0_63 = arith.constant 0 : index
    %73 = vector.load %arg10[%c2_61, %c0_62, %c0_63] : memref<3x224x128xf32, #tpu.memory_space<vmem>>, vector<1x224x128xf32>
    %74 = vector.shape_cast %73 : vector<1x224x128xf32> to vector<224x128xf32>
    %75 = vector.shape_cast %72 : vector<224x128xf32> to vector<1x224x128xf32>
    tpu.vector_store %arg10[%c2_61, %c0_62, %c0_63], %75 {strides = array<i32>} : memref<3x224x128xf32, #tpu.memory_space<vmem>>, vector<1x224x128xf32>,
    %76 = arith.index_cast %12 : i32 to index
    %c2_64 = arith.constant 2 : index
    %c0_65 = arith.constant 0 : index
    %c0_66 = arith.constant 0 : index
    %77 = vector.load %arg8[%76, %c2_64, %c0_65, %c0_66] : memref<2x16x16x128xbf16, #tpu.memory_space<vmem>>, vector<1x14x16x128xbf16>
    %78 = vector.shape_cast %77 : vector<1x14x16x128xbf16> to vector<14x16x128xbf16>
    %79 = vector.shape_cast %78 : vector<14x16x128xbf16> to vector<224x128xbf16>
    %c6 = arith.constant 6 : index
    %c0_67 = arith.constant 0 : index
    %c0_68 = arith.constant 0 : index
    %80 = vector.load %arg3[%c6, %c0_67, %c0_68] : memref<9x128x128xbf16, #tpu.memory_space<vmem>>, vector<1x128x128xbf16>
    %81 = vector.shape_cast %80 : vector<1x128x128xbf16> to vector<128x128xbf16>
    %cst_69 = arith.constant dense<0.000000e+00> : vector<224x128xf32>
    %82 = tpu.matmul %79, %81, %cst_69 {dimension_numbers = #tpu.dot_dimension_numbers<[1], [0], [0], [1], [0, 0, 1, 1], [], []>} : vector<224x128xbf16>, vector<128x128xbf16>, vector<224x128xf32> -> vector<224x128xf32>
    %c0_70 = arith.constant 0 : index
    %c0_71 = arith.constant 0 : index
    %c0_72 = arith.constant 0 : index
    %83 = vector.load %arg10[%c0_70, %c0_71, %c0_72] : memref<3x224x128xf32, #tpu.memory_space<vmem>>, vector<1x224x128xf32>
    %84 = vector.shape_cast %83 : vector<1x224x128xf32> to vector<224x128xf32>
    %85 = arith.addf %84, %82 : vector<224x128xf32>
    %c0_73 = arith.constant 0 : index
    %c0_74 = arith.constant 0 : index
    %c0_75 = arith.constant 0 : index
    %86 = vector.load %arg10[%c0_73, %c0_74, %c0_75] : memref<3x224x128xf32, #tpu.memory_space<vmem>>, vector<1x224x128xf32>
    %87 = vector.shape_cast %86 : vector<1x224x128xf32> to vector<224x128xf32>
    %88 = vector.shape_cast %85 : vector<224x128xf32> to vector<1x224x128xf32>
    tpu.vector_store %arg10[%c0_73, %c0_74, %c0_75], %88 {strides = array<i32>} : memref<3x224x128xf32, #tpu.memory_space<vmem>>, vector<1x224x128xf32>,
    %c7 = arith.constant 7 : index
    %c0_76 = arith.constant 0 : index
    %c0_77 = arith.constant 0 : index
    %89 = vector.load %arg3[%c7, %c0_76, %c0_77] : memref<9x128x128xbf16, #tpu.memory_space<vmem>>, vector<1x128x128xbf16>
    %90 = vector.shape_cast %89 : vector<1x128x128xbf16> to vector<128x128xbf16>
    %cst_78 = arith.constant dense<0.000000e+00> : vector<224x128xf32>
    %91 = tpu.matmul %79, %90, %cst_78 {dimension_numbers = #tpu.dot_dimension_numbers<[1], [0], [0], [1], [0, 0, 1, 1], [], []>} : vector<224x128xbf16>, vector<128x128xbf16>, vector<224x128xf32> -> vector<224x128xf32>
    %c1_79 = arith.constant 1 : index
    %c0_80 = arith.constant 0 : index
    %c0_81 = arith.constant 0 : index
    %92 = vector.load %arg10[%c1_79, %c0_80, %c0_81] : memref<3x224x128xf32, #tpu.memory_space<vmem>>, vector<1x224x128xf32>
    %93 = vector.shape_cast %92 : vector<1x224x128xf32> to vector<224x128xf32>
    %94 = arith.addf %93, %91 : vector<224x128xf32>
    %c1_82 = arith.constant 1 : index
    %c0_83 = arith.constant 0 : index
    %c0_84 = arith.constant 0 : index
    %95 = vector.load %arg10[%c1_82, %c0_83, %c0_84] : memref<3x224x128xf32, #tpu.memory_space<vmem>>, vector<1x224x128xf32>
    %96 = vector.shape_cast %95 : vector<1x224x128xf32> to vector<224x128xf32>
    %97 = vector.shape_cast %94 : vector<224x128xf32> to vector<1x224x128xf32>
    tpu.vector_store %arg10[%c1_82, %c0_83, %c0_84], %97 {strides = array<i32>} : memref<3x224x128xf32, #tpu.memory_space<vmem>>, vector<1x224x128xf32>,
    %c8 = arith.constant 8 : index
    %c0_85 = arith.constant 0 : index
    %c0_86 = arith.constant 0 : index
    %98 = vector.load %arg3[%c8, %c0_85, %c0_86] : memref<9x128x128xbf16, #tpu.memory_space<vmem>>, vector<1x128x128xbf16>
    %99 = vector.shape_cast %98 : vector<1x128x128xbf16> to vector<128x128xbf16>
    %cst_87 = arith.constant dense<0.000000e+00> : vector<224x128xf32>
    %100 = tpu.matmul %79, %99, %cst_87 {dimension_numbers = #tpu.dot_dimension_numbers<[1], [0], [0], [1], [0, 0, 1, 1], [], []>} : vector<224x128xbf16>, vector<128x128xbf16>, vector<224x128xf32> -> vector<224x128xf32>
    %c2_88 = arith.constant 2 : index
    %c0_89 = arith.constant 0 : index
    %c0_90 = arith.constant 0 : index
    %101 = vector.load %arg10[%c2_88, %c0_89, %c0_90] : memref<3x224x128xf32, #tpu.memory_space<vmem>>, vector<1x224x128xf32>
    %102 = vector.shape_cast %101 : vector<1x224x128xf32> to vector<224x128xf32>
    %103 = arith.addf %102, %100 : vector<224x128xf32>
    %c2_91 = arith.constant 2 : index
    %c0_92 = arith.constant 0 : index
    %c0_93 = arith.constant 0 : index
    %104 = vector.load %arg10[%c2_91, %c0_92, %c0_93] : memref<3x224x128xf32, #tpu.memory_space<vmem>>, vector<1x224x128xf32>
    %105 = vector.shape_cast %104 : vector<1x224x128xf32> to vector<224x128xf32>
    %106 = vector.shape_cast %103 : vector<224x128xf32> to vector<1x224x128xf32>
    tpu.vector_store %arg10[%c2_91, %c0_92, %c0_93], %106 {strides = array<i32>} : memref<3x224x128xf32, #tpu.memory_space<vmem>>, vector<1x224x128xf32>,
    %c0_94 = arith.constant 0 : index
    %c0_95 = arith.constant 0 : index
    %c0_96 = arith.constant 0 : index
    %107 = vector.load %arg10[%c0_94, %c0_95, %c0_96] : memref<3x224x128xf32, #tpu.memory_space<vmem>>, vector<1x224x128xf32>
    %108 = vector.shape_cast %107 : vector<1x224x128xf32> to vector<224x128xf32>
    %109 = vector.shape_cast %108 : vector<224x128xf32> to vector<14x16x128xf32>
    %110 = vector.extract_strided_slice %109 {offsets = [0, 0, 0], sizes = [14, 14, 128], strides = [1, 1, 1]} : vector<14x16x128xf32> to vector<14x14x128xf32>
    %c1_97 = arith.constant 1 : index
    %c0_98 = arith.constant 0 : index
    %c0_99 = arith.constant 0 : index
    %111 = vector.load %arg10[%c1_97, %c0_98, %c0_99] : memref<3x224x128xf32, #tpu.memory_space<vmem>>, vector<1x224x128xf32>
    %112 = vector.shape_cast %111 : vector<1x224x128xf32> to vector<224x128xf32>
    %113 = vector.shape_cast %112 : vector<224x128xf32> to vector<14x16x128xf32>
    %114 = vector.extract_strided_slice %113 {offsets = [0, 1, 0], sizes = [14, 14, 128], strides = [1, 1, 1]} : vector<14x16x128xf32> to vector<14x14x128xf32>
    %115 = arith.addf %110, %114 : vector<14x14x128xf32>
    %c2_100 = arith.constant 2 : index
    %c0_101 = arith.constant 0 : index
    %c0_102 = arith.constant 0 : index
    %116 = vector.load %arg10[%c2_100, %c0_101, %c0_102] : memref<3x224x128xf32, #tpu.memory_space<vmem>>, vector<1x224x128xf32>
    %117 = vector.shape_cast %116 : vector<1x224x128xf32> to vector<224x128xf32>
    %118 = vector.shape_cast %117 : vector<224x128xf32> to vector<14x16x128xf32>
    %119 = vector.extract_strided_slice %118 {offsets = [0, 2, 0], sizes = [14, 14, 128], strides = [1, 1, 1]} : vector<14x16x128xf32> to vector<14x14x128xf32>
    %120 = arith.addf %115, %119 : vector<14x14x128xf32>
    %c0_103 = arith.constant 0 : index
    %c0_104 = arith.constant 0 : index
    %121 = vector.load %arg4[%c0_103, %c0_104] : memref<1x128xf32, #tpu.memory_space<vmem>>, vector<1x128xf32>
    %122 = vector.shape_cast %121 : vector<1x128xf32> to vector<1x1x128xf32>
    %123 = vector.broadcast %122 : vector<1x1x128xf32> to vector<14x14x128xf32>
    %124 = arith.addf %120, %123 : vector<14x14x128xf32>
    %cst_105 = arith.constant 0.000000e+00 : f32
    %125 = vector.broadcast %cst_105 : f32 to vector<14x14x128xf32>
    %126 = arith.maximumf %124, %125 : vector<14x14x128xf32>
    %127 = arith.truncf %126 : vector<14x14x128xf32> to vector<14x14x128xbf16>
    %c0_106 = arith.constant 0 : index
    %c0_107 = arith.constant 0 : index
    %c0_108 = arith.constant 0 : index
    %128 = vector.load %arg11[%c0_106, %c0_107, %c0_108] : memref<14x16x128xbf16, #tpu.memory_space<vmem>>, vector<14x14x128xbf16>
    tpu.vector_store %arg11[%c0_106, %c0_107, %c0_108], %127 {strides = array<i32>} : memref<14x16x128xbf16, #tpu.memory_space<vmem>>, vector<14x14x128xbf16>,
    %c0_109 = arith.constant 0 : index
    %c0_110 = arith.constant 0 : index
    %c0_111 = arith.constant 0 : index
    %129 = vector.load %arg11[%c0_109, %c0_110, %c0_111] : memref<14x16x128xbf16, #tpu.memory_space<vmem>>, vector<12x16x128xbf16>
    %130 = vector.shape_cast %129 : vector<12x16x128xbf16> to vector<192x128xbf16>
    %c0_112 = arith.constant 0 : index
    %c0_113 = arith.constant 0 : index
    %c0_114 = arith.constant 0 : index
    %131 = vector.load %arg5[%c0_112, %c0_113, %c0_114] : memref<9x128x128xbf16, #tpu.memory_space<vmem>>, vector<1x128x128xbf16>
    %132 = vector.shape_cast %131 : vector<1x128x128xbf16> to vector<128x128xbf16>
    %cst_115 = arith.constant dense<0.000000e+00> : vector<192x128xf32>
    %133 = tpu.matmul %130, %132, %cst_115 {dimension_numbers = #tpu.dot_dimension_numbers<[1], [0], [0], [1], [0, 0, 1, 1], [], []>} : vector<192x128xbf16>, vector<128x128xbf16>, vector<192x128xf32> -> vector<192x128xf32>
    %c0_116 = arith.constant 0 : index
    %c0_117 = arith.constant 0 : index
    %c0_118 = arith.constant 0 : index
    %134 = vector.load %arg12[%c0_116, %c0_117, %c0_118] : memref<3x192x128xf32, #tpu.memory_space<vmem>>, vector<1x192x128xf32>
    %135 = vector.shape_cast %134 : vector<1x192x128xf32> to vector<192x128xf32>
    %136 = vector.shape_cast %133 : vector<192x128xf32> to vector<1x192x128xf32>
    tpu.vector_store %arg12[%c0_116, %c0_117, %c0_118], %136 {strides = array<i32>} : memref<3x192x128xf32, #tpu.memory_space<vmem>>, vector<1x192x128xf32>,
    %c1_119 = arith.constant 1 : index
    %c0_120 = arith.constant 0 : index
    %c0_121 = arith.constant 0 : index
    %137 = vector.load %arg5[%c1_119, %c0_120, %c0_121] : memref<9x128x128xbf16, #tpu.memory_space<vmem>>, vector<1x128x128xbf16>
    %138 = vector.shape_cast %137 : vector<1x128x128xbf16> to vector<128x128xbf16>
    %cst_122 = arith.constant dense<0.000000e+00> : vector<192x128xf32>
    %139 = tpu.matmul %130, %138, %cst_122 {dimension_numbers = #tpu.dot_dimension_numbers<[1], [0], [0], [1], [0, 0, 1, 1], [], []>} : vector<192x128xbf16>, vector<128x128xbf16>, vector<192x128xf32> -> vector<192x128xf32>
    %c1_123 = arith.constant 1 : index
    %c0_124 = arith.constant 0 : index
    %c0_125 = arith.constant 0 : index
    %140 = vector.load %arg12[%c1_123, %c0_124, %c0_125] : memref<3x192x128xf32, #tpu.memory_space<vmem>>, vector<1x192x128xf32>
    %141 = vector.shape_cast %140 : vector<1x192x128xf32> to vector<192x128xf32>
    %142 = vector.shape_cast %139 : vector<192x128xf32> to vector<1x192x128xf32>
    tpu.vector_store %arg12[%c1_123, %c0_124, %c0_125], %142 {strides = array<i32>} : memref<3x192x128xf32, #tpu.memory_space<vmem>>, vector<1x192x128xf32>,
    %c2_126 = arith.constant 2 : index
    %c0_127 = arith.constant 0 : index
    %c0_128 = arith.constant 0 : index
    %143 = vector.load %arg5[%c2_126, %c0_127, %c0_128] : memref<9x128x128xbf16, #tpu.memory_space<vmem>>, vector<1x128x128xbf16>
    %144 = vector.shape_cast %143 : vector<1x128x128xbf16> to vector<128x128xbf16>
    %cst_129 = arith.constant dense<0.000000e+00> : vector<192x128xf32>
    %145 = tpu.matmul %130, %144, %cst_129 {dimension_numbers = #tpu.dot_dimension_numbers<[1], [0], [0], [1], [0, 0, 1, 1], [], []>} : vector<192x128xbf16>, vector<128x128xbf16>, vector<192x128xf32> -> vector<192x128xf32>
    %c2_130 = arith.constant 2 : index
    %c0_131 = arith.constant 0 : index
    %c0_132 = arith.constant 0 : index
    %146 = vector.load %arg12[%c2_130, %c0_131, %c0_132] : memref<3x192x128xf32, #tpu.memory_space<vmem>>, vector<1x192x128xf32>
    %147 = vector.shape_cast %146 : vector<1x192x128xf32> to vector<192x128xf32>
    %148 = vector.shape_cast %145 : vector<192x128xf32> to vector<1x192x128xf32>
    tpu.vector_store %arg12[%c2_130, %c0_131, %c0_132], %148 {strides = array<i32>} : memref<3x192x128xf32, #tpu.memory_space<vmem>>, vector<1x192x128xf32>,
    %c1_133 = arith.constant 1 : index
    %c0_134 = arith.constant 0 : index
    %c0_135 = arith.constant 0 : index
    %149 = vector.load %arg11[%c1_133, %c0_134, %c0_135] : memref<14x16x128xbf16, #tpu.memory_space<vmem>>, vector<12x16x128xbf16>
    %150 = vector.shape_cast %149 : vector<12x16x128xbf16> to vector<192x128xbf16>
    %c3_136 = arith.constant 3 : index
    %c0_137 = arith.constant 0 : index
    %c0_138 = arith.constant 0 : index
    %151 = vector.load %arg5[%c3_136, %c0_137, %c0_138] : memref<9x128x128xbf16, #tpu.memory_space<vmem>>, vector<1x128x128xbf16>
    %152 = vector.shape_cast %151 : vector<1x128x128xbf16> to vector<128x128xbf16>
    %cst_139 = arith.constant dense<0.000000e+00> : vector<192x128xf32>
    %153 = tpu.matmul %150, %152, %cst_139 {dimension_numbers = #tpu.dot_dimension_numbers<[1], [0], [0], [1], [0, 0, 1, 1], [], []>} : vector<192x128xbf16>, vector<128x128xbf16>, vector<192x128xf32> -> vector<192x128xf32>
    %c0_140 = arith.constant 0 : index
    %c0_141 = arith.constant 0 : index
    %c0_142 = arith.constant 0 : index
    %154 = vector.load %arg12[%c0_140, %c0_141, %c0_142] : memref<3x192x128xf32, #tpu.memory_space<vmem>>, vector<1x192x128xf32>
    %155 = vector.shape_cast %154 : vector<1x192x128xf32> to vector<192x128xf32>
    %156 = arith.addf %155, %153 : vector<192x128xf32>
    %c0_143 = arith.constant 0 : index
    %c0_144 = arith.constant 0 : index
    %c0_145 = arith.constant 0 : index
    %157 = vector.load %arg12[%c0_143, %c0_144, %c0_145] : memref<3x192x128xf32, #tpu.memory_space<vmem>>, vector<1x192x128xf32>
    %158 = vector.shape_cast %157 : vector<1x192x128xf32> to vector<192x128xf32>
    %159 = vector.shape_cast %156 : vector<192x128xf32> to vector<1x192x128xf32>
    tpu.vector_store %arg12[%c0_143, %c0_144, %c0_145], %159 {strides = array<i32>} : memref<3x192x128xf32, #tpu.memory_space<vmem>>, vector<1x192x128xf32>,
    %c4_146 = arith.constant 4 : index
    %c0_147 = arith.constant 0 : index
    %c0_148 = arith.constant 0 : index
    %160 = vector.load %arg5[%c4_146, %c0_147, %c0_148] : memref<9x128x128xbf16, #tpu.memory_space<vmem>>, vector<1x128x128xbf16>
    %161 = vector.shape_cast %160 : vector<1x128x128xbf16> to vector<128x128xbf16>
    %cst_149 = arith.constant dense<0.000000e+00> : vector<192x128xf32>
    %162 = tpu.matmul %150, %161, %cst_149 {dimension_numbers = #tpu.dot_dimension_numbers<[1], [0], [0], [1], [0, 0, 1, 1], [], []>} : vector<192x128xbf16>, vector<128x128xbf16>, vector<192x128xf32> -> vector<192x128xf32>
    %c1_150 = arith.constant 1 : index
    %c0_151 = arith.constant 0 : index
    %c0_152 = arith.constant 0 : index
    %163 = vector.load %arg12[%c1_150, %c0_151, %c0_152] : memref<3x192x128xf32, #tpu.memory_space<vmem>>, vector<1x192x128xf32>
    %164 = vector.shape_cast %163 : vector<1x192x128xf32> to vector<192x128xf32>
    %165 = arith.addf %164, %162 : vector<192x128xf32>
    %c1_153 = arith.constant 1 : index
    %c0_154 = arith.constant 0 : index
    %c0_155 = arith.constant 0 : index
    %166 = vector.load %arg12[%c1_153, %c0_154, %c0_155] : memref<3x192x128xf32, #tpu.memory_space<vmem>>, vector<1x192x128xf32>
    %167 = vector.shape_cast %166 : vector<1x192x128xf32> to vector<192x128xf32>
    %168 = vector.shape_cast %165 : vector<192x128xf32> to vector<1x192x128xf32>
    tpu.vector_store %arg12[%c1_153, %c0_154, %c0_155], %168 {strides = array<i32>} : memref<3x192x128xf32, #tpu.memory_space<vmem>>, vector<1x192x128xf32>,
    %c5_156 = arith.constant 5 : index
    %c0_157 = arith.constant 0 : index
    %c0_158 = arith.constant 0 : index
    %169 = vector.load %arg5[%c5_156, %c0_157, %c0_158] : memref<9x128x128xbf16, #tpu.memory_space<vmem>>, vector<1x128x128xbf16>
    %170 = vector.shape_cast %169 : vector<1x128x128xbf16> to vector<128x128xbf16>
    %cst_159 = arith.constant dense<0.000000e+00> : vector<192x128xf32>
    %171 = tpu.matmul %150, %170, %cst_159 {dimension_numbers = #tpu.dot_dimension_numbers<[1], [0], [0], [1], [0, 0, 1, 1], [], []>} : vector<192x128xbf16>, vector<128x128xbf16>, vector<192x128xf32> -> vector<192x128xf32>
    %c2_160 = arith.constant 2 : index
    %c0_161 = arith.constant 0 : index
    %c0_162 = arith.constant 0 : index
    %172 = vector.load %arg12[%c2_160, %c0_161, %c0_162] : memref<3x192x128xf32, #tpu.memory_space<vmem>>, vector<1x192x128xf32>
    %173 = vector.shape_cast %172 : vector<1x192x128xf32> to vector<192x128xf32>
    %174 = arith.addf %173, %171 : vector<192x128xf32>
    %c2_163 = arith.constant 2 : index
    %c0_164 = arith.constant 0 : index
    %c0_165 = arith.constant 0 : index
    %175 = vector.load %arg12[%c2_163, %c0_164, %c0_165] : memref<3x192x128xf32, #tpu.memory_space<vmem>>, vector<1x192x128xf32>
    %176 = vector.shape_cast %175 : vector<1x192x128xf32> to vector<192x128xf32>
    %177 = vector.shape_cast %174 : vector<192x128xf32> to vector<1x192x128xf32>
    tpu.vector_store %arg12[%c2_163, %c0_164, %c0_165], %177 {strides = array<i32>} : memref<3x192x128xf32, #tpu.memory_space<vmem>>, vector<1x192x128xf32>,
    %c2_166 = arith.constant 2 : index
    %c0_167 = arith.constant 0 : index
    %c0_168 = arith.constant 0 : index
    %178 = vector.load %arg11[%c2_166, %c0_167, %c0_168] : memref<14x16x128xbf16, #tpu.memory_space<vmem>>, vector<12x16x128xbf16>
    %179 = vector.shape_cast %178 : vector<12x16x128xbf16> to vector<192x128xbf16>
    %c6_169 = arith.constant 6 : index
    %c0_170 = arith.constant 0 : index
    %c0_171 = arith.constant 0 : index
    %180 = vector.load %arg5[%c6_169, %c0_170, %c0_171] : memref<9x128x128xbf16, #tpu.memory_space<vmem>>, vector<1x128x128xbf16>
    %181 = vector.shape_cast %180 : vector<1x128x128xbf16> to vector<128x128xbf16>
    %cst_172 = arith.constant dense<0.000000e+00> : vector<192x128xf32>
    %182 = tpu.matmul %179, %181, %cst_172 {dimension_numbers = #tpu.dot_dimension_numbers<[1], [0], [0], [1], [0, 0, 1, 1], [], []>} : vector<192x128xbf16>, vector<128x128xbf16>, vector<192x128xf32> -> vector<192x128xf32>
    %c0_173 = arith.constant 0 : index
    %c0_174 = arith.constant 0 : index
    %c0_175 = arith.constant 0 : index
    %183 = vector.load %arg12[%c0_173, %c0_174, %c0_175] : memref<3x192x128xf32, #tpu.memory_space<vmem>>, vector<1x192x128xf32>
    %184 = vector.shape_cast %183 : vector<1x192x128xf32> to vector<192x128xf32>
    %185 = arith.addf %184, %182 : vector<192x128xf32>
    %c0_176 = arith.constant 0 : index
    %c0_177 = arith.constant 0 : index
    %c0_178 = arith.constant 0 : index
    %186 = vector.load %arg12[%c0_176, %c0_177, %c0_178] : memref<3x192x128xf32, #tpu.memory_space<vmem>>, vector<1x192x128xf32>
    %187 = vector.shape_cast %186 : vector<1x192x128xf32> to vector<192x128xf32>
    %188 = vector.shape_cast %185 : vector<192x128xf32> to vector<1x192x128xf32>
    tpu.vector_store %arg12[%c0_176, %c0_177, %c0_178], %188 {strides = array<i32>} : memref<3x192x128xf32, #tpu.memory_space<vmem>>, vector<1x192x128xf32>,
    %c7_179 = arith.constant 7 : index
    %c0_180 = arith.constant 0 : index
    %c0_181 = arith.constant 0 : index
    %189 = vector.load %arg5[%c7_179, %c0_180, %c0_181] : memref<9x128x128xbf16, #tpu.memory_space<vmem>>, vector<1x128x128xbf16>
    %190 = vector.shape_cast %189 : vector<1x128x128xbf16> to vector<128x128xbf16>
    %cst_182 = arith.constant dense<0.000000e+00> : vector<192x128xf32>
    %191 = tpu.matmul %179, %190, %cst_182 {dimension_numbers = #tpu.dot_dimension_numbers<[1], [0], [0], [1], [0, 0, 1, 1], [], []>} : vector<192x128xbf16>, vector<128x128xbf16>, vector<192x128xf32> -> vector<192x128xf32>
    %c1_183 = arith.constant 1 : index
    %c0_184 = arith.constant 0 : index
    %c0_185 = arith.constant 0 : index
    %192 = vector.load %arg12[%c1_183, %c0_184, %c0_185] : memref<3x192x128xf32, #tpu.memory_space<vmem>>, vector<1x192x128xf32>
    %193 = vector.shape_cast %192 : vector<1x192x128xf32> to vector<192x128xf32>
    %194 = arith.addf %193, %191 : vector<192x128xf32>
    %c1_186 = arith.constant 1 : index
    %c0_187 = arith.constant 0 : index
    %c0_188 = arith.constant 0 : index
    %195 = vector.load %arg12[%c1_186, %c0_187, %c0_188] : memref<3x192x128xf32, #tpu.memory_space<vmem>>, vector<1x192x128xf32>
    %196 = vector.shape_cast %195 : vector<1x192x128xf32> to vector<192x128xf32>
    %197 = vector.shape_cast %194 : vector<192x128xf32> to vector<1x192x128xf32>
    tpu.vector_store %arg12[%c1_186, %c0_187, %c0_188], %197 {strides = array<i32>} : memref<3x192x128xf32, #tpu.memory_space<vmem>>, vector<1x192x128xf32>,
    %c8_189 = arith.constant 8 : index
    %c0_190 = arith.constant 0 : index
    %c0_191 = arith.constant 0 : index
    %198 = vector.load %arg5[%c8_189, %c0_190, %c0_191] : memref<9x128x128xbf16, #tpu.memory_space<vmem>>, vector<1x128x128xbf16>
    %199 = vector.shape_cast %198 : vector<1x128x128xbf16> to vector<128x128xbf16>
    %cst_192 = arith.constant dense<0.000000e+00> : vector<192x128xf32>
    %200 = tpu.matmul %179, %199, %cst_192 {dimension_numbers = #tpu.dot_dimension_numbers<[1], [0], [0], [1], [0, 0, 1, 1], [], []>} : vector<192x128xbf16>, vector<128x128xbf16>, vector<192x128xf32> -> vector<192x128xf32>
    %c2_193 = arith.constant 2 : index
    %c0_194 = arith.constant 0 : index
    %c0_195 = arith.constant 0 : index
    %201 = vector.load %arg12[%c2_193, %c0_194, %c0_195] : memref<3x192x128xf32, #tpu.memory_space<vmem>>, vector<1x192x128xf32>
    %202 = vector.shape_cast %201 : vector<1x192x128xf32> to vector<192x128xf32>
    %203 = arith.addf %202, %200 : vector<192x128xf32>
    %c2_196 = arith.constant 2 : index
    %c0_197 = arith.constant 0 : index
    %c0_198 = arith.constant 0 : index
    %204 = vector.load %arg12[%c2_196, %c0_197, %c0_198] : memref<3x192x128xf32, #tpu.memory_space<vmem>>, vector<1x192x128xf32>
    %205 = vector.shape_cast %204 : vector<1x192x128xf32> to vector<192x128xf32>
    %206 = vector.shape_cast %203 : vector<192x128xf32> to vector<1x192x128xf32>
    tpu.vector_store %arg12[%c2_196, %c0_197, %c0_198], %206 {strides = array<i32>} : memref<3x192x128xf32, #tpu.memory_space<vmem>>, vector<1x192x128xf32>,
    %c0_199 = arith.constant 0 : index
    %c0_200 = arith.constant 0 : index
    %c0_201 = arith.constant 0 : index
    %207 = vector.load %arg12[%c0_199, %c0_200, %c0_201] : memref<3x192x128xf32, #tpu.memory_space<vmem>>, vector<1x192x128xf32>
    %208 = vector.shape_cast %207 : vector<1x192x128xf32> to vector<192x128xf32>
    %209 = vector.shape_cast %208 : vector<192x128xf32> to vector<12x16x128xf32>
    %210 = vector.extract_strided_slice %209 {offsets = [0, 0, 0], sizes = [12, 12, 128], strides = [1, 1, 1]} : vector<12x16x128xf32> to vector<12x12x128xf32>
    %c1_202 = arith.constant 1 : index
    %c0_203 = arith.constant 0 : index
    %c0_204 = arith.constant 0 : index
    %211 = vector.load %arg12[%c1_202, %c0_203, %c0_204] : memref<3x192x128xf32, #tpu.memory_space<vmem>>, vector<1x192x128xf32>
    %212 = vector.shape_cast %211 : vector<1x192x128xf32> to vector<192x128xf32>
    %213 = vector.shape_cast %212 : vector<192x128xf32> to vector<12x16x128xf32>
    %214 = vector.extract_strided_slice %213 {offsets = [0, 1, 0], sizes = [12, 12, 128], strides = [1, 1, 1]} : vector<12x16x128xf32> to vector<12x12x128xf32>
    %215 = arith.addf %210, %214 : vector<12x12x128xf32>
    %c2_205 = arith.constant 2 : index
    %c0_206 = arith.constant 0 : index
    %c0_207 = arith.constant 0 : index
    %216 = vector.load %arg12[%c2_205, %c0_206, %c0_207] : memref<3x192x128xf32, #tpu.memory_space<vmem>>, vector<1x192x128xf32>
    %217 = vector.shape_cast %216 : vector<1x192x128xf32> to vector<192x128xf32>
    %218 = vector.shape_cast %217 : vector<192x128xf32> to vector<12x16x128xf32>
    %219 = vector.extract_strided_slice %218 {offsets = [0, 2, 0], sizes = [12, 12, 128], strides = [1, 1, 1]} : vector<12x16x128xf32> to vector<12x12x128xf32>
    %220 = arith.addf %215, %219 : vector<12x12x128xf32>
    %c0_208 = arith.constant 0 : index
    %c0_209 = arith.constant 0 : index
    %221 = vector.load %arg6[%c0_208, %c0_209] : memref<1x128xf32, #tpu.memory_space<vmem>>, vector<1x128xf32>
    %222 = vector.shape_cast %221 : vector<1x128xf32> to vector<1x1x128xf32>
    %223 = vector.broadcast %222 : vector<1x1x128xf32> to vector<12x12x128xf32>
    %224 = arith.addf %220, %223 : vector<12x12x128xf32>
    %cst_210 = arith.constant 0.000000e+00 : f32
    %225 = vector.broadcast %cst_210 : f32 to vector<12x12x128xf32>
    %226 = arith.maximumf %224, %225 : vector<12x12x128xf32>
    %227 = arith.truncf %226 : vector<12x12x128xf32> to vector<12x12x128xbf16>
    %c0_211 = arith.constant 0 : index
    %c0_212 = arith.constant 0 : index
    %c0_213 = arith.constant 0 : index
    %c0_214 = arith.constant 0 : index
    %228 = vector.load %arg7[%c0_211, %c0_212, %c0_213, %c0_214] : memref<1x12x12x128xbf16, #tpu.memory_space<vmem>>, vector<1x12x12x128xbf16>
    %229 = vector.shape_cast %228 : vector<1x12x12x128xbf16> to vector<12x12x128xbf16>
    %230 = vector.shape_cast %227 : vector<12x12x128xbf16> to vector<1x12x12x128xbf16>
    tpu.vector_store %arg7[%c0_211, %c0_212, %c0_213, %c0_214], %230 {strides = array<i32>} : memref<1x12x12x128xbf16, #tpu.memory_space<vmem>>, vector<1x12x12x128xbf16>,
    return
  }
  func.func @transform_1(%arg0: i32, %arg1: i32) -> (i32, i32, i32) {
    %c0_i32 = arith.constant 0 : i32
    %c0_i32_0 = arith.constant 0 : i32
    %c0_i32_1 = arith.constant 0 : i32
    %c0_i32_2 = arith.constant 0 : i32
    return %c0_i32, %c0_i32_0, %c0_i32_1 : i32, i32, i32
  }
  func.func @transform_2(%arg0: i32, %arg1: i32) -> (i32, i32) {
    %c0_i32 = arith.constant 0 : i32
    %c0_i32_0 = arith.constant 0 : i32
    %c0_i32_1 = arith.constant 0 : i32
    return %c0_i32, %c0_i32_0 : i32, i32
  }
  func.func @transform_3(%arg0: i32, %arg1: i32) -> (i32, i32, i32) {
    %c0_i32 = arith.constant 0 : i32
    %c0_i32_0 = arith.constant 0 : i32
    %c0_i32_1 = arith.constant 0 : i32
    %c0_i32_2 = arith.constant 0 : i32
    return %c0_i32, %c0_i32_0, %c0_i32_1 : i32, i32, i32
  }
  func.func @transform_4(%arg0: i32, %arg1: i32) -> (i32, i32) {
    %c0_i32 = arith.constant 0 : i32
    %c0_i32_0 = arith.constant 0 : i32
    %c0_i32_1 = arith.constant 0 : i32
    return %c0_i32, %c0_i32_0 : i32, i32
  }
  func.func @transform_5(%arg0: i32, %arg1: i32) -> (i32, i32, i32, i32) {
    %c0_i32 = arith.constant 0 : i32
    %c0_i32_0 = arith.constant 0 : i32
    %c0_i32_1 = arith.constant 0 : i32
    return %arg0, %arg1, %c0_i32, %c0_i32_0 : i32, i32, i32, i32
  }
}

</mosaic_0001>

<bundles_post_ra>
// kernel: unet_up_forward.2
= control target key start
LH: loop header
LB: loop body
LE: loop exit
PB: predicated region body
PF: predicated region fallthrough
CT: control target
= control target key end

     0   :  { %s5017_s15 = smov 0   ;;  %s5019_s16 = smov 0   ;;  %s7579_s0 = inlined_call_operand.vmem [shape: bf16[2,8,8,128], index: 0, kind: input, shape index: {}]   ;;  %s7580_s1 = inlined_call_operand.vmem [shape: bf16[2,8,2,8,2,128], index: 1, kind: input, shape index: {}]   ;;  %s7581_s2 = inlined_call_operand.vmem [shape: bf16[2,2,128,128], index: 2, kind: input, shape index: {}]   ;;  %s7582_s3 = inlined_call_operand.vmem [shape: f32[1,128], index: 3, kind: input, shape index: {}]   ;;  %s7583_s4 = inlined_call_operand.vmem [shape: bf16[2,8,2,8,2,128], index: 4, kind: output, shape index: {}]  }
   0x1   :  { %s5021_s17 = smov 0  }
   0x2 LB: > { %s26_s18 = sadd.s32 1, %s4986_s16  ;;  %p4180_p0 = scmp.ge.s32.totalorder %s4990_s17, 1  ;;  %s4990_s17 = sphi %s5021_s17, %s14_s17   ;;  %s4986_s16 = sphi %s5019_s16, %s7589_s16   ;;  %s4982_s15 = sphi %s5017_s15, %s7588_s15  }
   0x3   : > { %p28_p1 = scmp.ge.s32.totalorder %s26_s18, 2  ;;  %p200_p2 = scmp.lt.s32.totalorder %s4990_s17, 3 }
   0x5   : > { %s7591_s18 = smov (%p28_p1, %s26_s18), 0  ;;  %p201_p3 = pnand %p4180_p0, %p200_p2 }
   0x6   : > { %p244_p4 = scmp.lt.s32.totalorder (!%p201_p3), %s4982_s15, 1 }
   0x7   : > { %204 = sbr.rel (%p201_p3) target bundleno = 590 (0x24e), region = 36 }
   0xc   : > { %v4903_v0 = vld [vmem:[%s7581_s2 + $0x38] sm:$0xff]  ;;  %v4902_v3 = vld [vmem:[%s7581_s2 + $0x30] sm:$0xff]  ;;  %v4901_v8 = vld [vmem:[%s7581_s2 + $0x28] sm:$0xff]  ;;  %s7593_s15 = smov (!%p244_p4, %s4982_s15), 1  ;;  %vm658_vm0 = vcmask 1041409   ;;  %vm660_vm1 = vcmask 1042434  }
   0xd   : > { %v4919_v1 = vld [vmem:[%s7581_s2 + $0xb8] sm:$0xff]  ;;  %373 = vmatpush.bf16.msra.mxu0 %v4903_v0  ;;  %v4918_v4 = vld [vmem:[%s7581_s2 + $0xb0] sm:$0xff]  ;;  %v4917_v9 = vld [vmem:[%s7581_s2 + $0xa8] sm:$0xff]  ;;  %s4891_s29 = sshll.u32 %s7593_s15, 5  ;;  %s4183_s21 = sshll.u32 %s7593_s15, 7  ;;  %vm662_vm2 = vcmask 1043459  }
   0xe   : > { %v4927_v2 = vld [vmem:[%s7581_s2 + $0xf8] sm:$0xff]  ;;  %2262 = vmatpush.bf16.msra.mxu2 %v4919_v1  ;;  %v4926_v6 = vld [vmem:[%s7581_s2 + $0xf0] sm:$0xff]  ;;  %v4925_v10 = vld [vmem:[%s7581_s2 + $0xe8] sm:$0xff]  ;;  %s251_s12 = scalar_lea.vmem %s7579_s0, %s4891_s29  ;;  %s5147_s24 = scalar_lea.vmem %s7580_s1, %s4183_s21  ;;  %vm664_vm3 = vcmask 1044484   ;;  %vm666_vm4 = vcmask 1045509   ;;  %vm668_vm5 = vcmask 1046534  }
   0xf   : > { %v4911_v5 = vld [vmem:[%s7581_s2 + $0x78] sm:$0xff]  ;;  %3202 = vmatpush.bf16.msra.mxu3 %v4927_v2  ;;  %v4910_v7 = vld [vmem:[%s7581_s2 + $0x70] sm:$0xff]  ;;  %v4909_v11 = vld [vmem:[%s7581_s2 + $0x68] sm:$0xff]  ;;  %vm670_vm6 = vcmask 1047559   ;;  %vm761_vm7 = vcmask 1040384   ;;  %s5283_s9 = scalar_lea.vmem %s7583_s4, %s4183_s21 }
  0x10   : > { %1322 = vmatpush.bf16.msra.mxu1 %v4911_v5  ;;  %v4900_v12 = vld [vmem:[%s7581_s2 + $0x20] sm:$0xff]  ;;  %v4899_v16 = vld [vmem:[%s7581_s2 + $0x18] sm:$0xff]  ;;  %v4898_v20 = vld [vmem:[%s7581_s2 + $0x10] sm:$0xff]  ;;  %vm1059_vm8 = vsmask.f32 256 }
  0x11   : > { %374 = vmatpush.bf16.msra.mxu0 %v4902_v3  ;;  %v4916_v13 = vld [vmem:[%s7581_s2 + $0xa0] sm:$0xff]  ;;  %v4915_v17 = vld [vmem:[%s7581_s2 + $0x98] sm:$0xff]  ;;  %v4914_v21 = vld [vmem:[%s7581_s2 + $0x90] sm:$0xff]  ;;  %vm1999_vm9 = vsmask.f32 7938 }
  0x12   : > { %2263 = vmatpush.bf16.msra.mxu2 %v4918_v4  ;;  %v4924_v14 = vld [vmem:[%s7581_s2 + $0xe0] sm:$0xff]  ;;  %v4923_v18 = vld [vmem:[%s7581_s2 + $0xd8] sm:$0xff]  ;;  %v4922_v22 = vld [vmem:[%s7581_s2 + $0xd0] sm:$0xff] }
  0x13   : > { %3203 = vmatpush.bf16.msra.mxu3 %v4926_v6  ;;  %v4908_v15 = vld [vmem:[%s7581_s2 + $0x60] sm:$0xff]  ;;  %v4907_v19 = vld [vmem:[%s7581_s2 + $0x58] sm:$0xff]  ;;  %v4906_v23 = vld [vmem:[%s7581_s2 + $0x50] sm:$0xff] }
  0x14   : > { %1323 = vmatpush.bf16.msra.mxu1 %v4910_v7  ;;  %v4897_v24 = vld [vmem:[%s7581_s2 + $0x8] sm:$0xff]  ;;  %v4896_v28 = vld [vmem:[%s7581_s2] sm:$0xff]  ;;  %v4894_v34 = vld [vmem:[%s251_s12 + $0x10] sm:$0xff] }
  0x15   : > { %375 = vmatpush.bf16.msra.mxu0 %v4901_v8  ;;  %v4913_v25 = vld [vmem:[%s7581_s2 + $0x88] sm:$0xff]  ;;  %v4912_v29 = vld [vmem:[%s7581_s2 + $0x80] sm:$0xff]  ;;  %v4895_v35 = vld [vmem:[%s251_s12 + $0x18] sm:$0xff] }
  0x16   : > { %2264 = vmatpush.bf16.msra.mxu2 %v4917_v9  ;;  %v4921_v26 = vld [vmem:[%s7581_s2 + $0xc8] sm:$0xff]  ;;  %v4920_v30 = vld [vmem:[%s7581_s2 + $0xc0] sm:$0xff]  ;;  %vm5302_vm10 = vmand %vm761_vm7, %vm1059_vm8 }
  0x17   : > { %3204 = vmatpush.bf16.msra.mxu3 %v4925_v10  ;;  %v4905_v27 = vld [vmem:[%s7581_s2 + $0x48] sm:$0xff]  ;;  %v4904_v31 = vld [vmem:[%s7581_s2 + $0x40] sm:$0xff]  ;;  %vm5344_vm11 = vmand %vm761_vm7, %vm1999_vm9 }
  0x18   : > { %1324 = vmatpush.bf16.msra.mxu1 %v4909_v11  ;;  %v4892_v32 = vld [vmem:[%s251_s12] sm:$0xff]  ;;  %v4893_v33 = vld [vmem:[%s251_s12 + $0x8] sm:$0xff] }
  0x19   : > { %376 = vmatpush.bf16.msra.mxu0 %v4900_v12  ;;  %v402_v36 = vld [vmem:[%s5147_s24] sm:$0x1]  ;;  %v403_v37 = vld [vmem:[%s5147_s24 + $0x1] sm:$0x1]  ;;  %v404_v38 = vld [vmem:[%s5147_s24 + $0x2] sm:$0x1] }
  0x1a   : > { %2265 = vmatpush.bf16.msra.mxu2 %v4916_v13  ;;  %v466_v39 = vunpack.c.l.bf16 %v402_v36  ;;  %v467_v40 = vunpack.c.l.bf16 %v403_v37  ;;  %v405_v41 = vld [vmem:[%s5147_s24 + $0x3] sm:$0x1]  ;;  %v468_v42 = vunpack.c.l.bf16 %v404_v38  ;;  %v406_v45 = vld [vmem:[%s5147_s24 + $0x4] sm:$0x1]  ;;  %v407_v49 = vld [vmem:[%s5147_s24 + $0x5] sm:$0x1] }
  0x1b   : > { %3205 = vmatpush.bf16.msra.mxu3 %v4924_v14  ;;  %v469_v46 = vunpack.c.l.bf16 %v405_v41  ;;  %v470_v50 = vunpack.c.l.bf16 %v406_v45  ;;  %v4393_v51 = vld [vmem:[%s5147_s24 + $0x8] sm:$0x1]  ;;  %v4394_v53 = vld [vmem:[%s5147_s24 + $0x9] sm:$0x1]  ;;  %v1351_v55 = vld [vmem:[%s5147_s24] sm:$0x1]  ;;  %v471_v58 = vunpack.c.l.bf16 %v407_v49 }
  0x1c   : > { %1325 = vmatpush.bf16.msra.mxu1 %v4908_v15  ;;  %v594_v43 = vperm.slane %v466_v39, 0  ;;  %v595_v44 = vperm.slane %v467_v40, 0  ;;  %v596_v47 = vperm.slane %v468_v42, 0  ;;  %v1352_v56 = vld [vmem:[%s5147_s24 + $0x1] sm:$0x1]  ;;  %v1415_v60 = vunpack.c.l.bf16 %v1351_v55 }
  0x1d   : > { %377 = vmatpush.bf16.msra.mxu0 %v4899_v16  ;;  %v597_v52 = vperm.slane %v469_v46, 0  ;;  %v408_v57 = vld [vmem:[%s5147_s24 + $0x6] sm:$0x1]  ;;  %v1353_v59 = vld [vmem:[%s5147_s24 + $0x2] sm:$0x1]  ;;  %v1416_v61 = vunpack.c.l.bf16 %v1352_v56  ;;  %v2356_v62 = vunpack.c.l.bf16 %v4393_v51  ;;  %v598_v63 = vperm.slane %v470_v50, 0 }
  0x1e   : > { %2266 = vmatpush.bf16.msra.mxu2 %v4915_v17  ;;  %v659_v48 = vsel %vm658_vm0, %v595_v44, %v594_v43  ;;  %v1354_v0 = vld [vmem:[%s5147_s24 + $0x3] sm:$0x1]  ;;  %v1417_v1 = vunpack.c.l.bf16 %v1353_v59  ;;  %v2357_v2 = vunpack.c.l.bf16 %v4394_v53  ;;  %v1355_v4 = vld [vmem:[%s5147_s24 + $0x4] sm:$0x1]  ;;  %v1543_v6 = vperm.slane %v1415_v60, 1 }
  0x1f   : > { %3206 = vmatpush.bf16.msra.mxu3 %v4923_v18  ;;  %v661_v54 = vsel %vm660_vm1, %v596_v47, %v659_v48  ;;  %v1418_v5 = vunpack.c.l.bf16 %v1354_v0  ;;  %v1544_v7 = vperm.slane %v1416_v61, 1  ;;  %v4395_v8 = vld [vmem:[%s5147_s24 + $0xa] sm:$0x1]  ;;  %v472_v9 = vunpack.c.l.bf16 %v408_v57  ;;  %v409_v11 = vld [vmem:[%s5147_s24 + $0x7] sm:$0x1] }
  0x20   : > { %1326 = vmatpush.bf16.msra.mxu1 %v4907_v19  ;;  %v663_v3 = vsel %vm662_vm2, %v597_v52, %v661_v54  ;;  %v1545_v10 = vperm.slane %v1417_v1, 1  ;;  %v599_v12 = vperm.slane %v471_v58, 0  ;;  %v1356_v13 = vld [vmem:[%s5147_s24 + $0x5] sm:$0x1]  ;;  %v1419_v14 = vunpack.c.l.bf16 %v1355_v4  ;;  %v4396_v18 = vld [vmem:[%s5147_s24 + $0xb] sm:$0x1] }
  0x21   : > { %378 = vmatpush.bf16.msra.mxu0 %v4898_v20  ;;  %v1607_v15 = vsel %vm658_vm0, %v1544_v7, %v1543_v6  ;;  %v665_v16 = vsel %vm664_vm3, %v598_v63, %v663_v3  ;;  %v1546_v17 = vperm.slane %v1418_v5, 1  ;;  %v2358_v19 = vunpack.c.l.bf16 %v4395_v8  ;;  %v1357_v20 = vld [vmem:[%s5147_s24 + $0x6] sm:$0x1]  ;;  %v5179_v36 = vld [vmem:[%s5147_s24 + $0xe] sm:$0x1] }
  0x22   : > { %2267 = vmatpush.bf16.msra.mxu2 %v4914_v21  ;;  %v1608_v21 = vsel %vm660_vm1, %v1545_v10, %v1607_v15  ;;  %v5182_v37 = vld [vmem:[%s5147_s24 + $0xf] sm:$0x1]  ;;  %v410_v39 = vld [vmem:[%s5147_s24 + $0x10] sm:$0x1]  ;;  %v5189_v41 = vld [vmem:[%s5147_s24 + $0x7] sm:$0x1]  ;;  %v2362_v55 = vunpack.c.l.bf16 %v5179_v36 }
  0x23   : > { %3207 = vmatpush.bf16.msra.mxu3 %v4922_v22  ;;  %v4397_v22 = vld [vmem:[%s5147_s24 + $0xc] sm:$0x1]  ;;  %v411_v43 = vld [vmem:[%s5147_s24 + $0x11] sm:$0x1]  ;;  %v412_v47 = vld [vmem:[%s5147_s24 + $0x12] sm:$0x1]  ;;  %v474_v48 = vunpack.c.l.bf16 %v410_v39  ;;  %v1422_v54 = vunpack.c.l.bf16 %v5189_v41  ;;  %v2363_v56 = vunpack.c.l.bf16 %v5182_v37 }
  0x24   : > { %1327 = vmatpush.bf16.msra.mxu1 %v4906_v23  ;;  %v2484_v23 = vperm.slane %v2356_v62, 0  ;;  %v413_v53 = vld [vmem:[%s5147_s24 + $0x13] sm:$0x1]  ;;  %v4665_v57 = vld [vmem:[%s5147_s24 + $0x8] sm:$0x1]  ;;  %v475_v60 = vunpack.c.l.bf16 %v411_v43 }
  0x25   : > { %379 = vmatpush.bf16.msra.mxu0 %v4897_v24  ;;  %v2485_v24 = vperm.slane %v2357_v2, 0  ;;  %v4666_v58 = vld [vmem:[%s5147_s24 + $0x9] sm:$0x1]  ;;  %v414_v59 = vld [vmem:[%s5147_s24 + $0x14] sm:$0x1]  ;;  %v3295_v63 = vunpack.c.l.bf16 %v4665_v57  ;;  %v476_v2 = vunpack.c.l.bf16 %v412_v47  ;;  %v477_v6 = vunpack.c.l.bf16 %v413_v53 }
  0x26   : > { %2268 = vmatpush.bf16.msra.mxu2 %v4913_v25  ;;  %v473_v25 = vunpack.c.l.bf16 %v409_v11  ;;  %v4667_v62 = vld [vmem:[%s5147_s24 + $0xa] sm:$0x1]  ;;  %v3296_v0 = vunpack.c.l.bf16 %v4666_v58  ;;  %v415_v1 = vld [vmem:[%s5147_s24 + $0x15] sm:$0x1]  ;;  %v4668_v4 = vld [vmem:[%s5147_s24 + $0xb] sm:$0x1] }
  0x27   : > { %3208 = vmatpush.bf16.msra.mxu3 %v4921_v26  ;;  %v600_v26 = vperm.slane %v472_v9, 0  ;;  %v2548_v38 = vsel %vm658_vm0, %v2485_v24, %v2484_v23  ;;  %v3297_v5 = vunpack.c.l.bf16 %v4667_v62  ;;  %v602_v7 = vperm.slane %v474_v48, 0  ;;  %v4669_v8 = vld [vmem:[%s5147_s24 + $0xc] sm:$0x1]  ;;  %v5224_v39 = vld [vmem:[%s7582_s3] ss:$0 sm:$0xff] }
  0x28   : > { %1328 = vmatpush.bf16.msra.mxu1 %v4905_v27  ;;  %v1420_v27 = vunpack.c.l.bf16 %v1356_v13  ;;  %v5186_v40 = vperm.slane %v473_v25, 0  ;;  %v3298_v9 = vunpack.c.l.bf16 %v4668_v4  ;;  %v3423_v10 = vperm.slane %v3295_v63, 1  ;;  %v4670_v13 = vld [vmem:[%s5147_s24 + $0xd] sm:$0x1]  ;;  %v1359_v4 = vld [vmem:[%s5147_s24 + $0x10] sm:$0x1] }
  0x29   : > { %380 = vmatpush.bf16.msra.mxu0 %v4896_v28  ;;  %v667_v28 = vsel %vm666_vm4, %v599_v12, %v665_v16  ;;  %v3424_v11 = vperm.slane %v3296_v0, 1  ;;  %v478_v12 = vunpack.c.l.bf16 %v414_v59  ;;  %v3425_v15 = vperm.slane %v3297_v5, 1  ;;  %v416_v16 = vld [vmem:[%s5147_s24 + $0x16] sm:$0x1]  ;;  %v1360_v5 = vld [vmem:[%s5147_s24 + $0x11] sm:$0x1] }
  0x2a   : > { %2269 = vmatpush.bf16.msra.mxu2 %v4912_v29  ;;  %v1547_v29 = vperm.slane %v1419_v14, 1  ;;  %v1548_v42 = vperm.slane %v1420_v27, 1  ;;  %v5193_v44 = vsel %vm668_vm5, %v600_v26, %v667_v28  ;;  %v3299_v14 = vunpack.c.l.bf16 %v4669_v8  ;;  %v4672_v28 = vld [vmem:[%s5147_s24 + $0xf] sm:$0x1] }
  0x2b   : > { %3209 = vmatpush.bf16.msra.mxu3 %v4920_v30  ;;  %v2359_v30 = vunpack.c.l.bf16 %v4396_v18  ;;  %v603_v18 = vperm.slane %v475_v60, 0  ;;  %v604_v23 = vperm.slane %v476_v2, 0  ;;  %v605_v27 = vperm.slane %v477_v6, 0  ;;  %v5260_v6 = vld [vmem:[%s7582_s3] ss:$0 sm:$0xff] }
  0x2c   : > { %1329 = vmatpush.bf16.msra.mxu1 %v4904_v31  ;;  %381 = vmatmul.bf16.vlgmr.msra.gmra.mxu0 %v4892_v32  ;;  %v1421_v31 = vunpack.c.l.bf16 %v1357_v20  ;;  %v3300_v20 = vunpack.c.l.bf16 %v4670_v13  ;;  %v3427_v25 = vperm.slane %v3299_v14, 1  ;;  %v1550_v41 = vperm.slane %v1422_v54, 1  ;;  %v5267_v13 = vld [vmem:[%s5147_s24 + $0x13] sm:$0x1] }
  0x2d   : > { %2270 = vmatmul.bf16.vlgmr.msra.gmra.mxu2 %v4892_v32  ;;  %v2487_v46 = vperm.slane %v2359_v30, 0  ;;  %v3302_v47 = vunpack.c.l.bf16 %v4672_v28  ;;  %v1423_v8 = vunpack.c.l.bf16 %v1359_v4 }
  0x2e   : > { %3210 = vmatmul.bf16.vlgmr.msra.gmra.mxu3 %v4892_v32  ;;  %v1549_v49 = vperm.slane %v1421_v31, 1  ;;  %v417_v31 = vld [vmem:[%s5147_s24 + $0x17] sm:$0x1] }
  0x2f   : > { %1330 = vmatmul.bf16.vlgmr.msra.gmra.mxu1 %v4892_v32  ;;  %v1609_v32 = vsel %vm662_vm2, %v1546_v17, %v1608_v21  ;;  %v479_v17 = vunpack.c.l.bf16 %v415_v1  ;;  %v3426_v21 = vperm.slane %v3298_v9, 1  ;;  %v481_v48 = vunpack.c.l.bf16 %v417_v31 }
  0x30   : > { %v1610_v45 = vsel %vm664_vm3, %v1547_v29, %v1609_v32  ;;  %v480_v32 = vunpack.c.l.bf16 %v416_v16  ;;  %v3430_v1 = vperm.slane %v3302_v47, 1  ;;  %v1424_v9 = vunpack.c.l.bf16 %v1360_v5 }
  0x31   : > { %v1611_v61 = vsel %vm666_vm4, %v1548_v42, %v1610_v45  ;;  %v607_v36 = vperm.slane %v479_v17, 0  ;;  %v609_v2 = vperm.slane %v481_v48, 0  ;;  %v5274_v17 = vld [vmem:[%s5147_s24 + $0x14] sm:$0x1] }
  0x32   : > { %v1612_v42 = vsel %vm668_vm5, %v1549_v49, %v1611_v61  ;;  %v608_v54 = vperm.slane %v480_v32, 0  ;;  %v2491_v61 = vperm.slane %v2363_v56, 0 }
  0x33   : > { %v1613_v63 = vsel %vm670_vm6, %v1550_v41, %v1612_v42  ;;  %v1061_v42 = vld [vmem:[%s5283_s9] sm:$0x1] }
  0x3c   : > { %386 = vmatmul.bf16.gmra.mxu0 %v4893_v33 }
  0x3d   : > { %2275 = vmatmul.bf16.gmra.mxu2 %v4893_v33 }
  0x3e   : > { %3215 = vmatmul.bf16.gmra.mxu3 %v4893_v33 }
  0x3f   : > { %1335 = vmatmul.bf16.gmra.mxu1 %v4893_v33  ;;  %v4398_v33 = vld [vmem:[%s5147_s24 + $0xd] sm:$0x1] }
  0x40   : > { %v2361_v50 = vunpack.c.l.bf16 %v4398_v33  ;;  %v606_v33 = vperm.slane %v478_v12, 0 }
  0x42   : > { %v2489_v24 = vperm.slane %v2361_v50, 0 }
  0x4c   : > { %391 = vmatmul.bf16.gmra.mxu0 %v4894_v34 }
  0x4d   : > { %2280 = vmatmul.bf16.gmra.mxu2 %v4894_v34 }
  0x4e   : > { %3220 = vmatmul.bf16.gmra.mxu3 %v4894_v34 }
  0x4f   : > { %1340 = vmatmul.bf16.gmra.mxu1 %v4894_v34  ;;  %v2360_v34 = vunpack.c.l.bf16 %v4397_v22  ;;  %v3487_v22 = vsel %vm658_vm0, %v3424_v11, %v3423_v10 }
  0x50   : > { %v3488_v26 = vsel %vm660_vm1, %v3425_v15, %v3487_v22 }
  0x51   : > { %v2488_v51 = vperm.slane %v2360_v34, 0  ;;  %v3489_v30 = vsel %vm662_vm2, %v3426_v21, %v3488_v26 }
  0x52   : > { %v3490_v43 = vsel %vm664_vm3, %v3427_v25, %v3489_v30  ;;  %v5289_v25 = vperm.slane %v1423_v8, 1 }
  0x5c   : > { %396 = vmatmul.bf16.gmra.mxu0 %v4895_v35 }
  0x5d   : > { %2285 = vmatmul.bf16.gmra.mxu2 %v4895_v35 }
  0x5e   : > { %3225 = vmatmul.bf16.gmra.mxu3 %v4895_v35 }
  0x5f   : > { %1345 = vmatmul.bf16.gmra.mxu1 %v4895_v35  ;;  %v2486_v35 = vperm.slane %v2358_v19, 0  ;;  %v4671_v19 = vld [vmem:[%s5147_s24 + $0xe] sm:$0x1] }
  0x60   : > { %v3301_v29 = vunpack.c.l.bf16 %v4671_v19  ;;  %v1426_v19 = vunpack.c.l.bf16 %v5267_v13 }
  0x61   : > { %v2549_v52 = vsel %vm660_vm1, %v2486_v35, %v2548_v38  ;;  %v3428_v35 = vperm.slane %v3300_v20, 1  ;;  %v672_v38 = vsel %vm658_vm0, %v603_v18, %v602_v7  ;;  %v5263_v7 = vld [vmem:[%s5147_s24 + $0x12] sm:$0x1] }
  0x62   : > { %v2550_v3 = vsel %vm662_vm2, %v2487_v46, %v2549_v52  ;;  %v673_v45 = vsel %vm660_vm1, %v604_v23, %v672_v38  ;;  %v2490_v46 = vperm.slane %v2362_v55, 0  ;;  %v3429_v53 = vperm.slane %v3301_v29, 1 }
  0x63   : > { %v2551_v34 = vsel %vm664_vm3, %v2488_v51, %v2550_v3  ;;  %v674_v50 = vsel %vm662_vm2, %v605_v27, %v673_v45  ;;  %v5233_v51 = vld [vmem:[%s7582_s3] ss:$0 sm:$0xff]  ;;  %v671_v55 = vsel %vm670_vm6, %v5186_v40, %v5193_v44  ;;  %v3491_v58 = vsel %vm666_vm4, %v3428_v35, %v3490_v43  ;;  %v1064_v45 = vld [vmem:[%s5283_s9 + $0x1] sm:$0x1] }
  0x64   : > { %v2552_v52 = vsel %vm666_vm4, %v2489_v24, %v2551_v34  ;;  %v675_v49 = vsel %vm664_vm3, %v606_v33, %v674_v50  ;;  %v5251_v44 = vld [vmem:[%s7582_s3] ss:$0 sm:$0xff]  ;;  %v3492_v37 = vsel %vm668_vm5, %v3429_v53, %v3491_v58  ;;  %v1425_v18 = vunpack.c.l.bf16 %v5263_v7  ;;  %v5287_v24 = vld [vmem:[%s5147_s24 + $0x15] sm:$0x1] }
  0x65   : > { %v676_v59 = vsel %vm666_vm4, %v607_v36, %v675_v49  ;;  %v2553_v0 = vsel %vm668_vm5, %v2490_v46, %v2552_v52  ;;  %v3493_v15 = vsel %vm670_vm6, %v3430_v1, %v3492_v37  ;;  %v1427_v27 = vunpack.c.l.bf16 %v5274_v17  ;;  %v1067_v49 = vld [vmem:[%s5283_s9 + $0x2] sm:$0x1] }
  0x66   : > { %v677_v56 = vsel %vm668_vm5, %v608_v54, %v676_v59  ;;  %v2554_v12 = vsel %vm670_vm6, %v2491_v61, %v2553_v0  ;;  %v1428_v28 = vunpack.c.l.bf16 %v5287_v24  ;;  %v5294_v29 = vperm.slane %v1424_v9, 1  ;;  %v1082_v0 = vld [vmem:[%s5283_s9 + $0x7] sm:$0x1] }
  0x67   : > { %v5271_v16 = vsel %vm670_vm6, %v609_v2, %v677_v56 }
  0x68   : > { %v1614_v17 = vsel %vm658_vm0, %v5294_v29, %v5289_v25 }
  0xa9   : > { %v382_v57 = vpop.f32.mrf.mxu0 }
  0xaa   : > { %v383_v60 = vadd.f32 %v5224_v39, %v382_v57  ;;  %v1073_v57 = vld [vmem:[%s5283_s9 + $0x4] sm:$0x1] }
  0xac   : > { %v1331_v62 = vpop.f32.mrf.mxu1  ;;  %v729_v3 = vadd.f32 %v671_v55, %v383_v60  ;;  %v1079_v55 = vld [vmem:[%s5283_s9 + $0x6] sm:$0x1] }
  0xad   : > { %v1332_v40 = vadd.f32 %v5233_v51, %v1331_v62  ;;  %v1070_v62 = vld [vmem:[%s5283_s9 + $0x3] sm:$0x1] }
  0xae   : > { %v737_v10 = vpack.c.bf16 %v729_v3, %v729_v3 }
  0xaf   : > { %v1671_v11 = vadd.f32 %v1613_v63, %v1332_v40  ;;  %v1076_v63 = vld [vmem:[%s5283_s9 + $0x5] sm:$0x1] }
  0xb0   : > { %v2271_v14 = vpop.f32.mrf.mxu2  ;;  %v753_v20 = vrot.slane %v737_v10, 3 }
  0xb1   : > { %v1679_v21 = vpack.c.bf16 %v1671_v11, %v1671_v11  ;;  %v2272_v22 = vadd.f32 %v5251_v44, %v2271_v14  ;;  %v3211_v23 = vpop.f32.mrf.mxu3 }
  0xb2   : > { %v3212_v26 = vadd.f32 %v5260_v6, %v3211_v23  ;;  %v764_v30 = vsel %vm761_vm7, %v737_v10, %v753_v20  ;;  %v766_v31 = vsel %vm658_vm0, %v737_v10, %v753_v20  ;;  %v769_v32 = vsel %vm660_vm1, %v737_v10, %v753_v20 }
  0xb3   : > { %v772_v33 = vsel %vm662_vm2, %v737_v10, %v753_v20  ;;  %v768_v34 = vrot.slane %v766_v31, 1  ;;  %v771_v35 = vrot.slane %v769_v32, 2  ;;  %v867_v38 = vunpack.i.h.s16 %v764_v30 }
  0xb4   : > { %v774_v36 = vrot.slane %v772_v33, 3  ;;  %v4233_v43 = vpack.i.b16 %v764_v30, %v764_v30  ;;  %v1695_v46 = vrot.slane %v1679_v21, 3  ;;  %v2612_v47 = vadd.f32 %v2554_v12, %v2272_v22 }
  0xb5   : > { %v3551_v48 = vadd.f32 %v3493_v15, %v3212_v26  ;;  %v869_v50 = vunpack.i.h.s16 %v768_v34  ;;  %v871_v52 = vunpack.i.h.s16 %v771_v35  ;;  %v931_v54 = vpack.i.b16 %v867_v38, %v867_v38 }
  0xb6   : > { %v873_v53 = vunpack.i.h.s16 %v774_v36  ;;  %v4234_v58 = vpack.i.b16 %v768_v34, %v768_v34  ;;  %v4235_v59 = vpack.i.b16 %v771_v35, %v771_v35  ;;  %v4236_v60 = vpack.i.b16 %v774_v36, %v774_v36 }
  0xb7   : > { %v1062_v61 = vsel %vm5302_vm10, %v4233_v43, %v1061_v42  ;;  %v933_v1 = vpack.i.b16 %v869_v50, %v869_v50  ;;  %v935_v2 = vpack.i.b16 %v871_v52, %v871_v52  ;;  %v1065_v40 = vsel %vm5302_vm10, %v931_v54, %v1064_v45 }
  0xb8   : > { %v937_v3 = vpack.i.b16 %v873_v53, %v873_v53  ;;  %1063 = vst [vmem:[%s5283_s9] sm:$0x1] %v1062_v61  ;;  %v1068_v37 = vsel %vm5302_vm10, %v4234_v58, %v1067_v49  ;;  %v1074_v56 = vsel %vm5302_vm10, %v4235_v59, %v1073_v57  ;;  %v1080_v4 = vsel %vm5302_vm10, %v4236_v60, %v1079_v55 }
  0xb9   : > { %1066 = vst [vmem:[%s5283_s9 + $0x1] sm:$0x1] %v1065_v40  ;;  %v1705_v5 = vsel %vm761_vm7, %v1679_v21, %v1695_v46  ;;  %v1071_v8 = vsel %vm5302_vm10, %v933_v1, %v1070_v62  ;;  %v1077_v9 = vsel %vm5302_vm10, %v935_v2, %v1076_v63  ;;  %v1707_v11 = vsel %vm658_vm0, %v1679_v21, %v1695_v46  ;;  %v4489_v62 = vld [vmem:[%s5283_s9 + $0x8] sm:$0x1]  ;;  %v4491_v63 = vld [vmem:[%s5283_s9 + $0x9] sm:$0x1] }
  0xba   : > { %1069 = vst [vmem:[%s5283_s9 + $0x2] sm:$0x1] %v1068_v37  ;;  %v1083_v10 = vsel %vm5302_vm10, %v937_v3, %v1082_v0  ;;  %v1709_v12 = vrot.slane %v1707_v11, 1  ;;  %v1710_v14 = vsel %vm660_vm1, %v1679_v21, %v1695_v46  ;;  %v1713_v15 = vsel %vm662_vm2, %v1679_v21, %v1695_v46  ;;  %v4493_v37 = vld [vmem:[%s5283_s9 + $0xa] sm:$0x1] }
  0xbb   : > { %1072 = vst [vmem:[%s5283_s9 + $0x3] sm:$0x1] %v1071_v8  ;;  %v1808_v20 = vunpack.i.h.s16 %v1705_v5  ;;  %v1712_v22 = vrot.slane %v1710_v14, 2  ;;  %v5339_v23 = vrot.slane %v1713_v15, 3  ;;  %v4313_v26 = vpack.i.b16 %v1705_v5, %v1705_v5  ;;  %v4497_v11 = vld [vmem:[%s5283_s9 + $0xc] sm:$0x1] }
  0xbc   : > { %1075 = vst [vmem:[%s5283_s9 + $0x4] sm:$0x1] %v1074_v56  ;;  %v2620_v30 = vpack.c.bf16 %v2612_v47, %v2612_v47  ;;  %v1810_v31 = vunpack.i.h.s16 %v1709_v12  ;;  %v5348_v34 = vpack.c.bf16 %v3551_v48, %v3551_v48  ;;  %v5352_v21 = vperm.slane %v1425_v18, 1  ;;  %v384_v56 = vpop.f32.mrf.mxu0 }
  0xbd   : > { %1078 = vst [vmem:[%s5283_s9 + $0x5] sm:$0x1] %v1077_v9  ;;  %v1872_v32 = vpack.i.b16 %v1808_v20, %v1808_v20  ;;  %v1812_v35 = vunpack.i.h.s16 %v1712_v22  ;;  %v1814_v36 = vunpack.i.h.s16 %v5339_v23  ;;  %v4314_v38 = vpack.i.b16 %v1709_v12, %v1709_v12 }
  0xbe   : > { %1081 = vst [vmem:[%s5283_s9 + $0x6] sm:$0x1] %v1080_v4  ;;  %v5358_v42 = vperm.slane %v1426_v19, 1  ;;  %v1874_v43 = vpack.i.b16 %v1810_v31, %v1810_v31  ;;  %v4315_v45 = vpack.i.b16 %v1712_v22, %v1712_v22  ;;  %v4316_v7 = vpack.i.b16 %v5339_v23, %v5339_v23  ;;  %v4495_v23 = vld [vmem:[%s5283_s9 + $0xb] sm:$0x1] }
  0xbf   : > { %1084 = vst [vmem:[%s5283_s9 + $0x7] sm:$0x1] %v1083_v10  ;;  %v2001_v18 = vld [vmem:[%s5283_s9] sm:$0x1]  ;;  %v2636_v46 = vrot.slane %v2620_v30, 3  ;;  %v1876_v47 = vpack.i.b16 %v1812_v35, %v1812_v35  ;;  %v1878_v48 = vpack.i.b16 %v1814_v36, %v1814_v36  ;;  %v5368_v19 = vrot.slane %v5348_v34, 3 }
  0xc0   : > { %v2002_v50 = vsel %vm5344_vm11, %v4313_v26, %v2001_v18  ;;  %v2004_v13 = vld [vmem:[%s5283_s9 + $0x1] sm:$0x1]  ;;  %v1333_v26 = vpop.f32.mrf.mxu1  ;;  %v4499_v36 = vld [vmem:[%s5283_s9 + $0xd] sm:$0x1] }
  0xc1   : > { %2003 = vst [vmem:[%s5283_s9] sm:$0x1] %v2002_v50  ;;  %v2005_v52 = vsel %vm5344_vm11, %v1872_v32, %v2004_v13  ;;  %v2007_v53 = vld [vmem:[%s5283_s9 + $0x2] sm:$0x1]  ;;  %v2646_v54 = vsel %vm761_vm7, %v2620_v30, %v2636_v46  ;;  %v2648_v49 = vsel %vm658_vm0, %v2620_v30, %v2636_v46  ;;  %v2651_v57 = vsel %vm660_vm1, %v2620_v30, %v2636_v46  ;;  %v4501_v13 = vld [vmem:[%s5283_s9 + $0xe] sm:$0x1] }
  0xc2   : > { %2006 = vst [vmem:[%s5283_s9 + $0x1] sm:$0x1] %v2005_v52  ;;  %v2008_v55 = vsel %vm5344_vm11, %v4314_v38, %v2007_v53  ;;  %v2010_v58 = vld [vmem:[%s5283_s9 + $0x3] sm:$0x1]  ;;  %v2650_v59 = vrot.slane %v2648_v49, 1  ;;  %v2653_v60 = vrot.slane %v2651_v57, 2  ;;  %v2654_v61 = vsel %vm662_vm2, %v2620_v30, %v2636_v46 }
  0xc3   : > { %2009 = vst [vmem:[%s5283_s9 + $0x2] sm:$0x1] %v2008_v55  ;;  %v2011_v0 = vsel %vm5344_vm11, %v1874_v43, %v2010_v58  ;;  %v2013_v1 = vld [vmem:[%s5283_s9 + $0x4] sm:$0x1]  ;;  %v2656_v2 = vrot.slane %v2654_v61, 3  ;;  %v2749_v3 = vunpack.i.h.s16 %v2646_v54  ;;  %v4457_v40 = vpack.i.b16 %v2646_v54, %v2646_v54 }
  0xc4   : > { %2012 = vst [vmem:[%s5283_s9 + $0x3] sm:$0x1] %v2011_v0  ;;  %v2014_v4 = vsel %vm5344_vm11, %v4315_v45, %v2013_v1  ;;  %v2016_v5 = vld [vmem:[%s5283_s9 + $0x5] sm:$0x1]  ;;  %v2751_v8 = vunpack.i.h.s16 %v2650_v59  ;;  %v2753_v9 = vunpack.i.h.s16 %v2653_v60  ;;  %v4458_v10 = vpack.i.b16 %v2650_v59, %v2650_v59  ;;  %v4503_v54 = vld [vmem:[%s5283_s9 + $0xf] sm:$0x1] }
  0xc5   : > { %2015 = vst [vmem:[%s5283_s9 + $0x4] sm:$0x1] %v2014_v4  ;;  %v2017_v12 = vsel %vm5344_vm11, %v1876_v47, %v2016_v5  ;;  %v2019_v14 = vld [vmem:[%s5283_s9 + $0x6] sm:$0x1]  ;;  %v2755_v15 = vunpack.i.h.s16 %v2656_v2  ;;  %v2813_v20 = vpack.i.b16 %v2749_v3, %v2749_v3  ;;  %v4459_v22 = vpack.i.b16 %v2653_v60, %v2653_v60  ;;  %v1365_v55 = vld [vmem:[%s5147_s24 + $0x16] sm:$0x1] }
  0xc6   : > { %2018 = vst [vmem:[%s5283_s9 + $0x5] sm:$0x1] %v2017_v12  ;;  %v2020_v30 = vsel %vm5344_vm11, %v4316_v7, %v2019_v14  ;;  %v2022_v31 = vld [vmem:[%s5283_s9 + $0x7] sm:$0x1]  ;;  %v2815_v32 = vpack.i.b16 %v2751_v8, %v2751_v8  ;;  %v2817_v35 = vpack.i.b16 %v2753_v9, %v2753_v9  ;;  %v385_v38 = vadd.f32 %v5224_v39, %v384_v56 }
  0xc7   : > { %2021 = vst [vmem:[%s5283_s9 + $0x6] sm:$0x1] %v2020_v30  ;;  %v2023_v43 = vsel %vm5344_vm11, %v1878_v48, %v2022_v31  ;;  %v4460_v45 = vpack.i.b16 %v2656_v2, %v2656_v2  ;;  %v2942_v18 = vsel %vm5302_vm10, %v4457_v40, %v4489_v62  ;;  %v2945_v7 = vsel %vm5302_vm10, %v2813_v20, %v4491_v63  ;;  %v1366_v2 = vld [vmem:[%s5147_s24 + $0x17] sm:$0x1] }
  0xc8   : > { %2024 = vst [vmem:[%s5283_s9 + $0x7] sm:$0x1] %v2023_v43  ;;  %v2819_v46 = vpack.i.b16 %v2755_v15, %v2755_v15  ;;  %v2948_v47 = vsel %vm5302_vm10, %v4458_v10, %v4493_v37  ;;  %v2951_v50 = vsel %vm5302_vm10, %v2815_v32, %v4495_v23  ;;  %v5419_v48 = vadd.f32 %v5233_v51, %v1333_v26 }
  0xc9   : > { %4490 = vst [vmem:[%s5283_s9 + $0x8] sm:$0x1] %v2942_v18  ;;  %v2954_v52 = vsel %vm5302_vm10, %v4459_v22, %v4497_v11  ;;  %v2957_v53 = vsel %vm5302_vm10, %v2817_v35, %v4499_v36  ;;  %v3585_v49 = vsel %vm761_vm7, %v5348_v34, %v5368_v19  ;;  %v3587_v57 = vsel %vm658_vm0, %v5348_v34, %v5368_v19  ;;  %v5457_v11 = vld [vmem:[%s5147_s24 + $0x18] sm:$0x1] }
  0xca   : > { %4492 = vst [vmem:[%s5283_s9 + $0x9] sm:$0x1] %v2945_v7  ;;  %v3589_v58 = vrot.slane %v3587_v57, 1  ;;  %v3590_v59 = vsel %vm660_vm1, %v5348_v34, %v5368_v19  ;;  %v3593_v60 = vsel %vm662_vm2, %v5348_v34, %v5368_v19  ;;  %v3688_v61 = vunpack.i.h.s16 %v3585_v49  ;;  %v1091_v57 = vld [vmem:[%s5283_s9 + $0x12] sm:$0x1] }
  0xcb   : > { %4494 = vst [vmem:[%s5283_s9 + $0xa] sm:$0x1] %v2948_v47  ;;  %v2960_v62 = vsel %vm5302_vm10, %v4460_v45, %v4501_v13  ;;  %v3592_v63 = vrot.slane %v3590_v59, 2  ;;  %v5444_v0 = vrot.slane %v3593_v60, 3  ;;  %v730_v1 = vadd.f32 %v5271_v16, %v385_v38  ;;  %v1088_v47 = vld [vmem:[%s5283_s9 + $0x11] sm:$0x1] }
  0xcc   : > { %4496 = vst [vmem:[%s5283_s9 + $0xb] sm:$0x1] %v2951_v50  ;;  %v2963_v3 = vsel %vm5302_vm10, %v2819_v46, %v4503_v54  ;;  %v3690_v40 = vunpack.i.h.s16 %v3589_v58  ;;  %v4729_v34 = vpack.i.b16 %v3585_v49, %v3585_v49  ;;  %v1429_v19 = vunpack.c.l.bf16 %v1365_v55  ;;  %v1085_v46 = vld [vmem:[%s5283_s9 + $0x10] sm:$0x1]  ;;  %v5502_v50 = vld [vmem:[%s5147_s24 + $0x19] sm:$0x1] }
  0xcd   : > { %4498 = vst [vmem:[%s5283_s9 + $0xc] sm:$0x1] %v2954_v52  ;;  %v3692_v37 = vunpack.i.h.s16 %v3592_v63  ;;  %v3694_v56 = vunpack.i.h.s16 %v5444_v0  ;;  %v3752_v4 = vpack.i.b16 %v3688_v61, %v3688_v61  ;;  %v4730_v5 = vpack.i.b16 %v3589_v58, %v3589_v58  ;;  %v1097_v55 = vld [vmem:[%s5283_s9 + $0x14] sm:$0x1] }
  0xce   : > { %4500 = vst [vmem:[%s5283_s9 + $0xd] sm:$0x1] %v2957_v53  ;;  %v4731_v16 = vpack.i.b16 %v3592_v63, %v3592_v63  ;;  %v4732_v8 = vpack.i.b16 %v5444_v0, %v5444_v0  ;;  %v738_v9 = vpack.c.bf16 %v730_v1, %v730_v1  ;;  %v1430_v10 = vunpack.c.l.bf16 %v1366_v2  ;;  %v1094_v63 = vld [vmem:[%s5283_s9 + $0x13] sm:$0x1]  ;;  %v4403_v0 = vld [vmem:[%s5147_s24 + $0x1a] sm:$0x1] }
  0xcf   : > { %4502 = vst [vmem:[%s5283_s9 + $0xe] sm:$0x1] %v2960_v62  ;;  %v3754_v12 = vpack.i.b16 %v3690_v40, %v3690_v40  ;;  %v3756_v14 = vpack.i.b16 %v3692_v37, %v3692_v37  ;;  %v5462_v15 = vperm.slane %v1427_v27, 1  ;;  %v5466_v20 = vperm.slane %v1428_v28, 1  ;;  %v4404_v37 = vld [vmem:[%s5147_s24 + $0x1b] sm:$0x1] }
  0xd0   : > { %4504 = vst [vmem:[%s5283_s9 + $0xf] sm:$0x1] %v2963_v3  ;;  %v5469_v22 = vpack.i.b16 %v3694_v56, %v3694_v56  ;;  %v4761_v23 = vld [vmem:[%s5283_s9 + $0x8] sm:$0x1]  ;;  %v754_v26 = vrot.slane %v738_v9, 3  ;;  %v5472_v30 = vperm.slane %v1429_v19, 1  ;;  %v5484_v28 = vsel %vm660_vm1, %v5352_v21, %v1614_v17 }
  0xd1   : > { %v3880_v27 = vsel %vm5344_vm11, %v4729_v34, %v4761_v23  ;;  %v4763_v31 = vld [vmem:[%s5283_s9 + $0x9] sm:$0x1]  ;;  %v5480_v24 = vperm.slane %v1430_v10, 1  ;;  %v2364_v32 = vunpack.c.l.bf16 %v5457_v11  ;;  %v1103_v19 = vld [vmem:[%s5283_s9 + $0x16] sm:$0x1]  ;;  %v2365_v17 = vunpack.c.l.bf16 %v5502_v50 }
  0xd2   : > { %4762 = vst [vmem:[%s5283_s9 + $0x8] sm:$0x1] %v3880_v27  ;;  %v3883_v25 = vsel %vm5344_vm11, %v3752_v4, %v4763_v31  ;;  %v4765_v29 = vld [vmem:[%s5283_s9 + $0xa] sm:$0x1]  ;;  %v777_v35 = vsel %vm761_vm7, %v738_v9, %v754_v26  ;;  %v779_v36 = vsel %vm658_vm0, %v738_v9, %v754_v26  ;;  %v782_v38 = vsel %vm660_vm1, %v738_v9, %v754_v26  ;;  %v1100_v10 = vld [vmem:[%s5283_s9 + $0x15] sm:$0x1] }
  0xd3   : > { %4764 = vst [vmem:[%s5283_s9 + $0x9] sm:$0x1] %v3883_v25  ;;  %v3886_v21 = vsel %vm5344_vm11, %v4730_v5, %v4765_v29  ;;  %v4767_v43 = vld [vmem:[%s5283_s9 + $0xb] sm:$0x1]  ;;  %v781_v45 = vrot.slane %v779_v36, 1  ;;  %v784_v18 = vrot.slane %v782_v38, 2  ;;  %v785_v7 = vsel %vm662_vm2, %v738_v9, %v754_v26 }
  0xd4   : > { %4766 = vst [vmem:[%s5283_s9 + $0xa] sm:$0x1] %v3886_v21  ;;  %v3889_v13 = vsel %vm5344_vm11, %v3754_v12, %v4767_v43  ;;  %v4769_v52 = vld [vmem:[%s5283_s9 + $0xc] sm:$0x1]  ;;  %v787_v53 = vrot.slane %v785_v7, 3  ;;  %v875_v54 = vunpack.i.h.s16 %v777_v35  ;;  %v4237_v49 = vpack.i.b16 %v777_v35, %v777_v35  ;;  %v2273_v7 = vpop.f32.mrf.mxu2 }
  0xd5   : > { %4768 = vst [vmem:[%s5283_s9 + $0xb] sm:$0x1] %v3889_v13  ;;  %v3892_v58 = vsel %vm5344_vm11, %v4731_v16, %v4769_v52  ;;  %v4771_v59 = vld [vmem:[%s5283_s9 + $0xd] sm:$0x1]  ;;  %v877_v60 = vunpack.i.h.s16 %v781_v45  ;;  %v879_v61 = vunpack.i.h.s16 %v784_v18  ;;  %v4238_v62 = vpack.i.b16 %v781_v45, %v781_v45  ;;  %v4405_v23 = vld [vmem:[%s5147_s24 + $0x1c] sm:$0x1] }
  0xd6   : > { %4770 = vst [vmem:[%s5283_s9 + $0xc] sm:$0x1] %v3892_v58  ;;  %v3895_v1 = vsel %vm5344_vm11, %v3756_v14, %v4771_v59  ;;  %v4773_v2 = vld [vmem:[%s5283_s9 + $0xe] sm:$0x1]  ;;  %v881_v3 = vunpack.i.h.s16 %v787_v53  ;;  %v939_v40 = vpack.i.b16 %v875_v54, %v875_v54  ;;  %v4239_v34 = vpack.i.b16 %v784_v18, %v784_v18  ;;  %v4406_v26 = vld [vmem:[%s5147_s24 + $0x1d] sm:$0x1] }
  0xd7   : > { %4772 = vst [vmem:[%s5283_s9 + $0xd] sm:$0x1] %v3895_v1  ;;  %v3898_v56 = vsel %vm5344_vm11, %v4732_v8, %v4773_v2  ;;  %v4775_v4 = vld [vmem:[%s5283_s9 + $0xf] sm:$0x1]  ;;  %v941_v5 = vpack.i.b16 %v877_v60, %v877_v60  ;;  %v943_v16 = vpack.i.b16 %v879_v61, %v879_v61  ;;  %v4240_v9 = vpack.i.b16 %v787_v53, %v787_v53  ;;  %v4407_v29 = vld [vmem:[%s5147_s24 + $0x1e] sm:$0x1] }
  0xd8   : > { %4774 = vst [vmem:[%s5283_s9 + $0xe] sm:$0x1] %v3898_v56  ;;  %v3901_v12 = vsel %vm5344_vm11, %v5469_v22, %v4775_v4  ;;  %v1086_v14 = vsel %vm5302_vm10, %v4237_v49, %v1085_v46  ;;  %v1089_v8 = vsel %vm5302_vm10, %v939_v40, %v1088_v47  ;;  %v945_v27 = vpack.i.b16 %v881_v3, %v881_v3  ;;  %v4408_v35 = vld [vmem:[%s5147_s24 + $0x1f] sm:$0x1]  ;;  %v1106_v21 = vld [vmem:[%s5283_s9 + $0x17] sm:$0x1] }
  0xd9   : > { %4776 = vst [vmem:[%s5283_s9 + $0xf] sm:$0x1] %v3901_v12  ;;  %v1092_v31 = vsel %vm5302_vm10, %v4238_v62, %v1091_v57  ;;  %v1095_v22 = vsel %vm5302_vm10, %v941_v5, %v1094_v63  ;;  %v1098_v25 = vsel %vm5302_vm10, %v4239_v34, %v1097_v55  ;;  %v1101_v36 = vsel %vm5302_vm10, %v943_v16, %v1100_v10  ;;  %v4673_v13 = vld [vmem:[%s5147_s24 + $0x18] sm:$0x1]  ;;  %v4674_v52 = vld [vmem:[%s5147_s24 + $0x19] sm:$0x1] }
  0xda   : > { %1087 = vst [vmem:[%s5283_s9 + $0x10] sm:$0x1] %v1086_v14  ;;  %v1104_v38 = vsel %vm5302_vm10, %v4240_v9, %v1103_v19  ;;  %v1616_v43 = vsel %vm662_vm2, %v5358_v42, %v5484_v28  ;;  %v2366_v45 = vunpack.c.l.bf16 %v4403_v0  ;;  %v2367_v46 = vunpack.c.l.bf16 %v4404_v37  ;;  %v4676_v59 = vld [vmem:[%s5147_s24 + $0x1b] sm:$0x1]  ;;  %v4677_v61 = vld [vmem:[%s5147_s24 + $0x1c] sm:$0x1] }
  0xdb   : > { %1090 = vst [vmem:[%s5283_s9 + $0x11] sm:$0x1] %v1089_v8  ;;  %v1617_v18 = vsel %vm664_vm3, %v5462_v15, %v1616_v43  ;;  %v2368_v47 = vunpack.c.l.bf16 %v4405_v23  ;;  %v2369_v50 = vunpack.c.l.bf16 %v4406_v26  ;;  %v2370_v54 = vunpack.c.l.bf16 %v4407_v29  ;;  %v4675_v15 = vld [vmem:[%s5147_s24 + $0x1a] sm:$0x1]  ;;  %v4678_v2 = vld [vmem:[%s5147_s24 + $0x1d] sm:$0x1] }
  0xdc   : > { %1093 = vst [vmem:[%s5283_s9 + $0x12] sm:$0x1] %v1092_v31  ;;  %v1618_v53 = vsel %vm666_vm4, %v5466_v20, %v1617_v18  ;;  %v2371_v42 = vunpack.c.l.bf16 %v4408_v35  ;;  %v2492_v28 = vperm.slane %v2364_v32, 0  ;;  %v2493_v57 = vperm.slane %v2365_v17, 0  ;;  %v5587_v40 = vld [vmem:[%s5147_s24 + $0x1e] sm:$0x1] }
  0xdd   : > { %1096 = vst [vmem:[%s5283_s9 + $0x13] sm:$0x1] %v1095_v22  ;;  %v1619_v49 = vsel %vm668_vm5, %v5472_v30, %v1618_v53  ;;  %v2494_v55 = vperm.slane %v2366_v45, 0  ;;  %v2495_v58 = vperm.slane %v2367_v46, 0  ;;  %v1107_v20 = vsel %vm5302_vm10, %v945_v27, %v1106_v21  ;;  %v3213_v30 = vpop.f32.mrf.mxu3 }
  0xde   : > { %1099 = vst [vmem:[%s5283_s9 + $0x14] sm:$0x1] %v1098_v25  ;;  %v1620_v11 = vsel %vm670_vm6, %v5480_v24, %v1619_v49  ;;  %v5577_v32 = vadd.f32 %v5251_v44, %v2273_v7  ;;  %v2496_v60 = vperm.slane %v2368_v47, 0  ;;  %v2497_v63 = vperm.slane %v2369_v50, 0  ;;  %v5590_v24 = vld [vmem:[%s5147_s24 + $0x1f] sm:$0x1] }
  0xdf   : > { %1102 = vst [vmem:[%s5283_s9 + $0x15] sm:$0x1] %v1101_v36  ;;  %v1672_v62 = vadd.f32 %v1620_v11, %v5419_v48  ;;  %v2498_v0 = vperm.slane %v2370_v54, 0  ;;  %v2555_v1 = vsel %vm658_vm0, %v2493_v57, %v2492_v28  ;;  %v3303_v44 = vunpack.c.l.bf16 %v4673_v13  ;;  %v419_v11 = vld [vmem:[%s5147_s24 + $0x21] sm:$0x1] }
  0xe0   : > { %1105 = vst [vmem:[%s5283_s9 + $0x16] sm:$0x1] %v1104_v38  ;;  %v2556_v3 = vsel %vm660_vm1, %v2494_v55, %v2555_v1  ;;  %v3304_v34 = vunpack.c.l.bf16 %v4674_v52  ;;  %v3305_v19 = vunpack.c.l.bf16 %v4675_v15  ;;  %v2499_v56 = vperm.slane %v2371_v42, 0  ;;  %v5626_v1 = vld [vmem:[%s5147_s24 + $0x23] sm:$0x1] }
  0xe1   : > { %1108 = vst [vmem:[%s5283_s9 + $0x17] sm:$0x1] %v1107_v20  ;;  %v1680_v37 = vpack.c.bf16 %v1672_v62, %v1672_v62  ;;  %v2557_v48 = vsel %vm662_vm2, %v2495_v58, %v2556_v3  ;;  %v5595_v4 = vadd.f32 %v5260_v6, %v3213_v30  ;;  %v3306_v16 = vunpack.c.l.bf16 %v4676_v59  ;;  %v2025_v43 = vld [vmem:[%s5283_s9 + $0x10] sm:$0x1]  ;;  %v418_v20 = vld [vmem:[%s5147_s24 + $0x20] sm:$0x1] }
  0xe2   : > { %v2558_v5 = vsel %vm664_vm3, %v2496_v60, %v2557_v48  ;;  %v3307_v9 = vunpack.c.l.bf16 %v4677_v61  ;;  %v3308_v10 = vunpack.c.l.bf16 %v4678_v2  ;;  %v3309_v8 = vunpack.c.l.bf16 %v5587_v40  ;;  %v2028_v18 = vld [vmem:[%s5283_s9 + $0x11] sm:$0x1]  ;;  %v5619_v60 = vld [vmem:[%s5147_s24 + $0x22] sm:$0x1] }
  0xe3   : > { %v1696_v12 = vrot.slane %v1680_v37, 3  ;;  %v2559_v14 = vsel %vm666_vm4, %v2497_v63, %v2558_v5  ;;  %v3310_v23 = vunpack.c.l.bf16 %v5590_v24  ;;  %v3431_v17 = vperm.slane %v3303_v44, 1  ;;  %v2031_v54 = vld [vmem:[%s5283_s9 + $0x12] sm:$0x1]  ;;  %v5635_v44 = vld [vmem:[%s5147_s24 + $0x24] sm:$0x1] }
  0xe4   : > { %v2560_v26 = vsel %vm668_vm5, %v2498_v0, %v2559_v14  ;;  %v3432_v27 = vperm.slane %v3304_v34, 1  ;;  %v3433_v6 = vperm.slane %v3305_v19, 1  ;;  %v3434_v46 = vperm.slane %v3306_v16, 1  ;;  %v2034_v42 = vld [vmem:[%s5283_s9 + $0x13] sm:$0x1] }
  0xe5   : > { %v1718_v31 = vsel %vm761_vm7, %v1680_v37, %v1696_v12  ;;  %v1720_v22 = vsel %vm658_vm0, %v1680_v37, %v1696_v12  ;;  %v1723_v25 = vsel %vm660_vm1, %v1680_v37, %v1696_v12  ;;  %v1726_v29 = vsel %vm662_vm2, %v1680_v37, %v1696_v12  ;;  %v2037_v28 = vld [vmem:[%s5283_s9 + $0x14] sm:$0x1]  ;;  %v5638_v34 = vld [vmem:[%s5147_s24 + $0x25] sm:$0x1]  ;;  %v5648_v5 = vld [vmem:[%s5147_s24 + $0x26] sm:$0x1] }
  0xe6   : > { %v1722_v35 = vrot.slane %v1720_v22, 1  ;;  %v1725_v36 = vrot.slane %v1723_v25, 2  ;;  %v1728_v38 = vrot.slane %v1726_v29, 3  ;;  %v1816_v21 = vunpack.i.h.s16 %v1718_v31  ;;  %v2040_v55 = vld [vmem:[%s5283_s9 + $0x15] sm:$0x1] }
  0xe7   : > { %v4317_v45 = vpack.i.b16 %v1718_v31, %v1718_v31  ;;  %v2561_v7 = vsel %vm670_vm6, %v2499_v56, %v2560_v26  ;;  %v3435_v47 = vperm.slane %v3307_v9, 1  ;;  %v2043_v58 = vld [vmem:[%s5283_s9 + $0x16] sm:$0x1]  ;;  %v3436_v59 = vperm.slane %v3308_v10, 1  ;;  %v5657_v12 = vld [vmem:[%s5147_s24 + $0x27] sm:$0x1] }
  0xe8   : > { %v1818_v50 = vunpack.i.h.s16 %v1722_v35  ;;  %v1820_v13 = vunpack.i.h.s16 %v1725_v36  ;;  %v1822_v52 = vunpack.i.h.s16 %v1728_v38  ;;  %v1880_v53 = vpack.i.b16 %v1816_v21, %v1816_v21  ;;  %v2046_v0 = vld [vmem:[%s5283_s9 + $0x17] sm:$0x1] }
  0xe9   : > { %v4318_v15 = vpack.i.b16 %v1722_v35, %v1722_v35  ;;  %v4319_v49 = vpack.i.b16 %v1725_v36, %v1725_v36  ;;  %v2026_v57 = vsel %vm5344_vm11, %v4317_v45, %v2025_v43  ;;  %v4320_v62 = vpack.i.b16 %v1728_v38, %v1728_v38 }
  0xea   : > { %v1882_v30 = vpack.i.b16 %v1818_v50, %v1818_v50  ;;  %v1884_v61 = vpack.i.b16 %v1820_v13, %v1820_v13  ;;  %2027 = vst [vmem:[%s5283_s9 + $0x10] sm:$0x1] %v2026_v57  ;;  %v2029_v63 = vsel %vm5344_vm11, %v1880_v53, %v2028_v18  ;;  %v1886_v2 = vpack.i.b16 %v1822_v52, %v1822_v52  ;;  %v4507_v13 = vld [vmem:[%s5283_s9 + $0x19] sm:$0x1]  ;;  %v4509_v57 = vld [vmem:[%s5283_s9 + $0x1a] sm:$0x1] }
  0xeb   : > { %2030 = vst [vmem:[%s5283_s9 + $0x11] sm:$0x1] %v2029_v63  ;;  %v2032_v3 = vsel %vm5344_vm11, %v4318_v15, %v2031_v54  ;;  %v2038_v40 = vsel %vm5344_vm11, %v4319_v49, %v2037_v28  ;;  %v2613_v24 = vadd.f32 %v2561_v7, %v5577_v32  ;;  %v2044_v56 = vsel %vm5344_vm11, %v4320_v62, %v2043_v58 }
  0xec   : > { %2033 = vst [vmem:[%s5283_s9 + $0x12] sm:$0x1] %v2032_v3  ;;  %v2035_v19 = vsel %vm5344_vm11, %v1882_v30, %v2034_v42  ;;  %v2041_v37 = vsel %vm5344_vm11, %v1884_v61, %v2040_v55  ;;  %v3437_v48 = vperm.slane %v3309_v8, 1  ;;  %v2047_v32 = vsel %vm5344_vm11, %v1886_v2, %v2046_v0  ;;  %v4513_v55 = vld [vmem:[%s5283_s9 + $0x1c] sm:$0x1] }
  0xed   : > { %2036 = vst [vmem:[%s5283_s9 + $0x13] sm:$0x1] %v2035_v19  ;;  %v2621_v16 = vpack.c.bf16 %v2613_v24, %v2613_v24  ;;  %v5653_v9 = vperm.slane %v3310_v23, 1  ;;  %v3494_v10 = vsel %vm658_vm0, %v3432_v27, %v3431_v17  ;;  %v482_v26 = vunpack.c.l.bf16 %v418_v20  ;;  %v4515_v30 = vld [vmem:[%s5283_s9 + $0x1d] sm:$0x1] }
  0xee   : > { %2039 = vst [vmem:[%s5283_s9 + $0x14] sm:$0x1] %v2038_v40  ;;  %v3495_v14 = vsel %vm660_vm1, %v3433_v6, %v3494_v10  ;;  %v483_v8 = vunpack.c.l.bf16 %v419_v11  ;;  %v484_v31 = vunpack.c.l.bf16 %v5619_v60  ;;  %v485_v29 = vunpack.c.l.bf16 %v5626_v1  ;;  %v4517_v1 = vld [vmem:[%s5283_s9 + $0x1e] sm:$0x1]  ;;  %v4519_v2 = vld [vmem:[%s5283_s9 + $0x1f] sm:$0x1] }
  0xef   : > { %2042 = vst [vmem:[%s5283_s9 + $0x15] sm:$0x1] %v2041_v37  ;;  %v2637_v22 = vrot.slane %v2621_v16, 3  ;;  %v3496_v25 = vsel %vm662_vm2, %v3434_v46, %v3495_v14  ;;  %v486_v23 = vunpack.c.l.bf16 %v5635_v44  ;;  %v487_v27 = vunpack.c.l.bf16 %v5638_v34  ;;  %v387_v44 = vpop.f32.mrf.mxu0  ;;  %v1367_v19 = vld [vmem:[%s5147_s24 + $0x20] sm:$0x1] }
  0xf0   : > { %2045 = vst [vmem:[%s5283_s9 + $0x16] sm:$0x1] %v2044_v56  ;;  %v3497_v17 = vsel %vm664_vm3, %v3435_v47, %v3496_v25  ;;  %v488_v6 = vunpack.c.l.bf16 %v5648_v5  ;;  %v489_v35 = vunpack.c.l.bf16 %v5657_v12  ;;  %v4505_v47 = vld [vmem:[%s5283_s9 + $0x18] sm:$0x1]  ;;  %v610_v53 = vperm.slane %v482_v26, 0 }
  0xf1   : > { %2048 = vst [vmem:[%s5283_s9 + $0x17] sm:$0x1] %v2047_v32  ;;  %v2659_v36 = vsel %vm761_vm7, %v2621_v16, %v2637_v22  ;;  %v2661_v38 = vsel %vm658_vm0, %v2621_v16, %v2637_v22  ;;  %v2664_v21 = vsel %vm660_vm1, %v2621_v16, %v2637_v22  ;;  %v2667_v43 = vsel %vm662_vm2, %v2621_v16, %v2637_v22  ;;  %v1368_v37 = vld [vmem:[%s5147_s24 + $0x21] sm:$0x1]  ;;  %v5699_v56 = vld [vmem:[%s5147_s24 + $0x22] sm:$0x1] }
  0xf2   : > { %v2663_v45 = vrot.slane %v2661_v38, 1  ;;  %v2666_v18 = vrot.slane %v2664_v21, 2  ;;  %v2669_v7 = vrot.slane %v2667_v43, 3  ;;  %v2757_v46 = vunpack.i.h.s16 %v2659_v36  ;;  %v5712_v10 = vld [vmem:[%s5147_s24 + $0x23] sm:$0x1]  ;;  %v1336_v38 = vpop.f32.mrf.mxu1 }
  0xf3   : > { %v4461_v50 = vpack.i.b16 %v2659_v36, %v2659_v36  ;;  %v3498_v52 = vsel %vm666_vm4, %v3436_v59, %v3497_v17  ;;  %v611_v54 = vperm.slane %v483_v8, 0  ;;  %v4511_v59 = vld [vmem:[%s5283_s9 + $0x1b] sm:$0x1]  ;;  %v612_v34 = vperm.slane %v484_v31, 0  ;;  %v5715_v14 = vld [vmem:[%s5147_s24 + $0x24] sm:$0x1] }
  0xf4   : > { %v2759_v42 = vunpack.i.h.s16 %v2663_v45  ;;  %v2761_v28 = vunpack.i.h.s16 %v2666_v18  ;;  %v2763_v15 = vunpack.i.h.s16 %v2669_v7  ;;  %v2821_v49 = vpack.i.b16 %v2757_v46, %v2757_v46  ;;  %v5729_v21 = vld [vmem:[%s5147_s24 + $0x26] sm:$0x1] }
  0xf5   : > { %v4462_v58 = vpack.i.b16 %v2663_v45, %v2663_v45  ;;  %v4463_v20 = vpack.i.b16 %v2666_v18, %v2666_v18  ;;  %v4464_v11 = vpack.i.b16 %v2669_v7, %v2669_v7  ;;  %v2966_v60 = vsel %vm5302_vm10, %v4461_v50, %v4505_v47  ;;  %v5739_v45 = vld [vmem:[%s5147_s24 + $0x27] sm:$0x1] }
  0xf6   : > { %v2823_v61 = vpack.i.b16 %v2759_v42, %v2759_v42  ;;  %v2825_v62 = vpack.i.b16 %v2761_v28, %v2761_v28  ;;  %v2827_v63 = vpack.i.b16 %v2763_v15, %v2763_v15  ;;  %4506 = vst [vmem:[%s5283_s9 + $0x18] sm:$0x1] %v2966_v60  ;;  %v2969_v0 = vsel %vm5302_vm10, %v2821_v49, %v4507_v13 }
  0xf7   : > { %4508 = vst [vmem:[%s5283_s9 + $0x19] sm:$0x1] %v2969_v0  ;;  %v2972_v3 = vsel %vm5302_vm10, %v4462_v58, %v4509_v57  ;;  %v2978_v40 = vsel %vm5302_vm10, %v4463_v20, %v4513_v55  ;;  %v3499_v24 = vsel %vm668_vm5, %v3437_v48, %v3498_v52  ;;  %v5709_v48 = vadd.f32 %v5224_v39, %v387_v44 }
  0xf8   : > { %4510 = vst [vmem:[%s5283_s9 + $0x1a] sm:$0x1] %v2972_v3  ;;  %v2975_v5 = vsel %vm5302_vm10, %v2823_v61, %v4511_v59  ;;  %v2981_v32 = vsel %vm5302_vm10, %v2825_v62, %v4515_v30  ;;  %v3500_v16 = vsel %vm670_vm6, %v5653_v9, %v3499_v24  ;;  %v2984_v26 = vsel %vm5302_vm10, %v4464_v11, %v4517_v1  ;;  %v5722_v9 = vld [vmem:[%s5147_s24 + $0x25] sm:$0x1] }
  0xf9   : > { %4512 = vst [vmem:[%s5283_s9 + $0x1b] sm:$0x1] %v2975_v5  ;;  %v3552_v8 = vadd.f32 %v3500_v16, %v5595_v4  ;;  %v613_v31 = vperm.slane %v485_v29, 0  ;;  %v614_v22 = vperm.slane %v486_v23, 0  ;;  %v2987_v39 = vsel %vm5302_vm10, %v2827_v63, %v4519_v2 }
  0xfa   : > { %4514 = vst [vmem:[%s5283_s9 + $0x1c] sm:$0x1] %v2978_v40  ;;  %v615_v25 = vperm.slane %v487_v27, 0  ;;  %v616_v17 = vperm.slane %v488_v6, 0  ;;  %v679_v36 = vsel %vm658_vm0, %v611_v54, %v610_v53  ;;  %v617_v29 = vperm.slane %v489_v35, 0 }
  0xfb   : > { %4516 = vst [vmem:[%s5283_s9 + $0x1d] sm:$0x1] %v2981_v32  ;;  %v3560_v4 = vpack.c.bf16 %v3552_v8, %v3552_v8  ;;  %v680_v23 = vsel %vm660_vm1, %v612_v34, %v679_v36  ;;  %v5736_v43 = vadd.f32 %v5233_v51, %v1336_v38  ;;  %v1431_v6 = vunpack.c.l.bf16 %v1367_v19  ;;  %v5773_v8 = vld [vmem:[%s5147_s24 + $0x2a] sm:$0x1] }
  0xfc   : > { %4518 = vst [vmem:[%s5283_s9 + $0x1e] sm:$0x1] %v2984_v26  ;;  %v681_v27 = vsel %vm662_vm2, %v613_v31, %v680_v23  ;;  %v1432_v18 = vunpack.c.l.bf16 %v1368_v37  ;;  %v1433_v7 = vunpack.c.l.bf16 %v5699_v56  ;;  %v1434_v35 = vunpack.c.l.bf16 %v5712_v10  ;;  %v4410_v26 = vld [vmem:[%s5147_s24 + $0x29] sm:$0x1]  ;;  %v5794_v23 = vld [vmem:[%s5147_s24 + $0x2d] sm:$0x1] }
  0xfd   : > { %4520 = vst [vmem:[%s5283_s9 + $0x1f] sm:$0x1] %v2987_v39  ;;  %v3576_v46 = vrot.slane %v3560_v4, 3  ;;  %v682_v12 = vsel %vm664_vm3, %v614_v22, %v681_v27  ;;  %v1435_v51 = vunpack.c.l.bf16 %v5715_v14  ;;  %v1436_v50 = vunpack.c.l.bf16 %v5722_v9  ;;  %v4777_v58 = vld [vmem:[%s5283_s9 + $0x18] sm:$0x1] }
  0xfe   : > { %v683_v47 = vsel %vm666_vm4, %v615_v25, %v682_v12  ;;  %v1437_v13 = vunpack.c.l.bf16 %v5729_v21  ;;  %v1438_v52 = vunpack.c.l.bf16 %v5739_v45  ;;  %v4779_v11 = vld [vmem:[%s5283_s9 + $0x19] sm:$0x1]  ;;  %v1559_v59 = vperm.slane %v1431_v6, 1  ;;  %v4409_v14 = vld [vmem:[%s5147_s24 + $0x28] sm:$0x1] }
  0xff   : > { %v3598_v53 = vsel %vm761_vm7, %v3560_v4, %v3576_v46  ;;  %v3600_v54 = vsel %vm658_vm0, %v3560_v4, %v3576_v46  ;;  %v3603_v42 = vsel %vm660_vm1, %v3560_v4, %v3576_v46  ;;  %v3606_v28 = vsel %vm662_vm2, %v3560_v4, %v3576_v46  ;;  %v4781_v1 = vld [vmem:[%s5283_s9 + $0x1a] sm:$0x1]  ;;  %v5782_v25 = vld [vmem:[%s5147_s24 + $0x2b] sm:$0x1] }
 0x100   : > { %v3602_v15 = vrot.slane %v3600_v54, 1  ;;  %v3605_v49 = vrot.slane %v3603_v42, 2  ;;  %v3608_v57 = vrot.slane %v3606_v28, 3  ;;  %v3696_v55 = vunpack.i.h.s16 %v3598_v53  ;;  %v4783_v44 = vld [vmem:[%s5283_s9 + $0x1b] sm:$0x1] }
 0x101   : > { %v4733_v20 = vpack.i.b16 %v3598_v53, %v3598_v53  ;;  %v684_v60 = vsel %vm668_vm5, %v616_v17, %v683_v47  ;;  %v1560_v30 = vperm.slane %v1432_v18, 1  ;;  %v4785_v2 = vld [vmem:[%s5283_s9 + $0x1c] sm:$0x1]  ;;  %v1561_v19 = vperm.slane %v1433_v7, 1  ;;  %v5785_v17 = vld [vmem:[%s5147_s24 + $0x2c] sm:$0x1] }
 0x102   : > { %v3698_v61 = vunpack.i.h.s16 %v3602_v15  ;;  %v3700_v62 = vunpack.i.h.s16 %v3605_v49  ;;  %v3702_v63 = vunpack.i.h.s16 %v3608_v57  ;;  %v3760_v0 = vpack.i.b16 %v3696_v55, %v3696_v55  ;;  %v4787_v34 = vld [vmem:[%s5283_s9 + $0x1d] sm:$0x1]  ;;  %v5802_v18 = vld [vmem:[%s5147_s24 + $0x2e] sm:$0x1] }
 0x103   : > { %v4734_v3 = vpack.i.b16 %v3602_v15, %v3602_v15  ;;  %v4735_v40 = vpack.i.b16 %v3605_v49, %v3605_v49  ;;  %v3904_v24 = vsel %vm5344_vm11, %v4733_v20, %v4777_v58  ;;  %v4736_v5 = vpack.i.b16 %v3608_v57, %v3608_v57  ;;  %v4789_v16 = vld [vmem:[%s5283_s9 + $0x1e] sm:$0x1] }
 0x104   : > { %v3762_v37 = vpack.i.b16 %v3698_v61, %v3698_v61  ;;  %v3764_v56 = vpack.i.b16 %v3700_v62, %v3700_v62  ;;  %4778 = vst [vmem:[%s5283_s9 + $0x18] sm:$0x1] %v3904_v24  ;;  %v3907_v32 = vsel %vm5344_vm11, %v3760_v0, %v4779_v11  ;;  %v4791_v10 = vld [vmem:[%s5283_s9 + $0x1f] sm:$0x1]  ;;  %v3766_v31 = vpack.i.b16 %v3702_v63, %v3702_v63  ;;  %v1109_v62 = vld [vmem:[%s5283_s9 + $0x20] sm:$0x1] }
 0x105   : > { %4780 = vst [vmem:[%s5283_s9 + $0x19] sm:$0x1] %v3907_v32  ;;  %v3910_v22 = vsel %vm5344_vm11, %v4734_v3, %v4781_v1  ;;  %v3916_v9 = vsel %vm5344_vm11, %v4735_v40, %v4785_v2  ;;  %v685_v39 = vsel %vm670_vm6, %v617_v29, %v684_v60  ;;  %v1562_v4 = vperm.slane %v1434_v35, 1  ;;  %v5809_v35 = vld [vmem:[%s5147_s24 + $0x2f] sm:$0x1] }
 0x106   : > { %4782 = vst [vmem:[%s5283_s9 + $0x1a] sm:$0x1] %v3910_v22  ;;  %v3913_v36 = vsel %vm5344_vm11, %v3762_v37, %v4783_v44  ;;  %v3919_v38 = vsel %vm5344_vm11, %v3764_v56, %v4787_v34  ;;  %v731_v21 = vadd.f32 %v685_v39, %v5709_v48  ;;  %v3922_v29 = vsel %vm5344_vm11, %v4736_v5, %v4789_v16  ;;  %v1112_v0 = vld [vmem:[%s5283_s9 + $0x21] sm:$0x1]  ;;  %v1121_v37 = vld [vmem:[%s5283_s9 + $0x24] sm:$0x1] }
 0x107   : > { %4784 = vst [vmem:[%s5283_s9 + $0x1b] sm:$0x1] %v3913_v36  ;;  %v3925_v45 = vsel %vm5344_vm11, %v3766_v31, %v4791_v10  ;;  %v1563_v27 = vperm.slane %v1435_v51, 1  ;;  %v1564_v6 = vperm.slane %v1436_v50, 1  ;;  %v1565_v46 = vperm.slane %v1437_v13, 1 }
 0x108   : > { %4786 = vst [vmem:[%s5283_s9 + $0x1c] sm:$0x1] %v3916_v9  ;;  %v739_v7 = vpack.c.bf16 %v731_v21, %v731_v21  ;;  %v5805_v48 = vperm.slane %v1438_v52, 1  ;;  %v1621_v12 = vsel %vm658_vm0, %v1560_v30, %v1559_v59  ;;  %v2372_v53 = vunpack.c.l.bf16 %v4409_v14  ;;  %v1118_v10 = vld [vmem:[%s5283_s9 + $0x23] sm:$0x1] }
 0x109   : > { %4788 = vst [vmem:[%s5283_s9 + $0x1d] sm:$0x1] %v3919_v38  ;;  %v1622_v47 = vsel %vm660_vm1, %v1561_v19, %v1621_v12  ;;  %v2373_v54 = vunpack.c.l.bf16 %v4410_v26  ;;  %v2374_v51 = vunpack.c.l.bf16 %v5773_v8  ;;  %v2375_v13 = vunpack.c.l.bf16 %v5782_v25  ;;  %v1115_v19 = vld [vmem:[%s5283_s9 + $0x22] sm:$0x1]  ;;  %v1124_v14 = vld [vmem:[%s5283_s9 + $0x25] sm:$0x1]  ;;  %v2276_v26 = vpop.f32.mrf.mxu2 }
 0x10a   : > { %4790 = vst [vmem:[%s5283_s9 + $0x1e] sm:$0x1] %v3922_v29  ;;  %v755_v50 = vrot.slane %v739_v7, 3  ;;  %v1623_v42 = vsel %vm662_vm2, %v1562_v4, %v1622_v47  ;;  %v2376_v52 = vunpack.c.l.bf16 %v5785_v17  ;;  %v2377_v15 = vunpack.c.l.bf16 %v5794_v23  ;;  %v1127_v39 = vld [vmem:[%s5283_s9 + $0x26] sm:$0x1] }
 0x10b   : > { %4792 = vst [vmem:[%s5283_s9 + $0x1f] sm:$0x1] %v3925_v45  ;;  %v1624_v28 = vsel %vm664_vm3, %v1563_v27, %v1623_v42  ;;  %v2378_v49 = vunpack.c.l.bf16 %v5802_v18  ;;  %v2379_v57 = vunpack.c.l.bf16 %v5809_v35  ;;  %v2500_v2 = vperm.slane %v2372_v53, 0  ;;  %v1130_v25 = vld [vmem:[%s5283_s9 + $0x27] sm:$0x1] }
 0x10c   : > { %v790_v55 = vsel %vm761_vm7, %v739_v7, %v755_v50  ;;  %v792_v58 = vsel %vm658_vm0, %v739_v7, %v755_v50  ;;  %v795_v20 = vsel %vm660_vm1, %v739_v7, %v755_v50  ;;  %v798_v11 = vsel %vm662_vm2, %v739_v7, %v755_v50  ;;  %v4681_v4 = vld [vmem:[%s5147_s24 + $0x28] sm:$0x1]  ;;  %v4682_v23 = vld [vmem:[%s5147_s24 + $0x29] sm:$0x1]  ;;  %v5850_v29 = vld [vmem:[%s5147_s24 + $0x2a] sm:$0x1] }
 0x10d   : > { %v794_v60 = vrot.slane %v792_v58, 1  ;;  %v797_v59 = vrot.slane %v795_v20, 2  ;;  %v800_v30 = vrot.slane %v798_v11, 3  ;;  %v883_v61 = vunpack.i.h.s16 %v790_v55  ;;  %v5862_v18 = vld [vmem:[%s7582_s3] ss:$0 sm:$0xff]  ;;  %v3216_v58 = vpop.f32.mrf.mxu3 }
 0x10e   : > { %v4241_v63 = vpack.i.b16 %v790_v55, %v790_v55  ;;  %v1625_v1 = vsel %vm666_vm4, %v1564_v6, %v1624_v28  ;;  %v2501_v3 = vperm.slane %v2373_v54, 0  ;;  %v2502_v21 = vperm.slane %v2374_v51, 0  ;;  %v5871_v12 = vld [vmem:[%s5147_s24 + $0x2c] sm:$0x1]  ;;  %v5878_v51 = vld [vmem:[%s5147_s24 + $0x2d] sm:$0x1] }
 0x10f   : > { %v885_v40 = vunpack.i.h.s16 %v794_v60  ;;  %v887_v24 = vunpack.i.h.s16 %v797_v59  ;;  %v889_v44 = vunpack.i.h.s16 %v800_v30  ;;  %v947_v34 = vpack.i.b16 %v883_v61, %v883_v61  ;;  %v5885_v20 = vld [vmem:[%s5147_s24 + $0x2e] sm:$0x1]  ;;  %v5894_v11 = vld [vmem:[%s7582_s3] ss:$0 sm:$0xff] }
 0x110   : > { %v4242_v56 = vpack.i.b16 %v794_v60, %v794_v60  ;;  %v4243_v5 = vpack.i.b16 %v797_v59, %v797_v59  ;;  %v4244_v32 = vpack.i.b16 %v800_v30, %v800_v30  ;;  %v1110_v16 = vsel %vm5302_vm10, %v4241_v63, %v1109_v62 }
 0x111   : > { %v949_v8 = vpack.i.b16 %v885_v40, %v885_v40  ;;  %v951_v31 = vpack.i.b16 %v887_v24, %v887_v24  ;;  %v953_v22 = vpack.i.b16 %v889_v44, %v889_v44  ;;  %1111 = vst [vmem:[%s5283_s9 + $0x20] sm:$0x1] %v1110_v16  ;;  %v1113_v9 = vsel %vm5302_vm10, %v947_v34, %v1112_v0 }
 0x112   : > { %1114 = vst [vmem:[%s5283_s9 + $0x21] sm:$0x1] %v1113_v9  ;;  %v1116_v17 = vsel %vm5302_vm10, %v4242_v56, %v1115_v19  ;;  %v1122_v36 = vsel %vm5302_vm10, %v4243_v5, %v1121_v37  ;;  %v1626_v38 = vsel %vm668_vm5, %v1565_v46, %v1625_v1  ;;  %v5865_v7 = vadd.f32 %v5862_v18, %v2276_v26  ;;  %v5868_v46 = vld [vmem:[%s5147_s24 + $0x2b] sm:$0x1] }
 0x113   : > { %1117 = vst [vmem:[%s5283_s9 + $0x22] sm:$0x1] %v1116_v17  ;;  %v1119_v45 = vsel %vm5302_vm10, %v949_v8, %v1118_v10  ;;  %v1125_v27 = vsel %vm5302_vm10, %v951_v31, %v1124_v14  ;;  %v1627_v6 = vsel %vm670_vm6, %v5805_v48, %v1626_v38  ;;  %v1128_v47 = vsel %vm5302_vm10, %v4244_v32, %v1127_v39 }
 0x114   : > { %1120 = vst [vmem:[%s5283_s9 + $0x23] sm:$0x1] %v1119_v45  ;;  %v1673_v48 = vadd.f32 %v1627_v6, %v5736_v43  ;;  %v2503_v53 = vperm.slane %v2375_v13, 0  ;;  %v2504_v54 = vperm.slane %v2376_v52, 0  ;;  %v1131_v50 = vsel %vm5302_vm10, %v953_v22, %v1130_v25 }
 0x115   : > { %1123 = vst [vmem:[%s5283_s9 + $0x24] sm:$0x1] %v1122_v36  ;;  %v2505_v42 = vperm.slane %v2377_v15, 0  ;;  %v2506_v28 = vperm.slane %v2378_v49, 0  ;;  %v2562_v55 = vsel %vm658_vm0, %v2501_v3, %v2500_v2  ;;  %v2507_v13 = vperm.slane %v2379_v57, 0 }
 0x116   : > { %1126 = vst [vmem:[%s5283_s9 + $0x25] sm:$0x1] %v1125_v27  ;;  %v1681_v43 = vpack.c.bf16 %v1673_v48, %v1673_v48  ;;  %v2563_v52 = vsel %vm660_vm1, %v2502_v21, %v2562_v55  ;;  %v5897_v15 = vadd.f32 %v5894_v11, %v3216_v58  ;;  %v5900_v49 = vld [vmem:[%s5147_s24 + $0x2f] sm:$0x1]  ;;  %v3311_v59 = vunpack.c.l.bf16 %v4681_v4  ;;  %v426_v48 = vld [vmem:[%s5147_s24 + $0x30] sm:$0x1] }
 0x117   : > { %1129 = vst [vmem:[%s5283_s9 + $0x26] sm:$0x1] %v1128_v47  ;;  %v2564_v60 = vsel %vm662_vm2, %v2503_v53, %v2563_v52  ;;  %v3312_v30 = vunpack.c.l.bf16 %v4682_v23  ;;  %v3313_v35 = vunpack.c.l.bf16 %v5850_v29  ;;  %v3314_v62 = vunpack.c.l.bf16 %v5868_v46  ;;  %v427_v53 = vld [vmem:[%s5147_s24 + $0x31] sm:$0x1]  ;;  %v5943_v55 = vld [vmem:[%s5147_s24 + $0x33] sm:$0x1] }
 0x118   : > { %1132 = vst [vmem:[%s5283_s9 + $0x27] sm:$0x1] %v1131_v50  ;;  %v1697_v57 = vrot.slane %v1681_v43, 3  ;;  %v2565_v61 = vsel %vm664_vm3, %v2504_v54, %v2564_v60  ;;  %v3315_v63 = vunpack.c.l.bf16 %v5871_v12  ;;  %v3316_v1 = vunpack.c.l.bf16 %v5878_v51  ;;  %v2049_v32 = vld [vmem:[%s5283_s9 + $0x20] sm:$0x1] }
 0x119   : > { %v2566_v0 = vsel %vm666_vm4, %v2505_v42, %v2565_v61  ;;  %v3317_v2 = vunpack.c.l.bf16 %v5885_v20  ;;  %v3318_v3 = vunpack.c.l.bf16 %v5900_v49  ;;  %v2052_v10 = vld [vmem:[%s5283_s9 + $0x21] sm:$0x1]  ;;  %v3439_v26 = vperm.slane %v3311_v59, 1  ;;  %v5934_v54 = vld [vmem:[%s5147_s24 + $0x32] sm:$0x1] }
 0x11a   : > { %v1731_v40 = vsel %vm761_vm7, %v1681_v43, %v1697_v57  ;;  %v1733_v24 = vsel %vm658_vm0, %v1681_v43, %v1697_v57  ;;  %v1736_v44 = vsel %vm660_vm1, %v1681_v43, %v1697_v57  ;;  %v1739_v34 = vsel %vm662_vm2, %v1681_v43, %v1697_v57  ;;  %v2055_v25 = vld [vmem:[%s5283_s9 + $0x22] sm:$0x1]  ;;  %v5946_v58 = vld [vmem:[%s5147_s24 + $0x34] sm:$0x1]  ;;  %v5955_v60 = vld [vmem:[%s5147_s24 + $0x35] sm:$0x1] }
 0x11b   : > { %v1735_v19 = vrot.slane %v1733_v24, 1  ;;  %v1738_v37 = vrot.slane %v1736_v44, 2  ;;  %v1741_v56 = vrot.slane %v1739_v34, 3  ;;  %v1824_v5 = vunpack.i.h.s16 %v1731_v40  ;;  %v2058_v23 = vld [vmem:[%s5283_s9 + $0x23] sm:$0x1] }
 0x11c   : > { %v4321_v16 = vpack.i.b16 %v1731_v40, %v1731_v40  ;;  %v2567_v14 = vsel %vm668_vm5, %v2506_v28, %v2566_v0  ;;  %v3440_v8 = vperm.slane %v3312_v30, 1  ;;  %v2061_v17 = vld [vmem:[%s5283_s9 + $0x24] sm:$0x1]  ;;  %v3441_v28 = vperm.slane %v3313_v35, 1  ;;  %v5963_v57 = vld [vmem:[%s5147_s24 + $0x36] sm:$0x1] }
 0x11d   : > { %v1826_v31 = vunpack.i.h.s16 %v1735_v19  ;;  %v1828_v22 = vunpack.i.h.s16 %v1738_v37  ;;  %v1830_v9 = vunpack.i.h.s16 %v1741_v56  ;;  %v1888_v39 = vpack.i.b16 %v1824_v5, %v1824_v5  ;;  %v2064_v29 = vld [vmem:[%s5283_s9 + $0x25] sm:$0x1]  ;;  %v5970_v40 = vld [vmem:[%s5147_s24 + $0x37] sm:$0x1] }
 0x11e   : > { %v4322_v36 = vpack.i.b16 %v1735_v19, %v1735_v19  ;;  %v4323_v38 = vpack.i.b16 %v1738_v37, %v1738_v37  ;;  %v4324_v21 = vpack.i.b16 %v1741_v56, %v1741_v56  ;;  %v2050_v4 = vsel %vm5344_vm11, %v4321_v16, %v2049_v32  ;;  %v2067_v12 = vld [vmem:[%s5283_s9 + $0x26] sm:$0x1] }
 0x11f   : > { %v1890_v45 = vpack.i.b16 %v1826_v31, %v1826_v31  ;;  %v1892_v27 = vpack.i.b16 %v1828_v22, %v1828_v22  ;;  %v1894_v6 = vpack.i.b16 %v1830_v9, %v1830_v9  ;;  %2051 = vst [vmem:[%s5283_s9 + $0x20] sm:$0x1] %v2050_v4  ;;  %v2053_v46 = vsel %vm5344_vm11, %v1888_v39, %v2052_v10  ;;  %v2070_v47 = vld [vmem:[%s5283_s9 + $0x27] sm:$0x1]  ;;  %v4521_v39 = vld [vmem:[%s5283_s9 + $0x28] sm:$0x1] }
 0x120   : > { %2054 = vst [vmem:[%s5283_s9 + $0x21] sm:$0x1] %v2053_v46  ;;  %v2056_v51 = vsel %vm5344_vm11, %v4322_v36, %v2055_v25  ;;  %v2062_v50 = vsel %vm5344_vm11, %v4323_v38, %v2061_v17  ;;  %v2568_v42 = vsel %vm670_vm6, %v2507_v13, %v2567_v14  ;;  %v3442_v49 = vperm.slane %v3314_v62, 1  ;;  %v4523_v17 = vld [vmem:[%s5283_s9 + $0x29] sm:$0x1] }
 0x121   : > { %2057 = vst [vmem:[%s5283_s9 + $0x22] sm:$0x1] %v2056_v51  ;;  %v2059_v20 = vsel %vm5344_vm11, %v1890_v45, %v2058_v23  ;;  %v2065_v43 = vsel %vm5344_vm11, %v1892_v27, %v2064_v29  ;;  %v2614_v52 = vadd.f32 %v2568_v42, %v5865_v7  ;;  %v2068_v13 = vsel %vm5344_vm11, %v4324_v21, %v2067_v12  ;;  %v4525_v27 = vld [vmem:[%s5283_s9 + $0x2a] sm:$0x1]  ;;  %v389_v51 = vpop.f32.mrf.mxu0 }
 0x122   : > { %2060 = vst [vmem:[%s5283_s9 + $0x23] sm:$0x1] %v2059_v20  ;;  %v2071_v59 = vsel %vm5344_vm11, %v1894_v6, %v2070_v47  ;;  %v3443_v30 = vperm.slane %v3315_v63, 1  ;;  %v3444_v35 = vperm.slane %v3316_v1, 1  ;;  %v3445_v0 = vperm.slane %v3317_v2, 1 }
 0x123   : > { %2063 = vst [vmem:[%s5283_s9 + $0x24] sm:$0x1] %v2062_v50  ;;  %v2622_v61 = vpack.c.bf16 %v2614_v52, %v2614_v52  ;;  %v5966_v7 = vperm.slane %v3318_v3, 1  ;;  %v3501_v62 = vsel %vm658_vm0, %v3440_v8, %v3439_v26  ;;  %v490_v44 = vunpack.c.l.bf16 %v426_v48  ;;  %v4529_v6 = vld [vmem:[%s5283_s9 + $0x2c] sm:$0x1] }
 0x124   : > { %2066 = vst [vmem:[%s5283_s9 + $0x25] sm:$0x1] %v2065_v43  ;;  %v3502_v24 = vsel %vm660_vm1, %v3441_v28, %v3501_v62  ;;  %v491_v34 = vunpack.c.l.bf16 %v427_v53  ;;  %v492_v63 = vunpack.c.l.bf16 %v5934_v54  ;;  %v493_v2 = vunpack.c.l.bf16 %v5943_v55  ;;  %v4527_v53 = vld [vmem:[%s5283_s9 + $0x2b] sm:$0x1]  ;;  %v4531_v54 = vld [vmem:[%s5283_s9 + $0x2d] sm:$0x1] }
 0x125   : > { %2069 = vst [vmem:[%s5283_s9 + $0x26] sm:$0x1] %v2068_v13  ;;  %v2638_v1 = vrot.slane %v2622_v61, 3  ;;  %v3503_v19 = vsel %vm662_vm2, %v3442_v49, %v3502_v24  ;;  %v494_v3 = vunpack.c.l.bf16 %v5946_v58  ;;  %v495_v56 = vunpack.c.l.bf16 %v5955_v60  ;;  %v4533_v58 = vld [vmem:[%s5283_s9 + $0x2e] sm:$0x1] }
 0x126   : > { %2072 = vst [vmem:[%s5283_s9 + $0x27] sm:$0x1] %v2071_v59  ;;  %v3504_v37 = vsel %vm664_vm3, %v3443_v30, %v3503_v19  ;;  %v496_v5 = vunpack.c.l.bf16 %v5963_v57  ;;  %v497_v32 = vunpack.c.l.bf16 %v5970_v40  ;;  %v618_v38 = vperm.slane %v490_v44, 0  ;;  %v4535_v20 = vld [vmem:[%s5283_s9 + $0x2f] sm:$0x1]  ;;  %v1338_v44 = vpop.f32.mrf.mxu1 }
 0x127   : > { %v2672_v16 = vsel %vm761_vm7, %v2622_v61, %v2638_v1  ;;  %v2674_v10 = vsel %vm658_vm0, %v2622_v61, %v2638_v1  ;;  %v2677_v14 = vsel %vm660_vm1, %v2622_v61, %v2638_v1  ;;  %v2680_v26 = vsel %vm662_vm2, %v2622_v61, %v2638_v1  ;;  %v1375_v59 = vld [vmem:[%s5147_s24 + $0x30] sm:$0x1]  ;;  %v1376_v30 = vld [vmem:[%s5147_s24 + $0x31] sm:$0x1] }
 0x128   : > { %v2676_v8 = vrot.slane %v2674_v10, 1  ;;  %v2679_v31 = vrot.slane %v2677_v14, 2  ;;  %v2682_v22 = vrot.slane %v2680_v26, 3  ;;  %v2765_v9 = vunpack.i.h.s16 %v2672_v16 }
 0x129   : > { %v4465_v25 = vpack.i.b16 %v2672_v16, %v2672_v16  ;;  %v3505_v36 = vsel %vm666_vm4, %v3444_v35, %v3504_v37  ;;  %v619_v21 = vperm.slane %v491_v34, 0  ;;  %v620_v13 = vperm.slane %v492_v63, 0  ;;  %v6011_v35 = vld [vmem:[%s5147_s24 + $0x32] sm:$0x1]  ;;  %v6029_v34 = vld [vmem:[%s5147_s24 + $0x33] sm:$0x1] }
 0x12a   : > { %v2767_v4 = vunpack.i.h.s16 %v2676_v8  ;;  %v2769_v23 = vunpack.i.h.s16 %v2679_v31  ;;  %v2771_v29 = vunpack.i.h.s16 %v2682_v22  ;;  %v2829_v45 = vpack.i.b16 %v2765_v9, %v2765_v9  ;;  %v6032_v63 = vld [vmem:[%s5147_s24 + $0x34] sm:$0x1]  ;;  %v6039_v16 = vld [vmem:[%s5147_s24 + $0x35] sm:$0x1] }
 0x12b   : > { %v4466_v46 = vpack.i.b16 %v2676_v8, %v2676_v8  ;;  %v4467_v12 = vpack.i.b16 %v2679_v31, %v2679_v31  ;;  %v4468_v47 = vpack.i.b16 %v2682_v22, %v2682_v22  ;;  %v2990_v48 = vsel %vm5302_vm10, %v4465_v25, %v4521_v39  ;;  %v6048_v31 = vld [vmem:[%s5147_s24 + $0x36] sm:$0x1]  ;;  %v6057_v22 = vld [vmem:[%s7582_s3] ss:$0 sm:$0xff] }
 0x12c   : > { %v2831_v50 = vpack.i.b16 %v2767_v4, %v2767_v4  ;;  %v2833_v42 = vpack.i.b16 %v2769_v23, %v2769_v23  ;;  %v2835_v28 = vpack.i.b16 %v2771_v29, %v2771_v29  ;;  %4522 = vst [vmem:[%s5283_s9 + $0x28] sm:$0x1] %v2990_v48  ;;  %v2993_v55 = vsel %vm5302_vm10, %v2829_v45, %v4523_v17 }
 0x12d   : > { %4524 = vst [vmem:[%s5283_s9 + $0x29] sm:$0x1] %v2993_v55  ;;  %v2996_v43 = vsel %vm5302_vm10, %v4466_v46, %v4525_v27  ;;  %v3002_v52 = vsel %vm5302_vm10, %v4467_v12, %v4529_v6  ;;  %v3506_v49 = vsel %vm668_vm5, %v3445_v0, %v3505_v36  ;;  %v6023_v0 = vld [vmem:[%s7582_s3] ss:$0 sm:$0xff]  ;;  %v3008_v1 = vsel %vm5302_vm10, %v4468_v47, %v4533_v58 }
 0x12e   : > { %4526 = vst [vmem:[%s5283_s9 + $0x2a] sm:$0x1] %v2996_v43  ;;  %v2999_v57 = vsel %vm5302_vm10, %v2831_v50, %v4527_v53  ;;  %v3005_v61 = vsel %vm5302_vm10, %v2833_v42, %v4531_v54  ;;  %v3507_v62 = vsel %vm670_vm6, %v5966_v7, %v3506_v49  ;;  %v6026_v24 = vadd.f32 %v6023_v0, %v389_v51 }
 0x12f   : > { %4528 = vst [vmem:[%s5283_s9 + $0x2b] sm:$0x1] %v2999_v57  ;;  %v3553_v7 = vadd.f32 %v3507_v62, %v5897_v15  ;;  %v621_v19 = vperm.slane %v493_v2, 0  ;;  %v622_v37 = vperm.slane %v494_v3, 0  ;;  %v3011_v10 = vsel %vm5302_vm10, %v2835_v28, %v4535_v20 }
 0x130   : > { %4530 = vst [vmem:[%s5283_s9 + $0x2c] sm:$0x1] %v3002_v52  ;;  %v623_v14 = vperm.slane %v495_v56, 0  ;;  %v624_v26 = vperm.slane %v496_v5, 0  ;;  %v686_v8 = vsel %vm658_vm0, %v619_v21, %v618_v38  ;;  %v625_v2 = vperm.slane %v497_v32, 0 }
 0x131   : > { %4532 = vst [vmem:[%s5283_s9 + $0x2d] sm:$0x1] %v3005_v61  ;;  %v3561_v15 = vpack.c.bf16 %v3553_v7, %v3553_v7  ;;  %v687_v3 = vsel %vm660_vm1, %v620_v13, %v686_v8  ;;  %v6060_v60 = vadd.f32 %v6057_v22, %v1338_v44  ;;  %v6063_v56 = vld [vmem:[%s5147_s24 + $0x37] sm:$0x1]  ;;  %v1439_v9 = vunpack.c.l.bf16 %v1375_v59 }
 0x132   : > { %4534 = vst [vmem:[%s5283_s9 + $0x2e] sm:$0x1] %v3008_v1  ;;  %v688_v5 = vsel %vm662_vm2, %v621_v19, %v687_v3  ;;  %v1440_v39 = vunpack.c.l.bf16 %v1376_v30  ;;  %v1441_v40 = vunpack.c.l.bf16 %v6011_v35  ;;  %v1442_v17 = vunpack.c.l.bf16 %v6029_v34  ;;  %v4417_v19 = vld [vmem:[%s5147_s24 + $0x38] sm:$0x1] }
 0x133   : > { %4536 = vst [vmem:[%s5283_s9 + $0x2f] sm:$0x1] %v3011_v10  ;;  %v3577_v32 = vrot.slane %v3561_v15, 3  ;;  %v689_v25 = vsel %vm664_vm3, %v622_v37, %v688_v5  ;;  %v1443_v36 = vunpack.c.l.bf16 %v6032_v63  ;;  %v1444_v21 = vunpack.c.l.bf16 %v6039_v16  ;;  %v4793_v53 = vld [vmem:[%s5283_s9 + $0x28] sm:$0x1] }
 0x134   : > { %v690_v38 = vsel %vm666_vm4, %v623_v14, %v689_v25  ;;  %v1445_v4 = vunpack.c.l.bf16 %v6048_v31  ;;  %v1446_v23 = vunpack.c.l.bf16 %v6063_v56  ;;  %v4795_v51 = vld [vmem:[%s5283_s9 + $0x29] sm:$0x1]  ;;  %v1567_v42 = vperm.slane %v1439_v9, 1  ;;  %v4418_v37 = vld [vmem:[%s5147_s24 + $0x39] sm:$0x1] }
 0x135   : > { %v3611_v29 = vsel %vm761_vm7, %v3561_v15, %v3577_v32  ;;  %v3613_v45 = vsel %vm658_vm0, %v3561_v15, %v3577_v32  ;;  %v3616_v27 = vsel %vm660_vm1, %v3561_v15, %v3577_v32  ;;  %v3619_v6 = vsel %vm662_vm2, %v3561_v15, %v3577_v32  ;;  %v4797_v52 = vld [vmem:[%s5283_s9 + $0x2a] sm:$0x1]  ;;  %v6097_v16 = vld [vmem:[%s5147_s24 + $0x3a] sm:$0x1]  ;;  %v6106_v31 = vld [vmem:[%s5147_s24 + $0x3b] sm:$0x1] }
 0x136   : > { %v3615_v46 = vrot.slane %v3613_v45, 1  ;;  %v3618_v12 = vrot.slane %v3616_v27, 2  ;;  %v3621_v47 = vrot.slane %v3619_v6, 3  ;;  %v3704_v48 = vunpack.i.h.s16 %v3611_v29  ;;  %v4799_v35 = vld [vmem:[%s5283_s9 + $0x2b] sm:$0x1] }
 0x137   : > { %v4737_v54 = vpack.i.b16 %v3611_v29, %v3611_v29  ;;  %v691_v50 = vsel %vm668_vm5, %v624_v26, %v690_v38  ;;  %v1568_v28 = vperm.slane %v1440_v39, 1  ;;  %v4801_v49 = vld [vmem:[%s5283_s9 + $0x2c] sm:$0x1]  ;;  %v1569_v61 = vperm.slane %v1441_v40, 1  ;;  %v6109_v15 = vld [vmem:[%s5147_s24 + $0x3c] sm:$0x1] }
 0x138   : > { %v3706_v55 = vunpack.i.h.s16 %v3615_v46  ;;  %v3708_v58 = vunpack.i.h.s16 %v3618_v12  ;;  %v3710_v20 = vunpack.i.h.s16 %v3621_v47  ;;  %v3768_v43 = vpack.i.b16 %v3704_v48, %v3704_v48  ;;  %v4803_v57 = vld [vmem:[%s5283_s9 + $0x2d] sm:$0x1]  ;;  %v6118_v39 = vld [vmem:[%s5147_s24 + $0x3d] sm:$0x1]  ;;  %v6126_v38 = vld [vmem:[%s5147_s24 + $0x3e] sm:$0x1] }
 0x139   : > { %v4738_v13 = vpack.i.b16 %v3615_v46, %v3615_v46  ;;  %v4739_v59 = vpack.i.b16 %v3618_v12, %v3618_v12  ;;  %v3928_v30 = vsel %vm5344_vm11, %v4737_v54, %v4793_v53  ;;  %v4740_v34 = vpack.i.b16 %v3621_v47, %v3621_v47  ;;  %v4805_v1 = vld [vmem:[%s5283_s9 + $0x2e] sm:$0x1]  ;;  %v6133_v27 = vld [vmem:[%s5147_s24 + $0x3f] sm:$0x1] }
 0x13a   : > { %v3770_v62 = vpack.i.b16 %v3706_v55, %v3706_v55  ;;  %v3772_v44 = vpack.i.b16 %v3708_v58, %v3708_v58  ;;  %4794 = vst [vmem:[%s5283_s9 + $0x28] sm:$0x1] %v3928_v30  ;;  %v3931_v63 = vsel %vm5344_vm11, %v3768_v43, %v4795_v51  ;;  %v4807_v7 = vld [vmem:[%s5283_s9 + $0x2f] sm:$0x1]  ;;  %v3774_v10 = vpack.i.b16 %v3710_v20, %v3710_v20 }
 0x13b   : > { %4796 = vst [vmem:[%s5283_s9 + $0x29] sm:$0x1] %v3931_v63  ;;  %v3934_v14 = vsel %vm5344_vm11, %v4738_v13, %v4797_v52  ;;  %v3940_v26 = vsel %vm5344_vm11, %v4739_v59, %v4801_v49  ;;  %v692_v8 = vsel %vm670_vm6, %v625_v2, %v691_v50  ;;  %v1570_v9 = vperm.slane %v1442_v17, 1  ;;  %v1133_v49 = vld [vmem:[%s5283_s9 + $0x30] sm:$0x1] }
 0x13c   : > { %4798 = vst [vmem:[%s5283_s9 + $0x2a] sm:$0x1] %v3934_v14  ;;  %v3937_v3 = vsel %vm5344_vm11, %v3770_v62, %v4799_v35  ;;  %v3943_v56 = vsel %vm5344_vm11, %v3772_v44, %v4803_v57  ;;  %v732_v5 = vadd.f32 %v692_v8, %v6026_v24  ;;  %v3946_v2 = vsel %vm5344_vm11, %v4740_v34, %v4805_v1  ;;  %v1136_v59 = vld [vmem:[%s5283_s9 + $0x31] sm:$0x1]  ;;  %v1139_v63 = vld [vmem:[%s5283_s9 + $0x32] sm:$0x1] }
 0x13d   : > { %4800 = vst [vmem:[%s5283_s9 + $0x2b] sm:$0x1] %v3937_v3  ;;  %v3949_v40 = vsel %vm5344_vm11, %v3774_v10, %v4807_v7  ;;  %v1571_v32 = vperm.slane %v1443_v36, 1  ;;  %v1572_v25 = vperm.slane %v1444_v21, 1  ;;  %v1573_v45 = vperm.slane %v1445_v4, 1 }
 0x13e   : > { %4802 = vst [vmem:[%s5283_s9 + $0x2c] sm:$0x1] %v3940_v26  ;;  %v740_v29 = vpack.c.bf16 %v732_v5, %v732_v5  ;;  %v6129_v24 = vperm.slane %v1446_v23, 1  ;;  %v1628_v17 = vsel %vm658_vm0, %v1568_v28, %v1567_v42  ;;  %v2380_v46 = vunpack.c.l.bf16 %v4417_v19  ;;  %v1145_v1 = vld [vmem:[%s5283_s9 + $0x34] sm:$0x1]  ;;  %v2278_v26 = vpop.f32.mrf.mxu2 }
 0x13f   : > { %4804 = vst [vmem:[%s5283_s9 + $0x2d] sm:$0x1] %v3943_v56  ;;  %v1629_v6 = vsel %vm660_vm1, %v1569_v61, %v1628_v17  ;;  %v2381_v12 = vunpack.c.l.bf16 %v4418_v37  ;;  %v2382_v36 = vunpack.c.l.bf16 %v6097_v16  ;;  %v2383_v4 = vunpack.c.l.bf16 %v6106_v31  ;;  %v1142_v10 = vld [vmem:[%s5283_s9 + $0x33] sm:$0x1]  ;;  %v1148_v14 = vld [vmem:[%s5283_s9 + $0x35] sm:$0x1] }
 0x140   : > { %4806 = vst [vmem:[%s5283_s9 + $0x2e] sm:$0x1] %v3946_v2  ;;  %v756_v21 = vrot.slane %v740_v29, 3  ;;  %v1630_v47 = vsel %vm662_vm2, %v1570_v9, %v1629_v6  ;;  %v2384_v23 = vunpack.c.l.bf16 %v6109_v15  ;;  %v2385_v53 = vunpack.c.l.bf16 %v6118_v39  ;;  %v1151_v56 = vld [vmem:[%s5283_s9 + $0x36] sm:$0x1] }
 0x141   : > { %4808 = vst [vmem:[%s5283_s9 + $0x2f] sm:$0x1] %v3949_v40  ;;  %v1631_v48 = vsel %vm664_vm3, %v1571_v32, %v1630_v47  ;;  %v2386_v54 = vunpack.c.l.bf16 %v6126_v38  ;;  %v2387_v51 = vunpack.c.l.bf16 %v6133_v27  ;;  %v2508_v35 = vperm.slane %v2380_v46, 0  ;;  %v1154_v5 = vld [vmem:[%s5283_s9 + $0x37] sm:$0x1]  ;;  %v3218_v46 = vpop.f32.mrf.mxu3 }
 0x142   : > { %v803_v50 = vsel %vm761_vm7, %v740_v29, %v756_v21  ;;  %v805_v42 = vsel %vm658_vm0, %v740_v29, %v756_v21  ;;  %v808_v28 = vsel %vm660_vm1, %v740_v29, %v756_v21  ;;  %v811_v55 = vsel %vm662_vm2, %v740_v29, %v756_v21  ;;  %v4689_v32 = vld [vmem:[%s5147_s24 + $0x38] sm:$0x1]  ;;  %v6174_v38 = vld [vmem:[%s5147_s24 + $0x3a] sm:$0x1] }
 0x143   : > { %v807_v58 = vrot.slane %v805_v42, 1  ;;  %v810_v20 = vrot.slane %v808_v28, 2  ;;  %v813_v43 = vrot.slane %v811_v55, 3  ;;  %v891_v52 = vunpack.i.h.s16 %v803_v50 }
 0x144   : > { %v4245_v13 = vpack.i.b16 %v803_v50, %v803_v50  ;;  %v1632_v30 = vsel %vm666_vm4, %v1572_v25, %v1631_v48  ;;  %v2509_v57 = vperm.slane %v2381_v12, 0  ;;  %v2510_v40 = vperm.slane %v2382_v36, 0  ;;  %v4690_v25 = vld [vmem:[%s5147_s24 + $0x39] sm:$0x1]  ;;  %v6187_v12 = vld [vmem:[%s5147_s24 + $0x3b] sm:$0x1] }
 0x145   : > { %v893_v61 = vunpack.i.h.s16 %v807_v58  ;;  %v895_v62 = vunpack.i.h.s16 %v810_v20  ;;  %v897_v44 = vunpack.i.h.s16 %v813_v43  ;;  %v955_v34 = vpack.i.b16 %v891_v52, %v891_v52  ;;  %v6190_v36 = vld [vmem:[%s5147_s24 + $0x3c] sm:$0x1]  ;;  %v6197_v50 = vld [vmem:[%s5147_s24 + $0x3d] sm:$0x1] }
 0x146   : > { %v4246_v7 = vpack.i.b16 %v807_v58, %v807_v58  ;;  %v4247_v19 = vpack.i.b16 %v810_v20, %v810_v20  ;;  %v4248_v37 = vpack.i.b16 %v813_v43, %v813_v43  ;;  %v1134_v16 = vsel %vm5302_vm10, %v4245_v13, %v1133_v49  ;;  %v6204_v58 = vld [vmem:[%s5147_s24 + $0x3e] sm:$0x1]  ;;  %v6214_v43 = vld [vmem:[%s5147_s24 + $0x3f] sm:$0x1] }
 0x147   : > { %v957_v8 = vpack.i.b16 %v893_v61, %v893_v61  ;;  %v959_v31 = vpack.i.b16 %v895_v62, %v895_v62  ;;  %v961_v15 = vpack.i.b16 %v897_v44, %v897_v44  ;;  %1135 = vst [vmem:[%s5283_s9 + $0x30] sm:$0x1] %v1134_v16  ;;  %v1137_v3 = vsel %vm5302_vm10, %v955_v34, %v1136_v59 }
 0x148   : > { %1138 = vst [vmem:[%s5283_s9 + $0x31] sm:$0x1] %v1137_v3  ;;  %v1140_v9 = vsel %vm5302_vm10, %v4246_v7, %v1139_v63  ;;  %v1146_v39 = vsel %vm5302_vm10, %v4247_v19, %v1145_v1  ;;  %v1633_v2 = vsel %vm668_vm5, %v1573_v45, %v1632_v30  ;;  %v6184_v45 = vadd.f32 %v5862_v18, %v2278_v26 }
 0x149   : > { %1141 = vst [vmem:[%s5283_s9 + $0x32] sm:$0x1] %v1140_v9  ;;  %v1143_v29 = vsel %vm5302_vm10, %v957_v8, %v1142_v10  ;;  %v1149_v17 = vsel %vm5302_vm10, %v959_v31, %v1148_v14  ;;  %v1634_v6 = vsel %vm670_vm6, %v6129_v24, %v1633_v2  ;;  %v1152_v21 = vsel %vm5302_vm10, %v4248_v37, %v1151_v56 }
 0x14a   : > { %1144 = vst [vmem:[%s5283_s9 + $0x33] sm:$0x1] %v1143_v29  ;;  %v1674_v47 = vadd.f32 %v1634_v6, %v6060_v60  ;;  %v2511_v48 = vperm.slane %v2383_v4, 0  ;;  %v2512_v24 = vperm.slane %v2384_v23, 0  ;;  %v1155_v18 = vsel %vm5302_vm10, %v961_v15, %v1154_v5 }
 0x14b   : > { %1147 = vst [vmem:[%s5283_s9 + $0x34] sm:$0x1] %v1146_v39  ;;  %v2513_v42 = vperm.slane %v2385_v53, 0  ;;  %v2514_v28 = vperm.slane %v2386_v54, 0  ;;  %v2569_v55 = vsel %vm658_vm0, %v2509_v57, %v2508_v35  ;;  %v2515_v60 = vperm.slane %v2387_v51, 0 }
 0x14c   : > { %1150 = vst [vmem:[%s5283_s9 + $0x35] sm:$0x1] %v1149_v17  ;;  %v1682_v20 = vpack.c.bf16 %v1674_v47, %v1674_v47  ;;  %v2570_v4 = vsel %vm660_vm1, %v2510_v40, %v2569_v55  ;;  %v6211_v23 = vadd.f32 %v5894_v11, %v3218_v46  ;;  %v3319_v54 = vunpack.c.l.bf16 %v4689_v32  ;;  %v435_v47 = vld [vmem:[%s5147_s24 + $0x41] sm:$0x1]  ;;  %v6260_v55 = vld [vmem:[%s5147_s24 + $0x44] sm:$0x1] }
 0x14d   : > { %1153 = vst [vmem:[%s5283_s9 + $0x36] sm:$0x1] %v1152_v21  ;;  %v2571_v53 = vsel %vm662_vm2, %v2511_v48, %v2570_v4  ;;  %v3320_v52 = vunpack.c.l.bf16 %v4690_v25  ;;  %v3321_v49 = vunpack.c.l.bf16 %v6174_v38  ;;  %v3322_v51 = vunpack.c.l.bf16 %v6187_v12  ;;  %v434_v21 = vld [vmem:[%s5147_s24 + $0x40] sm:$0x1]  ;;  %v6248_v48 = vld [vmem:[%s5147_s24 + $0x42] sm:$0x1] }
 0x14e   : > { %1156 = vst [vmem:[%s5283_s9 + $0x37] sm:$0x1] %v1155_v18  ;;  %v1698_v13 = vrot.slane %v1682_v20, 3  ;;  %v2572_v27 = vsel %vm664_vm3, %v2512_v24, %v2571_v53  ;;  %v3323_v11 = vunpack.c.l.bf16 %v6190_v36  ;;  %v3324_v30 = vunpack.c.l.bf16 %v6197_v50  ;;  %v2073_v37 = vld [vmem:[%s5283_s9 + $0x30] sm:$0x1] }
 0x14f   : > { %v2573_v59 = vsel %vm666_vm4, %v2513_v42, %v2572_v27  ;;  %v3325_v35 = vunpack.c.l.bf16 %v6204_v58  ;;  %v3326_v57 = vunpack.c.l.bf16 %v6214_v43  ;;  %v2076_v10 = vld [vmem:[%s5283_s9 + $0x31] sm:$0x1]  ;;  %v3447_v26 = vperm.slane %v3319_v54, 1  ;;  %v6269_v53 = vld [vmem:[%s5147_s24 + $0x45] sm:$0x1] }
 0x150   : > { %v1744_v61 = vsel %vm761_vm7, %v1682_v20, %v1698_v13  ;;  %v1746_v62 = vsel %vm658_vm0, %v1682_v20, %v1698_v13  ;;  %v1749_v44 = vsel %vm660_vm1, %v1682_v20, %v1698_v13  ;;  %v1752_v34 = vsel %vm662_vm2, %v1682_v20, %v1698_v13  ;;  %v2079_v5 = vld [vmem:[%s5283_s9 + $0x32] sm:$0x1]  ;;  %v6277_v13 = vld [vmem:[%s5147_s24 + $0x46] sm:$0x1] }
 0x151   : > { %v1748_v63 = vrot.slane %v1746_v62, 1  ;;  %v1751_v1 = vrot.slane %v1749_v44, 2  ;;  %v1754_v7 = vrot.slane %v1752_v34, 3  ;;  %v1832_v19 = vunpack.i.h.s16 %v1744_v61  ;;  %v2082_v32 = vld [vmem:[%s5283_s9 + $0x33] sm:$0x1] }
 0x152   : > { %v4325_v16 = vpack.i.b16 %v1744_v61, %v1744_v61  ;;  %v2574_v14 = vsel %vm668_vm5, %v2514_v28, %v2573_v59  ;;  %v3448_v8 = vperm.slane %v3320_v52, 1  ;;  %v2085_v9 = vld [vmem:[%s5283_s9 + $0x34] sm:$0x1]  ;;  %v3449_v38 = vperm.slane %v3321_v49, 1  ;;  %v6257_v28 = vld [vmem:[%s5147_s24 + $0x43] sm:$0x1] }
 0x153   : > { %v1834_v31 = vunpack.i.h.s16 %v1748_v63  ;;  %v1836_v15 = vunpack.i.h.s16 %v1751_v1  ;;  %v1838_v3 = vunpack.i.h.s16 %v1754_v7  ;;  %v1896_v56 = vpack.i.b16 %v1832_v19, %v1832_v19  ;;  %v2088_v25 = vld [vmem:[%s5283_s9 + $0x35] sm:$0x1]  ;;  %v6284_v61 = vld [vmem:[%s5147_s24 + $0x47] sm:$0x1] }
 0x154   : > { %v4326_v39 = vpack.i.b16 %v1748_v63, %v1748_v63  ;;  %v4327_v2 = vpack.i.b16 %v1751_v1, %v1751_v1  ;;  %v2074_v40 = vsel %vm5344_vm11, %v4325_v16, %v2073_v37  ;;  %v4328_v6 = vpack.i.b16 %v1754_v7, %v1754_v7  ;;  %v2091_v12 = vld [vmem:[%s5283_s9 + $0x36] sm:$0x1] }
 0x155   : > { %v1898_v29 = vpack.i.b16 %v1834_v31, %v1834_v31  ;;  %v1900_v17 = vpack.i.b16 %v1836_v15, %v1836_v15  ;;  %2075 = vst [vmem:[%s5283_s9 + $0x30] sm:$0x1] %v2074_v40  ;;  %v2077_v46 = vsel %vm5344_vm11, %v1896_v56, %v2076_v10  ;;  %v2094_v36 = vld [vmem:[%s5283_s9 + $0x37] sm:$0x1]  ;;  %v1902_v24 = vpack.i.b16 %v1838_v3, %v1838_v3  ;;  %v4537_v56 = vld [vmem:[%s5283_s9 + $0x38] sm:$0x1] }
 0x156   : > { %2078 = vst [vmem:[%s5283_s9 + $0x31] sm:$0x1] %v2077_v46  ;;  %v2080_v50 = vsel %vm5344_vm11, %v4326_v39, %v2079_v5  ;;  %v2086_v18 = vsel %vm5344_vm11, %v4327_v2, %v2085_v9  ;;  %v2575_v42 = vsel %vm670_vm6, %v2515_v60, %v2574_v14  ;;  %v3450_v43 = vperm.slane %v3322_v51, 1  ;;  %v4539_v9 = vld [vmem:[%s5283_s9 + $0x39] sm:$0x1] }
 0x157   : > { %2081 = vst [vmem:[%s5283_s9 + $0x32] sm:$0x1] %v2080_v50  ;;  %v2083_v58 = vsel %vm5344_vm11, %v1898_v29, %v2082_v32  ;;  %v2089_v20 = vsel %vm5344_vm11, %v1900_v17, %v2088_v25  ;;  %v2615_v4 = vadd.f32 %v2575_v42, %v6184_v45  ;;  %v2092_v60 = vsel %vm5344_vm11, %v4328_v6, %v2091_v12  ;;  %v4541_v17 = vld [vmem:[%s5283_s9 + $0x3a] sm:$0x1]  ;;  %v4545_v6 = vld [vmem:[%s5283_s9 + $0x3c] sm:$0x1] }
 0x158   : > { %2084 = vst [vmem:[%s5283_s9 + $0x33] sm:$0x1] %v2083_v58  ;;  %v2095_v54 = vsel %vm5344_vm11, %v1902_v24, %v2094_v36  ;;  %v3451_v52 = vperm.slane %v3323_v11, 1  ;;  %v3452_v49 = vperm.slane %v3324_v30, 1  ;;  %v3453_v59 = vperm.slane %v3325_v35, 1 }
 0x159   : > { %2087 = vst [vmem:[%s5283_s9 + $0x34] sm:$0x1] %v2086_v18  ;;  %v2623_v27 = vpack.c.bf16 %v2615_v4, %v2615_v4  ;;  %v6280_v45 = vperm.slane %v3326_v57, 1  ;;  %v3508_v51 = vsel %vm658_vm0, %v3448_v8, %v3447_v26  ;;  %v498_v44 = vunpack.c.l.bf16 %v434_v21 }
 0x15a   : > { %2090 = vst [vmem:[%s5283_s9 + $0x35] sm:$0x1] %v2089_v20  ;;  %v3509_v62 = vsel %vm660_vm1, %v3449_v38, %v3508_v51  ;;  %v499_v34 = vunpack.c.l.bf16 %v435_v47  ;;  %v500_v11 = vunpack.c.l.bf16 %v6248_v48  ;;  %v501_v35 = vunpack.c.l.bf16 %v6257_v28  ;;  %v4543_v47 = vld [vmem:[%s5283_s9 + $0x3b] sm:$0x1]  ;;  %v4547_v48 = vld [vmem:[%s5283_s9 + $0x3d] sm:$0x1] }
 0x15b   : > { %2093 = vst [vmem:[%s5283_s9 + $0x36] sm:$0x1] %v2092_v60  ;;  %v2639_v30 = vrot.slane %v2623_v27, 3  ;;  %v3510_v63 = vsel %vm662_vm2, %v3450_v43, %v3509_v62  ;;  %v502_v57 = vunpack.c.l.bf16 %v6260_v55  ;;  %v503_v7 = vunpack.c.l.bf16 %v6269_v53  ;;  %v4549_v28 = vld [vmem:[%s5283_s9 + $0x3e] sm:$0x1]  ;;  %v392_v43 = vpop.f32.mrf.mxu0 }
 0x15c   : > { %2096 = vst [vmem:[%s5283_s9 + $0x37] sm:$0x1] %v2095_v54  ;;  %v3511_v1 = vsel %vm664_vm3, %v3451_v52, %v3510_v63  ;;  %v504_v19 = vunpack.c.l.bf16 %v6277_v13  ;;  %v505_v37 = vunpack.c.l.bf16 %v6284_v61  ;;  %v626_v2 = vperm.slane %v498_v44, 0  ;;  %v4551_v55 = vld [vmem:[%s5283_s9 + $0x3f] sm:$0x1] }
 0x15d   : > { %v2685_v16 = vsel %vm761_vm7, %v2623_v27, %v2639_v30  ;;  %v2687_v10 = vsel %vm658_vm0, %v2623_v27, %v2639_v30  ;;  %v2690_v14 = vsel %vm660_vm1, %v2623_v27, %v2639_v30  ;;  %v2693_v26 = vsel %vm662_vm2, %v2623_v27, %v2639_v30  ;;  %v1383_v60 = vld [vmem:[%s5147_s24 + $0x40] sm:$0x1]  ;;  %v1384_v54 = vld [vmem:[%s5147_s24 + $0x41] sm:$0x1]  ;;  %v6325_v52 = vld [vmem:[%s5147_s24 + $0x42] sm:$0x1] }
 0x15e   : > { %v2689_v8 = vrot.slane %v2687_v10, 1  ;;  %v2692_v31 = vrot.slane %v2690_v14, 2  ;;  %v2695_v15 = vrot.slane %v2693_v26, 3  ;;  %v2773_v3 = vunpack.i.h.s16 %v2685_v16  ;;  %v6338_v51 = vld [vmem:[%s5147_s24 + $0x43] sm:$0x1]  ;;  %v1341_v10 = vpop.f32.mrf.mxu1 }
 0x15f   : > { %v4469_v5 = vpack.i.b16 %v2685_v16, %v2685_v16  ;;  %v3512_v39 = vsel %vm666_vm4, %v3452_v49, %v3511_v1  ;;  %v627_v40 = vperm.slane %v499_v34, 0  ;;  %v628_v53 = vperm.slane %v500_v11, 0  ;;  %v6341_v62 = vld [vmem:[%s5147_s24 + $0x44] sm:$0x1]  ;;  %v6355_v14 = vld [vmem:[%s5147_s24 + $0x46] sm:$0x1] }
 0x160   : > { %v2775_v32 = vunpack.i.h.s16 %v2689_v8  ;;  %v2777_v25 = vunpack.i.h.s16 %v2692_v31  ;;  %v2779_v38 = vunpack.i.h.s16 %v2695_v15  ;;  %v2837_v29 = vpack.i.b16 %v2773_v3, %v2773_v3 }
 0x161   : > { %v4470_v46 = vpack.i.b16 %v2689_v8, %v2689_v8  ;;  %v4471_v12 = vpack.i.b16 %v2692_v31, %v2692_v31  ;;  %v4472_v36 = vpack.i.b16 %v2695_v15, %v2695_v15  ;;  %v3014_v21 = vsel %vm5302_vm10, %v4469_v5, %v4537_v56  ;;  %v6365_v8 = vld [vmem:[%s5147_s24 + $0x47] sm:$0x1] }
 0x162   : > { %v2839_v24 = vpack.i.b16 %v2775_v32, %v2775_v32  ;;  %v2841_v50 = vpack.i.b16 %v2777_v25, %v2777_v25  ;;  %v2843_v18 = vpack.i.b16 %v2779_v38, %v2779_v38  ;;  %4538 = vst [vmem:[%s5283_s9 + $0x38] sm:$0x1] %v3014_v21  ;;  %v3017_v42 = vsel %vm5302_vm10, %v2837_v29, %v4539_v9 }
 0x163   : > { %4540 = vst [vmem:[%s5283_s9 + $0x39] sm:$0x1] %v3017_v42  ;;  %v3020_v58 = vsel %vm5302_vm10, %v4470_v46, %v4541_v17  ;;  %v3026_v20 = vsel %vm5302_vm10, %v4471_v12, %v4545_v6  ;;  %v3513_v4 = vsel %vm668_vm5, %v3453_v59, %v3512_v39  ;;  %v6335_v59 = vadd.f32 %v6023_v0, %v392_v43 }
 0x164   : > { %4542 = vst [vmem:[%s5283_s9 + $0x3a] sm:$0x1] %v3020_v58  ;;  %v3023_v49 = vsel %vm5302_vm10, %v2839_v24, %v4543_v47  ;;  %v3029_v13 = vsel %vm5302_vm10, %v2841_v50, %v4547_v48  ;;  %v3514_v27 = vsel %vm670_vm6, %v6280_v45, %v3513_v4  ;;  %v3032_v44 = vsel %vm5302_vm10, %v4472_v36, %v4549_v28  ;;  %v6348_v45 = vld [vmem:[%s5147_s24 + $0x45] sm:$0x1] }
 0x165   : > { %4544 = vst [vmem:[%s5283_s9 + $0x3b] sm:$0x1] %v3023_v49  ;;  %v3554_v34 = vadd.f32 %v3514_v27, %v6211_v23  ;;  %v629_v11 = vperm.slane %v501_v35, 0  ;;  %v630_v30 = vperm.slane %v502_v57, 0  ;;  %v3035_v0 = vsel %vm5302_vm10, %v2843_v18, %v4551_v55 }
 0x166   : > { %4546 = vst [vmem:[%s5283_s9 + $0x3c] sm:$0x1] %v3026_v20  ;;  %v631_v63 = vperm.slane %v503_v7, 0  ;;  %v632_v1 = vperm.slane %v504_v19, 0  ;;  %v693_v16 = vsel %vm658_vm0, %v627_v40, %v626_v2  ;;  %v633_v35 = vperm.slane %v505_v37, 0 }
 0x167   : > { %4548 = vst [vmem:[%s5283_s9 + $0x3d] sm:$0x1] %v3029_v13  ;;  %v3562_v23 = vpack.c.bf16 %v3554_v34, %v3554_v34  ;;  %v694_v57 = vsel %vm660_vm1, %v628_v53, %v693_v16  ;;  %v6362_v26 = vadd.f32 %v6057_v22, %v1341_v10  ;;  %v1447_v19 = vunpack.c.l.bf16 %v1383_v60  ;;  %v6399_v34 = vld [vmem:[%s5147_s24 + $0x4a] sm:$0x1] }
 0x168   : > { %4550 = vst [vmem:[%s5283_s9 + $0x3e] sm:$0x1] %v3032_v44  ;;  %v695_v7 = vsel %vm662_vm2, %v629_v11, %v694_v57  ;;  %v1448_v31 = vunpack.c.l.bf16 %v1384_v54  ;;  %v1449_v15 = vunpack.c.l.bf16 %v6325_v52  ;;  %v1450_v37 = vunpack.c.l.bf16 %v6338_v51  ;;  %v4426_v44 = vld [vmem:[%s5147_s24 + $0x49] sm:$0x1]  ;;  %v6420_v57 = vld [vmem:[%s5147_s24 + $0x4d] sm:$0x1] }
 0x169   : > { %4552 = vst [vmem:[%s5283_s9 + $0x3f] sm:$0x1] %v3035_v0  ;;  %v3578_v3 = vrot.slane %v3562_v23, 3  ;;  %v696_v61 = vsel %vm664_vm3, %v630_v30, %v695_v7  ;;  %v1451_v22 = vunpack.c.l.bf16 %v6341_v62  ;;  %v1452_v5 = vunpack.c.l.bf16 %v6348_v45  ;;  %v4809_v46 = vld [vmem:[%s5283_s9 + $0x38] sm:$0x1] }
 0x16a   : > { %v697_v56 = vsel %vm666_vm4, %v631_v63, %v696_v61  ;;  %v1453_v9 = vunpack.c.l.bf16 %v6355_v14  ;;  %v1454_v39 = vunpack.c.l.bf16 %v6365_v8  ;;  %v4811_v36 = vld [vmem:[%s5283_s9 + $0x39] sm:$0x1]  ;;  %v1575_v47 = vperm.slane %v1447_v19, 1  ;;  %v4425_v62 = vld [vmem:[%s5147_s24 + $0x48] sm:$0x1] }
 0x16b   : > { %v3624_v2 = vsel %vm761_vm7, %v3562_v23, %v3578_v3  ;;  %v3626_v40 = vsel %vm658_vm0, %v3562_v23, %v3578_v3  ;;  %v3629_v32 = vsel %vm660_vm1, %v3562_v23, %v3578_v3  ;;  %v3632_v25 = vsel %vm662_vm2, %v3562_v23, %v3578_v3  ;;  %v4813_v28 = vld [vmem:[%s5283_s9 + $0x3a] sm:$0x1]  ;;  %v6408_v63 = vld [vmem:[%s5147_s24 + $0x4b] sm:$0x1] }
 0x16c   : > { %v3628_v38 = vrot.slane %v3626_v40, 1  ;;  %v3631_v29 = vrot.slane %v3629_v32, 2  ;;  %v3634_v17 = vrot.slane %v3632_v25, 3  ;;  %v3712_v6 = vunpack.i.h.s16 %v3624_v2  ;;  %v4815_v43 = vld [vmem:[%s5283_s9 + $0x3b] sm:$0x1] }
 0x16d   : > { %v4741_v12 = vpack.i.b16 %v3624_v2, %v3624_v2  ;;  %v698_v21 = vsel %vm668_vm5, %v632_v1, %v697_v56  ;;  %v1576_v48 = vperm.slane %v1448_v31, 1  ;;  %v4817_v55 = vld [vmem:[%s5283_s9 + $0x3c] sm:$0x1]  ;;  %v1577_v60 = vperm.slane %v1449_v15, 1  ;;  %v6411_v1 = vld [vmem:[%s5147_s24 + $0x4c] sm:$0x1] }
 0x16e   : > { %v3714_v24 = vunpack.i.h.s16 %v3628_v38  ;;  %v3716_v50 = vunpack.i.h.s16 %v3631_v29  ;;  %v3718_v18 = vunpack.i.h.s16 %v3634_v17  ;;  %v3776_v42 = vpack.i.b16 %v3712_v6, %v3712_v6  ;;  %v4819_v53 = vld [vmem:[%s5283_s9 + $0x3d] sm:$0x1]  ;;  %v6428_v31 = vld [vmem:[%s5147_s24 + $0x4e] sm:$0x1] }
 0x16f   : > { %v4742_v58 = vpack.i.b16 %v3628_v38, %v3628_v38  ;;  %v4743_v20 = vpack.i.b16 %v3631_v29, %v3631_v29  ;;  %v3952_v4 = vsel %vm5344_vm11, %v4741_v12, %v4809_v46  ;;  %v4744_v49 = vpack.i.b16 %v3634_v17, %v3634_v17  ;;  %v4821_v27 = vld [vmem:[%s5283_s9 + $0x3e] sm:$0x1] }
 0x170   : > { %v3778_v54 = vpack.i.b16 %v3714_v24, %v3714_v24  ;;  %v3780_v52 = vpack.i.b16 %v3716_v50, %v3716_v50  ;;  %4810 = vst [vmem:[%s5283_s9 + $0x38] sm:$0x1] %v3952_v4  ;;  %v3955_v13 = vsel %vm5344_vm11, %v3776_v42, %v4811_v36  ;;  %v4823_v51 = vld [vmem:[%s5283_s9 + $0x3f] sm:$0x1]  ;;  %v3782_v11 = vpack.i.b16 %v3718_v18, %v3718_v18  ;;  %v1157_v50 = vld [vmem:[%s5283_s9 + $0x40] sm:$0x1] }
 0x171   : > { %4812 = vst [vmem:[%s5283_s9 + $0x39] sm:$0x1] %v3955_v13  ;;  %v3958_v30 = vsel %vm5344_vm11, %v4742_v58, %v4813_v28  ;;  %v3964_v45 = vsel %vm5344_vm11, %v4743_v20, %v4817_v55  ;;  %v699_v0 = vsel %vm670_vm6, %v633_v35, %v698_v21  ;;  %v1578_v23 = vperm.slane %v1450_v37, 1  ;;  %v6435_v37 = vld [vmem:[%s5147_s24 + $0x4f] sm:$0x1] }
 0x172   : > { %4814 = vst [vmem:[%s5283_s9 + $0x3a] sm:$0x1] %v3958_v30  ;;  %v3961_v16 = vsel %vm5344_vm11, %v3778_v54, %v4815_v43  ;;  %v3967_v10 = vsel %vm5344_vm11, %v3780_v52, %v4819_v53  ;;  %v733_v14 = vadd.f32 %v699_v0, %v6335_v59  ;;  %v3970_v35 = vsel %vm5344_vm11, %v4744_v49, %v4821_v27  ;;  %v1160_v42 = vld [vmem:[%s5283_s9 + $0x41] sm:$0x1]  ;;  %v1169_v54 = vld [vmem:[%s5283_s9 + $0x44] sm:$0x1] }
 0x173   : > { %4816 = vst [vmem:[%s5283_s9 + $0x3b] sm:$0x1] %v3961_v16  ;;  %v3973_v8 = vsel %vm5344_vm11, %v3782_v11, %v4823_v51  ;;  %v1579_v7 = vperm.slane %v1451_v22, 1  ;;  %v1580_v19 = vperm.slane %v1452_v5, 1  ;;  %v1581_v3 = vperm.slane %v1453_v9, 1 }
 0x174   : > { %4818 = vst [vmem:[%s5283_s9 + $0x3c] sm:$0x1] %v3964_v45  ;;  %v741_v15 = vpack.c.bf16 %v733_v14, %v733_v14  ;;  %v6431_v59 = vperm.slane %v1454_v39, 1  ;;  %v1635_v61 = vsel %vm658_vm0, %v1576_v48, %v1575_v47  ;;  %v2388_v2 = vunpack.c.l.bf16 %v4425_v62  ;;  %v1166_v51 = vld [vmem:[%s5283_s9 + $0x43] sm:$0x1] }
 0x175   : > { %4820 = vst [vmem:[%s5283_s9 + $0x3d] sm:$0x1] %v3967_v10  ;;  %v1636_v56 = vsel %vm660_vm1, %v1577_v60, %v1635_v61  ;;  %v2389_v40 = vunpack.c.l.bf16 %v4426_v44  ;;  %v2390_v22 = vunpack.c.l.bf16 %v6399_v34  ;;  %v2391_v9 = vunpack.c.l.bf16 %v6408_v63  ;;  %v1163_v60 = vld [vmem:[%s5283_s9 + $0x42] sm:$0x1]  ;;  %v1172_v62 = vld [vmem:[%s5283_s9 + $0x45] sm:$0x1]  ;;  %v2281_v44 = vpop.f32.mrf.mxu2 }
 0x176   : > { %4822 = vst [vmem:[%s5283_s9 + $0x3e] sm:$0x1] %v3970_v35  ;;  %v757_v5 = vrot.slane %v741_v15, 3  ;;  %v1637_v32 = vsel %vm662_vm2, %v1578_v23, %v1636_v56  ;;  %v2392_v39 = vunpack.c.l.bf16 %v6411_v1  ;;  %v2393_v38 = vunpack.c.l.bf16 %v6420_v57  ;;  %v1175_v0 = vld [vmem:[%s5283_s9 + $0x46] sm:$0x1] }
 0x177   : > { %4824 = vst [vmem:[%s5283_s9 + $0x3f] sm:$0x1] %v3973_v8  ;;  %v1638_v25 = vsel %vm664_vm3, %v1579_v7, %v1637_v32  ;;  %v2394_v29 = vunpack.c.l.bf16 %v6428_v31  ;;  %v2395_v17 = vunpack.c.l.bf16 %v6435_v37  ;;  %v2516_v55 = vperm.slane %v2388_v2, 0  ;;  %v1178_v63 = vld [vmem:[%s5283_s9 + $0x47] sm:$0x1] }
 0x178   : > { %v816_v6 = vsel %vm761_vm7, %v741_v15, %v757_v5  ;;  %v818_v46 = vsel %vm658_vm0, %v741_v15, %v757_v5  ;;  %v821_v12 = vsel %vm660_vm1, %v741_v15, %v757_v5  ;;  %v824_v36 = vsel %vm662_vm2, %v741_v15, %v757_v5  ;;  %v4697_v23 = vld [vmem:[%s5147_s24 + $0x48] sm:$0x1]  ;;  %v4698_v57 = vld [vmem:[%s5147_s24 + $0x49] sm:$0x1]  ;;  %v6476_v35 = vld [vmem:[%s5147_s24 + $0x4a] sm:$0x1] }
 0x179   : > { %v820_v21 = vrot.slane %v818_v46, 1  ;;  %v823_v47 = vrot.slane %v821_v12, 2  ;;  %v826_v48 = vrot.slane %v824_v36, 3  ;;  %v899_v24 = vunpack.i.h.s16 %v816_v6  ;;  %v6488_v31 = vld [vmem:[%s7582_s3] ss:$0 sm:$0xff]  ;;  %v3221_v46 = vpop.f32.mrf.mxu3 }
 0x17a   : > { %v4249_v18 = vpack.i.b16 %v816_v6, %v816_v6  ;;  %v1639_v28 = vsel %vm666_vm4, %v1580_v19, %v1638_v25  ;;  %v2517_v58 = vperm.slane %v2389_v40, 0  ;;  %v2518_v14 = vperm.slane %v2390_v22, 0  ;;  %v6497_v61 = vld [vmem:[%s5147_s24 + $0x4c] sm:$0x1]  ;;  %v6504_v22 = vld [vmem:[%s5147_s24 + $0x4d] sm:$0x1] }
 0x17b   : > { %v901_v20 = vunpack.i.h.s16 %v820_v21  ;;  %v903_v4 = vunpack.i.h.s16 %v823_v47  ;;  %v905_v43 = vunpack.i.h.s16 %v826_v48  ;;  %v963_v53 = vpack.i.b16 %v899_v24, %v899_v24  ;;  %v6511_v12 = vld [vmem:[%s5147_s24 + $0x4e] sm:$0x1]  ;;  %v6520_v36 = vld [vmem:[%s7582_s3] ss:$0 sm:$0xff] }
 0x17c   : > { %v4250_v52 = vpack.i.b16 %v820_v21, %v820_v21  ;;  %v4251_v49 = vpack.i.b16 %v823_v47, %v823_v47  ;;  %v4252_v13 = vpack.i.b16 %v826_v48, %v826_v48  ;;  %v1158_v27 = vsel %vm5302_vm10, %v4249_v18, %v1157_v50 }
 0x17d   : > { %v965_v34 = vpack.i.b16 %v901_v20, %v901_v20  ;;  %v967_v11 = vpack.i.b16 %v903_v4, %v903_v4  ;;  %v969_v30 = vpack.i.b16 %v905_v43, %v905_v43  ;;  %1159 = vst [vmem:[%s5283_s9 + $0x40] sm:$0x1] %v1158_v27  ;;  %v1161_v45 = vsel %vm5302_vm10, %v963_v53, %v1160_v42 }
 0x17e   : > { %1162 = vst [vmem:[%s5283_s9 + $0x41] sm:$0x1] %v1161_v45  ;;  %v1164_v1 = vsel %vm5302_vm10, %v4250_v52, %v1163_v60  ;;  %v1170_v16 = vsel %vm5302_vm10, %v4251_v49, %v1169_v54  ;;  %v1640_v10 = vsel %vm668_vm5, %v1581_v3, %v1639_v28  ;;  %v6491_v15 = vadd.f32 %v6488_v31, %v2281_v44  ;;  %v6494_v3 = vld [vmem:[%s5147_s24 + $0x4b] sm:$0x1] }
 0x17f   : > { %1165 = vst [vmem:[%s5283_s9 + $0x42] sm:$0x1] %v1164_v1  ;;  %v1167_v8 = vsel %vm5302_vm10, %v965_v34, %v1166_v51  ;;  %v1173_v7 = vsel %vm5302_vm10, %v967_v11, %v1172_v62  ;;  %v1641_v19 = vsel %vm670_vm6, %v6431_v59, %v1640_v10  ;;  %v1176_v56 = vsel %vm5302_vm10, %v4252_v13, %v1175_v0 }
 0x180   : > { %1168 = vst [vmem:[%s5283_s9 + $0x43] sm:$0x1] %v1167_v8  ;;  %v1675_v59 = vadd.f32 %v1641_v19, %v6362_v26  ;;  %v2519_v2 = vperm.slane %v2391_v9, 0  ;;  %v2520_v40 = vperm.slane %v2392_v39, 0  ;;  %v1179_v5 = vsel %vm5302_vm10, %v969_v30, %v1178_v63 }
 0x181   : > { %1171 = vst [vmem:[%s5283_s9 + $0x44] sm:$0x1] %v1170_v16  ;;  %v2521_v32 = vperm.slane %v2393_v38, 0  ;;  %v2522_v25 = vperm.slane %v2394_v29, 0  ;;  %v2576_v6 = vsel %vm658_vm0, %v2517_v58, %v2516_v55  ;;  %v2523_v9 = vperm.slane %v2395_v17, 0 }
 0x182   : > { %1174 = vst [vmem:[%s5283_s9 + $0x45] sm:$0x1] %v1173_v7  ;;  %v1683_v26 = vpack.c.bf16 %v1675_v59, %v1675_v59  ;;  %v2577_v39 = vsel %vm660_vm1, %v2518_v14, %v2576_v6  ;;  %v6523_v38 = vadd.f32 %v6520_v36, %v3221_v46  ;;  %v6526_v29 = vld [vmem:[%s5147_s24 + $0x4f] sm:$0x1]  ;;  %v3327_v47 = vunpack.c.l.bf16 %v4697_v23  ;;  %v442_v59 = vld [vmem:[%s5147_s24 + $0x50] sm:$0x1] }
 0x183   : > { %1177 = vst [vmem:[%s5283_s9 + $0x46] sm:$0x1] %v1176_v56  ;;  %v2578_v21 = vsel %vm662_vm2, %v2519_v2, %v2577_v39  ;;  %v3328_v48 = vunpack.c.l.bf16 %v4698_v57  ;;  %v3329_v37 = vunpack.c.l.bf16 %v6476_v35  ;;  %v3330_v50 = vunpack.c.l.bf16 %v6494_v3  ;;  %v443_v2 = vld [vmem:[%s5147_s24 + $0x51] sm:$0x1]  ;;  %v6569_v6 = vld [vmem:[%s5147_s24 + $0x53] sm:$0x1] }
 0x184   : > { %1180 = vst [vmem:[%s5283_s9 + $0x47] sm:$0x1] %v1179_v5  ;;  %v1699_v17 = vrot.slane %v1683_v26, 3  ;;  %v2579_v24 = vsel %vm664_vm3, %v2520_v40, %v2578_v21  ;;  %v3331_v18 = vunpack.c.l.bf16 %v6497_v61  ;;  %v3332_v28 = vunpack.c.l.bf16 %v6504_v22  ;;  %v2097_v13 = vld [vmem:[%s5283_s9 + $0x40] sm:$0x1] }
 0x185   : > { %v2580_v42 = vsel %vm666_vm4, %v2521_v32, %v2579_v24  ;;  %v3333_v55 = vunpack.c.l.bf16 %v6511_v12  ;;  %v3334_v58 = vunpack.c.l.bf16 %v6526_v29  ;;  %v2100_v51 = vld [vmem:[%s5283_s9 + $0x41] sm:$0x1]  ;;  %v3455_v44 = vperm.slane %v3327_v47, 1  ;;  %v6560_v40 = vld [vmem:[%s5147_s24 + $0x52] sm:$0x1] }
 0x186   : > { %v1757_v20 = vsel %vm761_vm7, %v1683_v26, %v1699_v17  ;;  %v1759_v4 = vsel %vm658_vm0, %v1683_v26, %v1699_v17  ;;  %v1762_v43 = vsel %vm660_vm1, %v1683_v26, %v1699_v17  ;;  %v1765_v53 = vsel %vm662_vm2, %v1683_v26, %v1699_v17  ;;  %v2103_v63 = vld [vmem:[%s5283_s9 + $0x42] sm:$0x1]  ;;  %v6572_v46 = vld [vmem:[%s5147_s24 + $0x54] sm:$0x1]  ;;  %v6581_v21 = vld [vmem:[%s5147_s24 + $0x55] sm:$0x1] }
 0x187   : > { %v1761_v60 = vrot.slane %v1759_v4, 1  ;;  %v1764_v54 = vrot.slane %v1762_v43, 2  ;;  %v1767_v52 = vrot.slane %v1765_v53, 3  ;;  %v1840_v49 = vunpack.i.h.s16 %v1757_v20  ;;  %v2106_v57 = vld [vmem:[%s5283_s9 + $0x43] sm:$0x1] }
 0x188   : > { %v4329_v27 = vpack.i.b16 %v1757_v20, %v1757_v20  ;;  %v2581_v62 = vsel %vm668_vm5, %v2522_v25, %v2580_v42  ;;  %v3456_v34 = vperm.slane %v3328_v48, 1  ;;  %v2109_v1 = vld [vmem:[%s5283_s9 + $0x44] sm:$0x1]  ;;  %v3457_v25 = vperm.slane %v3329_v37, 1  ;;  %v6589_v17 = vld [vmem:[%s5147_s24 + $0x56] sm:$0x1] }
 0x189   : > { %v1842_v11 = vunpack.i.h.s16 %v1761_v60  ;;  %v1844_v30 = vunpack.i.h.s16 %v1764_v54  ;;  %v1846_v45 = vunpack.i.h.s16 %v1767_v52  ;;  %v1904_v0 = vpack.i.b16 %v1840_v49, %v1840_v49  ;;  %v2112_v35 = vld [vmem:[%s5283_s9 + $0x45] sm:$0x1]  ;;  %v6596_v20 = vld [vmem:[%s5147_s24 + $0x57] sm:$0x1] }
 0x18a   : > { %v4330_v16 = vpack.i.b16 %v1761_v60, %v1761_v60  ;;  %v4331_v10 = vpack.i.b16 %v1764_v54, %v1764_v54  ;;  %v4332_v14 = vpack.i.b16 %v1767_v52, %v1767_v52  ;;  %v2098_v23 = vsel %vm5344_vm11, %v4329_v27, %v2097_v13  ;;  %v2115_v61 = vld [vmem:[%s5283_s9 + $0x46] sm:$0x1] }
 0x18b   : > { %v1906_v8 = vpack.i.b16 %v1842_v11, %v1842_v11  ;;  %v1908_v7 = vpack.i.b16 %v1844_v30, %v1844_v30  ;;  %v1910_v19 = vpack.i.b16 %v1846_v45, %v1846_v45  ;;  %2099 = vst [vmem:[%s5283_s9 + $0x40] sm:$0x1] %v2098_v23  ;;  %v2101_v3 = vsel %vm5344_vm11, %v1904_v0, %v2100_v51  ;;  %v2118_v56 = vld [vmem:[%s5283_s9 + $0x47] sm:$0x1]  ;;  %v4553_v0 = vld [vmem:[%s5283_s9 + $0x48] sm:$0x1] }
 0x18c   : > { %2102 = vst [vmem:[%s5283_s9 + $0x41] sm:$0x1] %v2101_v3  ;;  %v2104_v22 = vsel %vm5344_vm11, %v4330_v16, %v2103_v63  ;;  %v2110_v5 = vsel %vm5344_vm11, %v4331_v10, %v2109_v1  ;;  %v2582_v32 = vsel %vm670_vm6, %v2523_v9, %v2581_v62  ;;  %v3458_v29 = vperm.slane %v3330_v50, 1  ;;  %v4555_v1 = vld [vmem:[%s5283_s9 + $0x49] sm:$0x1] }
 0x18d   : > { %2105 = vst [vmem:[%s5283_s9 + $0x42] sm:$0x1] %v2104_v22  ;;  %v2107_v12 = vsel %vm5344_vm11, %v1906_v8, %v2106_v57  ;;  %v2113_v26 = vsel %vm5344_vm11, %v1908_v7, %v2112_v35  ;;  %v2616_v39 = vadd.f32 %v2582_v32, %v6491_v15  ;;  %v2116_v9 = vsel %vm5344_vm11, %v4332_v14, %v2115_v61  ;;  %v4557_v7 = vld [vmem:[%s5283_s9 + $0x4a] sm:$0x1]  ;;  %v394_v22 = vpop.f32.mrf.mxu0 }
 0x18e   : > { %2108 = vst [vmem:[%s5283_s9 + $0x43] sm:$0x1] %v2107_v12  ;;  %v2119_v47 = vsel %vm5344_vm11, %v1910_v19, %v2118_v56  ;;  %v3459_v48 = vperm.slane %v3331_v18, 1  ;;  %v3460_v37 = vperm.slane %v3332_v28, 1  ;;  %v3461_v42 = vperm.slane %v3333_v55, 1 }
 0x18f   : > { %2111 = vst [vmem:[%s5283_s9 + $0x44] sm:$0x1] %v2110_v5  ;;  %v2624_v24 = vpack.c.bf16 %v2616_v39, %v2616_v39  ;;  %v6592_v15 = vperm.slane %v3334_v58, 1  ;;  %v3515_v50 = vsel %vm658_vm0, %v3456_v34, %v3455_v44  ;;  %v506_v43 = vunpack.c.l.bf16 %v442_v59  ;;  %v4561_v19 = vld [vmem:[%s5283_s9 + $0x4c] sm:$0x1] }
 0x190   : > { %2114 = vst [vmem:[%s5283_s9 + $0x45] sm:$0x1] %v2113_v26  ;;  %v3516_v4 = vsel %vm660_vm1, %v3457_v25, %v3515_v50  ;;  %v507_v53 = vunpack.c.l.bf16 %v443_v2  ;;  %v508_v18 = vunpack.c.l.bf16 %v6560_v40  ;;  %v509_v55 = vunpack.c.l.bf16 %v6569_v6  ;;  %v4559_v2 = vld [vmem:[%s5283_s9 + $0x4b] sm:$0x1]  ;;  %v4563_v40 = vld [vmem:[%s5283_s9 + $0x4d] sm:$0x1] }
 0x191   : > { %2117 = vst [vmem:[%s5283_s9 + $0x46] sm:$0x1] %v2116_v9  ;;  %v2640_v28 = vrot.slane %v2624_v24, 3  ;;  %v3517_v60 = vsel %vm662_vm2, %v3458_v29, %v3516_v4  ;;  %v510_v58 = vunpack.c.l.bf16 %v6572_v46  ;;  %v511_v52 = vunpack.c.l.bf16 %v6581_v21  ;;  %v4565_v46 = vld [vmem:[%s5283_s9 + $0x4e] sm:$0x1] }
 0x192   : > { %2120 = vst [vmem:[%s5283_s9 + $0x47] sm:$0x1] %v2119_v47  ;;  %v3518_v54 = vsel %vm664_vm3, %v3459_v48, %v3517_v60  ;;  %v512_v49 = vunpack.c.l.bf16 %v6589_v17  ;;  %v513_v13 = vunpack.c.l.bf16 %v6596_v20  ;;  %v634_v10 = vperm.slane %v506_v43, 0  ;;  %v4567_v12 = vld [vmem:[%s5283_s9 + $0x4f] sm:$0x1]  ;;  %v1343_v43 = vpop.f32.mrf.mxu1 }
 0x193   : > { %v2698_v27 = vsel %vm761_vm7, %v2624_v24, %v2640_v28  ;;  %v2700_v51 = vsel %vm658_vm0, %v2624_v24, %v2640_v28  ;;  %v2703_v62 = vsel %vm660_vm1, %v2624_v24, %v2640_v28  ;;  %v2706_v44 = vsel %vm662_vm2, %v2624_v24, %v2640_v28  ;;  %v1391_v47 = vld [vmem:[%s5147_s24 + $0x50] sm:$0x1]  ;;  %v1392_v48 = vld [vmem:[%s5147_s24 + $0x51] sm:$0x1] }
 0x194   : > { %v2702_v34 = vrot.slane %v2700_v51, 1  ;;  %v2705_v11 = vrot.slane %v2703_v62, 2  ;;  %v2708_v30 = vrot.slane %v2706_v44, 3  ;;  %v2781_v45 = vunpack.i.h.s16 %v2698_v27 }
 0x195   : > { %v4473_v63 = vpack.i.b16 %v2698_v27, %v2698_v27  ;;  %v3519_v16 = vsel %vm666_vm4, %v3460_v37, %v3518_v54  ;;  %v635_v14 = vperm.slane %v507_v53, 0  ;;  %v636_v9 = vperm.slane %v508_v18, 0  ;;  %v6637_v37 = vld [vmem:[%s5147_s24 + $0x52] sm:$0x1]  ;;  %v6655_v53 = vld [vmem:[%s5147_s24 + $0x53] sm:$0x1] }
 0x196   : > { %v2783_v23 = vunpack.i.h.s16 %v2702_v34  ;;  %v2785_v57 = vunpack.i.h.s16 %v2705_v11  ;;  %v2787_v35 = vunpack.i.h.s16 %v2708_v30  ;;  %v2845_v8 = vpack.i.b16 %v2781_v45, %v2781_v45  ;;  %v6658_v18 = vld [vmem:[%s5147_s24 + $0x54] sm:$0x1]  ;;  %v6665_v27 = vld [vmem:[%s5147_s24 + $0x55] sm:$0x1] }
 0x197   : > { %v4474_v3 = vpack.i.b16 %v2702_v34, %v2702_v34  ;;  %v4475_v61 = vpack.i.b16 %v2705_v11, %v2705_v11  ;;  %v4476_v56 = vpack.i.b16 %v2708_v30, %v2708_v30  ;;  %v3038_v59 = vsel %vm5302_vm10, %v4473_v63, %v4553_v0  ;;  %v6674_v11 = vld [vmem:[%s5147_s24 + $0x56] sm:$0x1]  ;;  %v6683_v30 = vld [vmem:[%s7582_s3] ss:$0 sm:$0xff] }
 0x198   : > { %v2847_v5 = vpack.i.b16 %v2783_v23, %v2783_v23  ;;  %v2849_v32 = vpack.i.b16 %v2785_v57, %v2785_v57  ;;  %v2851_v25 = vpack.i.b16 %v2787_v35, %v2787_v35  ;;  %4554 = vst [vmem:[%s5283_s9 + $0x48] sm:$0x1] %v3038_v59  ;;  %v3041_v6 = vsel %vm5302_vm10, %v2845_v8, %v4555_v1 }
 0x199   : > { %4556 = vst [vmem:[%s5283_s9 + $0x49] sm:$0x1] %v3041_v6  ;;  %v3044_v26 = vsel %vm5302_vm10, %v4474_v3, %v4557_v7  ;;  %v3050_v39 = vsel %vm5302_vm10, %v4475_v61, %v4561_v19  ;;  %v3520_v29 = vsel %vm668_vm5, %v3461_v42, %v3519_v16  ;;  %v6649_v42 = vld [vmem:[%s7582_s3] ss:$0 sm:$0xff]  ;;  %v3056_v28 = vsel %vm5302_vm10, %v4476_v56, %v4565_v46 }
 0x19a   : > { %4558 = vst [vmem:[%s5283_s9 + $0x4a] sm:$0x1] %v3044_v26  ;;  %v3047_v17 = vsel %vm5302_vm10, %v2847_v5, %v4559_v2  ;;  %v3053_v24 = vsel %vm5302_vm10, %v2849_v32, %v4563_v40  ;;  %v3521_v50 = vsel %vm670_vm6, %v6592_v15, %v3520_v29  ;;  %v6652_v4 = vadd.f32 %v6649_v42, %v394_v22 }
 0x19b   : > { %4560 = vst [vmem:[%s5283_s9 + $0x4b] sm:$0x1] %v3047_v17  ;;  %v3555_v15 = vadd.f32 %v3521_v50, %v6523_v38  ;;  %v637_v60 = vperm.slane %v509_v55, 0  ;;  %v638_v54 = vperm.slane %v510_v58, 0  ;;  %v3059_v51 = vsel %vm5302_vm10, %v2851_v25, %v4567_v12 }
 0x19c   : > { %4562 = vst [vmem:[%s5283_s9 + $0x4c] sm:$0x1] %v3050_v39  ;;  %v639_v62 = vperm.slane %v511_v52, 0  ;;  %v640_v44 = vperm.slane %v512_v49, 0  ;;  %v700_v34 = vsel %vm658_vm0, %v635_v14, %v634_v10  ;;  %v641_v55 = vperm.slane %v513_v13, 0 }
 0x19d   : > { %4564 = vst [vmem:[%s5283_s9 + $0x4d] sm:$0x1] %v3053_v24  ;;  %v3563_v38 = vpack.c.bf16 %v3555_v15, %v3555_v15  ;;  %v701_v58 = vsel %vm660_vm1, %v636_v9, %v700_v34  ;;  %v6686_v21 = vadd.f32 %v6683_v30, %v1343_v43  ;;  %v6689_v52 = vld [vmem:[%s5147_s24 + $0x57] sm:$0x1]  ;;  %v1455_v45 = vunpack.c.l.bf16 %v1391_v47 }
 0x19e   : > { %4566 = vst [vmem:[%s5283_s9 + $0x4e] sm:$0x1] %v3056_v28  ;;  %v702_v49 = vsel %vm662_vm2, %v637_v60, %v701_v58  ;;  %v1456_v0 = vunpack.c.l.bf16 %v1392_v48  ;;  %v1457_v20 = vunpack.c.l.bf16 %v6637_v37  ;;  %v1458_v1 = vunpack.c.l.bf16 %v6655_v53  ;;  %v4433_v60 = vld [vmem:[%s5147_s24 + $0x58] sm:$0x1] }
 0x19f   : > { %4568 = vst [vmem:[%s5283_s9 + $0x4f] sm:$0x1] %v3059_v51  ;;  %v3579_v13 = vrot.slane %v3563_v38, 3  ;;  %v703_v63 = vsel %vm664_vm3, %v638_v54, %v702_v49  ;;  %v1459_v16 = vunpack.c.l.bf16 %v6658_v18  ;;  %v1460_v14 = vunpack.c.l.bf16 %v6665_v27  ;;  %v4825_v2 = vld [vmem:[%s5283_s9 + $0x48] sm:$0x1] }
 0x1a0   : > { %v704_v10 = vsel %vm666_vm4, %v639_v62, %v703_v63  ;;  %v1461_v23 = vunpack.c.l.bf16 %v6674_v11  ;;  %v1462_v57 = vunpack.c.l.bf16 %v6689_v52  ;;  %v4827_v22 = vld [vmem:[%s5283_s9 + $0x49] sm:$0x1]  ;;  %v1583_v32 = vperm.slane %v1455_v45, 1  ;;  %v4434_v54 = vld [vmem:[%s5147_s24 + $0x59] sm:$0x1] }
 0x1a1   : > { %v3637_v35 = vsel %vm761_vm7, %v3563_v38, %v3579_v13  ;;  %v3639_v8 = vsel %vm658_vm0, %v3563_v38, %v3579_v13  ;;  %v3642_v7 = vsel %vm660_vm1, %v3563_v38, %v3579_v13  ;;  %v3645_v19 = vsel %vm662_vm2, %v3563_v38, %v3579_v13  ;;  %v4829_v39 = vld [vmem:[%s5283_s9 + $0x4a] sm:$0x1]  ;;  %v6723_v27 = vld [vmem:[%s5147_s24 + $0x5a] sm:$0x1]  ;;  %v6732_v11 = vld [vmem:[%s5147_s24 + $0x5b] sm:$0x1] }
 0x1a2   : > { %v3641_v3 = vrot.slane %v3639_v8, 1  ;;  %v3644_v61 = vrot.slane %v3642_v7, 2  ;;  %v3647_v56 = vrot.slane %v3645_v19, 3  ;;  %v3720_v59 = vunpack.i.h.s16 %v3637_v35  ;;  %v4831_v37 = vld [vmem:[%s5283_s9 + $0x4b] sm:$0x1] }
 0x1a3   : > { %v4745_v40 = vpack.i.b16 %v3637_v35, %v3637_v35  ;;  %v705_v5 = vsel %vm668_vm5, %v640_v44, %v704_v10  ;;  %v1584_v25 = vperm.slane %v1456_v0, 1  ;;  %v4833_v29 = vld [vmem:[%s5283_s9 + $0x4c] sm:$0x1]  ;;  %v1585_v24 = vperm.slane %v1457_v20, 1  ;;  %v6735_v38 = vld [vmem:[%s5147_s24 + $0x5c] sm:$0x1] }
 0x1a4   : > { %v3722_v6 = vunpack.i.h.s16 %v3641_v3  ;;  %v3724_v46 = vunpack.i.h.s16 %v3644_v61  ;;  %v3726_v12 = vunpack.i.h.s16 %v3647_v56  ;;  %v3784_v26 = vpack.i.b16 %v3720_v59, %v3720_v59  ;;  %v4835_v17 = vld [vmem:[%s5283_s9 + $0x4d] sm:$0x1]  ;;  %v6744_v0 = vld [vmem:[%s5147_s24 + $0x5d] sm:$0x1]  ;;  %v6752_v10 = vld [vmem:[%s5147_s24 + $0x5e] sm:$0x1] }
 0x1a5   : > { %v4746_v9 = vpack.i.b16 %v3641_v3, %v3641_v3  ;;  %v4747_v47 = vpack.i.b16 %v3644_v61, %v3644_v61  ;;  %v3976_v48 = vsel %vm5344_vm11, %v4745_v40, %v4825_v2  ;;  %v4748_v53 = vpack.i.b16 %v3647_v56, %v3647_v56  ;;  %v4837_v28 = vld [vmem:[%s5283_s9 + $0x4e] sm:$0x1]  ;;  %v6759_v7 = vld [vmem:[%s5147_s24 + $0x5f] sm:$0x1] }
 0x1a6   : > { %v3786_v50 = vpack.i.b16 %v3722_v6, %v3722_v6  ;;  %v3788_v43 = vpack.i.b16 %v3724_v46, %v3724_v46  ;;  %4826 = vst [vmem:[%s5283_s9 + $0x48] sm:$0x1] %v3976_v48  ;;  %v3979_v18 = vsel %vm5344_vm11, %v3784_v26, %v4827_v22  ;;  %v4839_v15 = vld [vmem:[%s5283_s9 + $0x4f] sm:$0x1]  ;;  %v3790_v51 = vpack.i.b16 %v3726_v12, %v3726_v12 }
 0x1a7   : > { %4828 = vst [vmem:[%s5283_s9 + $0x49] sm:$0x1] %v3979_v18  ;;  %v3982_v62 = vsel %vm5344_vm11, %v4746_v9, %v4829_v39  ;;  %v3988_v44 = vsel %vm5344_vm11, %v4747_v47, %v4833_v29  ;;  %v706_v34 = vsel %vm670_vm6, %v641_v55, %v705_v5  ;;  %v1586_v45 = vperm.slane %v1458_v1, 1  ;;  %v1181_v29 = vld [vmem:[%s5283_s9 + $0x50] sm:$0x1] }
 0x1a8   : > { %4830 = vst [vmem:[%s5283_s9 + $0x4a] sm:$0x1] %v3982_v62  ;;  %v3985_v58 = vsel %vm5344_vm11, %v3786_v50, %v4831_v37  ;;  %v3991_v52 = vsel %vm5344_vm11, %v3788_v43, %v4835_v17  ;;  %v734_v49 = vadd.f32 %v706_v34, %v6652_v4  ;;  %v3994_v55 = vsel %vm5344_vm11, %v4748_v53, %v4837_v28  ;;  %v1184_v47 = vld [vmem:[%s5283_s9 + $0x51] sm:$0x1]  ;;  %v1187_v18 = vld [vmem:[%s5283_s9 + $0x52] sm:$0x1] }
 0x1a9   : > { %4832 = vst [vmem:[%s5283_s9 + $0x4b] sm:$0x1] %v3985_v58  ;;  %v3997_v20 = vsel %vm5344_vm11, %v3790_v51, %v4839_v15  ;;  %v1587_v13 = vperm.slane %v1459_v16, 1  ;;  %v1588_v63 = vperm.slane %v1460_v14, 1  ;;  %v1589_v8 = vperm.slane %v1461_v23, 1 }
 0x1aa   : > { %4834 = vst [vmem:[%s5283_s9 + $0x4c] sm:$0x1] %v3988_v44  ;;  %v742_v35 = vpack.c.bf16 %v734_v49, %v734_v49  ;;  %v6755_v4 = vperm.slane %v1462_v57, 1  ;;  %v1642_v1 = vsel %vm658_vm0, %v1584_v25, %v1583_v32  ;;  %v2396_v3 = vunpack.c.l.bf16 %v4433_v60  ;;  %v1193_v28 = vld [vmem:[%s5283_s9 + $0x54] sm:$0x1]  ;;  %v2283_v44 = vpop.f32.mrf.mxu2 }
 0x1ab   : > { %4836 = vst [vmem:[%s5283_s9 + $0x4d] sm:$0x1] %v3991_v52  ;;  %v1643_v19 = vsel %vm660_vm1, %v1585_v24, %v1642_v1  ;;  %v2397_v61 = vunpack.c.l.bf16 %v4434_v54  ;;  %v2398_v16 = vunpack.c.l.bf16 %v6723_v27  ;;  %v2399_v23 = vunpack.c.l.bf16 %v6732_v11  ;;  %v1190_v51 = vld [vmem:[%s5283_s9 + $0x53] sm:$0x1]  ;;  %v1196_v62 = vld [vmem:[%s5283_s9 + $0x55] sm:$0x1] }
 0x1ac   : > { %4838 = vst [vmem:[%s5283_s9 + $0x4e] sm:$0x1] %v3994_v55  ;;  %v758_v14 = vrot.slane %v742_v35, 3  ;;  %v1644_v56 = vsel %vm662_vm2, %v1586_v45, %v1643_v19  ;;  %v2400_v57 = vunpack.c.l.bf16 %v6735_v38  ;;  %v2401_v2 = vunpack.c.l.bf16 %v6744_v0  ;;  %v1199_v52 = vld [vmem:[%s5283_s9 + $0x56] sm:$0x1] }
 0x1ad   : > { %4840 = vst [vmem:[%s5283_s9 + $0x4f] sm:$0x1] %v3997_v20  ;;  %v1645_v59 = vsel %vm664_vm3, %v1587_v13, %v1644_v56  ;;  %v2402_v40 = vunpack.c.l.bf16 %v6752_v10  ;;  %v2403_v22 = vunpack.c.l.bf16 %v6759_v7  ;;  %v2524_v37 = vperm.slane %v2396_v3, 0  ;;  %v1202_v49 = vld [vmem:[%s5283_s9 + $0x57] sm:$0x1]  ;;  %v3223_v3 = vpop.f32.mrf.mxu3 }
 0x1ae   : > { %v829_v5 = vsel %vm761_vm7, %v742_v35, %v758_v14  ;;  %v831_v32 = vsel %vm658_vm0, %v742_v35, %v758_v14  ;;  %v834_v25 = vsel %vm660_vm1, %v742_v35, %v758_v14  ;;  %v837_v6 = vsel %vm662_vm2, %v742_v35, %v758_v14  ;;  %v4705_v13 = vld [vmem:[%s5147_s24 + $0x58] sm:$0x1]  ;;  %v6800_v10 = vld [vmem:[%s5147_s24 + $0x5a] sm:$0x1] }
 0x1af   : > { %v833_v46 = vrot.slane %v831_v32, 1  ;;  %v836_v12 = vrot.slane %v834_v25, 2  ;;  %v839_v26 = vrot.slane %v837_v6, 3  ;;  %v907_v39 = vunpack.i.h.s16 %v829_v5 }
 0x1b0   : > { %v4253_v9 = vpack.i.b16 %v829_v5, %v829_v5  ;;  %v1646_v48 = vsel %vm666_vm4, %v1588_v63, %v1645_v59  ;;  %v2525_v17 = vperm.slane %v2397_v61, 0  ;;  %v2526_v20 = vperm.slane %v2398_v16, 0  ;;  %v4706_v63 = vld [vmem:[%s5147_s24 + $0x59] sm:$0x1]  ;;  %v6813_v61 = vld [vmem:[%s5147_s24 + $0x5b] sm:$0x1] }
 0x1b1   : > { %v909_v24 = vunpack.i.h.s16 %v833_v46  ;;  %v911_v50 = vunpack.i.h.s16 %v836_v12  ;;  %v913_v43 = vunpack.i.h.s16 %v839_v26  ;;  %v971_v53 = vpack.i.b16 %v907_v39, %v907_v39  ;;  %v6816_v16 = vld [vmem:[%s5147_s24 + $0x5c] sm:$0x1]  ;;  %v6823_v5 = vld [vmem:[%s5147_s24 + $0x5d] sm:$0x1] }
 0x1b2   : > { %v4254_v15 = vpack.i.b16 %v833_v46, %v833_v46  ;;  %v4255_v60 = vpack.i.b16 %v836_v12, %v836_v12  ;;  %v4256_v54 = vpack.i.b16 %v839_v26, %v839_v26  ;;  %v1182_v27 = vsel %vm5302_vm10, %v4253_v9, %v1181_v29  ;;  %v6830_v46 = vld [vmem:[%s5147_s24 + $0x5e] sm:$0x1]  ;;  %v6840_v26 = vld [vmem:[%s5147_s24 + $0x5f] sm:$0x1] }
 0x1b3   : > { %v973_v34 = vpack.i.b16 %v909_v24, %v909_v24  ;;  %v975_v11 = vpack.i.b16 %v911_v50, %v911_v50  ;;  %v977_v38 = vpack.i.b16 %v913_v43, %v913_v43  ;;  %1183 = vst [vmem:[%s5283_s9 + $0x50] sm:$0x1] %v1182_v27  ;;  %v1185_v58 = vsel %vm5302_vm10, %v971_v53, %v1184_v47 }
 0x1b4   : > { %1186 = vst [vmem:[%s5283_s9 + $0x51] sm:$0x1] %v1185_v58  ;;  %v1188_v45 = vsel %vm5302_vm10, %v4254_v15, %v1187_v18  ;;  %v1194_v0 = vsel %vm5302_vm10, %v4255_v60, %v1193_v28  ;;  %v1647_v55 = vsel %vm668_vm5, %v1589_v8, %v1646_v48  ;;  %v6810_v8 = vadd.f32 %v6488_v31, %v2283_v44 }
 0x1b5   : > { %1189 = vst [vmem:[%s5283_s9 + $0x52] sm:$0x1] %v1188_v45  ;;  %v1191_v35 = vsel %vm5302_vm10, %v973_v34, %v1190_v51  ;;  %v1197_v1 = vsel %vm5302_vm10, %v975_v11, %v1196_v62  ;;  %v1648_v19 = vsel %vm670_vm6, %v6755_v4, %v1647_v55  ;;  %v1200_v14 = vsel %vm5302_vm10, %v4256_v54, %v1199_v52 }
 0x1b6   : > { %1192 = vst [vmem:[%s5283_s9 + $0x53] sm:$0x1] %v1191_v35  ;;  %v1676_v56 = vadd.f32 %v1648_v19, %v6686_v21  ;;  %v2527_v59 = vperm.slane %v2399_v23, 0  ;;  %v2528_v4 = vperm.slane %v2400_v57, 0  ;;  %v1203_v31 = vsel %vm5302_vm10, %v977_v38, %v1202_v49 }
 0x1b7   : > { %1195 = vst [vmem:[%s5283_s9 + $0x54] sm:$0x1] %v1194_v0  ;;  %v2529_v32 = vperm.slane %v2401_v2, 0  ;;  %v2530_v25 = vperm.slane %v2402_v40, 0  ;;  %v2583_v6 = vsel %vm658_vm0, %v2525_v17, %v2524_v37  ;;  %v2531_v21 = vperm.slane %v2403_v22, 0 }
 0x1b8   : > { %1198 = vst [vmem:[%s5283_s9 + $0x55] sm:$0x1] %v1197_v1  ;;  %v1684_v12 = vpack.c.bf16 %v1676_v56, %v1676_v56  ;;  %v2584_v23 = vsel %vm660_vm1, %v2526_v20, %v2583_v6  ;;  %v6837_v57 = vadd.f32 %v6520_v36, %v3223_v3  ;;  %v3335_v40 = vunpack.c.l.bf16 %v4705_v13  ;;  %v451_v56 = vld [vmem:[%s5147_s24 + $0x61] sm:$0x1]  ;;  %v6886_v6 = vld [vmem:[%s5147_s24 + $0x64] sm:$0x1] }
 0x1b9   : > { %1201 = vst [vmem:[%s5283_s9 + $0x56] sm:$0x1] %v1200_v14  ;;  %v2585_v2 = vsel %vm662_vm2, %v2527_v59, %v2584_v23  ;;  %v3336_v39 = vunpack.c.l.bf16 %v4706_v63  ;;  %v3337_v29 = vunpack.c.l.bf16 %v6800_v10  ;;  %v3338_v22 = vunpack.c.l.bf16 %v6813_v61  ;;  %v450_v14 = vld [vmem:[%s5147_s24 + $0x60] sm:$0x1]  ;;  %v6874_v59 = vld [vmem:[%s5147_s24 + $0x62] sm:$0x1] }
 0x1ba   : > { %1204 = vst [vmem:[%s5283_s9 + $0x57] sm:$0x1] %v1203_v31  ;;  %v1700_v9 = vrot.slane %v1684_v12, 3  ;;  %v2586_v7 = vsel %vm664_vm3, %v2528_v4, %v2585_v2  ;;  %v3339_v36 = vunpack.c.l.bf16 %v6816_v16  ;;  %v3340_v48 = vunpack.c.l.bf16 %v6823_v5  ;;  %v2121_v54 = vld [vmem:[%s5283_s9 + $0x50] sm:$0x1] }
 0x1bb   : > { %v2587_v47 = vsel %vm666_vm4, %v2529_v32, %v2586_v7  ;;  %v3341_v37 = vunpack.c.l.bf16 %v6830_v46  ;;  %v3342_v17 = vunpack.c.l.bf16 %v6840_v26  ;;  %v2124_v51 = vld [vmem:[%s5283_s9 + $0x51] sm:$0x1]  ;;  %v3463_v44 = vperm.slane %v3335_v40, 1  ;;  %v6895_v2 = vld [vmem:[%s5147_s24 + $0x65] sm:$0x1] }
 0x1bc   : > { %v1770_v24 = vsel %vm761_vm7, %v1684_v12, %v1700_v9  ;;  %v1772_v50 = vsel %vm658_vm0, %v1684_v12, %v1700_v9  ;;  %v1775_v43 = vsel %vm660_vm1, %v1684_v12, %v1700_v9  ;;  %v1778_v53 = vsel %vm662_vm2, %v1684_v12, %v1700_v9  ;;  %v2127_v49 = vld [vmem:[%s5283_s9 + $0x52] sm:$0x1]  ;;  %v6903_v9 = vld [vmem:[%s5147_s24 + $0x66] sm:$0x1] }
 0x1bd   : > { %v1774_v18 = vrot.slane %v1772_v50, 1  ;;  %v1777_v28 = vrot.slane %v1775_v43, 2  ;;  %v1780_v15 = vrot.slane %v1778_v53, 3  ;;  %v1848_v60 = vunpack.i.h.s16 %v1770_v24  ;;  %v2130_v13 = vld [vmem:[%s5283_s9 + $0x53] sm:$0x1] }
 0x1be   : > { %v4333_v27 = vpack.i.b16 %v1770_v24, %v1770_v24  ;;  %v2588_v62 = vsel %vm668_vm5, %v2530_v25, %v2587_v47  ;;  %v3464_v34 = vperm.slane %v3336_v39, 1  ;;  %v2133_v45 = vld [vmem:[%s5283_s9 + $0x54] sm:$0x1]  ;;  %v3465_v10 = vperm.slane %v3337_v29, 1  ;;  %v6883_v25 = vld [vmem:[%s5147_s24 + $0x63] sm:$0x1] }
 0x1bf   : > { %v1850_v11 = vunpack.i.h.s16 %v1774_v18  ;;  %v1852_v38 = vunpack.i.h.s16 %v1777_v28  ;;  %v1854_v58 = vunpack.i.h.s16 %v1780_v15  ;;  %v1912_v52 = vpack.i.b16 %v1848_v60, %v1848_v60  ;;  %v2136_v63 = vld [vmem:[%s5283_s9 + $0x55] sm:$0x1]  ;;  %v6910_v24 = vld [vmem:[%s5147_s24 + $0x67] sm:$0x1] }
 0x1c0   : > { %v4334_v0 = vpack.i.b16 %v1774_v18, %v1774_v18  ;;  %v4335_v55 = vpack.i.b16 %v1777_v28, %v1777_v28  ;;  %v2122_v20 = vsel %vm5344_vm11, %v4333_v27, %v2121_v54  ;;  %v4336_v19 = vpack.i.b16 %v1780_v15, %v1780_v15  ;;  %v2139_v61 = vld [vmem:[%s5283_s9 + $0x56] sm:$0x1] }
 0x1c1   : > { %v1914_v35 = vpack.i.b16 %v1850_v11, %v1850_v11  ;;  %v1916_v1 = vpack.i.b16 %v1852_v38, %v1852_v38  ;;  %2123 = vst [vmem:[%s5283_s9 + $0x50] sm:$0x1] %v2122_v20  ;;  %v2125_v3 = vsel %vm5344_vm11, %v1912_v52, %v2124_v51  ;;  %v2142_v16 = vld [vmem:[%s5283_s9 + $0x57] sm:$0x1]  ;;  %v1918_v4 = vpack.i.b16 %v1854_v58, %v1854_v58  ;;  %v4569_v52 = vld [vmem:[%s5283_s9 + $0x58] sm:$0x1] }
 0x1c2   : > { %2126 = vst [vmem:[%s5283_s9 + $0x51] sm:$0x1] %v2125_v3  ;;  %v2128_v5 = vsel %vm5344_vm11, %v4334_v0, %v2127_v49  ;;  %v2134_v31 = vsel %vm5344_vm11, %v4335_v55, %v2133_v45  ;;  %v2589_v32 = vsel %vm670_vm6, %v2531_v21, %v2588_v62  ;;  %v3466_v26 = vperm.slane %v3338_v22, 1  ;;  %v4571_v45 = vld [vmem:[%s5283_s9 + $0x59] sm:$0x1] }
 0x1c3   : > { %2129 = vst [vmem:[%s5283_s9 + $0x52] sm:$0x1] %v2128_v5  ;;  %v2131_v46 = vsel %vm5344_vm11, %v1914_v35, %v2130_v13  ;;  %v2137_v12 = vsel %vm5344_vm11, %v1916_v1, %v2136_v63  ;;  %v2617_v23 = vadd.f32 %v2589_v32, %v6810_v8  ;;  %v2140_v21 = vsel %vm5344_vm11, %v4336_v19, %v2139_v61  ;;  %v4573_v1 = vld [vmem:[%s5283_s9 + $0x5a] sm:$0x1]  ;;  %v4577_v19 = vld [vmem:[%s5283_s9 + $0x5c] sm:$0x1] }
 0x1c4   : > { %2132 = vst [vmem:[%s5283_s9 + $0x53] sm:$0x1] %v2131_v46  ;;  %v2143_v40 = vsel %vm5344_vm11, %v1918_v4, %v2142_v16  ;;  %v3467_v39 = vperm.slane %v3339_v36, 1  ;;  %v3468_v29 = vperm.slane %v3340_v48, 1  ;;  %v3469_v47 = vperm.slane %v3341_v37, 1 }
 0x1c5   : > { %2135 = vst [vmem:[%s5283_s9 + $0x54] sm:$0x1] %v2134_v31  ;;  %v2625_v7 = vpack.c.bf16 %v2617_v23, %v2617_v23  ;;  %v6906_v8 = vperm.slane %v3342_v17, 1  ;;  %v3522_v22 = vsel %vm658_vm0, %v3464_v34, %v3463_v44  ;;  %v514_v43 = vunpack.c.l.bf16 %v450_v14 }
 0x1c6   : > { %2138 = vst [vmem:[%s5283_s9 + $0x55] sm:$0x1] %v2137_v12  ;;  %v3523_v50 = vsel %vm660_vm1, %v3465_v10, %v3522_v22  ;;  %v515_v53 = vunpack.c.l.bf16 %v451_v56  ;;  %v516_v36 = vunpack.c.l.bf16 %v6874_v59  ;;  %v517_v37 = vunpack.c.l.bf16 %v6883_v25  ;;  %v4575_v56 = vld [vmem:[%s5283_s9 + $0x5b] sm:$0x1]  ;;  %v4579_v59 = vld [vmem:[%s5283_s9 + $0x5d] sm:$0x1] }
 0x1c7   : > { %2141 = vst [vmem:[%s5283_s9 + $0x56] sm:$0x1] %v2140_v21  ;;  %v2641_v48 = vrot.slane %v2625_v7, 3  ;;  %v3524_v18 = vsel %vm662_vm2, %v3466_v26, %v3523_v50  ;;  %v518_v17 = vunpack.c.l.bf16 %v6886_v6  ;;  %v519_v15 = vunpack.c.l.bf16 %v6895_v2  ;;  %v4581_v25 = vld [vmem:[%s5283_s9 + $0x5e] sm:$0x1]  ;;  %v397_v26 = vpop.f32.mrf.mxu0 }
 0x1c8   : > { %2144 = vst [vmem:[%s5283_s9 + $0x57] sm:$0x1] %v2143_v40  ;;  %v3525_v28 = vsel %vm664_vm3, %v3467_v39, %v3524_v18  ;;  %v520_v60 = vunpack.c.l.bf16 %v6903_v9  ;;  %v521_v54 = vunpack.c.l.bf16 %v6910_v24  ;;  %v642_v55 = vperm.slane %v514_v43, 0  ;;  %v4583_v6 = vld [vmem:[%s5283_s9 + $0x5f] sm:$0x1] }
 0x1c9   : > { %v2711_v27 = vsel %vm761_vm7, %v2625_v7, %v2641_v48  ;;  %v2713_v51 = vsel %vm658_vm0, %v2625_v7, %v2641_v48  ;;  %v2716_v62 = vsel %vm660_vm1, %v2625_v7, %v2641_v48  ;;  %v2719_v44 = vsel %vm662_vm2, %v2625_v7, %v2641_v48  ;;  %v1399_v21 = vld [vmem:[%s5147_s24 + $0x60] sm:$0x1]  ;;  %v1400_v40 = vld [vmem:[%s5147_s24 + $0x61] sm:$0x1]  ;;  %v6951_v39 = vld [vmem:[%s5147_s24 + $0x62] sm:$0x1] }
 0x1ca   : > { %v2715_v34 = vrot.slane %v2713_v51, 1  ;;  %v2718_v11 = vrot.slane %v2716_v62, 2  ;;  %v2721_v38 = vrot.slane %v2719_v44, 3  ;;  %v2789_v58 = vunpack.i.h.s16 %v2711_v27  ;;  %v6964_v22 = vld [vmem:[%s5147_s24 + $0x63] sm:$0x1]  ;;  %v1346_v51 = vpop.f32.mrf.mxu1 }
 0x1cb   : > { %v4477_v49 = vpack.i.b16 %v2711_v27, %v2711_v27  ;;  %v3526_v0 = vsel %vm666_vm4, %v3468_v29, %v3525_v28  ;;  %v643_v20 = vperm.slane %v515_v53, 0  ;;  %v644_v2 = vperm.slane %v516_v36, 0  ;;  %v6967_v50 = vld [vmem:[%s5147_s24 + $0x64] sm:$0x1]  ;;  %v6981_v62 = vld [vmem:[%s5147_s24 + $0x66] sm:$0x1] }
 0x1cc   : > { %v2791_v13 = vunpack.i.h.s16 %v2715_v34  ;;  %v2793_v63 = vunpack.i.h.s16 %v2718_v11  ;;  %v2795_v10 = vunpack.i.h.s16 %v2721_v38  ;;  %v2853_v35 = vpack.i.b16 %v2789_v58, %v2789_v58 }
 0x1cd   : > { %v4478_v3 = vpack.i.b16 %v2715_v34, %v2715_v34  ;;  %v4479_v61 = vpack.i.b16 %v2718_v11, %v2718_v11  ;;  %v4480_v16 = vpack.i.b16 %v2721_v38, %v2721_v38  ;;  %v3062_v14 = vsel %vm5302_vm10, %v4477_v49, %v4569_v52  ;;  %v6991_v34 = vld [vmem:[%s5147_s24 + $0x67] sm:$0x1] }
 0x1ce   : > { %v2855_v4 = vpack.i.b16 %v2791_v13, %v2791_v13  ;;  %v2857_v5 = vpack.i.b16 %v2793_v63, %v2793_v63  ;;  %v2859_v31 = vpack.i.b16 %v2795_v10, %v2795_v10  ;;  %4570 = vst [vmem:[%s5283_s9 + $0x58] sm:$0x1] %v3062_v14  ;;  %v3065_v32 = vsel %vm5302_vm10, %v2853_v35, %v4571_v45 }
 0x1cf   : > { %4572 = vst [vmem:[%s5283_s9 + $0x59] sm:$0x1] %v3065_v32  ;;  %v3068_v46 = vsel %vm5302_vm10, %v4478_v3, %v4573_v1  ;;  %v3074_v12 = vsel %vm5302_vm10, %v4479_v61, %v4577_v19  ;;  %v3527_v23 = vsel %vm668_vm5, %v3469_v47, %v3526_v0  ;;  %v6961_v47 = vadd.f32 %v6649_v42, %v397_v26 }
 0x1d0   : > { %4574 = vst [vmem:[%s5283_s9 + $0x5a] sm:$0x1] %v3068_v46  ;;  %v3071_v29 = vsel %vm5302_vm10, %v2855_v4, %v4575_v56  ;;  %v3077_v9 = vsel %vm5302_vm10, %v2857_v5, %v4579_v59  ;;  %v3528_v7 = vsel %vm670_vm6, %v6906_v8, %v3527_v23  ;;  %v3080_v43 = vsel %vm5302_vm10, %v4480_v16, %v4581_v25  ;;  %v6974_v8 = vld [vmem:[%s5147_s24 + $0x65] sm:$0x1] }
 0x1d1   : > { %4576 = vst [vmem:[%s5283_s9 + $0x5b] sm:$0x1] %v3071_v29  ;;  %v3556_v53 = vadd.f32 %v3528_v7, %v6837_v57  ;;  %v645_v36 = vperm.slane %v517_v37, 0  ;;  %v646_v48 = vperm.slane %v518_v17, 0  ;;  %v3083_v42 = vsel %vm5302_vm10, %v2859_v31, %v4583_v6 }
 0x1d2   : > { %4578 = vst [vmem:[%s5283_s9 + $0x5c] sm:$0x1] %v3074_v12  ;;  %v647_v18 = vperm.slane %v519_v15, 0  ;;  %v648_v28 = vperm.slane %v520_v60, 0  ;;  %v707_v27 = vsel %vm658_vm0, %v643_v20, %v642_v55  ;;  %v649_v37 = vperm.slane %v521_v54, 0 }
 0x1d3   : > { %4580 = vst [vmem:[%s5283_s9 + $0x5d] sm:$0x1] %v3077_v9  ;;  %v3564_v57 = vpack.c.bf16 %v3556_v53, %v3556_v53  ;;  %v708_v17 = vsel %vm660_vm1, %v644_v2, %v707_v27  ;;  %v6988_v44 = vadd.f32 %v6683_v30, %v1346_v51  ;;  %v1463_v60 = vunpack.c.l.bf16 %v1399_v21  ;;  %v7025_v53 = vld [vmem:[%s5147_s24 + $0x6a] sm:$0x1] }
 0x1d4   : > { %4582 = vst [vmem:[%s5283_s9 + $0x5e] sm:$0x1] %v3080_v43  ;;  %v709_v15 = vsel %vm662_vm2, %v645_v36, %v708_v17  ;;  %v1464_v11 = vunpack.c.l.bf16 %v1400_v40  ;;  %v1465_v38 = vunpack.c.l.bf16 %v6951_v39  ;;  %v1466_v54 = vunpack.c.l.bf16 %v6964_v22  ;;  %v4442_v43 = vld [vmem:[%s5147_s24 + $0x69] sm:$0x1]  ;;  %v7046_v17 = vld [vmem:[%s5147_s24 + $0x6d] sm:$0x1] }
 0x1d5   : > { %4584 = vst [vmem:[%s5283_s9 + $0x5f] sm:$0x1] %v3083_v42  ;;  %v3580_v58 = vrot.slane %v3564_v57, 3  ;;  %v710_v24 = vsel %vm664_vm3, %v646_v48, %v709_v15  ;;  %v1467_v30 = vunpack.c.l.bf16 %v6967_v50  ;;  %v1468_v49 = vunpack.c.l.bf16 %v6974_v8  ;;  %v4841_v3 = vld [vmem:[%s5283_s9 + $0x58] sm:$0x1] }
 0x1d6   : > { %v711_v52 = vsel %vm666_vm4, %v647_v18, %v710_v24  ;;  %v1469_v45 = vunpack.c.l.bf16 %v6981_v62  ;;  %v1470_v0 = vunpack.c.l.bf16 %v6991_v34  ;;  %v4843_v16 = vld [vmem:[%s5283_s9 + $0x59] sm:$0x1]  ;;  %v1591_v56 = vperm.slane %v1463_v60, 1  ;;  %v4441_v50 = vld [vmem:[%s5147_s24 + $0x68] sm:$0x1] }
 0x1d7   : > { %v3650_v55 = vsel %vm761_vm7, %v3564_v57, %v3580_v58  ;;  %v3652_v20 = vsel %vm658_vm0, %v3564_v57, %v3580_v58  ;;  %v3655_v13 = vsel %vm660_vm1, %v3564_v57, %v3580_v58  ;;  %v3658_v63 = vsel %vm662_vm2, %v3564_v57, %v3580_v58  ;;  %v4845_v25 = vld [vmem:[%s5283_s9 + $0x5a] sm:$0x1]  ;;  %v7034_v18 = vld [vmem:[%s5147_s24 + $0x6b] sm:$0x1] }
 0x1d8   : > { %v3654_v10 = vrot.slane %v3652_v20, 1  ;;  %v3657_v35 = vrot.slane %v3655_v13, 2  ;;  %v3660_v1 = vrot.slane %v3658_v63, 3  ;;  %v3728_v19 = vunpack.i.h.s16 %v3650_v55  ;;  %v4847_v26 = vld [vmem:[%s5283_s9 + $0x5b] sm:$0x1] }
 0x1d9   : > { %v4749_v61 = vpack.i.b16 %v3650_v55, %v3650_v55  ;;  %v712_v14 = vsel %vm668_vm5, %v648_v28, %v711_v52  ;;  %v1592_v59 = vperm.slane %v1464_v11, 1  ;;  %v4849_v6 = vld [vmem:[%s5283_s9 + $0x5c] sm:$0x1]  ;;  %v1593_v21 = vperm.slane %v1465_v38, 1  ;;  %v7037_v28 = vld [vmem:[%s5147_s24 + $0x6c] sm:$0x1] }
 0x1da   : > { %v3730_v4 = vunpack.i.h.s16 %v3654_v10  ;;  %v3732_v5 = vunpack.i.h.s16 %v3657_v35  ;;  %v3734_v31 = vunpack.i.h.s16 %v3660_v1  ;;  %v3792_v32 = vpack.i.b16 %v3728_v19, %v3728_v19  ;;  %v4851_v2 = vld [vmem:[%s5283_s9 + $0x5d] sm:$0x1]  ;;  %v7054_v11 = vld [vmem:[%s5147_s24 + $0x6e] sm:$0x1] }
 0x1db   : > { %v4750_v46 = vpack.i.b16 %v3654_v10, %v3654_v10  ;;  %v4751_v12 = vpack.i.b16 %v3657_v35, %v3657_v35  ;;  %v4000_v23 = vsel %vm5344_vm11, %v4749_v61, %v4841_v3  ;;  %v4752_v29 = vpack.i.b16 %v3660_v1, %v3660_v1  ;;  %v4853_v7 = vld [vmem:[%s5283_s9 + $0x5e] sm:$0x1] }
 0x1dc   : > { %v3794_v40 = vpack.i.b16 %v3730_v4, %v3730_v4  ;;  %v3796_v39 = vpack.i.b16 %v3732_v5, %v3732_v5  ;;  %4842 = vst [vmem:[%s5283_s9 + $0x58] sm:$0x1] %v4000_v23  ;;  %v4003_v9 = vsel %vm5344_vm11, %v3792_v32, %v4843_v16  ;;  %v4855_v22 = vld [vmem:[%s5283_s9 + $0x5f] sm:$0x1]  ;;  %v3798_v36 = vpack.i.b16 %v3734_v31, %v3734_v31  ;;  %v1205_v5 = vld [vmem:[%s5283_s9 + $0x60] sm:$0x1] }
 0x1dd   : > { %4844 = vst [vmem:[%s5283_s9 + $0x59] sm:$0x1] %v4003_v9  ;;  %v4006_v48 = vsel %vm5344_vm11, %v4750_v46, %v4845_v25  ;;  %v4012_v8 = vsel %vm5344_vm11, %v4751_v12, %v4849_v6  ;;  %v713_v42 = vsel %vm670_vm6, %v649_v37, %v712_v14  ;;  %v1594_v57 = vperm.slane %v1466_v54, 1  ;;  %v7061_v54 = vld [vmem:[%s5147_s24 + $0x6f] sm:$0x1] }
 0x1de   : > { %4846 = vst [vmem:[%s5283_s9 + $0x5a] sm:$0x1] %v4006_v48  ;;  %v4009_v27 = vsel %vm5344_vm11, %v3794_v40, %v4847_v26  ;;  %v4015_v51 = vsel %vm5344_vm11, %v3796_v39, %v4851_v2  ;;  %v735_v62 = vadd.f32 %v713_v42, %v6961_v47  ;;  %v4018_v37 = vsel %vm5344_vm11, %v4752_v29, %v4853_v7  ;;  %v1208_v32 = vld [vmem:[%s5283_s9 + $0x61] sm:$0x1]  ;;  %v1217_v40 = vld [vmem:[%s5283_s9 + $0x64] sm:$0x1] }
 0x1df   : > { %4848 = vst [vmem:[%s5283_s9 + $0x5b] sm:$0x1] %v4009_v27  ;;  %v4021_v34 = vsel %vm5344_vm11, %v3798_v36, %v4855_v22  ;;  %v1595_v15 = vperm.slane %v1467_v30, 1  ;;  %v1596_v60 = vperm.slane %v1468_v49, 1  ;;  %v1597_v58 = vperm.slane %v1469_v45, 1 }
 0x1e0   : > { %4850 = vst [vmem:[%s5283_s9 + $0x5c] sm:$0x1] %v4012_v8  ;;  %v743_v38 = vpack.c.bf16 %v735_v62, %v735_v62  ;;  %v7057_v47 = vperm.slane %v1470_v0, 1  ;;  %v1649_v24 = vsel %vm658_vm0, %v1592_v59, %v1591_v56  ;;  %v2404_v55 = vunpack.c.l.bf16 %v4441_v50  ;;  %v1214_v22 = vld [vmem:[%s5283_s9 + $0x63] sm:$0x1] }
 0x1e1   : > { %4852 = vst [vmem:[%s5283_s9 + $0x5d] sm:$0x1] %v4015_v51  ;;  %v1650_v52 = vsel %vm660_vm1, %v1593_v21, %v1649_v24  ;;  %v2405_v20 = vunpack.c.l.bf16 %v4442_v43  ;;  %v2406_v30 = vunpack.c.l.bf16 %v7025_v53  ;;  %v2407_v45 = vunpack.c.l.bf16 %v7034_v18  ;;  %v1211_v21 = vld [vmem:[%s5283_s9 + $0x62] sm:$0x1]  ;;  %v1220_v50 = vld [vmem:[%s5283_s9 + $0x65] sm:$0x1]  ;;  %v2286_v43 = vpop.f32.mrf.mxu2 }
 0x1e2   : > { %4854 = vst [vmem:[%s5283_s9 + $0x5e] sm:$0x1] %v4018_v37  ;;  %v759_v49 = vrot.slane %v743_v38, 3  ;;  %v1651_v13 = vsel %vm662_vm2, %v1594_v57, %v1650_v52  ;;  %v2408_v0 = vunpack.c.l.bf16 %v7037_v28  ;;  %v2409_v10 = vunpack.c.l.bf16 %v7046_v17  ;;  %v1223_v42 = vld [vmem:[%s5283_s9 + $0x66] sm:$0x1] }
 0x1e3   : > { %4856 = vst [vmem:[%s5283_s9 + $0x5f] sm:$0x1] %v4021_v34  ;;  %v1652_v63 = vsel %vm664_vm3, %v1595_v15, %v1651_v13  ;;  %v2410_v35 = vunpack.c.l.bf16 %v7054_v11  ;;  %v2411_v1 = vunpack.c.l.bf16 %v7061_v54  ;;  %v2532_v6 = vperm.slane %v2404_v55, 0  ;;  %v1226_v18 = vld [vmem:[%s5283_s9 + $0x67] sm:$0x1] }
 0x1e4   : > { %v842_v19 = vsel %vm761_vm7, %v743_v38, %v759_v49  ;;  %v844_v3 = vsel %vm658_vm0, %v743_v38, %v759_v49  ;;  %v847_v61 = vsel %vm660_vm1, %v743_v38, %v759_v49  ;;  %v850_v16 = vsel %vm662_vm2, %v743_v38, %v759_v49  ;;  %v4713_v57 = vld [vmem:[%s5147_s24 + $0x68] sm:$0x1]  ;;  %v4714_v17 = vld [vmem:[%s5147_s24 + $0x69] sm:$0x1]  ;;  %v7102_v37 = vld [vmem:[%s5147_s24 + $0x6a] sm:$0x1] }
 0x1e5   : > { %v846_v14 = vrot.slane %v844_v3, 1  ;;  %v849_v56 = vrot.slane %v847_v61, 2  ;;  %v852_v59 = vrot.slane %v850_v16, 3  ;;  %v915_v4 = vunpack.i.h.s16 %v842_v19  ;;  %v7114_v11 = vld [vmem:[%s7582_s3] ss:$0 sm:$0xff]  ;;  %v3226_v3 = vpop.f32.mrf.mxu3 }
 0x1e6   : > { %v4257_v31 = vpack.i.b16 %v842_v19, %v842_v19  ;;  %v1653_v25 = vsel %vm666_vm4, %v1596_v60, %v1652_v63  ;;  %v2533_v46 = vperm.slane %v2405_v20, 0  ;;  %v2534_v62 = vperm.slane %v2406_v30, 0  ;;  %v7123_v24 = vld [vmem:[%s5147_s24 + $0x6c] sm:$0x1]  ;;  %v7130_v30 = vld [vmem:[%s5147_s24 + $0x6d] sm:$0x1] }
 0x1e7   : > { %v917_v12 = vunpack.i.h.s16 %v846_v14  ;;  %v919_v23 = vunpack.i.h.s16 %v849_v56  ;;  %v921_v26 = vunpack.i.h.s16 %v852_v59  ;;  %v979_v2 = vpack.i.b16 %v915_v4, %v915_v4  ;;  %v7137_v61 = vld [vmem:[%s5147_s24 + $0x6e] sm:$0x1]  ;;  %v7146_v16 = vld [vmem:[%s7582_s3] ss:$0 sm:$0xff] }
 0x1e8   : > { %v4258_v39 = vpack.i.b16 %v846_v14, %v846_v14  ;;  %v4259_v29 = vpack.i.b16 %v849_v56, %v849_v56  ;;  %v4260_v9 = vpack.i.b16 %v852_v59, %v852_v59  ;;  %v1206_v7 = vsel %vm5302_vm10, %v4257_v31, %v1205_v5 }
 0x1e9   : > { %v981_v53 = vpack.i.b16 %v917_v12, %v917_v12  ;;  %v983_v36 = vpack.i.b16 %v919_v23, %v919_v23  ;;  %v985_v48 = vpack.i.b16 %v921_v26, %v921_v26  ;;  %1207 = vst [vmem:[%s5283_s9 + $0x60] sm:$0x1] %v1206_v7  ;;  %v1209_v8 = vsel %vm5302_vm10, %v979_v2, %v1208_v32 }
 0x1ea   : > { %1210 = vst [vmem:[%s5283_s9 + $0x61] sm:$0x1] %v1209_v8  ;;  %v1212_v28 = vsel %vm5302_vm10, %v4258_v39, %v1211_v21  ;;  %v1218_v27 = vsel %vm5302_vm10, %v4259_v29, %v1217_v40  ;;  %v1654_v51 = vsel %vm668_vm5, %v1597_v58, %v1653_v25  ;;  %v7117_v38 = vadd.f32 %v7114_v11, %v2286_v43  ;;  %v7120_v58 = vld [vmem:[%s5147_s24 + $0x6b] sm:$0x1] }
 0x1eb   : > { %1213 = vst [vmem:[%s5283_s9 + $0x62] sm:$0x1] %v1212_v28  ;;  %v1215_v34 = vsel %vm5302_vm10, %v981_v53, %v1214_v22  ;;  %v1221_v15 = vsel %vm5302_vm10, %v983_v36, %v1220_v50  ;;  %v1655_v60 = vsel %vm670_vm6, %v7057_v47, %v1654_v51  ;;  %v1224_v52 = vsel %vm5302_vm10, %v4260_v9, %v1223_v42 }
 0x1ec   : > { %1216 = vst [vmem:[%s5283_s9 + $0x63] sm:$0x1] %v1215_v34  ;;  %v1677_v47 = vadd.f32 %v1655_v60, %v6988_v44  ;;  %v2535_v55 = vperm.slane %v2407_v45, 0  ;;  %v2536_v20 = vperm.slane %v2408_v0, 0  ;;  %v1227_v49 = vsel %vm5302_vm10, %v985_v48, %v1226_v18 }
 0x1ed   : > { %1219 = vst [vmem:[%s5283_s9 + $0x64] sm:$0x1] %v1218_v27  ;;  %v2537_v13 = vperm.slane %v2409_v10, 0  ;;  %v2538_v63 = vperm.slane %v2410_v35, 0  ;;  %v2590_v19 = vsel %vm658_vm0, %v2533_v46, %v2532_v6  ;;  %v2539_v45 = vperm.slane %v2411_v1, 0 }
 0x1ee   : > { %1222 = vst [vmem:[%s5283_s9 + $0x65] sm:$0x1] %v1221_v15  ;;  %v1685_v44 = vpack.c.bf16 %v1677_v47, %v1677_v47  ;;  %v2591_v0 = vsel %vm660_vm1, %v2534_v62, %v2590_v19  ;;  %v7149_v10 = vadd.f32 %v7146_v16, %v3226_v3  ;;  %v7152_v35 = vld [vmem:[%s5147_s24 + $0x6f] sm:$0x1]  ;;  %v3343_v56 = vunpack.c.l.bf16 %v4713_v57  ;;  %v458_v47 = vld [vmem:[%s5147_s24 + $0x70] sm:$0x1] }
 0x1ef   : > { %1225 = vst [vmem:[%s5283_s9 + $0x66] sm:$0x1] %v1224_v52  ;;  %v2592_v14 = vsel %vm662_vm2, %v2535_v55, %v2591_v0  ;;  %v3344_v59 = vunpack.c.l.bf16 %v4714_v17  ;;  %v3345_v54 = vunpack.c.l.bf16 %v7102_v37  ;;  %v3346_v5 = vunpack.c.l.bf16 %v7120_v58  ;;  %v459_v55 = vld [vmem:[%s5147_s24 + $0x71] sm:$0x1]  ;;  %v7195_v19 = vld [vmem:[%s5147_s24 + $0x73] sm:$0x1] }
 0x1f0   : > { %1228 = vst [vmem:[%s5283_s9 + $0x67] sm:$0x1] %v1227_v49  ;;  %v1701_v1 = vrot.slane %v1685_v44, 3  ;;  %v2593_v4 = vsel %vm664_vm3, %v2536_v20, %v2592_v14  ;;  %v3347_v31 = vunpack.c.l.bf16 %v7123_v24  ;;  %v3348_v25 = vunpack.c.l.bf16 %v7130_v30  ;;  %v2145_v9 = vld [vmem:[%s5283_s9 + $0x60] sm:$0x1] }
 0x1f1   : > { %v2594_v32 = vsel %vm666_vm4, %v2537_v13, %v2593_v4  ;;  %v3349_v6 = vunpack.c.l.bf16 %v7137_v61  ;;  %v3350_v46 = vunpack.c.l.bf16 %v7152_v35  ;;  %v2148_v22 = vld [vmem:[%s5283_s9 + $0x61] sm:$0x1]  ;;  %v3471_v43 = vperm.slane %v3343_v56, 1  ;;  %v7186_v20 = vld [vmem:[%s5147_s24 + $0x72] sm:$0x1] }
 0x1f2   : > { %v1783_v12 = vsel %vm761_vm7, %v1685_v44, %v1701_v1  ;;  %v1785_v23 = vsel %vm658_vm0, %v1685_v44, %v1701_v1  ;;  %v1788_v26 = vsel %vm660_vm1, %v1685_v44, %v1701_v1  ;;  %v1791_v2 = vsel %vm662_vm2, %v1685_v44, %v1701_v1  ;;  %v2151_v18 = vld [vmem:[%s5283_s9 + $0x62] sm:$0x1]  ;;  %v7198_v3 = vld [vmem:[%s5147_s24 + $0x74] sm:$0x1]  ;;  %v7207_v14 = vld [vmem:[%s5147_s24 + $0x75] sm:$0x1] }
 0x1f3   : > { %v1787_v21 = vrot.slane %v1785_v23, 1  ;;  %v1790_v40 = vrot.slane %v1788_v26, 2  ;;  %v1793_v39 = vrot.slane %v1791_v2, 3  ;;  %v1856_v29 = vunpack.i.h.s16 %v1783_v12  ;;  %v2154_v17 = vld [vmem:[%s5283_s9 + $0x63] sm:$0x1] }
 0x1f4   : > { %v4337_v7 = vpack.i.b16 %v1783_v12, %v1783_v12  ;;  %v2595_v50 = vsel %vm668_vm5, %v2538_v63, %v2594_v32  ;;  %v3472_v53 = vperm.slane %v3344_v59, 1  ;;  %v2157_v28 = vld [vmem:[%s5283_s9 + $0x64] sm:$0x1]  ;;  %v3473_v63 = vperm.slane %v3345_v54, 1  ;;  %v7215_v1 = vld [vmem:[%s5147_s24 + $0x76] sm:$0x1] }
 0x1f5   : > { %v1858_v36 = vunpack.i.h.s16 %v1787_v21  ;;  %v1860_v48 = vunpack.i.h.s16 %v1790_v40  ;;  %v1862_v8 = vunpack.i.h.s16 %v1793_v39  ;;  %v1920_v42 = vpack.i.b16 %v1856_v29, %v1856_v29  ;;  %v2160_v37 = vld [vmem:[%s5283_s9 + $0x65] sm:$0x1]  ;;  %v7222_v12 = vld [vmem:[%s5147_s24 + $0x77] sm:$0x1] }
 0x1f6   : > { %v4338_v27 = vpack.i.b16 %v1787_v21, %v1787_v21  ;;  %v4339_v51 = vpack.i.b16 %v1790_v40, %v1790_v40  ;;  %v4340_v62 = vpack.i.b16 %v1793_v39, %v1793_v39  ;;  %v2146_v57 = vsel %vm5344_vm11, %v4337_v7, %v2145_v9  ;;  %v2163_v24 = vld [vmem:[%s5283_s9 + $0x66] sm:$0x1] }
 0x1f7   : > { %v1922_v34 = vpack.i.b16 %v1858_v36, %v1858_v36  ;;  %v1924_v15 = vpack.i.b16 %v1860_v48, %v1860_v48  ;;  %v1926_v60 = vpack.i.b16 %v1862_v8, %v1862_v8  ;;  %2147 = vst [vmem:[%s5283_s9 + $0x60] sm:$0x1] %v2146_v57  ;;  %v2149_v58 = vsel %vm5344_vm11, %v1920_v42, %v2148_v22  ;;  %v2166_v52 = vld [vmem:[%s5283_s9 + $0x67] sm:$0x1]  ;;  %v4585_v42 = vld [vmem:[%s5283_s9 + $0x68] sm:$0x1] }
 0x1f8   : > { %2150 = vst [vmem:[%s5283_s9 + $0x61] sm:$0x1] %v2149_v58  ;;  %v2152_v30 = vsel %vm5344_vm11, %v4338_v27, %v2151_v18  ;;  %v2158_v49 = vsel %vm5344_vm11, %v4339_v51, %v2157_v28  ;;  %v2596_v13 = vsel %vm670_vm6, %v2539_v45, %v2595_v50  ;;  %v3474_v35 = vperm.slane %v3346_v5, 1  ;;  %v4587_v28 = vld [vmem:[%s5283_s9 + $0x69] sm:$0x1] }
 0x1f9   : > { %2153 = vst [vmem:[%s5283_s9 + $0x62] sm:$0x1] %v2152_v30  ;;  %v2155_v61 = vsel %vm5344_vm11, %v1922_v34, %v2154_v17  ;;  %v2161_v44 = vsel %vm5344_vm11, %v1924_v15, %v2160_v37  ;;  %v2618_v0 = vadd.f32 %v2596_v13, %v7117_v38  ;;  %v2164_v45 = vsel %vm5344_vm11, %v4340_v62, %v2163_v24  ;;  %v4589_v15 = vld [vmem:[%s5283_s9 + $0x6a] sm:$0x1] }
 0x1fa   : > { %2156 = vst [vmem:[%s5283_s9 + $0x63] sm:$0x1] %v2155_v61  ;;  %v2167_v56 = vsel %vm5344_vm11, %v1926_v60, %v2166_v52  ;;  %v3475_v59 = vperm.slane %v3347_v31, 1  ;;  %v3476_v54 = vperm.slane %v3348_v25, 1  ;;  %v3477_v32 = vperm.slane %v3349_v6, 1 }
 0x1fb   : > { %2159 = vst [vmem:[%s5283_s9 + $0x64] sm:$0x1] %v2158_v49  ;;  %v2626_v4 = vpack.c.bf16 %v2618_v0, %v2618_v0  ;;  %v7218_v38 = vperm.slane %v3350_v46, 1  ;;  %v3529_v5 = vsel %vm658_vm0, %v3472_v53, %v3471_v43  ;;  %v522_v26 = vunpack.c.l.bf16 %v458_v47  ;;  %v4593_v60 = vld [vmem:[%s5283_s9 + $0x6c] sm:$0x1] }
 0x1fc   : > { %2162 = vst [vmem:[%s5283_s9 + $0x65] sm:$0x1] %v2161_v44  ;;  %v3530_v23 = vsel %vm660_vm1, %v3473_v63, %v3529_v5  ;;  %v523_v2 = vunpack.c.l.bf16 %v459_v55  ;;  %v524_v31 = vunpack.c.l.bf16 %v7186_v20  ;;  %v525_v6 = vunpack.c.l.bf16 %v7195_v19  ;;  %v4591_v55 = vld [vmem:[%s5283_s9 + $0x6b] sm:$0x1]  ;;  %v4595_v20 = vld [vmem:[%s5283_s9 + $0x6d] sm:$0x1] }
 0x1fd   : > { %2165 = vst [vmem:[%s5283_s9 + $0x66] sm:$0x1] %v2164_v45  ;;  %v2642_v25 = vrot.slane %v2626_v4, 3  ;;  %v3531_v21 = vsel %vm662_vm2, %v3474_v35, %v3530_v23  ;;  %v526_v46 = vunpack.c.l.bf16 %v7198_v3  ;;  %v527_v39 = vunpack.c.l.bf16 %v7207_v14  ;;  %v4597_v19 = vld [vmem:[%s5283_s9 + $0x6e] sm:$0x1]  ;;  %v399_v35 = vpop.f32.mrf.mxu0 }
 0x1fe   : > { %2168 = vst [vmem:[%s5283_s9 + $0x67] sm:$0x1] %v2167_v56  ;;  %v3532_v40 = vsel %vm664_vm3, %v3475_v59, %v3531_v21  ;;  %v528_v29 = vunpack.c.l.bf16 %v7215_v1  ;;  %v529_v9 = vunpack.c.l.bf16 %v7222_v12  ;;  %v650_v51 = vperm.slane %v522_v26, 0  ;;  %v4599_v3 = vld [vmem:[%s5283_s9 + $0x6f] sm:$0x1] }
 0x1ff   : > { %v2724_v7 = vsel %vm761_vm7, %v2626_v4, %v2642_v25  ;;  %v2726_v22 = vsel %vm658_vm0, %v2626_v4, %v2642_v25  ;;  %v2729_v50 = vsel %vm660_vm1, %v2626_v4, %v2642_v25  ;;  %v2732_v43 = vsel %vm662_vm2, %v2626_v4, %v2642_v25  ;;  %v1407_v45 = vld [vmem:[%s5147_s24 + $0x70] sm:$0x1]  ;;  %v1408_v56 = vld [vmem:[%s5147_s24 + $0x71] sm:$0x1]  ;;  %v7263_v59 = vld [vmem:[%s5147_s24 + $0x72] sm:$0x1] }
 0x200   : > { %v2728_v53 = vrot.slane %v2726_v22, 1  ;;  %v2731_v36 = vrot.slane %v2729_v50, 2  ;;  %v2734_v48 = vrot.slane %v2732_v43, 3  ;;  %v2797_v8 = vunpack.i.h.s16 %v2724_v7  ;;  %v7276_v23 = vld [vmem:[%s5147_s24 + $0x74] sm:$0x1] }
 0x201   : > { %v4481_v18 = vpack.i.b16 %v2724_v7, %v2724_v7  ;;  %v3533_v27 = vsel %vm666_vm4, %v3476_v54, %v3532_v40  ;;  %v651_v62 = vperm.slane %v523_v2, 0  ;;  %v652_v14 = vperm.slane %v524_v31, 0  ;;  %v7283_v21 = vld [vmem:[%s5147_s24 + $0x75] sm:$0x1]  ;;  %v4966_v40 = vld [vmem:[%s7582_s3] ss:$0 sm:$0xff] }
 0x202   : > { %v2799_v57 = vunpack.i.h.s16 %v2728_v53  ;;  %v2801_v17 = vunpack.i.h.s16 %v2731_v36  ;;  %v2803_v37 = vunpack.i.h.s16 %v2734_v48  ;;  %v2861_v34 = vpack.i.b16 %v2797_v8, %v2797_v8  ;;  %v7295_v50 = vld [vmem:[%s5147_s24 + $0x76] sm:$0x1] }
 0x203   : > { %v4482_v58 = vpack.i.b16 %v2728_v53, %v2728_v53  ;;  %v4483_v24 = vpack.i.b16 %v2731_v36, %v2731_v36  ;;  %v4484_v52 = vpack.i.b16 %v2734_v48, %v2734_v48  ;;  %v3086_v47 = vsel %vm5302_vm10, %v4481_v18, %v4585_v42  ;;  %v7304_v36 = vld [vmem:[%s5147_s24 + $0x77] sm:$0x1] }
 0x204   : > { %v2863_v30 = vpack.i.b16 %v2799_v57, %v2799_v57  ;;  %v2865_v49 = vpack.i.b16 %v2801_v17, %v2801_v17  ;;  %v2867_v13 = vpack.i.b16 %v2803_v37, %v2803_v37  ;;  %4586 = vst [vmem:[%s5283_s9 + $0x68] sm:$0x1] %v3086_v47  ;;  %v3089_v63 = vsel %vm5302_vm10, %v2861_v34, %v4587_v28 }
 0x205   : > { %4588 = vst [vmem:[%s5283_s9 + $0x69] sm:$0x1] %v3089_v63  ;;  %v3092_v61 = vsel %vm5302_vm10, %v4482_v58, %v4589_v15  ;;  %v3098_v44 = vsel %vm5302_vm10, %v4483_v24, %v4593_v60  ;;  %v3534_v0 = vsel %vm668_vm5, %v3477_v32, %v3533_v27  ;;  %v7273_v32 = vld [vmem:[%s5147_s24 + $0x73] sm:$0x1]  ;;  %v3104_v26 = vsel %vm5302_vm10, %v4484_v52, %v4597_v19 }
 0x206   : > { %4590 = vst [vmem:[%s5283_s9 + $0x6a] sm:$0x1] %v3092_v61  ;;  %v3095_v54 = vsel %vm5302_vm10, %v2863_v30, %v4591_v55  ;;  %v3101_v4 = vsel %vm5302_vm10, %v2865_v49, %v4595_v20  ;;  %v3535_v5 = vsel %vm670_vm6, %v7218_v38, %v3534_v0  ;;  %v653_v31 = vperm.slane %v525_v6, 0 }
 0x207   : > { %4592 = vst [vmem:[%s5283_s9 + $0x6b] sm:$0x1] %v3095_v54  ;;  %v3557_v2 = vadd.f32 %v3535_v5, %v7149_v10  ;;  %v654_v25 = vperm.slane %v526_v46, 0  ;;  %v3107_v38 = vsel %vm5302_vm10, %v2867_v13, %v4599_v3  ;;  %v7291_v7 = vadd.f32 %v4966_v40, %v399_v35 }
 0x208   : > { %4594 = vst [vmem:[%s5283_s9 + $0x6c] sm:$0x1] %v3098_v44  ;;  %v655_v22 = vperm.slane %v527_v39, 0  ;;  %v714_v10 = vsel %vm658_vm0, %v651_v62, %v650_v51  ;;  %v656_v46 = vperm.slane %v528_v29, 0  ;;  %v657_v43 = vperm.slane %v529_v9, 0 }
 0x209   : > { %4596 = vst [vmem:[%s5283_s9 + $0x6d] sm:$0x1] %v3101_v4  ;;  %v3565_v6 = vpack.c.bf16 %v3557_v2, %v3557_v2  ;;  %v715_v53 = vsel %vm660_vm1, %v652_v14, %v714_v10  ;;  %v1471_v39 = vunpack.c.l.bf16 %v1407_v45  ;;  %v1472_v8 = vunpack.c.l.bf16 %v1408_v56  ;;  %v4449_v2 = vld [vmem:[%s5147_s24 + $0x78] sm:$0x1]  ;;  %v7347_v10 = vld [vmem:[%s5147_s24 + $0x7b] sm:$0x1] }
 0x20a   : > { %4598 = vst [vmem:[%s5283_s9 + $0x6e] sm:$0x1] %v3104_v26  ;;  %v716_v48 = vsel %vm662_vm2, %v653_v31, %v715_v53  ;;  %v1473_v42 = vunpack.c.l.bf16 %v7263_v59  ;;  %v1474_v29 = vunpack.c.l.bf16 %v7273_v32  ;;  %v1475_v12 = vunpack.c.l.bf16 %v7276_v23  ;;  %v1348_v26 = vpop.f32.mrf.mxu1  ;;  %v4450_v31 = vld [vmem:[%s5147_s24 + $0x79] sm:$0x1] }
 0x20b   : > { %4600 = vst [vmem:[%s5283_s9 + $0x6f] sm:$0x1] %v3107_v38  ;;  %v3581_v18 = vrot.slane %v3565_v6, 3  ;;  %v717_v1 = vsel %vm664_vm3, %v654_v25, %v716_v48  ;;  %v1476_v28 = vunpack.c.l.bf16 %v7283_v21  ;;  %v1477_v27 = vunpack.c.l.bf16 %v7295_v50  ;;  %v4857_v24 = vld [vmem:[%s5283_s9 + $0x68] sm:$0x1] }
 0x20c   : > { %v718_v9 = vsel %vm666_vm4, %v655_v22, %v717_v1  ;;  %v1478_v51 = vunpack.c.l.bf16 %v7304_v36  ;;  %v4859_v47 = vld [vmem:[%s5283_s9 + $0x69] sm:$0x1]  ;;  %v1599_v20 = vperm.slane %v1471_v39, 1  ;;  %v1600_v30 = vperm.slane %v1472_v8, 1  ;;  %v7344_v22 = vld [vmem:[%s5147_s24 + $0x7a] sm:$0x1] }
 0x20d   : > { %v3663_v62 = vsel %vm761_vm7, %v3565_v6, %v3581_v18  ;;  %v3665_v57 = vsel %vm658_vm0, %v3565_v6, %v3581_v18  ;;  %v3668_v17 = vsel %vm660_vm1, %v3565_v6, %v3581_v18  ;;  %v3671_v37 = vsel %vm662_vm2, %v3565_v6, %v3581_v18  ;;  %v4861_v3 = vld [vmem:[%s5283_s9 + $0x6a] sm:$0x1]  ;;  %v7356_v48 = vld [vmem:[%s5147_s24 + $0x7c] sm:$0x1]  ;;  %v4967_v8 = vld [vmem:[%s7582_s3] ss:$0 sm:$0xff] }
 0x20e   : > { %v3667_v34 = vrot.slane %v3665_v57, 1  ;;  %v3670_v15 = vrot.slane %v3668_v17, 2  ;;  %v3673_v60 = vrot.slane %v3671_v37, 3  ;;  %v3736_v58 = vunpack.i.h.s16 %v3663_v62  ;;  %v4863_v14 = vld [vmem:[%s5283_s9 + $0x6b] sm:$0x1] }
 0x20f   : > { %v4753_v52 = vpack.i.b16 %v3663_v62, %v3663_v62  ;;  %v719_v55 = vsel %vm668_vm5, %v656_v46, %v718_v9  ;;  %v4865_v61 = vld [vmem:[%s5283_s9 + $0x6c] sm:$0x1]  ;;  %v1601_v56 = vperm.slane %v1473_v42, 1  ;;  %v1602_v53 = vperm.slane %v1474_v29, 1  ;;  %v7374_v57 = vld [vmem:[%s5147_s24 + $0x7e] sm:$0x1] }
 0x210   : > { %v3738_v49 = vunpack.i.h.s16 %v3667_v34  ;;  %v3740_v13 = vunpack.i.h.s16 %v3670_v15  ;;  %v3742_v63 = vunpack.i.h.s16 %v3673_v60  ;;  %v3800_v19 = vpack.i.b16 %v3736_v58, %v3736_v58  ;;  %v4867_v45 = vld [vmem:[%s5283_s9 + $0x6d] sm:$0x1] }
 0x211   : > { %v4754_v44 = vpack.i.b16 %v3667_v34, %v3667_v34  ;;  %v4755_v0 = vpack.i.b16 %v3670_v15, %v3670_v15  ;;  %v4024_v35 = vsel %vm5344_vm11, %v4753_v52, %v4857_v24  ;;  %v4756_v4 = vpack.i.b16 %v3673_v60, %v3673_v60  ;;  %v4869_v32 = vld [vmem:[%s5283_s9 + $0x6e] sm:$0x1] }
 0x212   : > { %v3802_v59 = vpack.i.b16 %v3738_v49, %v3738_v49  ;;  %v3804_v54 = vpack.i.b16 %v3740_v13, %v3740_v13  ;;  %4858 = vst [vmem:[%s5283_s9 + $0x68] sm:$0x1] %v4024_v35  ;;  %v4027_v5 = vsel %vm5344_vm11, %v3800_v19, %v4859_v47  ;;  %v4871_v23 = vld [vmem:[%s5283_s9 + $0x6f] sm:$0x1]  ;;  %v3806_v25 = vpack.i.b16 %v3742_v63, %v3742_v63  ;;  %v1229_v19 = vld [vmem:[%s5283_s9 + $0x70] sm:$0x1] }
 0x213   : > { %4860 = vst [vmem:[%s5283_s9 + $0x69] sm:$0x1] %v4027_v5  ;;  %v4030_v21 = vsel %vm5344_vm11, %v4754_v44, %v4861_v3  ;;  %v4036_v38 = vsel %vm5344_vm11, %v4755_v0, %v4865_v61  ;;  %v720_v40 = vsel %vm670_vm6, %v657_v43, %v719_v55  ;;  %v4042_v43 = vsel %vm5344_vm11, %v4756_v4, %v4869_v32  ;;  %v1232_v61 = vld [vmem:[%s5283_s9 + $0x71] sm:$0x1]  ;;  %v1241_v4 = vld [vmem:[%s5283_s9 + $0x74] sm:$0x1] }
 0x214   : > { %4862 = vst [vmem:[%s5283_s9 + $0x6a] sm:$0x1] %v4030_v21  ;;  %v4033_v50 = vsel %vm5344_vm11, %v3802_v59, %v4863_v14  ;;  %v4039_v6 = vsel %vm5344_vm11, %v3804_v54, %v4867_v45  ;;  %v736_v46 = vadd.f32 %v720_v40, %v7291_v7  ;;  %v4045_v39 = vsel %vm5344_vm11, %v3806_v25, %v4871_v23  ;;  %v7369_v7 = vld [vmem:[%s5147_s24 + $0x7d] sm:$0x1]  ;;  %v1235_v54 = vld [vmem:[%s5283_s9 + $0x72] sm:$0x1] }
 0x215   : > { %4864 = vst [vmem:[%s5283_s9 + $0x6b] sm:$0x1] %v4033_v50  ;;  %v7366_v42 = vadd.f32 %v4967_v8, %v1348_v26  ;;  %v1603_v18 = vperm.slane %v1475_v12, 1  ;;  %v1604_v29 = vperm.slane %v1476_v28, 1  ;;  %v1605_v9 = vperm.slane %v1477_v27, 1 }
 0x216   : > { %4866 = vst [vmem:[%s5283_s9 + $0x6c] sm:$0x1] %v4036_v38  ;;  %v744_v1 = vpack.c.bf16 %v736_v46, %v736_v46  ;;  %v1656_v62 = vsel %vm658_vm0, %v1600_v30, %v1599_v20  ;;  %v1606_v17 = vperm.slane %v1478_v51, 1  ;;  %v2412_v34 = vunpack.c.l.bf16 %v4449_v2  ;;  %v1238_v2 = vld [vmem:[%s5283_s9 + $0x73] sm:$0x1] }
 0x217   : > { %4868 = vst [vmem:[%s5283_s9 + $0x6d] sm:$0x1] %v4039_v6  ;;  %v1657_v37 = vsel %vm660_vm1, %v1601_v56, %v1656_v62  ;;  %v2413_v15 = vunpack.c.l.bf16 %v4450_v31  ;;  %v2414_v28 = vunpack.c.l.bf16 %v7344_v22  ;;  %v2415_v27 = vunpack.c.l.bf16 %v7347_v10  ;;  %v1244_v31 = vld [vmem:[%s5283_s9 + $0x75] sm:$0x1]  ;;  %v4456_v25 = vld [vmem:[%s5147_s24 + $0x7f] sm:$0x1] }
 0x218   : > { %4870 = vst [vmem:[%s5283_s9 + $0x6e] sm:$0x1] %v4042_v43  ;;  %v760_v12 = vrot.slane %v744_v1, 3  ;;  %v1658_v60 = vsel %vm662_vm2, %v1602_v53, %v1657_v37  ;;  %v2416_v36 = vunpack.c.l.bf16 %v7356_v48  ;;  %v2417_v51 = vunpack.c.l.bf16 %v7369_v7  ;;  %v1247_v10 = vld [vmem:[%s5283_s9 + $0x76] sm:$0x1] }
 0x219   : > { %4872 = vst [vmem:[%s5283_s9 + $0x6f] sm:$0x1] %v4045_v39  ;;  %v1659_v58 = vsel %vm664_vm3, %v1603_v18, %v1658_v60  ;;  %v2418_v24 = vunpack.c.l.bf16 %v7374_v57  ;;  %v2540_v0 = vperm.slane %v2412_v34, 0  ;;  %v2541_v35 = vperm.slane %v2413_v15, 0  ;;  %v1250_v46 = vld [vmem:[%s5283_s9 + $0x77] sm:$0x1]  ;;  %v2288_v18 = vpop.f32.mrf.mxu2 }
 0x21a   : > { %v855_v52 = vsel %vm761_vm7, %v744_v1, %v760_v12  ;;  %v857_v47 = vsel %vm658_vm0, %v744_v1, %v760_v12  ;;  %v860_v55 = vsel %vm660_vm1, %v744_v1, %v760_v12  ;;  %v863_v20 = vsel %vm662_vm2, %v744_v1, %v760_v12  ;;  %v4721_v1 = vld [vmem:[%s5147_s24 + $0x78] sm:$0x1]  ;;  %v4723_v15 = vld [vmem:[%s5147_s24 + $0x7a] sm:$0x1] }
 0x21b   : > { %v859_v30 = vrot.slane %v857_v47, 1  ;;  %v862_v49 = vrot.slane %v860_v55, 2  ;;  %v865_v13 = vrot.slane %v863_v20, 3  ;;  %v923_v63 = vunpack.i.h.s16 %v855_v52  ;;  %v7436_v55 = vld [vmem:[%s5147_s24 + $0x7c] sm:$0x1] }
 0x21c   : > { %v4261_v3 = vpack.i.b16 %v855_v52, %v855_v52  ;;  %v1660_v44 = vsel %vm666_vm4, %v1604_v29, %v1659_v58  ;;  %v2542_v48 = vperm.slane %v2414_v28, 0  ;;  %v2419_v7 = vunpack.c.l.bf16 %v4456_v25  ;;  %v4722_v29 = vld [vmem:[%s5147_s24 + $0x79] sm:$0x1]  ;;  %v4724_v28 = vld [vmem:[%s5147_s24 + $0x7b] sm:$0x1] }
 0x21d   : > { %v925_v14 = vunpack.i.h.s16 %v859_v30  ;;  %v927_v45 = vunpack.i.h.s16 %v862_v49  ;;  %v929_v56 = vunpack.i.h.s16 %v865_v13  ;;  %v987_v59 = vpack.i.b16 %v923_v63, %v923_v63 }
 0x21e   : > { %v4262_v5 = vpack.i.b16 %v859_v30, %v859_v30  ;;  %v4263_v32 = vpack.i.b16 %v862_v49, %v862_v49  ;;  %v4264_v23 = vpack.i.b16 %v865_v13, %v865_v13  ;;  %v1230_v26 = vsel %vm5302_vm10, %v4261_v3, %v1229_v19 }
 0x21f   : > { %v989_v21 = vpack.i.b16 %v925_v14, %v925_v14  ;;  %v991_v38 = vpack.i.b16 %v927_v45, %v927_v45  ;;  %v993_v40 = vpack.i.b16 %v929_v56, %v929_v56  ;;  %1231 = vst [vmem:[%s5283_s9 + $0x70] sm:$0x1] %v1230_v26  ;;  %v1233_v22 = vsel %vm5302_vm10, %v987_v59, %v1232_v61 }
 0x220   : > { %1234 = vst [vmem:[%s5283_s9 + $0x71] sm:$0x1] %v1233_v22  ;;  %v1236_v50 = vsel %vm5302_vm10, %v4262_v5, %v1235_v54  ;;  %v1242_v6 = vsel %vm5302_vm10, %v4263_v32, %v1241_v4  ;;  %v1661_v53 = vsel %vm668_vm5, %v1605_v9, %v1660_v44  ;;  %v1248_v9 = vsel %vm5302_vm10, %v4264_v23, %v1247_v10 }
 0x221   : > { %1237 = vst [vmem:[%s5283_s9 + $0x72] sm:$0x1] %v1236_v50  ;;  %v1239_v43 = vsel %vm5302_vm10, %v989_v21, %v1238_v2  ;;  %v1245_v39 = vsel %vm5302_vm10, %v991_v38, %v1244_v31  ;;  %v1662_v8 = vsel %vm670_vm6, %v1606_v17, %v1661_v53  ;;  %v2543_v37 = vperm.slane %v2415_v27, 0 }
 0x222   : > { %1240 = vst [vmem:[%s5283_s9 + $0x73] sm:$0x1] %v1239_v43  ;;  %v1678_v62 = vadd.f32 %v1662_v8, %v7366_v42  ;;  %v2544_v34 = vperm.slane %v2416_v36, 0  ;;  %v1251_v17 = vsel %vm5302_vm10, %v993_v40, %v1250_v46  ;;  %v2545_v12 = vperm.slane %v2417_v51, 0  ;;  %v7439_v42 = vld [vmem:[%s5147_s24 + $0x7d] sm:$0x1] }
 0x223   : > { %1243 = vst [vmem:[%s5283_s9 + $0x74] sm:$0x1] %v1242_v6  ;;  %v2597_v60 = vsel %vm658_vm0, %v2541_v35, %v2540_v0  ;;  %v2289_v52 = vadd.f32 %v7114_v11, %v2288_v18  ;;  %v2546_v27 = vperm.slane %v2418_v24, 0  ;;  %v2547_v36 = vperm.slane %v2419_v7, 0 }
 0x224   : > { %1246 = vst [vmem:[%s5283_s9 + $0x75] sm:$0x1] %v1245_v39  ;;  %v1686_v58 = vpack.c.bf16 %v1678_v62, %v1678_v62  ;;  %v2598_v47 = vsel %vm660_vm1, %v2542_v48, %v2597_v60  ;;  %v3351_v20 = vunpack.c.l.bf16 %v4721_v1  ;;  %v3352_v11 = vunpack.c.l.bf16 %v4722_v29  ;;  %v4728_v60 = vld [vmem:[%s5147_s24 + $0x7f] sm:$0x1] }
 0x225   : > { %1249 = vst [vmem:[%s5283_s9 + $0x76] sm:$0x1] %v1248_v9  ;;  %v2599_v51 = vsel %vm662_vm2, %v2543_v37, %v2598_v47  ;;  %v3353_v13 = vunpack.c.l.bf16 %v4723_v15  ;;  %v3354_v19 = vunpack.c.l.bf16 %v4724_v28  ;;  %v3355_v3 = vunpack.c.l.bf16 %v7436_v55  ;;  %v3228_v55 = vpop.f32.mrf.mxu3 }
 0x226   : > { %1252 = vst [vmem:[%s5283_s9 + $0x77] sm:$0x1] %v1251_v17  ;;  %v1702_v30 = vrot.slane %v1686_v58, 3  ;;  %v2600_v49 = vsel %vm664_vm3, %v2544_v34, %v2599_v51  ;;  %v3356_v57 = vunpack.c.l.bf16 %v7439_v42  ;;  %v2169_v59 = vld [vmem:[%s5283_s9 + $0x70] sm:$0x1]  ;;  %v3479_v32 = vperm.slane %v3351_v20, 1 }
 0x227   : > { %v2601_v63 = vsel %vm666_vm4, %v2545_v12, %v2600_v49  ;;  %v2172_v4 = vld [vmem:[%s5283_s9 + $0x71] sm:$0x1]  ;;  %v3480_v23 = vperm.slane %v3352_v11, 1  ;;  %v3481_v46 = vperm.slane %v3353_v13, 1  ;;  %v3482_v8 = vperm.slane %v3354_v19, 1 }
 0x228   : > { %v1796_v24 = vsel %vm761_vm7, %v1686_v58, %v1702_v30  ;;  %v1798_v61 = vsel %vm658_vm0, %v1686_v58, %v1702_v30  ;;  %v1801_v44 = vsel %vm660_vm1, %v1686_v58, %v1702_v30  ;;  %v1804_v0 = vsel %vm662_vm2, %v1686_v58, %v1702_v30  ;;  %v2175_v21 = vld [vmem:[%s5283_s9 + $0x72] sm:$0x1]  ;;  %v4727_v17 = vld [vmem:[%s5147_s24 + $0x7e] sm:$0x1] }
 0x229   : > { %v1800_v35 = vrot.slane %v1798_v61, 1  ;;  %v1803_v14 = vrot.slane %v1801_v44, 2  ;;  %v1806_v45 = vrot.slane %v1804_v0, 3  ;;  %v1864_v56 = vunpack.i.h.s16 %v1796_v24  ;;  %v2178_v50 = vld [vmem:[%s5283_s9 + $0x73] sm:$0x1] }
 0x22a   : > { %v4341_v54 = vpack.i.b16 %v1796_v24, %v1796_v24  ;;  %v2602_v5 = vsel %vm668_vm5, %v2546_v27, %v2601_v63  ;;  %v2181_v38 = vld [vmem:[%s5283_s9 + $0x74] sm:$0x1]  ;;  %v3483_v28 = vperm.slane %v3355_v3, 1  ;;  %v3536_v42 = vsel %vm658_vm0, %v3480_v23, %v3479_v32  ;;  %v4601_v0 = vld [vmem:[%s5283_s9 + $0x78] sm:$0x1] }
 0x22b   : > { %v1866_v26 = vunpack.i.h.s16 %v1800_v35  ;;  %v1868_v2 = vunpack.i.h.s16 %v1803_v14  ;;  %v1870_v31 = vunpack.i.h.s16 %v1806_v45  ;;  %v1928_v25 = vpack.i.b16 %v1864_v56, %v1864_v56  ;;  %v2184_v6 = vld [vmem:[%s5283_s9 + $0x75] sm:$0x1]  ;;  %v4605_v32 = vld [vmem:[%s5283_s9 + $0x7a] sm:$0x1]  ;;  %v4609_v23 = vld [vmem:[%s5283_s9 + $0x7c] sm:$0x1] }
 0x22c   : > { %v4342_v40 = vpack.i.b16 %v1800_v35, %v1800_v35  ;;  %v4343_v22 = vpack.i.b16 %v1803_v14, %v1803_v14  ;;  %v2170_v10 = vsel %vm5344_vm11, %v4341_v54, %v2169_v59  ;;  %v2187_v39 = vld [vmem:[%s5283_s9 + $0x76] sm:$0x1]  ;;  %v4344_v18 = vpack.i.b16 %v1806_v45, %v1806_v45 }
 0x22d   : > { %v1930_v53 = vpack.i.b16 %v1866_v26, %v1866_v26  ;;  %v1932_v48 = vpack.i.b16 %v1868_v2, %v1868_v2  ;;  %2171 = vst [vmem:[%s5283_s9 + $0x70] sm:$0x1] %v2170_v10  ;;  %v2173_v43 = vsel %vm5344_vm11, %v1928_v25, %v2172_v4  ;;  %v2190_v29 = vld [vmem:[%s5283_s9 + $0x77] sm:$0x1]  ;;  %v2603_v9 = vsel %vm670_vm6, %v2547_v36, %v2602_v5 }
 0x22e   : > { %2174 = vst [vmem:[%s5283_s9 + $0x71] sm:$0x1] %v2173_v43  ;;  %v2176_v7 = vsel %vm5344_vm11, %v4342_v40, %v2175_v21  ;;  %v2182_v1 = vsel %vm5344_vm11, %v4343_v22, %v2181_v38  ;;  %v1934_v62 = vpack.i.b16 %v1870_v31, %v1870_v31  ;;  %v2619_v15 = vadd.f32 %v2603_v9, %v2289_v52  ;;  %v4607_v21 = vld [vmem:[%s5283_s9 + $0x7b] sm:$0x1]  ;;  %v4611_v38 = vld [vmem:[%s5283_s9 + $0x7d] sm:$0x1] }
 0x22f   : > { %2177 = vst [vmem:[%s5283_s9 + $0x72] sm:$0x1] %v2176_v7  ;;  %v2179_v37 = vsel %vm5344_vm11, %v1930_v53, %v2178_v50  ;;  %v2185_v34 = vsel %vm5344_vm11, %v1932_v48, %v2184_v6  ;;  %v2188_v12 = vsel %vm5344_vm11, %v4344_v18, %v2187_v39  ;;  %v3357_v27 = vunpack.c.l.bf16 %v4727_v17  ;;  %v4613_v6 = vld [vmem:[%s5283_s9 + $0x7e] sm:$0x1]  ;;  %v4615_v48 = vld [vmem:[%s5283_s9 + $0x7f] sm:$0x1] }
 0x230   : > { %2180 = vst [vmem:[%s5283_s9 + $0x73] sm:$0x1] %v2179_v37  ;;  %v2191_v58 = vsel %vm5344_vm11, %v1934_v62, %v2190_v29  ;;  %v2627_v47 = vpack.c.bf16 %v2619_v15, %v2619_v15  ;;  %v3537_v52 = vsel %vm660_vm1, %v3481_v46, %v3536_v42  ;;  %v3358_v51 = vunpack.c.l.bf16 %v4728_v60 }
 0x231   : > { %2183 = vst [vmem:[%s5283_s9 + $0x74] sm:$0x1] %v2182_v1  ;;  %v3484_v20 = vperm.slane %v3356_v57, 1  ;;  %v3538_v30 = vsel %vm662_vm2, %v3482_v8, %v3537_v52  ;;  %v3229_v49 = vadd.f32 %v7146_v16, %v3228_v55  ;;  %v4603_v16 = vld [vmem:[%s5283_s9 + $0x79] sm:$0x1]  ;;  %v3485_v14 = vperm.slane %v3357_v27, 1 }
 0x232   : > { %2186 = vst [vmem:[%s5283_s9 + $0x75] sm:$0x1] %v2185_v34  ;;  %v2643_v36 = vrot.slane %v2627_v47, 3  ;;  %v3539_v11 = vsel %vm664_vm3, %v3483_v28, %v3538_v30  ;;  %v3486_v45 = vperm.slane %v3358_v51, 1 }
 0x233   : > { %2189 = vst [vmem:[%s5283_s9 + $0x76] sm:$0x1] %v2188_v12  ;;  %v3540_v56 = vsel %vm666_vm4, %v3484_v20, %v3539_v11 }
 0x234   : > { %2192 = vst [vmem:[%s5283_s9 + $0x77] sm:$0x1] %v2191_v58  ;;  %v2737_v13 = vsel %vm761_vm7, %v2627_v47, %v2643_v36  ;;  %v2739_v63 = vsel %vm658_vm0, %v2627_v47, %v2643_v36  ;;  %v2742_v19 = vsel %vm660_vm1, %v2627_v47, %v2643_v36  ;;  %v2745_v3 = vsel %vm662_vm2, %v2627_v47, %v2643_v36 }
 0x235   : > { %v2741_v24 = vrot.slane %v2739_v63, 1  ;;  %v2744_v61 = vrot.slane %v2742_v19, 2  ;;  %v2747_v57 = vrot.slane %v2745_v3, 3  ;;  %v2805_v44 = vunpack.i.h.s16 %v2737_v13 }
 0x236   : > { %v4485_v35 = vpack.i.b16 %v2737_v13, %v2737_v13  ;;  %v3541_v43 = vsel %vm668_vm5, %v3485_v14, %v3540_v56 }
 0x237   : > { %v2807_v59 = vunpack.i.h.s16 %v2741_v24  ;;  %v2809_v54 = vunpack.i.h.s16 %v2744_v61  ;;  %v2811_v4 = vunpack.i.h.s16 %v2747_v57  ;;  %v2869_v5 = vpack.i.b16 %v2805_v44, %v2805_v44 }
 0x238   : > { %v4486_v26 = vpack.i.b16 %v2741_v24, %v2741_v24  ;;  %v4487_v2 = vpack.i.b16 %v2744_v61, %v2744_v61  ;;  %v4488_v31 = vpack.i.b16 %v2747_v57, %v2747_v57  ;;  %v3110_v25 = vsel %vm5302_vm10, %v4485_v35, %v4601_v0 }
 0x239   : > { %v2871_v40 = vpack.i.b16 %v2807_v59, %v2807_v59  ;;  %v2873_v22 = vpack.i.b16 %v2809_v54, %v2809_v54  ;;  %v2875_v10 = vpack.i.b16 %v2811_v4, %v2811_v4  ;;  %4602 = vst [vmem:[%s5283_s9 + $0x78] sm:$0x1] %v3110_v25  ;;  %v3113_v50 = vsel %vm5302_vm10, %v2869_v5, %v4603_v16 }
 0x23a   : > { %4604 = vst [vmem:[%s5283_s9 + $0x79] sm:$0x1] %v3113_v50  ;;  %v3116_v46 = vsel %vm5302_vm10, %v4486_v26, %v4605_v32  ;;  %v3122_v53 = vsel %vm5302_vm10, %v4487_v2, %v4609_v23  ;;  %v3542_v18 = vsel %vm670_vm6, %v3486_v45, %v3541_v43  ;;  %v3128_v7 = vsel %vm5302_vm10, %v4488_v31, %v4613_v6 }
 0x23b   : > { %4606 = vst [vmem:[%s5283_s9 + $0x7a] sm:$0x1] %v3116_v46  ;;  %v3119_v39 = vsel %vm5302_vm10, %v2871_v40, %v4607_v21  ;;  %v3125_v8 = vsel %vm5302_vm10, %v2873_v22, %v4611_v38  ;;  %v3558_v1 = vadd.f32 %v3542_v18, %v3229_v49  ;;  %v3131_v29 = vsel %vm5302_vm10, %v2875_v10, %v4615_v48 }
 0x23c   : > { %4608 = vst [vmem:[%s5283_s9 + $0x7b] sm:$0x1] %v3119_v39 }
 0x23d   : > { %4610 = vst [vmem:[%s5283_s9 + $0x7c] sm:$0x1] %v3122_v53  ;;  %v3566_v9 = vpack.c.bf16 %v3558_v1, %v3558_v1 }
 0x23e   : > { %4612 = vst [vmem:[%s5283_s9 + $0x7d] sm:$0x1] %v3125_v8 }
 0x23f   : > { %4614 = vst [vmem:[%s5283_s9 + $0x7e] sm:$0x1] %v3128_v7  ;;  %v3582_v62 = vrot.slane %v3566_v9, 3 }
 0x240   : > { %4616 = vst [vmem:[%s5283_s9 + $0x7f] sm:$0x1] %v3131_v29  ;;  %v4873_v58 = vld [vmem:[%s5283_s9 + $0x78] sm:$0x1] }
 0x241   : > { %v3676_v37 = vsel %vm761_vm7, %v3566_v9, %v3582_v62  ;;  %v3678_v34 = vsel %vm658_vm0, %v3566_v9, %v3582_v62  ;;  %v3681_v15 = vsel %vm660_vm1, %v3566_v9, %v3582_v62  ;;  %v3684_v17 = vsel %vm662_vm2, %v3566_v9, %v3582_v62  ;;  %v4875_v55 = vld [vmem:[%s5283_s9 + $0x79] sm:$0x1] }
 0x242   : > { %v3680_v12 = vrot.slane %v3678_v34, 1  ;;  %v3683_v41 = vrot.slane %v3681_v15, 2  ;;  %v3686_v60 = vrot.slane %v3684_v17, 3  ;;  %v3744_v28 = vunpack.i.h.s16 %v3676_v37  ;;  %v4877_v51 = vld [vmem:[%s5283_s9 + $0x7a] sm:$0x1] }
 0x243   : > { %v4757_v47 = vpack.i.b16 %v3676_v37, %v3676_v37  ;;  %v4879_v13 = vld [vmem:[%s5283_s9 + $0x7b] sm:$0x1] }
 0x244   : > { %v3746_v42 = vunpack.i.h.s16 %v3680_v12  ;;  %v3748_v27 = vunpack.i.h.s16 %v3683_v41  ;;  %v3750_v52 = vunpack.i.h.s16 %v3686_v60  ;;  %v3808_v36 = vpack.i.b16 %v3744_v28, %v3744_v28  ;;  %v4881_v20 = vld [vmem:[%s5283_s9 + $0x7c] sm:$0x1] }
 0x245   : > { %v4758_v30 = vpack.i.b16 %v3680_v12, %v3680_v12  ;;  %v4759_v49 = vpack.i.b16 %v3683_v41, %v3683_v41  ;;  %v4048_v11 = vsel %vm5344_vm11, %v4757_v47, %v4873_v58  ;;  %v4883_v63 = vld [vmem:[%s5283_s9 + $0x7d] sm:$0x1]  ;;  %v4760_v57 = vpack.i.b16 %v3686_v60, %v3686_v60 }
 0x246   : > { %v3810_v19 = vpack.i.b16 %v3746_v42, %v3746_v42  ;;  %v3812_v3 = vpack.i.b16 %v3748_v27, %v3748_v27  ;;  %4874 = vst [vmem:[%s5283_s9 + $0x78] sm:$0x1] %v4048_v11  ;;  %v4051_v24 = vsel %vm5344_vm11, %v3808_v36, %v4875_v55  ;;  %v4885_v61 = vld [vmem:[%s5283_s9 + $0x7e] sm:$0x1]  ;;  %v3814_v16 = vpack.i.b16 %v3750_v52, %v3750_v52 }
 0x247   : > { %4876 = vst [vmem:[%s5283_s9 + $0x79] sm:$0x1] %v4051_v24  ;;  %v4054_v44 = vsel %vm5344_vm11, %v4758_v30, %v4877_v51  ;;  %v4060_v0 = vsel %vm5344_vm11, %v4759_v49, %v4881_v20  ;;  %v4887_v35 = vld [vmem:[%s5283_s9 + $0x7f] sm:$0x1]  ;;  %v4066_v56 = vsel %vm5344_vm11, %v4760_v57, %v4885_v61 }
 0x248   : > { %4878 = vst [vmem:[%s5283_s9 + $0x7a] sm:$0x1] %v4054_v44  ;;  %v4057_v14 = vsel %vm5344_vm11, %v3810_v19, %v4879_v13  ;;  %v4063_v45 = vsel %vm5344_vm11, %v3812_v3, %v4883_v63  ;;  %v4069_v59 = vsel %vm5344_vm11, %v3814_v16, %v4887_v35 }
 0x249   : > { %4880 = vst [vmem:[%s5283_s9 + $0x7b] sm:$0x1] %v4057_v14 }
 0x24a   : > { %4882 = vst [vmem:[%s5283_s9 + $0x7c] sm:$0x1] %v4060_v0 }
 0x24b   : > { %4884 = vst [vmem:[%s5283_s9 + $0x7d] sm:$0x1] %v4063_v45 }
 0x24c   : > { %4886 = vst [vmem:[%s5283_s9 + $0x7e] sm:$0x1] %v4066_v56 }
 0x24d   : > { %4888 = vst [vmem:[%s5283_s9 + $0x7f] sm:$0x1] %v4069_v59 }
 0x24e PF: > { %s14_s17 = sadd.s32 1, %s4990_s17   ;;  %s7588_s15 = smov %s4986_s16 }
 0x24f   : > { %p11_p5 = scmp.ge.s32.totalorder %s14_s17, 4   ;;  %s7589_s16 = smov %s7591_s18 }
 0x251   :  { %13 = sbr.rel (!%p11_p5) target bundleno = 2 (0x2), region = 74 }

// kernel: unet_up_forward.3
= control target key start
LH: loop header
LB: loop body
LE: loop exit
PB: predicated region body
PF: predicated region fallthrough
CT: control target
= control target key end

     0   :  { %s7101_s18 = smov 0   ;;  %s7103_s19 = smov 0   ;;  %s8958_s0 = inlined_call_operand.vmem [shape: bf16[2,16,16,128], index: 0, kind: input, shape index: {}]   ;;  %s8959_s1 = inlined_call_operand.vmem [shape: bf16[9,128,128], index: 1, kind: input, shape index: {}]   ;;  %s8960_s2 = inlined_call_operand.vmem [shape: f32[1,128], index: 2, kind: input, shape index: {}]   ;;  %s8961_s3 = inlined_call_operand.vmem [shape: bf16[9,128,128], index: 3, kind: input, shape index: {}]   ;;  %s8962_s4 = inlined_call_operand.vmem [shape: f32[1,128], index: 4, kind: input, shape index: {}]   ;;  %s8963_s5 = inlined_call_operand.vmem [shape: bf16[2,12,12,128], index: 5, kind: output, shape index: {}]  }
   0x1   :  { %s7105_s20 = smov 0  }
   0x2 LB: > { %s27_s21 = sadd.s32 1, %s7065_s19  ;;  %p5535_p0 = scmp.ge.s32.totalorder %s7069_s20, 1  ;;  %s7069_s20 = sphi %s7105_s20, %s15_s20   ;;  %s7065_s19 = sphi %s7103_s19, %s9304_s19   ;;  %s7061_s18 = sphi %s7101_s18, %s9303_s18  }
   0x3   : > { %p29_p1 = scmp.ge.s32.totalorder %s27_s21, 2  ;;  %p167_p2 = scmp.lt.s32.totalorder %s7069_s20, 3 }
   0x5   : > { %s9306_s21 = smov (%p29_p1, %s27_s21), 0  ;;  %p168_p3 = pnand %p5535_p0, %p167_p2 }
   0x7   : > { %171 = sbr.rel (%p168_p3) target bundleno = 1462 (0x5b6), region = 36 }
   0xc   : > { %p194_p4 = scmp.lt.s32.totalorder %s7061_s18, 1  ;;  %s6777_s22 = sshll.u32 %s7061_s18, 7 }
   0xd   : > { %s7122_s25 = scalar_lea.vmem %s8958_s0, %s6777_s22 }
   0xe   : > { %s9308_s18 = smov (!%p194_p4, %s7061_s18), 1  ;;  %v221_v0 = vld [vmem:[%s7122_s25] sm:$0xff]  ;;  %v223_v1 = vld [vmem:[%s7122_s25 + $0x8] sm:$0xff]  ;;  %v225_v2 = vld [vmem:[%s7122_s25 + $0x10] sm:$0xff] }
   0xf   : > { %222 = vst [vmem:[#allocation2 + $0x30] sm:$0xff] %v221_v0  ;;  %v227_v3 = vld [vmem:[%s7122_s25 + $0x18] sm:$0xff]  ;;  %s7017_s26 = smul.u32 96, %s9308_s18  ;;  %v229_v4 = vld [vmem:[%s7122_s25 + $0x20] sm:$0xff]  ;;  %v231_v5 = vld [vmem:[%s7122_s25 + $0x28] sm:$0xff] }
  0x10   : > { %224 = vst [vmem:[#allocation2] sm:$0xff] %v223_v1  ;;  %v233_v6 = vld [vmem:[%s7122_s25 + $0x30] sm:$0xff]  ;;  %v235_v7 = vld [vmem:[%s7122_s25 + $0x38] sm:$0xff]  ;;  %v237_v8 = vld [vmem:[%s7122_s25 + $0x40] sm:$0xff] }
  0x11   : > { %226 = vst [vmem:[#allocation2 + $0x58] sm:$0xff] %v225_v2  ;;  %s7133_s29 = scalar_lea.vmem %s8963_s5, %s7017_s26  ;;  %v239_v9 = vld [vmem:[%s7122_s25 + $0x48] sm:$0xff]  ;;  %v241_v10 = vld [vmem:[%s7122_s25 + $0x50] sm:$0xff]  ;;  %v243_v11 = vld [vmem:[%s7122_s25 + $0x58] sm:$0xff] }
  0x12   : > { %228 = vst [vmem:[#allocation2 + $0x18] sm:$0xff] %v227_v3  ;;  %v245_v12 = vld [vmem:[%s7122_s25 + $0x60] sm:$0xff]  ;;  %v247_v13 = vld [vmem:[%s7122_s25 + $0x68] sm:$0xff]  ;;  %v249_v14 = vld [vmem:[%s7122_s25 + $0x70] sm:$0xff] }
  0x13   : > { %230 = vst [vmem:[#allocation2 + $0x50] sm:$0xff] %v229_v4  ;;  %v251_v15 = vld [vmem:[%s7122_s25 + $0x78] sm:$0xff] }
  0x14   : > { %232 = vst [vmem:[#allocation2 + $0x68] sm:$0xff] %v231_v5 }
  0x15   : > { %234 = vst [vmem:[#allocation2 + $0x8] sm:$0xff] %v233_v6 }
  0x16   : > { %236 = vst [vmem:[#allocation2 + $0x48] sm:$0xff] %v235_v7 }
  0x17   : > { %238 = vst [vmem:[#allocation2 + $0x40] sm:$0xff] %v237_v8 }
  0x18   : > { %240 = vst [vmem:[#allocation2 + $0x20] sm:$0xff] %v239_v9 }
  0x19   : > { %242 = vst [vmem:[#allocation2 + $0x10] sm:$0xff] %v241_v10 }
  0x1a   : > { %244 = vst [vmem:[#allocation2 + $0x38] sm:$0xff] %v243_v11 }
  0x1b   : > { %246 = vst [vmem:[#allocation2 + $0x60] sm:$0xff] %v245_v12 }
  0x1c   : > { %248 = vst [vmem:[#allocation2 + $0x70] sm:$0xff] %v247_v13 }
  0x1d   : > { %250 = vst [vmem:[#allocation2 + $0x78] sm:$0xff] %v249_v14 }
  0x1e   : > { %252 = vst [vmem:[#allocation2 + $0x28] sm:$0xff] %v251_v15 }
  0x1f   : > { %258 = vsyncadd [#allocation3], 2048 }
  0x20   : > { %7057 = dma.done.wait [#allocation3], 2048 }
  0x21   : > { %7058 = vsyncadd [#allocation3], 4294965248  ;;  %v6800_v16 = vld [vmem:[%s8959_s1 + $0x38] sm:$0xff]  ;;  %v6799_v19 = vld [vmem:[%s8959_s1 + $0x30] sm:$0xff]  ;;  %vm2655_vm0 = vcmask 1046528   ;;  %vm2810_vm1 = vcmask 1045504  }
  0x22   : > { %v6808_v17 = vld [vmem:[%s8959_s1 + $0x78] sm:$0xff]  ;;  %520 = vmatpush.bf16.msra.mxu0 %v6800_v16  ;;  %v6807_v20 = vld [vmem:[%s8959_s1 + $0x70] sm:$0xff]  ;;  %v6798_v22 = vld [vmem:[%s8959_s1 + $0x28] sm:$0xff] }
  0x23   : > { %v6816_v18 = vld [vmem:[%s8959_s1 + $0xb8] sm:$0xff]  ;;  %7001 = vmatpush.bf16.msra.mxu3 %v6808_v17  ;;  %v6815_v21 = vld [vmem:[%s8959_s1 + $0xb0] sm:$0xff]  ;;  %692 = vmatpush.bf16.msra.mxu1 %v6808_v17  ;;  %v6806_v23 = vld [vmem:[%s8959_s1 + $0x68] sm:$0xff] }
  0x24   : > { %7009 = vmatpush.bf16.msra.mxu2 %v6816_v18  ;;  %v6814_v24 = vld [vmem:[%s8959_s1 + $0xa8] sm:$0xff]  ;;  %v6797_v25 = vld [vmem:[%s8959_s1 + $0x20] sm:$0xff]  ;;  %v6796_v28 = vld [vmem:[%s8959_s1 + $0x18] sm:$0xff] }
  0x25   : > { %v6805_v26 = vld [vmem:[%s8959_s1 + $0x60] sm:$0xff]  ;;  %v6804_v29 = vld [vmem:[%s8959_s1 + $0x58] sm:$0xff]  ;;  %v6795_v31 = vld [vmem:[%s8959_s1 + $0x10] sm:$0xff] }
  0x26   : > { %521 = vmatpush.bf16.msra.mxu0 %v6799_v19  ;;  %v6813_v27 = vld [vmem:[%s8959_s1 + $0xa0] sm:$0xff]  ;;  %v6812_v30 = vld [vmem:[%s8959_s1 + $0x98] sm:$0xff]  ;;  %v6803_v32 = vld [vmem:[%s8959_s1 + $0x50] sm:$0xff] }
  0x27   : > { %7002 = vmatpush.bf16.msra.mxu3 %v6807_v20  ;;  %693 = vmatpush.bf16.msra.mxu1 %v6807_v20  ;;  %v6811_v33 = vld [vmem:[%s8959_s1 + $0x90] sm:$0xff]  ;;  %v6794_v34 = vld [vmem:[%s8959_s1 + $0x8] sm:$0xff]  ;;  %v6793_v37 = vld [vmem:[%s8959_s1] sm:$0xff] }
  0x28   : > { %7010 = vmatpush.bf16.msra.mxu2 %v6815_v21  ;;  %v6802_v35 = vld [vmem:[%s8959_s1 + $0x48] sm:$0xff]  ;;  %v6801_v38 = vld [vmem:[%s8959_s1 + $0x40] sm:$0xff]  ;;  %v7217_v40 = vld [vmem:[#allocation2 + $0x30] sm:$0xff] }
  0x29   : > { %v6810_v36 = vld [vmem:[%s8959_s1 + $0x88] sm:$0xff]  ;;  %v6809_v39 = vld [vmem:[%s8959_s1 + $0x80] sm:$0xff]  ;;  %v7229_v44 = vld [vmem:[#allocation2 + $0x10] sm:$0xff] }
  0x2a   : > { %522 = vmatpush.bf16.msra.mxu0 %v6798_v22  ;;  %v7219_v41 = vld [vmem:[#allocation2 + $0x20] sm:$0xff]  ;;  %v7221_v42 = vld [vmem:[#allocation2 + $0x68] sm:$0xff]  ;;  %v6838_v46 = vld [vmem:[%s8959_s1 + $0xf8] sm:$0xff] }
  0x2b   : > { %7003 = vmatpush.bf16.msra.mxu3 %v6806_v23  ;;  %694 = vmatpush.bf16.msra.mxu1 %v6806_v23  ;;  %v7227_v43 = vld [vmem:[#allocation2] sm:$0xff]  ;;  %v7231_v45 = vld [vmem:[#allocation2 + $0x8] sm:$0xff]  ;;  %v6837_v47 = vld [vmem:[%s8959_s1 + $0xf0] sm:$0xff] }
  0x2c   : > { %7011 = vmatpush.bf16.msra.mxu2 %v6814_v24  ;;  %v6836_v48 = vld [vmem:[%s8959_s1 + $0xe8] sm:$0xff]  ;;  %v6835_v49 = vld [vmem:[%s8959_s1 + $0xe0] sm:$0xff]  ;;  %v7249_v50 = vld [vmem:[#allocation2 + $0x58] sm:$0xff] }
  0x2d   : > { %v7251_v51 = vld [vmem:[#allocation2 + $0x38] sm:$0xff]  ;;  %v6786_v52 = vld [vmem:[#allocation2 + $0x48] sm:$0xff]  ;;  %v6833_v54 = vld [vmem:[%s8959_s1 + $0xd0] sm:$0xff] }
  0x2e   : > { %523 = vmatpush.bf16.msra.mxu0 %v6797_v25  ;;  %v6834_v53 = vld [vmem:[%s8959_s1 + $0xd8] sm:$0xff]  ;;  %v6832_v55 = vld [vmem:[%s8959_s1 + $0xc8] sm:$0xff]  ;;  %v6831_v56 = vld [vmem:[%s8959_s1 + $0xc0] sm:$0xff] }
  0x2f   : > { %7004 = vmatpush.bf16.msra.mxu3 %v6805_v26  ;;  %695 = vmatpush.bf16.msra.mxu1 %v6805_v26  ;;  %v7268_v57 = vld [vmem:[#allocation2 + $0x18] sm:$0xff]  ;;  %v7270_v58 = vld [vmem:[#allocation2 + $0x60] sm:$0xff]  ;;  %v7275_v60 = vld [vmem:[#allocation2 + $0x50] sm:$0xff] }
  0x30   : > { %7012 = vmatpush.bf16.msra.mxu2 %v6813_v27  ;;  %v6787_v59 = vld [vmem:[#allocation2 + $0x40] sm:$0xff]  ;;  %v7277_v61 = vld [vmem:[#allocation2 + $0x70] sm:$0xff]  ;;  %v6876_v63 = vld [vmem:[%s8959_s1 + $0x1b8] sm:$0xff] }
  0x31   : > { %v7283_v62 = vld [vmem:[#allocation2] sm:$0xff]  ;;  %v6875_v0 = vld [vmem:[%s8959_s1 + $0x1b0] sm:$0xff]  ;;  %v6874_v1 = vld [vmem:[%s8959_s1 + $0x1a8] sm:$0xff] }
  0x32   : > { %524 = vmatpush.bf16.msra.mxu0 %v6796_v28  ;;  %v7298_v2 = vld [vmem:[#allocation2 + $0x58] sm:$0xff]  ;;  %v6873_v3 = vld [vmem:[%s8959_s1 + $0x1a0] sm:$0xff]  ;;  %v6871_v5 = vld [vmem:[%s8959_s1 + $0x190] sm:$0xff] }
  0x33   : > { %7005 = vmatpush.bf16.msra.mxu3 %v6804_v29  ;;  %696 = vmatpush.bf16.msra.mxu1 %v6804_v29  ;;  %v6872_v4 = vld [vmem:[%s8959_s1 + $0x198] sm:$0xff]  ;;  %v6870_v6 = vld [vmem:[%s8959_s1 + $0x188] sm:$0xff]  ;;  %v6869_v8 = vld [vmem:[%s8959_s1 + $0x180] sm:$0xff] }
  0x34   : > { %7013 = vmatpush.bf16.msra.mxu2 %v6812_v30  ;;  %v7316_v7 = vld [vmem:[#allocation2 + $0x18] sm:$0xff]  ;;  %v7323_v9 = vld [vmem:[#allocation2 + $0x50] sm:$0xff]  ;;  %v7339_v16 = vld [vmem:[#allocation2 + $0x68] sm:$0xff] }
  0x35   : > { %v7362_v26 = vld [vmem:[#allocation2 + $0x18] sm:$0xff] }
  0x36   : > { %525 = vmatpush.bf16.msra.mxu0 %v6795_v31  ;;  %8982 = vst [vmem:[#allocation19_spill] sm:$0xff] %v7362_v26 }
  0x37   : > { %7006 = vmatpush.bf16.msra.mxu3 %v6803_v32  ;;  %697 = vmatpush.bf16.msra.mxu1 %v6803_v32  ;;  %v6852_v32 = vld [vmem:[%s8959_s1 + $0x168] sm:$0xff] }
  0x38   : > { %7014 = vmatpush.bf16.msra.mxu2 %v6811_v33 }
  0x3a   : > { %526 = vmatpush.bf16.msra.mxu0 %v6794_v34 }
  0x3b   : > { %7007 = vmatpush.bf16.msra.mxu3 %v6802_v35  ;;  %698 = vmatpush.bf16.msra.mxu1 %v6802_v35  ;;  %v7386_v35 = vld [vmem:[#allocation2 + $0x48] sm:$0xff] }
  0x3c   : > { %7015 = vmatpush.bf16.msra.mxu2 %v6810_v36 }
  0x3e   : > { %527 = vmatpush.bf16.msra.mxu0 %v6793_v37 }
  0x3f   : > { %7008 = vmatpush.bf16.msra.mxu3 %v6801_v38  ;;  %699 = vmatpush.bf16.msra.mxu1 %v6801_v38  ;;  %v7393_v38 = vld [vmem:[#allocation2 + $0x50] sm:$0xff] }
  0x40   : > { %7016 = vmatpush.bf16.msra.mxu2 %v6809_v39  ;;  %8987 = vst [vmem:[#allocation24_spill] sm:$0xff] %v7393_v38 }
  0x41   : > { %528 = vmatmul.bf16.vlgmr.msra.gmra.mxu0 %v7217_v40 }
  0x42   : > { %865 = vmatpush.bf16.msrb.mxu0 %v6816_v18  ;;  %745 = vmatmul.bf16.vlgmr.msra.gmra.mxu3 %v7219_v41  ;;  %v7343_v18 = vld [vmem:[#allocation2 + $0x58] sm:$0xff] }
  0x43   : > { %898 = vmatmul.bf16.vlgmr.msra.gmra.mxu2 %v7221_v42  ;;  %700 = vmatmul.bf16.vlgmr.msra.gmra.mxu1 %v7217_v40  ;;  %8977 = vst [vmem:[#allocation14_spill] sm:$0xff] %v7343_v18 }
  0x44   : > { %1153 = vmatpush.bf16.msrb.mxu3 %v6838_v46  ;;  %1952 = vmatpush.bf16.msrb.mxu2 %v6876_v63 }
  0x46   : > { %866 = vmatpush.bf16.msrb.mxu0 %v6815_v21 }
  0x48   : > { %1154 = vmatpush.bf16.msrb.mxu3 %v6837_v47  ;;  %1953 = vmatpush.bf16.msrb.mxu2 %v6875_v0 }
  0x4a   : > { %867 = vmatpush.bf16.msrb.mxu0 %v6814_v24  ;;  %v7358_v24 = vld [vmem:[#allocation2 + $0x8] sm:$0xff] }
  0x4c   : > { %1155 = vmatpush.bf16.msrb.mxu3 %v6836_v48  ;;  %1954 = vmatpush.bf16.msrb.mxu2 %v6874_v1  ;;  %v6848_v48 = vld [vmem:[%s8959_s1 + $0x148] sm:$0xff] }
  0x4e   : > { %868 = vmatpush.bf16.msrb.mxu0 %v6813_v27  ;;  %v6854_v27 = vld [vmem:[%s8959_s1 + $0x178] sm:$0xff] }
  0x4f   : > { %1609 = vmatpush.bf16.msrb.mxu1 %v6854_v27  ;;  %v7458_v27 = vld [vmem:[#allocation2 + $0x8] sm:$0xff] }
  0x50   : > { %1156 = vmatpush.bf16.msrb.mxu3 %v6835_v49  ;;  %1955 = vmatpush.bf16.msrb.mxu2 %v6873_v3 }
  0x51   : > { %533 = vmatmul.bf16.gmra.mxu0 %v7227_v43 }
  0x52   : > { %869 = vmatpush.bf16.msrb.mxu0 %v6812_v30  ;;  %750 = vmatmul.bf16.gmra.mxu3 %v7229_v44  ;;  %v6853_v30 = vld [vmem:[%s8959_s1 + $0x170] sm:$0xff] }
  0x53   : > { %903 = vmatmul.bf16.gmra.mxu2 %v7231_v45  ;;  %705 = vmatmul.bf16.gmra.mxu1 %v7227_v43 }
  0x54   : > { %1157 = vmatpush.bf16.msrb.mxu3 %v6834_v53  ;;  %1956 = vmatpush.bf16.msrb.mxu2 %v6872_v4  ;;  %v6847_v53 = vld [vmem:[%s8959_s1 + $0x140] sm:$0xff] }
  0x55   : > { %1610 = vmatpush.bf16.msrb.mxu1 %v6853_v30 }
  0x56   : > { %870 = vmatpush.bf16.msrb.mxu0 %v6811_v33 }
  0x58   : > { %1158 = vmatpush.bf16.msrb.mxu3 %v6833_v54  ;;  %1957 = vmatpush.bf16.msrb.mxu2 %v6871_v5 }
  0x59   : > { %1611 = vmatpush.bf16.msrb.mxu1 %v6852_v32 }
  0x5a   : > { %871 = vmatpush.bf16.msrb.mxu0 %v6810_v36  ;;  %v6851_v36 = vld [vmem:[%s8959_s1 + $0x160] sm:$0xff] }
  0x5c   : > { %1159 = vmatpush.bf16.msrb.mxu3 %v6832_v55  ;;  %1958 = vmatpush.bf16.msrb.mxu2 %v6870_v6  ;;  %v7428_v55 = vld [vmem:[#allocation2 + $0x68] sm:$0xff]  ;;  %v7454_v6 = vld [vmem:[#allocation2 + $0x20] sm:$0xff] }
  0x5d   : > { %1612 = vmatpush.bf16.msrb.mxu1 %v6851_v36  ;;  %8992 = vst [vmem:[#allocation29_spill] sm:$0xff] %v7428_v55 }
  0x5e   : > { %872 = vmatpush.bf16.msrb.mxu0 %v6809_v39 }
  0x60   : > { %1160 = vmatpush.bf16.msrb.mxu3 %v6831_v56  ;;  %1959 = vmatpush.bf16.msrb.mxu2 %v6869_v8 }
  0x61   : > { %538 = vmatmul.bf16.gmra.mxu0 %v7249_v50 }
  0x62   : > { %755 = vmatmul.bf16.gmra.mxu3 %v7251_v51 }
  0x63   : > { %908 = vmatmul.bf16.gmra.mxu2 %v6786_v52  ;;  %710 = vmatmul.bf16.gmra.mxu1 %v7249_v50 }
  0x71   : > { %543 = vmatmul.bf16.gmra.mxu0 %v7268_v57 }
  0x72   : > { %760 = vmatmul.bf16.gmra.mxu3 %v7270_v58 }
  0x73   : > { %913 = vmatmul.bf16.gmra.mxu2 %v6787_v59  ;;  %715 = vmatmul.bf16.gmra.mxu1 %v7268_v57 }
  0x81   : > { %548 = vmatmul.bf16.gmra.mxu0 %v7275_v60 }
  0x82   : > { %765 = vmatmul.bf16.gmra.mxu3 %v7277_v61 }
  0x83   : > { %918 = vmatmul.bf16.gmra.mxu2 %v7219_v41  ;;  %720 = vmatmul.bf16.gmra.mxu1 %v7275_v60 }
  0x91   : > { %553 = vmatmul.bf16.gmra.mxu0 %v7221_v42 }
  0x92   : > { %1161 = vmatmul.bf16.vlgmr.msrb.gmra.mxu3 %v7283_v62 }
  0x93   : > { %923 = vmatmul.bf16.gmra.mxu2 %v7229_v44  ;;  %725 = vmatmul.bf16.gmra.mxu1 %v7221_v42 }
  0xa1   : > { %558 = vmatmul.bf16.gmra.mxu0 %v7231_v45 }
  0xa2   : > { %1166 = vmatmul.bf16.gmra.mxu3 %v7298_v2 }
  0xa3   : > { %928 = vmatmul.bf16.gmra.mxu2 %v7251_v51  ;;  %730 = vmatmul.bf16.gmra.mxu1 %v7231_v45  ;;  %v6849_v45 = vld [vmem:[%s8959_s1 + $0x150] sm:$0xff] }
  0xb1   : > { %563 = vmatmul.bf16.gmra.mxu0 %v6786_v52 }
  0xb2   : > { %1171 = vmatmul.bf16.gmra.mxu3 %v7316_v7 }
  0xb3   : > { %933 = vmatmul.bf16.gmra.mxu2 %v7270_v58  ;;  %735 = vmatmul.bf16.gmra.mxu1 %v6786_v52  ;;  %v7421_v52 = vld [vmem:[#allocation2 + $0x40] sm:$0xff] }
  0xbe   : > { %v7325_v10 = vpop.f32.mrf.mxu0 }
  0xc0   : > { %v7395_v39 = vpop.f32.mrf.mxu1 }
  0xc1   : > { %568 = vmatmul.bf16.gmra.mxu0 %v6787_v59 }
  0xc2   : > { %1176 = vmatmul.bf16.gmra.mxu3 %v7323_v9 }
  0xc3   : > { %938 = vmatmul.bf16.gmra.mxu2 %v7277_v61  ;;  %740 = vmatmul.bf16.gmra.mxu1 %v6787_v59  ;;  %v6846_v59 = vld [vmem:[%s8959_s1 + $0x138] sm:$0xff] }
  0xc4   : > { %1381 = vmatpush.bf16.msra.mxu0 %v6846_v59  ;;  %v7481_v59 = vld [vmem:[#allocation2 + $0x10] sm:$0xff] }
  0xc5   : > { %v7329_v11 = vpop.f32.mrf.mxu3 }
  0xc6   : > { %8973 = vst [vmem:[#allocation10_spill] sm:$0xff] %v7329_v11  ;;  %v7331_v12 = vpop.f32.mrf.mxu2  ;;  %v7333_v13 = vpop.f32.mrf.mxu0 }
  0xc7   : > { %8974 = vst [vmem:[#allocation11_spill] sm:$0xff] %v7331_v12 }
  0xc8   : > { %v7412_v47 = vpop.f32.mrf.mxu1 }
  0xcd   : > { %v7335_v14 = vpop.f32.mrf.mxu3 }
  0xce   : > { %8975 = vst [vmem:[#allocation12_spill] sm:$0xff] %v7335_v14  ;;  %v7337_v15 = vpop.f32.mrf.mxu2  ;;  %v7341_v17 = vpop.f32.mrf.mxu0  ;;  %v6839_v14 = vld [vmem:[%s8959_s1 + $0x100] sm:$0xff] }
  0xcf   : > { %8976 = vst [vmem:[#allocation13_spill] sm:$0xff] %v7337_v15 }
  0xd0   : > { %v7430_v56 = vpop.f32.mrf.mxu1 }
  0xd1   : > { %573 = vmatmul.bf16.gmra.mxu0 %v7219_v41  ;;  %v6850_v41 = vld [vmem:[%s8959_s1 + $0x158] sm:$0xff] }
  0xd2   : > { %1181 = vmatmul.bf16.gmra.mxu3 %v7339_v16  ;;  %1613 = vmatpush.bf16.msrb.mxu1 %v6850_v41  ;;  %v6844_v41 = vld [vmem:[%s8959_s1 + $0x128] sm:$0xff] }
  0xd3   : > { %1960 = vmatmul.bf16.vlgmr.msrb.gmra.mxu2 %v7343_v18 }
  0xd5   : > { %v7348_v19 = vpop.f32.mrf.mxu3 }
  0xd6   : > { %8978 = vst [vmem:[#allocation15_spill] sm:$0xff] %v7348_v19  ;;  %v7350_v20 = vpop.f32.mrf.mxu2  ;;  %v7352_v21 = vpop.f32.mrf.mxu0  ;;  %1614 = vmatpush.bf16.msrb.mxu1 %v6849_v45 }
  0xd7   : > { %8979 = vst [vmem:[#allocation16_spill] sm:$0xff] %v7350_v20  ;;  %v7515_v20 = vld [vmem:[#allocation2 + $0x40] sm:$0xff] }
  0xd8   : > { %v7445_v3 = vpop.f32.mrf.mxu1  ;;  %9004 = vst [vmem:[#allocation41_spill] sm:$0xff] %v7515_v20 }
  0xda   : > { %1615 = vmatpush.bf16.msrb.mxu1 %v6848_v48 }
  0xdd   : > { %v7354_v22 = vpop.f32.mrf.mxu3 }
  0xde   : > { %8980 = vst [vmem:[#allocation17_spill] sm:$0xff] %v7354_v22  ;;  %v7356_v23 = vpop.f32.mrf.mxu2  ;;  %v7360_v25 = vpop.f32.mrf.mxu0  ;;  %1616 = vmatpush.bf16.msrb.mxu1 %v6847_v53 }
  0xdf   : > { %8981 = vst [vmem:[#allocation18_spill] sm:$0xff] %v7356_v23 }
  0xe0   : > { %v7460_v30 = vpop.f32.mrf.mxu1 }
  0xe1   : > { %578 = vmatmul.bf16.gmra.mxu0 %v7229_v44  ;;  %1617 = vmatmul.bf16.vlgmr.msrb.gmra.mxu1 %v7283_v62 }
  0xe2   : > { %1186 = vmatmul.bf16.gmra.mxu3 %v7358_v24 }
  0xe3   : > { %1965 = vmatmul.bf16.gmra.mxu2 %v7362_v26 }
  0xe5   : > { %v7370_v28 = vpop.f32.mrf.mxu3 }
  0xe6   : > { %8983 = vst [vmem:[#allocation20_spill] sm:$0xff] %v7370_v28  ;;  %v7372_v29 = vpop.f32.mrf.mxu2  ;;  %v7377_v31 = vpop.f32.mrf.mxu0  ;;  %v7554_v28 = vld [vmem:[#allocation2 + $0x20] sm:$0xff] }
  0xe7   : > { %8984 = vst [vmem:[#allocation21_spill] sm:$0xff] %v7372_v29  ;;  %v7511_v29 = vld [vmem:[#allocation2 + $0x38] sm:$0xff] }
  0xe8   : > { %v7475_v48 = vpop.f32.mrf.mxu1  ;;  %9010 = vst [vmem:[#allocation47_spill] sm:$0xff] %v7554_v28 }
  0xed   : > { %v7382_v33 = vpop.f32.mrf.mxu3 }
  0xee   : > { %8985 = vst [vmem:[#allocation22_spill] sm:$0xff] %v7382_v33  ;;  %v7384_v34 = vpop.f32.mrf.mxu2  ;;  %v7391_v37 = vpop.f32.mrf.mxu0 }
  0xef   : > { %8986 = vst [vmem:[#allocation23_spill] sm:$0xff] %v7384_v34 }
  0xf1   : > { %583 = vmatmul.bf16.gmra.mxu0 %v7251_v51  ;;  %1622 = vmatmul.bf16.gmra.mxu1 %v7298_v2 }
  0xf2   : > { %1191 = vmatmul.bf16.gmra.mxu3 %v7386_v35 }
  0xf3   : > { %1970 = vmatmul.bf16.gmra.mxu2 %v7393_v38 }
  0xf5   : > { %v7403_v42 = vpop.f32.mrf.mxu3 }
  0xf6   : > { %8988 = vst [vmem:[#allocation25_spill] sm:$0xff] %v7403_v42  ;;  %v7405_v44 = vpop.f32.mrf.mxu2  ;;  %v7410_v46 = vpop.f32.mrf.mxu0 }
  0xf7   : > { %8989 = vst [vmem:[#allocation26_spill] sm:$0xff] %v7405_v44 }
  0xfd   : > { %v7417_v49 = vpop.f32.mrf.mxu3 }
  0xfe   : > { %8990 = vst [vmem:[#allocation27_spill] sm:$0xff] %v7417_v49  ;;  %v7419_v51 = vpop.f32.mrf.mxu2  ;;  %v7426_v54 = vpop.f32.mrf.mxu0  ;;  %v6882_v49 = vld [vmem:[%s8959_s1 + $0x1e8] sm:$0xff] }
  0xff   : > { %8991 = vst [vmem:[#allocation28_spill] sm:$0xff] %v7419_v51 }
 0x101   : > { %588 = vmatmul.bf16.gmra.mxu0 %v7270_v58  ;;  %v6845_v58 = vld [vmem:[%s8959_s1 + $0x130] sm:$0xff]  ;;  %1627 = vmatmul.bf16.gmra.mxu1 %v7316_v7 }
 0x102   : > { %1196 = vmatmul.bf16.gmra.mxu3 %v7421_v52  ;;  %1382 = vmatpush.bf16.msra.mxu0 %v6845_v58 }
 0x103   : > { %1975 = vmatmul.bf16.gmra.mxu2 %v7428_v55 }
 0x105   : > { %v7439_v63 = vpop.f32.mrf.mxu3 }
 0x106   : > { %8993 = vst [vmem:[#allocation30_spill] sm:$0xff] %v7439_v63  ;;  %v7441_v0 = vpop.f32.mrf.mxu2  ;;  %v7443_v1 = vpop.f32.mrf.mxu0  ;;  %1383 = vmatpush.bf16.msra.mxu0 %v6844_v41 }
 0x107   : > { %8994 = vst [vmem:[#allocation31_spill] sm:$0xff] %v7441_v0  ;;  %v6843_v0 = vld [vmem:[%s8959_s1 + $0x120] sm:$0xff] }
 0x108   : > { %8995 = vst [vmem:[#allocation32_spill] sm:$0xff] %v7443_v1 }
 0x10a   : > { %1384 = vmatpush.bf16.msra.mxu0 %v6843_v0  ;;  %v6842_v0 = vld [vmem:[%s8959_s1 + $0x118] sm:$0xff] }
 0x10d   : > { %v7450_v4 = vpop.f32.mrf.mxu3 }
 0x10e   : > { %8996 = vst [vmem:[#allocation33_spill] sm:$0xff] %v7450_v4  ;;  %v7452_v5 = vpop.f32.mrf.mxu2  ;;  %v7456_v8 = vpop.f32.mrf.mxu0  ;;  %1385 = vmatpush.bf16.msra.mxu0 %v6842_v0  ;;  %v6884_v0 = vld [vmem:[%s8959_s1 + $0x1f8] sm:$0xff] }
 0x10f   : > { %8997 = vst [vmem:[#allocation34_spill] sm:$0xff] %v7452_v5  ;;  %v7485_v5 = vld [vmem:[#allocation2 + $0x48] sm:$0xff]  ;;  %2180 = vmatpush.bf16.msra.mxu3 %v6884_v0 }
 0x111   : > { %593 = vmatmul.bf16.gmra.mxu0 %v7277_v61  ;;  %1632 = vmatmul.bf16.gmra.mxu1 %v7323_v9 }
 0x112   : > { %1201 = vmatmul.bf16.gmra.mxu3 %v7454_v6 }
 0x113   : > { %1980 = vmatmul.bf16.gmra.mxu2 %v7458_v27 }
 0x115   : > { %v7466_v32 = vpop.f32.mrf.mxu3 }
 0x116   : > { %v7468_v36 = vpop.f32.mrf.mxu2  ;;  %v7473_v45 = vpop.f32.mrf.mxu0 }
 0x117   : > { %8998 = vst [vmem:[#allocation35_spill] sm:$0xff] %v7468_v36  ;;  %v7487_v36 = vpop.f32.mrf.mxu1 }
 0x118   : > { %8999 = vst [vmem:[#allocation36_spill] sm:$0xff] %v7473_v45  ;;  %v7596_v45 = vld [vmem:[#allocation2 + $0x10] sm:$0xff] }
 0x119   : > { %9017 = vst [vmem:[#allocation54_spill] sm:$0xff] %v7596_v45 }
 0x11d   : > { %v7477_v61 = vpop.f32.mrf.mxu3 }
 0x11e   : > { %v7479_v53 = vpop.f32.mrf.mxu2  ;;  %v7483_v58 = vpop.f32.mrf.mxu0 }
 0x11f   : > { %9000 = vst [vmem:[#allocation37_spill] sm:$0xff] %v7479_v53  ;;  %v7502_v44 = vpop.f32.mrf.mxu1 }
 0x121   : > { %873 = vmatmul.bf16.vlgmr.msrb.gmra.mxu0 %v7217_v40  ;;  %1637 = vmatmul.bf16.gmra.mxu1 %v7339_v16 }
 0x122   : > { %1206 = vmatmul.bf16.gmra.mxu3 %v7481_v59 }
 0x123   : > { %1985 = vmatmul.bf16.gmra.mxu2 %v7485_v5 }
 0x125   : > { %v7496_v41 = vpop.f32.mrf.mxu3 }
 0x126   : > { %v7498_v53 = vpop.f32.mrf.mxu2  ;;  %v7500_v51 = vpop.f32.mrf.mxu0 }
 0x127   : > { %9001 = vst [vmem:[#allocation38_spill] sm:$0xff] %v7498_v53  ;;  %v7517_v53 = vpop.f32.mrf.mxu1 }
 0x128   : > { %9002 = vst [vmem:[#allocation39_spill] sm:$0xff] %v7500_v51 }
 0x129   : > { %9005 = vst [vmem:[#allocation42_spill] sm:$0xff] %v7517_v53  ;;  %v7621_v53 = vld [vmem:[#allocation2 + $0x78] sm:$0xff] }
 0x12d   : > { %v7507_v40 = vpop.f32.mrf.mxu3 }
 0x12e   : > { %v7509_v34 = vpop.f32.mrf.mxu2  ;;  %v7513_v23 = vpop.f32.mrf.mxu0 }
 0x12f   : > { %9003 = vst [vmem:[#allocation40_spill] sm:$0xff] %v7509_v34  ;;  %v6841_v34 = vld [vmem:[%s8959_s1 + $0x110] sm:$0xff]  ;;  %v7538_v63 = vpop.f32.mrf.mxu1 }
 0x130   : > { %1386 = vmatpush.bf16.msra.mxu0 %v6841_v34  ;;  %9008 = vst [vmem:[#allocation45_spill] sm:$0xff] %v7538_v63  ;;  %v7547_v34 = vld [vmem:[#allocation2 + $0x60] sm:$0xff] }
 0x131   : > { %878 = vmatmul.bf16.gmra.mxu0 %v7227_v43  ;;  %v6883_v43 = vld [vmem:[%s8959_s1 + $0x1f0] sm:$0xff]  ;;  %1642 = vmatmul.bf16.gmra.mxu1 %v7358_v24 }
 0x132   : > { %1211 = vmatmul.bf16.gmra.mxu3 %v7511_v29 }
 0x133   : > { %1990 = vmatmul.bf16.gmra.mxu2 %v7515_v20  ;;  %2181 = vmatpush.bf16.msra.mxu3 %v6883_v43  ;;  %v6840_v43 = vld [vmem:[%s8959_s1 + $0x108] sm:$0xff] }
 0x134   : > { %1387 = vmatpush.bf16.msra.mxu0 %v6840_v43 }
 0x135   : > { %v7529_v15 = vpop.f32.mrf.mxu3 }
 0x136   : > { %v7531_v12 = vpop.f32.mrf.mxu2  ;;  %v7536_v4 = vpop.f32.mrf.mxu0 }
 0x137   : > { %9006 = vst [vmem:[#allocation43_spill] sm:$0xff] %v7531_v12  ;;  %2182 = vmatpush.bf16.msra.mxu3 %v6882_v49  ;;  %v6881_v12 = vld [vmem:[%s8959_s1 + $0x1e0] sm:$0xff]  ;;  %v7559_v22 = vpop.f32.mrf.mxu1  ;;  %v6880_v49 = vld [vmem:[%s8959_s1 + $0x1d8] sm:$0xff] }
 0x138   : > { %9007 = vst [vmem:[#allocation44_spill] sm:$0xff] %v7536_v4  ;;  %1388 = vmatpush.bf16.msra.mxu0 %v6839_v14  ;;  %v7589_v4 = vld [vmem:[#allocation2 + $0x70] sm:$0xff]  ;;  %v6892_v14 = vld [vmem:[%s8959_s1 + $0x238] sm:$0xff] }
 0x139   : > { %9011 = vst [vmem:[#allocation48_spill] sm:$0xff] %v7559_v22  ;;  %v1261_v22 = vadd.f32 %v7477_v61, %v7333_v13  ;;  %v1262_v13 = vadd.f32 %v7496_v41, %v7341_v17  ;;  %v7651_v17 = vld [vmem:[#allocation2 + $0x60] sm:$0xff] }
 0x13b   : > { %2183 = vmatpush.bf16.msra.mxu3 %v6881_v12  ;;  %v6879_v12 = vld [vmem:[%s8959_s1 + $0x1d0] sm:$0xff] }
 0x13c   : > { %2408 = vmatpush.bf16.msrb.mxu0 %v6892_v14 }
 0x13d   : > { %v7543_v0 = vpop.f32.mrf.mxu3 }
 0x13e   : > { %v7545_v42 = vpop.f32.mrf.mxu2  ;;  %v7552_v33 = vpop.f32.mrf.mxu0 }
 0x13f   : > { %9009 = vst [vmem:[#allocation46_spill] sm:$0xff] %v7545_v42  ;;  %2184 = vmatpush.bf16.msra.mxu3 %v6880_v49  ;;  %v7577_v43 = vpop.f32.mrf.mxu1  ;;  %v6878_v49 = vld [vmem:[%s8959_s1 + $0x1c8] sm:$0xff] }
 0x140   : > { %9014 = vst [vmem:[#allocation51_spill] sm:$0xff] %v7577_v43 }
 0x141   : > { %883 = vmatmul.bf16.gmra.mxu0 %v7249_v50  ;;  %1647 = vmatmul.bf16.gmra.mxu1 %v7386_v35 }
 0x142   : > { %1216 = vmatmul.bf16.gmra.mxu3 %v7547_v34 }
 0x143   : > { %1995 = vmatmul.bf16.gmra.mxu2 %v7554_v28  ;;  %2185 = vmatpush.bf16.msra.mxu3 %v6879_v12 }
 0x145   : > { %v7568_v42 = vpop.f32.mrf.mxu3 }
 0x146   : > { %v7570_v19 = vpop.f32.mrf.mxu2  ;;  %v7575_v50 = vpop.f32.mrf.mxu0 }
 0x147   : > { %9012 = vst [vmem:[#allocation49_spill] sm:$0xff] %v7570_v19  ;;  %2186 = vmatpush.bf16.msra.mxu3 %v6878_v49  ;;  %v7598_v12 = vpop.f32.mrf.mxu1  ;;  %v1260_v49 = vadd.f32 %v7466_v32, %v7325_v10  ;;  %v7627_v32 = vld [vmem:[#allocation2 + $0x38] sm:$0xff] }
 0x148   : > { %9013 = vst [vmem:[#allocation50_spill] sm:$0xff] %v7575_v50  ;;  %v6877_v50 = vld [vmem:[%s8959_s1 + $0x1c0] sm:$0xff] }
 0x149   : > { %9018 = vst [vmem:[#allocation55_spill] sm:$0xff] %v7598_v12 }
 0x14b   : > { %2187 = vmatpush.bf16.msra.mxu3 %v6877_v50 }
 0x14d   : > { %v7585_v19 = vpop.f32.mrf.mxu3 }
 0x14e   : > { %9015 = vst [vmem:[#allocation52_spill] sm:$0xff] %v7585_v19  ;;  %v7587_v11 = vpop.f32.mrf.mxu2  ;;  %v7594_v51 = vpop.f32.mrf.mxu0 }
 0x14f   : > { %9016 = vst [vmem:[#allocation53_spill] sm:$0xff] %v7587_v11  ;;  %v7615_v43 = vpop.f32.mrf.mxu1 }
 0x150   : > { %9020 = vst [vmem:[#allocation57_spill] sm:$0xff] %v7615_v43 }
 0x151   : > { %888 = vmatmul.bf16.gmra.mxu0 %v7268_v57  ;;  %1652 = vmatmul.bf16.gmra.mxu1 %v7421_v52 }
 0x152   : > { %1221 = vmatmul.bf16.gmra.mxu3 %v7589_v4 }
 0x153   : > { %2000 = vmatmul.bf16.gmra.mxu2 %v7596_v45 }
 0x155   : > { %v7609_v11 = vpop.f32.mrf.mxu3 }
 0x156   : > { %v1961_v50 = vpop.f32.mrf.mxu2  ;;  %v7613_v57 = vpop.f32.mrf.mxu0 }
 0x157   : > { %v7611_v12 = vadd.f32 %v1961_v50, %v1260_v49  ;;  %9019 = vst [vmem:[#allocation56_spill] sm:$0xff] %v7613_v57  ;;  %v7637_v14 = vpop.f32.mrf.mxu1 }
 0x158   : > { %9022 = vst [vmem:[#allocation59_spill] sm:$0xff] %v7637_v14  ;;  %v7676_v14 = vld [vmem:[#allocation2 + $0x70] sm:$0xff] }
 0x15d   : > { %v7619_v1 = vpop.f32.mrf.mxu3 }
 0x15e   : > { %9021 = vst [vmem:[#allocation58_spill] sm:$0xff] %v7619_v1  ;;  %v1963_v63 = vpop.f32.mrf.mxu2  ;;  %v7625_v10 = vpop.f32.mrf.mxu0 }
 0x15f   : > { %v7623_v19 = vadd.f32 %v1963_v63, %v1261_v22  ;;  %v7653_v41 = vpop.f32.mrf.mxu1 }
 0x160   : > { %9025 = vst [vmem:[#allocation62_spill] sm:$0xff] %v7653_v41 }
 0x161   : > { %893 = vmatmul.bf16.gmra.mxu0 %v7275_v60  ;;  %v1263_v60 = vadd.f32 %v7507_v40, %v7352_v21  ;;  %v1264_v21 = vadd.f32 %v7529_v15, %v7360_v25  ;;  %1657 = vmatmul.bf16.gmra.mxu1 %v7454_v6  ;;  %v1266_v25 = vadd.f32 %v7568_v42, %v7391_v37  ;;  %v7701_v37 = vld [vmem:[#allocation2 + $0x78] sm:$0xff] }
 0x162   : > { %1226 = vmatmul.bf16.gmra.mxu3 %v7621_v53  ;;  %9034 = vst [vmem:[#allocation71_spill] sm:$0xff] %v7701_v37  ;;  %v1268_v42 = vadd.f32 %v7609_v11, %v7426_v54 }
 0x163   : > { %2005 = vmatmul.bf16.gmra.mxu2 %v7627_v32 }
 0x165   : > { %v7635_v61 = vpop.f32.mrf.mxu3 }
 0x166   : > { %v1966_v22 = vpop.f32.mrf.mxu2  ;;  %v7641_v49 = vpop.f32.mrf.mxu0  ;;  %v1270_v11 = vadd.f32 %v7635_v61, %v7456_v8 }
 0x167   : > { %v7639_v63 = vadd.f32 %v1966_v22, %v1262_v13  ;;  %9023 = vst [vmem:[#allocation60_spill] sm:$0xff] %v7641_v49  ;;  %v6891_v13 = vld [vmem:[%s8959_s1 + $0x230] sm:$0xff]  ;;  %v7668_v49 = vpop.f32.mrf.mxu1 }
 0x168   : > { %2409 = vmatpush.bf16.msrb.mxu0 %v6891_v13  ;;  %9027 = vst [vmem:[#allocation64_spill] sm:$0xff] %v7668_v49 }
 0x16d   : > { %v7645_v50 = vpop.f32.mrf.mxu3 }
 0x16e   : > { %9024 = vst [vmem:[#allocation61_spill] sm:$0xff] %v7645_v50  ;;  %v1968_v57 = vpop.f32.mrf.mxu2  ;;  %v7649_v1 = vpop.f32.mrf.mxu0 }
 0x16f   : > { %v7647_v43 = vadd.f32 %v1968_v57, %v1263_v60  ;;  %v7681_v15 = vpop.f32.mrf.mxu1 }
 0x170   : > { %9029 = vst [vmem:[#allocation66_spill] sm:$0xff] %v7681_v15 }
 0x171   : > { %1389 = vmatmul.bf16.vlgmr.msra.gmra.mxu0 %v7283_v62  ;;  %1662 = vmatmul.bf16.gmra.mxu1 %v7481_v59 }
 0x172   : > { %2188 = vmatmul.bf16.vlgmr.msra.gmra.mxu3 %v7343_v18 }
 0x173   : > { %2010 = vmatmul.bf16.gmra.mxu2 %v7651_v17 }
 0x175   : > { %v1192_v40 = vpop.f32.mrf.mxu3 }
 0x176   : > { %v1971_v57 = vpop.f32.mrf.mxu2  ;;  %v7666_v60 = vpop.f32.mrf.mxu0  ;;  %v1272_v8 = vadd.f32 %v1192_v40, %v7483_v58  ;;  %v6888_v58 = vld [vmem:[%s8959_s1 + $0x218] sm:$0xff] }
 0x177   : > { %v7664_v22 = vadd.f32 %v1971_v57, %v1264_v21  ;;  %9026 = vst [vmem:[#allocation63_spill] sm:$0xff] %v7666_v60  ;;  %v1618_v15 = vpop.f32.mrf.mxu1 }
 0x17d   : > { %v7670_v13 = vpop.f32.mrf.mxu3 }
 0x17e   : > { %9028 = vst [vmem:[#allocation65_spill] sm:$0xff] %v7670_v13  ;;  %v7672_v62 = vpop.f32.mrf.mxu2  ;;  %v7674_v41 = vpop.f32.mrf.mxu0 }
 0x181   : > { %1394 = vmatmul.bf16.gmra.mxu0 %v7298_v2  ;;  %v6890_v2 = vld [vmem:[%s8959_s1 + $0x228] sm:$0xff]  ;;  %1667 = vmatmul.bf16.gmra.mxu1 %v7511_v29 }
 0x182   : > { %2193 = vmatmul.bf16.gmra.mxu3 %v7362_v26  ;;  %2410 = vmatpush.bf16.msrb.mxu0 %v6890_v2 }
 0x183   : > { %2015 = vmatmul.bf16.gmra.mxu2 %v7676_v14 }
 0x185   : > { %v7686_v21 = vpop.f32.mrf.mxu3 }
 0x186   : > { %v1976_v57 = vpop.f32.mrf.mxu2  ;;  %v7690_v49 = vpop.f32.mrf.mxu0  ;;  %v1274_v40 = vadd.f32 %v7686_v21, %v7513_v23 }
 0x187   : > { %v7688_v60 = vadd.f32 %v1976_v57, %v1266_v25  ;;  %9031 = vst [vmem:[#allocation68_spill] sm:$0xff] %v7690_v49 }
 0x189   : > { %9030 = vst [vmem:[#allocation67_spill] sm:$0xff] %v7688_v60 }
 0x18d   : > { %v7695_v26 = vpop.f32.mrf.mxu3 }
 0x18e   : > { %9032 = vst [vmem:[#allocation69_spill] sm:$0xff] %v7695_v26  ;;  %v7697_v13 = vpop.f32.mrf.mxu2  ;;  %v7699_v18 = vpop.f32.mrf.mxu0 }
 0x18f   : > { %9033 = vst [vmem:[#allocation70_spill] sm:$0xff] %v7697_v13  ;;  %v1620_v26 = vpop.f32.mrf.mxu1 }
 0x191   : > { %1399 = vmatmul.bf16.gmra.mxu0 %v7316_v7  ;;  %1672 = vmatmul.bf16.gmra.mxu1 %v7547_v34 }
 0x192   : > { %2198 = vmatmul.bf16.gmra.mxu3 %v7393_v38  ;;  %v7717_v38 = vld [vmem:[#allocation2 + $0x28] sm:$0xff] }
 0x193   : > { %2020 = vmatmul.bf16.gmra.mxu2 %v7701_v37 }
 0x195   : > { %v1202_v25 = vpop.f32.mrf.mxu3 }
 0x196   : > { %v1981_v57 = vpop.f32.mrf.mxu2  ;;  %v7711_v49 = vpop.f32.mrf.mxu0  ;;  %v1276_v21 = vadd.f32 %v1202_v25, %v7552_v33  ;;  %v6887_v33 = vld [vmem:[%s8959_s1 + $0x210] sm:$0xff] }
 0x197   : > { %v7709_v2 = vadd.f32 %v1981_v57, %v1268_v42  ;;  %9036 = vst [vmem:[#allocation73_spill] sm:$0xff] %v7711_v49  ;;  %v1623_v13 = vpop.f32.mrf.mxu1 }
 0x199   : > { %9035 = vst [vmem:[#allocation72_spill] sm:$0xff] %v7709_v2 }
 0x19d   : > { %v7713_v50 = vpop.f32.mrf.mxu3 }
 0x19e   : > { %9037 = vst [vmem:[#allocation74_spill] sm:$0xff] %v7713_v50  ;;  %v7715_v60 = vpop.f32.mrf.mxu2  ;;  %v874_v7 = vpop.f32.mrf.mxu0 }
 0x19f   : > { %v7719_v37 = vadd.f32 %v1618_v15, %v874_v7  ;;  %v6889_v15 = vld [vmem:[%s8959_s1 + $0x220] sm:$0xff] }
 0x1a0   : > { %2411 = vmatpush.bf16.msrb.mxu0 %v6889_v15 }
 0x1a1   : > { %9038 = vst [vmem:[#allocation75_spill] sm:$0xff] %v7719_v37  ;;  %1404 = vmatmul.bf16.gmra.mxu0 %v7323_v9  ;;  %v1625_v9 = vpop.f32.mrf.mxu1  ;;  %1677 = vmatmul.bf16.gmra.mxu1 %v7589_v4 }
 0x1a2   : > { %2203 = vmatmul.bf16.gmra.mxu3 %v7428_v55 }
 0x1a3   : > { %2025 = vmatmul.bf16.gmra.mxu2 %v7717_v38 }
 0x1a4   : > { %2412 = vmatpush.bf16.msrb.mxu0 %v6888_v58 }
 0x1a5   : > { %v1207_v54 = vpop.f32.mrf.mxu3 }
 0x1a6   : > { %v1986_v42 = vpop.f32.mrf.mxu2  ;;  %v876_v49 = vpop.f32.mrf.mxu0  ;;  %v1278_v25 = vadd.f32 %v1207_v54, %v7594_v51  ;;  %v6920_v51 = vld [vmem:[%s8961_s3 + $0x78] sm:$0xff] }
 0x1a7   : > { %v7727_v57 = vadd.f32 %v1986_v42, %v1270_v11  ;;  %v7732_v7 = vadd.f32 %v1620_v26, %v876_v49  ;;  %v6912_v54 = vld [vmem:[%s8961_s3 + $0x38] sm:$0xff]  ;;  %3343 = vmatpush.bf16.msra.mxu2 %v6920_v51 }
 0x1a8   : > { %2413 = vmatpush.bf16.msrb.mxu0 %v6887_v33  ;;  %3185 = vmatpush.bf16.msra.mxu1 %v6912_v54 }
 0x1a9   : > { %9039 = vst [vmem:[#allocation76_spill] sm:$0xff] %v7732_v7  ;;  %v1628_v26 = vpop.f32.mrf.mxu1 }
 0x1ad   : > { %v7734_v37 = vpop.f32.mrf.mxu3 }
 0x1ae   : > { %v7736_v55 = vpop.f32.mrf.mxu2  ;;  %v879_v50 = vpop.f32.mrf.mxu0 }
 0x1af   : > { %v7738_v2 = vadd.f32 %v1623_v13, %v879_v50 }
 0x1b1   : > { %9040 = vst [vmem:[#allocation77_spill] sm:$0xff] %v7738_v2  ;;  %1409 = vmatmul.bf16.gmra.mxu0 %v7339_v16  ;;  %v7752_v16 = vpop.f32.mrf.mxu1  ;;  %1682 = vmatmul.bf16.gmra.mxu1 %v7621_v53 }
 0x1b2   : > { %2208 = vmatmul.bf16.gmra.mxu3 %v7458_v27  ;;  %9042 = vst [vmem:[#allocation79_spill] sm:$0xff] %v7752_v16 }
 0x1b5   : > { %v1212_v61 = vpop.f32.mrf.mxu3 }
 0x1b6   : > { %v1991_v49 = vpop.f32.mrf.mxu2  ;;  %v881_v42 = vpop.f32.mrf.mxu0 }
 0x1b7   : > { %v7744_v11 = vadd.f32 %v1991_v49, %v1272_v8  ;;  %v7746_v15 = vadd.f32 %v1625_v9, %v881_v42 }
 0x1b9   : > { %9041 = vst [vmem:[#allocation78_spill] sm:$0xff] %v7746_v15 }
 0x1bd   : > { %v7748_v7 = vpop.f32.mrf.mxu3 }
 0x1be   : > { %v7750_v50 = vpop.f32.mrf.mxu2  ;;  %v884_v13 = vpop.f32.mrf.mxu0 }
 0x1bf   : > { %v7754_v2 = vadd.f32 %v1628_v26, %v884_v13 }
 0x1c1   : > { %9043 = vst [vmem:[#allocation80_spill] sm:$0xff] %v7754_v2  ;;  %1414 = vmatmul.bf16.gmra.mxu0 %v7358_v24  ;;  %v1633_v24 = vpop.f32.mrf.mxu1 }
 0x1c2   : > { %2213 = vmatmul.bf16.gmra.mxu3 %v7485_v5 }
 0x1c5   : > { %v7764_v9 = vpop.f32.mrf.mxu3 }
 0x1c6   : > { %v1996_v8 = vpop.f32.mrf.mxu2  ;;  %v7768_v26 = vpop.f32.mrf.mxu0 }
 0x1c7   : > { %v7766_v49 = vadd.f32 %v1996_v8, %v1274_v40  ;;  %9044 = vst [vmem:[#allocation81_spill] sm:$0xff] %v7768_v26 }
 0x1c9   : > { %v7778_v23 = vpop.f32.mrf.mxu1 }
 0x1ca   : > { %9046 = vst [vmem:[#allocation83_spill] sm:$0xff] %v7778_v23 }
 0x1cd   : > { %v7770_v42 = vpop.f32.mrf.mxu3 }
 0x1ce   : > { %v7772_v13 = vpop.f32.mrf.mxu2  ;;  %v889_v2 = vpop.f32.mrf.mxu0 }
 0x1cf   : > { %v7774_v16 = vadd.f32 %v1633_v24, %v889_v2 }
 0x1d1   : > { %9045 = vst [vmem:[#allocation82_spill] sm:$0xff] %v7774_v16  ;;  %1419 = vmatmul.bf16.gmra.mxu0 %v7386_v35  ;;  %v1638_v2 = vpop.f32.mrf.mxu1 }
 0x1d2   : > { %2218 = vmatmul.bf16.gmra.mxu3 %v7515_v20 }
 0x1d5   : > { %v7782_v58 = vpop.f32.mrf.mxu3 }
 0x1d6   : > { %v2001_v40 = vpop.f32.mrf.mxu2  ;;  %v7786_v26 = vpop.f32.mrf.mxu0 }
 0x1d7   : > { %v7784_v8 = vadd.f32 %v2001_v40, %v1276_v21  ;;  %9047 = vst [vmem:[#allocation84_spill] sm:$0xff] %v7786_v26 }
 0x1dd   : > { %v7788_v15 = vpop.f32.mrf.mxu3 }
 0x1de   : > { %9048 = vst [vmem:[#allocation85_spill] sm:$0xff] %v7788_v15  ;;  %v7790_v24 = vpop.f32.mrf.mxu2  ;;  %v894_v35 = vpop.f32.mrf.mxu0 }
 0x1df   : > { %v7792_v16 = vadd.f32 %v1638_v2, %v894_v35 }
 0x1e1   : > { %9049 = vst [vmem:[#allocation86_spill] sm:$0xff] %v7792_v16  ;;  %1424 = vmatmul.bf16.gmra.mxu0 %v7421_v52 }
 0x1e2   : > { %2223 = vmatmul.bf16.gmra.mxu3 %v7554_v28 }
 0x1e5   : > { %v7800_v21 = vpop.f32.mrf.mxu3 }
 0x1e6   : > { %v2006_v40 = vpop.f32.mrf.mxu2  ;;  %v7804_v26 = vpop.f32.mrf.mxu0 }
 0x1e7   : > { %v7802_v23 = vadd.f32 %v2006_v40, %v1278_v25  ;;  %9050 = vst [vmem:[#allocation87_spill] sm:$0xff] %v7804_v26  ;;  %v1280_v25 = vadd.f32 %v1212_v61, %v7625_v10 }
 0x1ed   : > { %v7806_v2 = vpop.f32.mrf.mxu3 }
 0x1ee   : > { %9051 = vst [vmem:[#allocation88_spill] sm:$0xff] %v7806_v2  ;;  %v7808_v35 = vpop.f32.mrf.mxu2  ;;  %v1390_v52 = vpop.f32.mrf.mxu0  ;;  %v6886_v2 = vld [vmem:[%s8959_s1 + $0x208] sm:$0xff] }
 0x1ef   : > { %v1488_v33 = vadd.f32 %v1390_v52, %v7395_v39  ;;  %2414 = vmatpush.bf16.msrb.mxu0 %v6886_v2 }
 0x1f1   : > { %1429 = vmatmul.bf16.gmra.mxu0 %v7454_v6 }
 0x1f2   : > { %2228 = vmatmul.bf16.gmra.mxu3 %v7596_v45 }
 0x1f5   : > { %v2189_v40 = vpop.f32.mrf.mxu3 }
 0x1f6   : > { %v2011_v16 = vpop.f32.mrf.mxu2  ;;  %v2287_v26 = vadd.f32 %v2189_v40, %v1488_v33  ;;  %v1392_v45 = vpop.f32.mrf.mxu0 }
 0x1f7   : > { %v7820_v6 = vadd.f32 %v2011_v16, %v1280_v25  ;;  %v1489_v28 = vadd.f32 %v1392_v45, %v7412_v47 }
 0x1f8   : > { %v2656_v61 = vrot.slane %v2287_v26, 1 }
 0x1fd   : > { %v2191_v15 = vpop.f32.mrf.mxu3 }
 0x1fe   : > { %v7826_v20 = vpop.f32.mrf.mxu2  ;;  %v2288_v39 = vadd.f32 %v2191_v15, %v1489_v28  ;;  %v1395_v10 = vpop.f32.mrf.mxu0  ;;  %v1282_v28 = vadd.f32 %v7764_v9, %v7649_v1 }
 0x1ff   : > { %v1490_v47 = vadd.f32 %v1395_v10, %v7430_v56 }
 0x200   : > { %v2657_v52 = vrot.slane %v2288_v39, 1 }
 0x201   : > { %1434 = vmatmul.bf16.gmra.mxu0 %v7481_v59 }
 0x202   : > { %v2658_v51 = vsel %vm2655_vm0, %v2656_v61, %v2657_v52  ;;  %v7830_v16 = vadd.f32 %v2657_v52, %v7623_v19  ;;  %2233 = vmatmul.bf16.gmra.mxu3 %v7627_v32  ;;  %v6919_v19 = vld [vmem:[%s8961_s3 + $0x70] sm:$0xff]  ;;  %v1284_v52 = vadd.f32 %v7782_v58, %v7674_v41  ;;  %v1265_v41 = vadd.f32 %v7543_v0, %v7377_v31 }
 0x203   : > { %v7835_v2 = vadd.f32 %v2658_v51, %v7611_v12  ;;  %3344 = vmatpush.bf16.msra.mxu2 %v6919_v19  ;;  %v1286_v31 = vadd.f32 %v7800_v21, %v7699_v18 }
 0x205   : > { %v2194_v45 = vpop.f32.mrf.mxu3 }
 0x206   : > { %v2016_v15 = vpop.f32.mrf.mxu2  ;;  %v2289_v26 = vadd.f32 %v2194_v45, %v1490_v47  ;;  %v1397_v33 = vpop.f32.mrf.mxu0 }
 0x207   : > { %v7840_v54 = vadd.f32 %v2016_v15, %v1282_v28  ;;  %v1491_v59 = vadd.f32 %v1397_v33, %v7445_v3  ;;  %v6911_v3 = vld [vmem:[%s8961_s3 + $0x30] sm:$0xff] }
 0x208   : > { %v2659_v39 = vrot.slane %v2289_v26, 1  ;;  %3186 = vmatpush.bf16.msra.mxu1 %v6911_v3 }
 0x20d   : > { %v2196_v12 = vpop.f32.mrf.mxu3 }
 0x20e   : > { %v7846_v25 = vpop.f32.mrf.mxu2  ;;  %v2290_v56 = vadd.f32 %v2196_v12, %v1491_v59  ;;  %v1400_v40 = vpop.f32.mrf.mxu0  ;;  %v2064_v59 = vadd.f32 %v7672_v62, %v1265_v41 }
 0x210   : > { %v2660_v1 = vrot.slane %v2290_v56, 1 }
 0x211   : > { %1439 = vmatmul.bf16.gmra.mxu0 %v7511_v29  ;;  %v6885_v29 = vld [vmem:[%s8959_s1 + $0x200] sm:$0xff] }
 0x212   : > { %v2661_v9 = vsel %vm2655_vm0, %v2659_v39, %v2660_v1  ;;  %v7850_v10 = vadd.f32 %v2660_v1, %v7647_v43  ;;  %2238 = vmatmul.bf16.gmra.mxu3 %v7651_v17  ;;  %2415 = vmatpush.bf16.msrb.mxu0 %v6885_v29  ;;  %v9053_v29 = vld [vmem:[#allocation70_spill] sm:$0xff] }
 0x213   : > { %v7855_v61 = vadd.f32 %v2661_v9, %v7639_v63  ;;  %v1492_v63 = vadd.f32 %v1400_v40, %v7460_v30  ;;  %v6918_v9 = vld [vmem:[%s8961_s3 + $0x68] sm:$0xff] }
 0x214   : > { %3345 = vmatpush.bf16.msra.mxu2 %v6918_v9 }
 0x215   : > { %v2199_v51 = vpop.f32.mrf.mxu3 }
 0x216   : > { %v2021_v47 = vpop.f32.mrf.mxu2  ;;  %v1402_v43 = vpop.f32.mrf.mxu0  ;;  %v2291_v45 = vadd.f32 %v2199_v51, %v1492_v63 }
 0x217   : > { %v7862_v28 = vadd.f32 %v2021_v47, %v1284_v52  ;;  %v1493_v15 = vadd.f32 %v1402_v43, %v7475_v48  ;;  %v9052_v52 = vld [vmem:[#allocation52_spill] sm:$0xff] }
 0x218   : > { %v2662_v12 = vrot.slane %v2291_v45, 1  ;;  %v1267_v51 = vadd.f32 %v9052_v52, %v7410_v46  ;;  %v9056_v46 = vld [vmem:[#allocation42_spill] sm:$0xff] }
 0x21a   : > { %v2066_v63 = vadd.f32 %v9053_v29, %v1267_v51  ;;  %v9060_v51 = vld [vmem:[#allocation72_spill] sm:$0xff] }
 0x21d   : > { %v2201_v26 = vpop.f32.mrf.mxu3 }
 0x21e   : > { %v7871_v58 = vpop.f32.mrf.mxu2  ;;  %v2292_v33 = vadd.f32 %v2201_v26, %v1493_v15  ;;  %v1405_v19 = vpop.f32.mrf.mxu0 }
 0x21f   : > { %v1494_v3 = vadd.f32 %v1405_v19, %v7487_v36  ;;  %v9054_v36 = vld [vmem:[#allocation71_spill] sm:$0xff] }
 0x220   : > { %v2663_v56 = vrot.slane %v2292_v33, 1  ;;  %v9055_v33 = vld [vmem:[#allocation67_spill] sm:$0xff] }
 0x221   : > { %1444 = vmatmul.bf16.gmra.mxu0 %v7547_v34  ;;  %v6910_v34 = vld [vmem:[%s8961_s3 + $0x28] sm:$0xff] }
 0x222   : > { %v2664_v39 = vsel %vm2655_vm0, %v2662_v12, %v2663_v56  ;;  %v7875_v1 = vadd.f32 %v2663_v56, %v2064_v59  ;;  %2243 = vmatmul.bf16.gmra.mxu3 %v7676_v14  ;;  %3187 = vmatpush.bf16.msra.mxu1 %v6910_v34 }
 0x223   : > { %v7880_v30 = vadd.f32 %v2664_v39, %v7664_v22  ;;  %v9057_v39 = vld [vmem:[#allocation45_spill] sm:$0xff] }
 0x225   : > { %v2204_v48 = vpop.f32.mrf.mxu3 }
 0x226   : > { %v2026_v0 = vpop.f32.mrf.mxu2  ;;  %v1407_v62 = vpop.f32.mrf.mxu0  ;;  %v2293_v22 = vadd.f32 %v2204_v48, %v1494_v3 }
 0x227   : > { %v7884_v40 = vadd.f32 %v2026_v0, %v1286_v31  ;;  %v1495_v18 = vadd.f32 %v1407_v62, %v7502_v44  ;;  %v9058_v0 = vld [vmem:[#allocation32_spill] sm:$0xff]  ;;  %v9059_v62 = vld [vmem:[#allocation58_spill] sm:$0xff] }
 0x228   : > { %v2665_v45 = vrot.slane %v2293_v22, 1  ;;  %v1269_v9 = vadd.f32 %v9059_v62, %v9058_v0 }
 0x22d   : > { %v2206_v21 = vpop.f32.mrf.mxu3 }
 0x22e   : > { %v2294_v47 = vadd.f32 %v2206_v21, %v1495_v18  ;;  %v1410_v43 = vpop.f32.mrf.mxu0 }
 0x22f   : > { %v1496_v12 = vadd.f32 %v1410_v43, %v9056_v46  ;;  %v6917_v43 = vld [vmem:[%s8961_s3 + $0x60] sm:$0xff] }
 0x230   : > { %v2666_v15 = vrot.slane %v2294_v47, 1  ;;  %3346 = vmatpush.bf16.msra.mxu2 %v6917_v43 }
 0x231   : > { %1449 = vmatmul.bf16.gmra.mxu0 %v7589_v4  ;;  %v2068_v4 = vadd.f32 %v7715_v60, %v1269_v9  ;;  %v9065_v9 = vld [vmem:[#allocation14_spill] sm:$0xff] }
 0x232   : > { %v2667_v26 = vsel %vm2655_vm0, %v2665_v45, %v2666_v15  ;;  %v7898_v41 = vadd.f32 %v2666_v15, %v2066_v63  ;;  %2248 = vmatmul.bf16.gmra.mxu3 %v9054_v36  ;;  %v6909_v63 = vld [vmem:[%s8961_s3 + $0x20] sm:$0xff] }
 0x233   : > { %v7903_v44 = vadd.f32 %v2667_v26, %v9055_v33  ;;  %v9061_v45 = vld [vmem:[#allocation48_spill] sm:$0xff]  ;;  %3188 = vmatpush.bf16.msra.mxu1 %v6909_v63  ;;  %v9062_v26 = vld [vmem:[#allocation51_spill] sm:$0xff] }
 0x235   : > { %v2209_v19 = vpop.f32.mrf.mxu3 }
 0x236   : > { %v1412_v59 = vpop.f32.mrf.mxu0  ;;  %v2295_v56 = vadd.f32 %v2209_v19, %v1496_v12  ;;  %v9063_v19 = vld [vmem:[#allocation36_spill] sm:$0xff] }
 0x237   : > { %v1497_v31 = vadd.f32 %v1412_v59, %v9057_v39  ;;  %v9064_v59 = vld [vmem:[#allocation61_spill] sm:$0xff] }
 0x238   : > { %v2668_v22 = vrot.slane %v2295_v56, 1  ;;  %v1271_v46 = vadd.f32 %v9064_v59, %v9063_v19  ;;  %v9070_v19 = vld [vmem:[#allocation19_spill] sm:$0xff] }
 0x23a   : > { %v2070_v39 = vadd.f32 %v7736_v55, %v1271_v46  ;;  %v9068_v55 = vld [vmem:[#allocation39_spill] sm:$0xff] }
 0x23b   : > { %v6916_v46 = vld [vmem:[%s8961_s3 + $0x58] sm:$0xff] }
 0x23c   : > { %3347 = vmatpush.bf16.msra.mxu2 %v6916_v46 }
 0x23d   : > { %v2211_v48 = vpop.f32.mrf.mxu3 }
 0x23e   : > { %v2296_v34 = vadd.f32 %v2211_v48, %v1497_v31  ;;  %v1415_v3 = vpop.f32.mrf.mxu0 }
 0x23f   : > { %v1498_v15 = vadd.f32 %v1415_v3, %v9061_v45 }
 0x240   : > { %v2669_v18 = vrot.slane %v2296_v34, 1 }
 0x241   : > { %1454 = vmatmul.bf16.gmra.mxu0 %v7621_v53 }
 0x242   : > { %v2670_v21 = vsel %vm2655_vm0, %v2668_v22, %v2669_v18  ;;  %v7911_v52 = vadd.f32 %v2669_v18, %v2068_v4  ;;  %2253 = vmatmul.bf16.gmra.mxu3 %v7717_v38  ;;  %v9066_v22 = vld [vmem:[#allocation55_spill] sm:$0xff] }
 0x243   : > { %v7916_v47 = vadd.f32 %v2670_v21, %v9060_v51  ;;  %v9067_v51 = vld [vmem:[#allocation57_spill] sm:$0xff] }
 0x245   : > { %v2214_v29 = vpop.f32.mrf.mxu3 }
 0x246   : > { %v1417_v60 = vpop.f32.mrf.mxu0  ;;  %v2297_v53 = vadd.f32 %v2214_v29, %v1498_v15 }
 0x247   : > { %v1499_v38 = vadd.f32 %v1417_v60, %v9062_v26  ;;  %v9069_v60 = vld [vmem:[#allocation65_spill] sm:$0xff] }
 0x248   : > { %v2671_v31 = vrot.slane %v2297_v53, 1  ;;  %v1273_v63 = vadd.f32 %v9069_v60, %v9068_v55 }
 0x24a   : > { %v2072_v53 = vadd.f32 %v7750_v50, %v1273_v63  ;;  %v9075_v63 = vld [vmem:[#allocation24_spill] sm:$0xff] }
 0x24d   : > { %v2216_v33 = vpop.f32.mrf.mxu3 }
 0x24e   : > { %v2298_v12 = vadd.f32 %v2216_v33, %v1499_v38  ;;  %v1420_v56 = vpop.f32.mrf.mxu0 }
 0x24f   : > { %v1500_v18 = vadd.f32 %v1420_v56, %v9066_v22 }
 0x250   : > { %v2672_v48 = vrot.slane %v2298_v12, 1  ;;  %v6908_v12 = vld [vmem:[%s8961_s3 + $0x18] sm:$0xff] }
 0x251   : > { %2416 = vmatmul.bf16.vlgmr.msrb.gmra.mxu0 %v9065_v9  ;;  %3189 = vmatpush.bf16.msra.mxu1 %v6908_v12 }
 0x252   : > { %v2673_v0 = vsel %vm2655_vm0, %v2671_v31, %v2672_v48  ;;  %v7930_v62 = vadd.f32 %v2672_v48, %v2070_v39  ;;  %v9071_v39 = vld [vmem:[#allocation59_spill] sm:$0xff] }
 0x253   : > { %v7934_v34 = vadd.f32 %v2673_v0, %v7727_v57  ;;  %v9072_v0 = vld [vmem:[#allocation62_spill] sm:$0xff] }
 0x255   : > { %v2219_v3 = vpop.f32.mrf.mxu3 }
 0x256   : > { %v1422_v4 = vpop.f32.mrf.mxu0  ;;  %v2299_v21 = vadd.f32 %v2219_v3, %v1500_v18 }
 0x257   : > { %v1501_v43 = vadd.f32 %v1422_v4, %v9067_v51  ;;  %v9074_v4 = vld [vmem:[#allocation69_spill] sm:$0xff] }
 0x258   : > { %v2674_v26 = vrot.slane %v2299_v21, 1 }
 0x25d   : > { %v2221_v29 = vpop.f32.mrf.mxu3 }
 0x25e   : > { %v2300_v45 = vadd.f32 %v2221_v29, %v1501_v43  ;;  %v1425_v15 = vpop.f32.mrf.mxu0 }
 0x25f   : > { %v1502_v31 = vadd.f32 %v1425_v15, %v9071_v39 }
 0x260   : > { %v2675_v38 = vrot.slane %v2300_v45, 1 }
 0x261   : > { %2421 = vmatmul.bf16.gmra.mxu0 %v9070_v19  ;;  %v9077_v19 = vld [vmem:[#allocation66_spill] sm:$0xff] }
 0x262   : > { %v2676_v57 = vsel %vm2655_vm0, %v2674_v26, %v2675_v38  ;;  %v7942_v33 = vadd.f32 %v2675_v38, %v2072_v53  ;;  %v6915_v26 = vld [vmem:[%s8961_s3 + $0x50] sm:$0xff]  ;;  %v9076_v38 = vld [vmem:[#allocation64_spill] sm:$0xff] }
 0x263   : > { %v7946_v59 = vadd.f32 %v2676_v57, %v7744_v11  ;;  %v9073_v11 = vld [vmem:[#allocation44_spill] sm:$0xff]  ;;  %3348 = vmatpush.bf16.msra.mxu2 %v6915_v26 }
 0x264   : > { %v1275_v22 = vadd.f32 %v9074_v4, %v9073_v11  ;;  %v9080_v4 = vld [vmem:[#allocation29_spill] sm:$0xff] }
 0x265   : > { %v2224_v50 = vpop.f32.mrf.mxu3 }
 0x266   : > { %v1427_v56 = vpop.f32.mrf.mxu0  ;;  %v2301_v48 = vadd.f32 %v2224_v50, %v1502_v31  ;;  %v2074_v51 = vadd.f32 %v7772_v13, %v1275_v22  ;;  %v9078_v50 = vld [vmem:[#allocation50_spill] sm:$0xff] }
 0x267   : > { %v1503_v9 = vadd.f32 %v1427_v56, %v9072_v0  ;;  %v9079_v56 = vld [vmem:[#allocation74_spill] sm:$0xff] }
 0x268   : > { %v2677_v43 = vrot.slane %v2301_v48, 1  ;;  %v1277_v39 = vadd.f32 %v9079_v56, %v9078_v50 }
 0x26d   : > { %v2226_v3 = vpop.f32.mrf.mxu3 }
 0x26e   : > { %v2302_v18 = vadd.f32 %v2226_v3, %v1503_v9  ;;  %v1430_v21 = vpop.f32.mrf.mxu0 }
 0x26f   : > { %v1504_v57 = vadd.f32 %v1430_v21, %v9076_v38 }
 0x270   : > { %v2678_v29 = vrot.slane %v2302_v18, 1  ;;  %v6907_v18 = vld [vmem:[%s8961_s3 + $0x10] sm:$0xff] }
 0x271   : > { %2426 = vmatmul.bf16.gmra.mxu0 %v9075_v63  ;;  %3190 = vmatpush.bf16.msra.mxu1 %v6907_v18 }
 0x272   : > { %v2679_v55 = vsel %vm2655_vm0, %v2677_v43, %v2678_v29  ;;  %v7960_v60 = vadd.f32 %v2678_v29, %v2074_v51  ;;  %v9081_v43 = vld [vmem:[#allocation10_spill] sm:$0xff] }
 0x273   : > { %v7964_v45 = vadd.f32 %v2679_v55, %v7766_v49  ;;  %v2076_v49 = vadd.f32 %v7790_v24, %v1277_v39  ;;  %v9082_v55 = vld [vmem:[#allocation12_spill] sm:$0xff] }
 0x275   : > { %v2229_v15 = vpop.f32.mrf.mxu3 }
 0x276   : > { %v1432_v53 = vpop.f32.mrf.mxu0  ;;  %v2303_v13 = vadd.f32 %v2229_v15, %v1504_v57 }
 0x277   : > { %v1505_v46 = vadd.f32 %v1432_v53, %v9077_v19  ;;  %v9083_v53 = vld [vmem:[#allocation56_spill] sm:$0xff] }
 0x278   : > { %v2680_v0 = vrot.slane %v2303_v13, 1  ;;  %v1279_v26 = vadd.f32 %v7734_v37, %v9083_v53  ;;  %v6914_v37 = vld [vmem:[%s8961_s3 + $0x48] sm:$0xff]  ;;  %v9087_v53 = vld [vmem:[#allocation20_spill] sm:$0xff] }
 0x279   : > { %3349 = vmatpush.bf16.msra.mxu2 %v6914_v37 }
 0x27d   : > { %v2231_v12 = vpop.f32.mrf.mxu3 }
 0x27e   : > { %v2304_v31 = vadd.f32 %v2231_v12, %v1505_v46  ;;  %v1435_v48 = vpop.f32.mrf.mxu0 }
 0x27f   : > { %v1506_v24 = vadd.f32 %v1435_v48, %v9081_v43 }
 0x280   : > { %v2681_v9 = vrot.slane %v2304_v31, 1  ;;  %v9084_v31 = vld [vmem:[#allocation15_spill] sm:$0xff] }
 0x281   : > { %2431 = vmatmul.bf16.gmra.mxu0 %v9080_v4 }
 0x282   : > { %v2682_v3 = vsel %vm2655_vm0, %v2680_v0, %v2681_v9  ;;  %v7975_v11 = vadd.f32 %v2681_v9, %v2076_v49  ;;  %v9085_v0 = vld [vmem:[#allocation17_spill] sm:$0xff] }
 0x283   : > { %v7979_v22 = vadd.f32 %v2682_v3, %v7784_v8  ;;  %v2078_v8 = vadd.f32 %v7808_v35, %v1279_v26  ;;  %v6906_v35 = vld [vmem:[%s8961_s3 + $0x8] sm:$0xff] }
 0x284   : > { %3191 = vmatpush.bf16.msra.mxu1 %v6906_v35 }
 0x285   : > { %v2234_v21 = vpop.f32.mrf.mxu3 }
 0x286   : > { %v1437_v51 = vpop.f32.mrf.mxu0  ;;  %v2305_v29 = vadd.f32 %v2234_v21, %v1506_v24 }
 0x287   : > { %v1507_v63 = vadd.f32 %v1437_v51, %v9082_v55 }
 0x288   : > { %v2683_v13 = vrot.slane %v2305_v29, 1 }
 0x28d   : > { %v2236_v15 = vpop.f32.mrf.mxu3 }
 0x28e   : > { %v2306_v38 = vadd.f32 %v2236_v15, %v1507_v63  ;;  %v1440_v57 = vpop.f32.mrf.mxu0 }
 0x28f   : > { %v1508_v48 = vadd.f32 %v1440_v57, %v9084_v31 }
 0x290   : > { %v2684_v19 = vrot.slane %v2306_v38, 1  ;;  %v9088_v38 = vld [vmem:[#allocation22_spill] sm:$0xff] }
 0x291   : > { %2436 = vmatmul.bf16.gmra.mxu0 %v7458_v27 }
 0x292   : > { %v2685_v46 = vsel %vm2655_vm0, %v2683_v13, %v2684_v19  ;;  %v7990_v12 = vadd.f32 %v2684_v19, %v2078_v8 }
 0x293   : > { %v7994_v50 = vadd.f32 %v2685_v46, %v7802_v23  ;;  %v9086_v23 = vld [vmem:[#allocation60_spill] sm:$0xff]  ;;  %v6928_v46 = vld [vmem:[%s8961_s3 + $0xb8] sm:$0xff] }
 0x294   : > { %v1281_v3 = vadd.f32 %v7748_v7, %v9086_v23  ;;  %3502 = vmatpush.bf16.msrb.mxu3 %v6928_v46  ;;  %v9095_v46 = vld [vmem:[#allocation47_spill] sm:$0xff] }
 0x295   : > { %v2239_v56 = vpop.f32.mrf.mxu3 }
 0x296   : > { %v1442_v39 = vpop.f32.mrf.mxu0  ;;  %v2307_v49 = vadd.f32 %v2239_v56, %v1508_v48  ;;  %v2080_v21 = vadd.f32 %v7826_v20, %v1281_v3  ;;  %v9089_v20 = vld [vmem:[#allocation63_spill] sm:$0xff]  ;;  %v8021_v56 = vpop.f32.mrf.mxu1  ;;  %v9090_v48 = vld [vmem:[#allocation41_spill] sm:$0xff] }
 0x297   : > { %v1509_v27 = vadd.f32 %v1442_v39, %v9085_v0  ;;  %v1283_v13 = vadd.f32 %v7770_v42, %v9089_v20  ;;  %v6927_v42 = vld [vmem:[%s8961_s3 + $0xb0] sm:$0xff]  ;;  %v9091_v3 = vld [vmem:[#allocation25_spill] sm:$0xff] }
 0x298   : > { %v2686_v51 = vrot.slane %v2307_v49, 1  ;;  %3503 = vmatpush.bf16.msrb.mxu3 %v6927_v42 }
 0x29d   : > { %v2241_v9 = vpop.f32.mrf.mxu3 }
 0x29e   : > { %v2308_v4 = vadd.f32 %v2241_v9, %v1509_v27  ;;  %v1445_v18 = vpop.f32.mrf.mxu0  ;;  %v6926_v27 = vld [vmem:[%s8961_s3 + $0xa8] sm:$0xff]  ;;  %v8040_v23 = vpop.f32.mrf.mxu1 }
 0x29f   : > { %v1510_v26 = vadd.f32 %v1445_v18, %v9087_v53  ;;  %3504 = vmatpush.bf16.msrb.mxu3 %v6926_v27  ;;  %v9097_v27 = vld [vmem:[#allocation33_spill] sm:$0xff] }
 0x2a0   : > { %v2687_v43 = vrot.slane %v2308_v4, 1 }
 0x2a1   : > { %2441 = vmatmul.bf16.gmra.mxu0 %v7485_v5 }
 0x2a2   : > { %v2688_v24 = vsel %vm2655_vm0, %v2686_v51, %v2687_v43  ;;  %v8008_v29 = vadd.f32 %v2687_v43, %v2080_v21  ;;  %v9092_v21 = vld [vmem:[#allocation27_spill] sm:$0xff] }
 0x2a3   : > { %v8012_v55 = vadd.f32 %v2688_v24, %v7820_v6  ;;  %v2082_v6 = vadd.f32 %v7846_v25, %v1283_v13  ;;  %v6913_v25 = vld [vmem:[%s8961_s3 + $0x40] sm:$0xff] }
 0x2a4   : > { %3350 = vmatpush.bf16.msra.mxu2 %v6913_v25  ;;  %v9093_v24 = vld [vmem:[#allocation68_spill] sm:$0xff] }
 0x2a5   : > { %v2244_v63 = vpop.f32.mrf.mxu3 }
 0x2a6   : > { %v1447_v15 = vpop.f32.mrf.mxu0  ;;  %v2309_v7 = vadd.f32 %v2244_v63, %v1510_v26  ;;  %v9094_v63 = vld [vmem:[#allocation85_spill] sm:$0xff]  ;;  %v6924_v26 = vld [vmem:[%s8961_s3 + $0x98] sm:$0xff]  ;;  %v8053_v20 = vpop.f32.mrf.mxu1 }
 0x2a7   : > { %v1511_v57 = vadd.f32 %v1447_v15, %v9088_v38  ;;  %v1285_v15 = vadd.f32 %v9094_v63, %v9093_v24 }
 0x2a8   : > { %v2689_v39 = vrot.slane %v2309_v7, 1 }
 0x2a9   : > { %v2084_v38 = vadd.f32 %v7871_v58, %v1285_v15 }
 0x2ad   : > { %v2246_v8 = vpop.f32.mrf.mxu3 }
 0x2ae   : > { %v2310_v19 = vadd.f32 %v2246_v8, %v1511_v57  ;;  %v1450_v5 = vpop.f32.mrf.mxu0  ;;  %v8075_v25 = vpop.f32.mrf.mxu1 }
 0x2af   : > { %v1512_v4 = vadd.f32 %v1450_v5, %v9091_v3  ;;  %v6923_v5 = vld [vmem:[%s8961_s3 + $0x90] sm:$0xff]  ;;  %v2028_v3 = vpop.f32.mrf.mxu2 }
 0x2b0   : > { %v2690_v37 = vrot.slane %v2310_v19, 1 }
 0x2b1   : > { %2446 = vmatmul.bf16.gmra.mxu0 %v9090_v48  ;;  %v9096_v48 = vld [vmem:[#allocation30_spill] sm:$0xff] }
 0x2b2   : > { %v2691_v35 = vsel %vm2655_vm0, %v2689_v39, %v2690_v37  ;;  %v8025_v31 = vadd.f32 %v2690_v37, %v2082_v6  ;;  %v6905_v39 = vld [vmem:[%s8961_s3] sm:$0xff]  ;;  %v6922_v37 = vld [vmem:[%s8961_s3 + $0x88] sm:$0xff] }
 0x2b3   : > { %v8032_v49 = vadd.f32 %v2691_v35, %v7840_v54  ;;  %v6925_v54 = vld [vmem:[%s8961_s3 + $0xa0] sm:$0xff]  ;;  %3192 = vmatpush.bf16.msra.mxu1 %v6905_v39 }
 0x2b4   : > { %3505 = vmatpush.bf16.msrb.mxu3 %v6925_v54  ;;  %v9098_v54 = vld [vmem:[#allocation73_spill] sm:$0xff]  ;;  %v9102_v39 = vld [vmem:[#allocation76_spill] sm:$0xff] }
 0x2b5   : > { %v2249_v0 = vpop.f32.mrf.mxu3 }
 0x2b6   : > { %v1452_v9 = vpop.f32.mrf.mxu0  ;;  %v2311_v18 = vadd.f32 %v2249_v0, %v1512_v4 }
 0x2b7   : > { %v1513_v51 = vadd.f32 %v1452_v9, %v9092_v21 }
 0x2b8   : > { %v2692_v57 = vrot.slane %v2311_v18, 1  ;;  %3506 = vmatpush.bf16.msrb.mxu3 %v6924_v26  ;;  %v9099_v18 = vld [vmem:[#allocation88_spill] sm:$0xff] }
 0x2b9   : > { %v1287_v21 = vadd.f32 %v9099_v18, %v9098_v54 }
 0x2bb   : > { %v2086_v24 = vadd.f32 %v2028_v3, %v1287_v21 }
 0x2bc   : > { %3507 = vmatpush.bf16.msrb.mxu3 %v6923_v5  ;;  %v8094_v5 = vpop.f32.mrf.mxu1 }
 0x2bd   : > { %v2251_v43 = vpop.f32.mrf.mxu3 }
 0x2be   : > { %v2312_v53 = vadd.f32 %v2251_v43, %v1513_v51  ;;  %v1455_v7 = vpop.f32.mrf.mxu0 }
 0x2bf   : > { %v1514_v42 = vadd.f32 %v1455_v7, %v9096_v48  ;;  %v9100_v7 = vld [vmem:[#allocation54_spill] sm:$0xff]  ;;  %v8100_v48 = vld [vmem:[%s8960_s2] ss:$0 sm:$0xff] }
 0x2c0   : > { %v2693_v8 = vrot.slane %v2312_v53, 1  ;;  %3508 = vmatpush.bf16.msrb.mxu3 %v6922_v37 }
 0x2c1   : > { %2451 = vmatmul.bf16.gmra.mxu0 %v9095_v46 }
 0x2c2   : > { %v2694_v13 = vsel %vm2655_vm0, %v2692_v57, %v2693_v8  ;;  %v8056_v19 = vadd.f32 %v2693_v8, %v2084_v38  ;;  %v6956_v57 = vld [vmem:[%s8961_s3 + $0x138] sm:$0xff] }
 0x2c3   : > { %v8063_v6 = vadd.f32 %v2694_v13, %v7862_v28  ;;  %v6921_v28 = vld [vmem:[%s8961_s3 + $0x80] sm:$0xff]  ;;  %v6948_v8 = vld [vmem:[%s8961_s3 + $0xf8] sm:$0xff]  ;;  %3964 = vmatpush.bf16.msrb.mxu2 %v6956_v57 }
 0x2c4   : > { %3509 = vmatpush.bf16.msrb.mxu3 %v6921_v28  ;;  %v9101_v13 = vld [vmem:[#allocation75_spill] sm:$0xff]  ;;  %3758 = vmatpush.bf16.msrb.mxu1 %v6948_v8  ;;  %v8107_v54 = vpop.f32.mrf.mxu1 }
 0x2c5   : > { %v2254_v58 = vpop.f32.mrf.mxu3 }
 0x2c6   : > { %v1457_v35 = vpop.f32.mrf.mxu0  ;;  %v2313_v0 = vadd.f32 %v2254_v58, %v1514_v42 }
 0x2c7   : > { %v1515_v9 = vadd.f32 %v1457_v35, %v9097_v27 }
 0x2c8   : > { %v2695_v63 = vrot.slane %v2313_v0, 1 }
 0x2cd   : > { %v2256_v4 = vpop.f32.mrf.mxu3 }
 0x2ce   : > { %v2314_v51 = vadd.f32 %v2256_v4, %v1515_v9  ;;  %v2417_v43 = vpop.f32.mrf.mxu0 }
 0x2cf   : > { %v2515_v46 = vadd.f32 %v2417_v43, %v9101_v13  ;;  %v9103_v43 = vld [vmem:[#allocation77_spill] sm:$0xff] }
 0x2d0   : > { %v2696_v15 = vrot.slane %v2314_v51, 1 }
 0x2d1   : > { %2456 = vmatmul.bf16.gmra.mxu0 %v9100_v7  ;;  %v8112_v7 = vpop.f32.mrf.mxu1 }
 0x2d2   : > { %v2697_v53 = vsel %vm2655_vm0, %v2695_v63, %v2696_v15  ;;  %v8081_v26 = vadd.f32 %v2696_v15, %v2086_v24  ;;  %v9104_v63 = vld [vmem:[#allocation78_spill] sm:$0xff] }
 0x2d3   : > { %v8085_v38 = vadd.f32 %v2697_v53, %v7884_v40  ;;  %v2811_v40 = vrot.slane %v2515_v46, 2 }
 0x2d6   : > { %v2419_v58 = vpop.f32.mrf.mxu0 }
 0x2d7   : > { %v2516_v37 = vadd.f32 %v2419_v58, %v9102_v39 }
 0x2d9   : > { %v2812_v35 = vrot.slane %v2516_v37, 2 }
 0x2db   : > { %v2813_v42 = vsel %vm2810_vm1, %v2811_v40, %v2812_v35  ;;  %v2882_v28 = vadd.f32 %v2812_v35, %v7830_v16 }
 0x2dc   : > { %v2881_v0 = vadd.f32 %v2813_v42, %v7835_v2 }
 0x2dd   : > { %v2914_v27 = vadd.f32 %v8100_v48, %v2882_v28  ;;  %v6955_v28 = vld [vmem:[%s8961_s3 + $0x130] sm:$0xff] }
 0x2de   : > { %v2913_v9 = vadd.f32 %v8100_v48, %v2881_v0  ;;  %v2422_v3 = vpop.f32.mrf.mxu0  ;;  %v6947_v0 = vld [vmem:[%s8961_s3 + $0xf0] sm:$0xff]  ;;  %3965 = vmatpush.bf16.msrb.mxu2 %v6955_v28 }
 0x2df   : > { %v2942_v4 = vmax.f32 %v2914_v27, 0.0  ;;  %v2517_v24 = vadd.f32 %v2422_v3, %v9103_v43  ;;  %v9105_v27 = vld [vmem:[#allocation81_spill] sm:$0xff]  ;;  %v9107_v3 = vld [vmem:[#allocation80_spill] sm:$0xff]  ;;  %3759 = vmatpush.bf16.msrb.mxu1 %v6947_v0 }
 0x2e0   : > { %v2941_v18 = vmax.f32 %v2913_v9, 0.0 }
 0x2e1   : > { %v2970_v21 = vpack.c.bf16 %v2942_v4, %v2942_v4  ;;  %2461 = vmatmul.bf16.gmra.mxu0 %v7627_v32  ;;  %v2814_v15 = vrot.slane %v2517_v24, 2 }
 0x2e2   : > { %v2969_v51 = vpack.c.bf16 %v2941_v18, %v2941_v18  ;;  %v6983_v18 = vld [vmem:[%s8961_s3 + $0x1b0] sm:$0xff] }
 0x2e3   : > { %2998 = vst [vmem:[#allocation5 + $0x4] sm:$0x7] %v2970_v21 }
 0x2e4   : > { %2997 = vst [vmem:[#allocation5] sm:$0xf] %v2969_v51 }
 0x2e6   : > { %v2424_v16 = vpop.f32.mrf.mxu0 }
 0x2e7   : > { %v2518_v2 = vadd.f32 %v2424_v16, %v9104_v63  ;;  %v6982_v16 = vld [vmem:[%s8961_s3 + $0x1a8] sm:$0xff] }
 0x2e9   : > { %v2815_v53 = vrot.slane %v2518_v2, 2 }
 0x2eb   : > { %v2816_v57 = vsel %vm2810_vm1, %v2814_v15, %v2815_v53  ;;  %v2884_v8 = vadd.f32 %v2815_v53, %v7850_v10  ;;  %v6893_v13 = vld [vmem:[#allocation5] sm:$0xff]  ;;  %v6984_v10 = vld [vmem:[%s8961_s3 + $0x1b8] sm:$0xff] }
 0x2ec   : > { %v2883_v46 = vadd.f32 %v2816_v57, %v7855_v61  ;;  %3193 = vmatmul.bf16.vlgmr.msra.gmra.mxu1 %v6893_v13  ;;  %3351 = vmatmul.bf16.vlgmr.msra.gmra.mxu2 %v6893_v13  ;;  %v8123_v61 = vpop.f32.mrf.mxu1 }
 0x2ed   : > { %v2916_v32 = vadd.f32 %v8100_v48, %v2884_v8  ;;  %3510 = vmatmul.bf16.vlgmr.msrb.gmra.mxu3 %v6893_v13  ;;  %4473 = vmatpush.bf16.msra.mxu0 %v6984_v10  ;;  %v6981_v8 = vld [vmem:[%s8961_s3 + $0x1a0] sm:$0xff] }
 0x2ee   : > { %v2915_v58 = vadd.f32 %v8100_v48, %v2883_v46  ;;  %v2427_v39 = vpop.f32.mrf.mxu0  ;;  %v9108_v10 = vld [vmem:[#allocation84_spill] sm:$0xff] }
 0x2ef   : > { %v2944_v37 = vmax.f32 %v2916_v32, 0.0  ;;  %v2519_v4 = vadd.f32 %v2427_v39, %v9107_v3 }
 0x2f0   : > { %v2943_v40 = vmax.f32 %v2915_v58, 0.0 }
 0x2f1   : > { %v2972_v35 = vpack.c.bf16 %v2944_v37, %v2944_v37  ;;  %2466 = vmatmul.bf16.gmra.mxu0 %v7651_v17  ;;  %v9106_v17 = vld [vmem:[#allocation79_spill] sm:$0xff]  ;;  %v2817_v43 = vrot.slane %v2519_v4, 2 }
 0x2f2   : > { %v2971_v42 = vpack.c.bf16 %v2943_v40, %v2943_v40  ;;  %v1721_v9 = vadd.f32 %v9106_v17, %v9105_v27  ;;  %4474 = vmatpush.bf16.msra.mxu0 %v6983_v18  ;;  %v6954_v40 = vld [vmem:[%s8961_s3 + $0x128] sm:$0xff]  ;;  %v6979_v27 = vld [vmem:[%s8961_s3 + $0x190] sm:$0xff] }
 0x2f3   : > { %3000 = vst [vmem:[#allocation5 + $0xc] sm:$0x7] %v2972_v35  ;;  %v6946_v35 = vld [vmem:[%s8961_s3 + $0xe8] sm:$0xff]  ;;  %3966 = vmatpush.bf16.msrb.mxu2 %v6954_v40 }
 0x2f4   : > { %2999 = vst [vmem:[#allocation5 + $0x8] sm:$0xf] %v2971_v42  ;;  %v8147_v13 = vpop.f32.mrf.mxu1  ;;  %v9109_v42 = vld [vmem:[#allocation83_spill] sm:$0xff]  ;;  %3760 = vmatpush.bf16.msrb.mxu1 %v6946_v35 }
 0x2f5   : > { %v1723_v28 = vadd.f32 %v9109_v42, %v9108_v10 }
 0x2f6   : > { %v2429_v21 = vpop.f32.mrf.mxu0  ;;  %4475 = vmatpush.bf16.msra.mxu0 %v6982_v16 }
 0x2f7   : > { %v2520_v51 = vadd.f32 %v2429_v21, %v1721_v9  ;;  %v6978_v21 = vld [vmem:[%s8961_s3 + $0x188] sm:$0xff] }
 0x2f9   : > { %v2818_v24 = vrot.slane %v2520_v51, 2 }
 0x2fa   : > { %4476 = vmatpush.bf16.msra.mxu0 %v6981_v8 }
 0x2fb   : > { %v2819_v63 = vsel %vm2810_vm1, %v2817_v43, %v2818_v24  ;;  %v2886_v2 = vadd.f32 %v2818_v24, %v7875_v1  ;;  %v6894_v15 = vld [vmem:[#allocation5 + $0x8] sm:$0xff] }
 0x2fc   : > { %v2885_v53 = vadd.f32 %v2819_v63, %v7880_v30  ;;  %3198 = vmatmul.bf16.gmra.mxu1 %v6894_v15  ;;  %3356 = vmatmul.bf16.gmra.mxu2 %v6894_v15  ;;  %v6980_v30 = vld [vmem:[%s8961_s3 + $0x198] sm:$0xff]  ;;  %v8166_v3 = vpop.f32.mrf.mxu1 }
 0x2fd   : > { %v2918_v57 = vadd.f32 %v8100_v48, %v2886_v2  ;;  %3515 = vmatmul.bf16.gmra.mxu3 %v6894_v15  ;;  %v6977_v2 = vld [vmem:[%s8961_s3 + $0x180] sm:$0xff] }
 0x2fe   : > { %v2917_v46 = vadd.f32 %v8100_v48, %v2885_v53  ;;  %v2432_v32 = vpop.f32.mrf.mxu0  ;;  %4477 = vmatpush.bf16.msra.mxu0 %v6980_v30 }
 0x2ff   : > { %v2946_v58 = vmax.f32 %v2918_v57, 0.0 }
 0x300   : > { %v2945_v1 = vmax.f32 %v2917_v46, 0.0 }
 0x301   : > { %v2974_v39 = vpack.c.bf16 %v2946_v58, %v2946_v58  ;;  %2471 = vmatmul.bf16.gmra.mxu0 %v7676_v14  ;;  %v9110_v14 = vld [vmem:[#allocation82_spill] sm:$0xff] }
 0x302   : > { %v2973_v37 = vpack.c.bf16 %v2945_v1, %v2945_v1  ;;  %v2521_v0 = vadd.f32 %v2432_v32, %v9110_v14  ;;  %4478 = vmatpush.bf16.msra.mxu0 %v6979_v27  ;;  %v9111_v32 = vld [vmem:[#allocation87_spill] sm:$0xff]  ;;  %v9112_v1 = vld [vmem:[#allocation86_spill] sm:$0xff] }
 0x303   : > { %3002 = vst [vmem:[#allocation5 + $0x14] sm:$0x7] %v2974_v39  ;;  %v1725_v58 = vadd.f32 %v8021_v56, %v9111_v32 }
 0x304   : > { %3001 = vst [vmem:[#allocation5 + $0x10] sm:$0xf] %v2973_v37  ;;  %v2820_v4 = vrot.slane %v2521_v0, 2  ;;  %v8180_v46 = vpop.f32.mrf.mxu1 }
 0x306   : > { %v2434_v17 = vpop.f32.mrf.mxu0  ;;  %4479 = vmatpush.bf16.msra.mxu0 %v6978_v21 }
 0x307   : > { %v2522_v9 = vadd.f32 %v2434_v17, %v1723_v28 }
 0x309   : > { %v2821_v18 = vrot.slane %v2522_v9, 2 }
 0x30a   : > { %4480 = vmatpush.bf16.msra.mxu0 %v6977_v2 }
 0x30b   : > { %v2822_v51 = vsel %vm2810_vm1, %v2820_v4, %v2821_v18  ;;  %v2888_v43 = vadd.f32 %v2821_v18, %v7898_v41  ;;  %v6895_v24 = vld [vmem:[#allocation5 + $0x10] sm:$0xff]  ;;  %v7044_v18 = vld [vmem:[#allocation2 + $0x28] sm:$0xff] }
 0x30c   : > { %v2887_v16 = vadd.f32 %v2822_v51, %v7903_v44  ;;  %3203 = vmatmul.bf16.gmra.mxu1 %v6895_v24  ;;  %3361 = vmatmul.bf16.gmra.mxu2 %v6895_v24 }
 0x30d   : > { %v2920_v63 = vadd.f32 %v8100_v48, %v2888_v43  ;;  %3520 = vmatmul.bf16.gmra.mxu3 %v6895_v24  ;;  %v6945_v43 = vld [vmem:[%s8961_s3 + $0xe0] sm:$0xff]  ;;  %v9114_v24 = vld [vmem:[#allocation13_spill] sm:$0xff] }
 0x30e   : > { %v2919_v15 = vadd.f32 %v8100_v48, %v2887_v16  ;;  %v2437_v53 = vpop.f32.mrf.mxu0  ;;  %v1727_v16 = vadd.f32 %v8053_v20, %v9114_v24  ;;  %3761 = vmatpush.bf16.msrb.mxu1 %v6945_v43 }
 0x30f   : > { %v2948_v57 = vmax.f32 %v2920_v63, 0.0  ;;  %v2523_v39 = vadd.f32 %v2437_v53, %v9112_v1 }
 0x310   : > { %v2947_v8 = vmax.f32 %v2919_v15, 0.0 }
 0x311   : > { %v2976_v41 = vpack.c.bf16 %v2948_v57, %v2948_v57  ;;  %2476 = vmatmul.bf16.gmra.mxu0 %v9054_v36  ;;  %v2823_v40 = vrot.slane %v2523_v39, 2  ;;  %v8187_v36 = vpop.f32.mrf.mxu1 }
 0x312   : > { %v2975_v44 = vpack.c.bf16 %v2947_v8, %v2947_v8 }
 0x313   : > { %3004 = vst [vmem:[#allocation5 + $0x1c] sm:$0x7] %v2976_v41 }
 0x314   : > { %3003 = vst [vmem:[#allocation5 + $0x18] sm:$0xf] %v2975_v44 }
 0x316   : > { %v2439_v30 = vpop.f32.mrf.mxu0 }
 0x317   : > { %v2524_v37 = vadd.f32 %v2439_v30, %v1725_v58  ;;  %v8209_v30 = vld [vmem:[#allocation5 + $0x10] sm:$0xff] }
 0x319   : > { %v2824_v35 = vrot.slane %v2524_v37, 2  ;;  %v8202_v2 = vpop.f32.mrf.mxu1 }
 0x31b   : > { %v2825_v10 = vsel %vm2810_vm1, %v2823_v40, %v2824_v35  ;;  %v2890_v42 = vadd.f32 %v2824_v35, %v7911_v52  ;;  %v6896_v28 = vld [vmem:[#allocation5 + $0x18] sm:$0xff] }
 0x31c   : > { %v2889_v14 = vadd.f32 %v2825_v10, %v7916_v47  ;;  %3208 = vmatmul.bf16.gmra.mxu1 %v6896_v28  ;;  %3366 = vmatmul.bf16.gmra.mxu2 %v6896_v28  ;;  %v9113_v52 = vld [vmem:[#allocation11_spill] sm:$0xff]  ;;  %v6953_v47 = vld [vmem:[%s8961_s3 + $0x120] sm:$0xff] }
 0x31d   : > { %v2922_v0 = vadd.f32 %v8100_v48, %v2890_v42  ;;  %3525 = vmatmul.bf16.gmra.mxu3 %v6896_v28  ;;  %v1726_v51 = vadd.f32 %v8040_v23, %v9113_v52  ;;  %3967 = vmatpush.bf16.msrb.mxu2 %v6953_v47  ;;  %v9115_v10 = vld [vmem:[#allocation16_spill] sm:$0xff]  ;;  %v6952_v42 = vld [vmem:[%s8961_s3 + $0x118] sm:$0xff] }
 0x31e   : > { %v2921_v56 = vadd.f32 %v8100_v48, %v2889_v14  ;;  %v2442_v27 = vpop.f32.mrf.mxu0  ;;  %v6944_v28 = vld [vmem:[%s8961_s3 + $0xd8] sm:$0xff]  ;;  %v9116_v14 = vld [vmem:[#allocation18_spill] sm:$0xff] }
 0x31f   : > { %v2950_v17 = vmax.f32 %v2922_v0, 0.0  ;;  %v2525_v63 = vadd.f32 %v2442_v27, %v1726_v51  ;;  %v1729_v0 = vadd.f32 %v8094_v5, %v9116_v14  ;;  %3762 = vmatpush.bf16.msrb.mxu1 %v6944_v28 }
 0x320   : > { %v2949_v9 = vmax.f32 %v2921_v56, 0.0 }
 0x321   : > { %v2978_v4 = vpack.c.bf16 %v2950_v17, %v2950_v17  ;;  %2481 = vmatmul.bf16.gmra.mxu0 %v7044_v18  ;;  %v2826_v53 = vrot.slane %v2525_v63, 2  ;;  %v8211_v37 = vpop.f32.mrf.mxu1  ;;  %3968 = vmatpush.bf16.msrb.mxu2 %v6952_v42 }
 0x322   : > { %v2977_v21 = vpack.c.bf16 %v2949_v9, %v2949_v9 }
 0x323   : > { %3006 = vst [vmem:[#allocation5 + $0x24] sm:$0x7] %v2978_v4 }
 0x324   : > { %3005 = vst [vmem:[#allocation5 + $0x20] sm:$0xf] %v2977_v21 }
 0x326   : > { %v2444_v15 = vpop.f32.mrf.mxu0 }
 0x327   : > { %v2526_v23 = vadd.f32 %v2444_v15, %v1727_v16  ;;  %v8231_v16 = vld [vmem:[#allocation5 + $0x18] sm:$0xff] }
 0x329   : > { %v2827_v57 = vrot.slane %v2526_v23, 2  ;;  %v8224_v4 = vpop.f32.mrf.mxu1 }
 0x32b   : > { %v2828_v8 = vsel %vm2810_vm1, %v2826_v53, %v2827_v57  ;;  %v2892_v41 = vadd.f32 %v2827_v57, %v7930_v62  ;;  %v6897_v44 = vld [vmem:[#allocation5 + $0x20] sm:$0xff]  ;;  %v9118_v57 = vld [vmem:[#allocation23_spill] sm:$0xff] }
 0x32c   : > { %v2891_v32 = vadd.f32 %v2828_v8, %v7934_v34  ;;  %3213 = vmatmul.bf16.gmra.mxu1 %v6897_v44  ;;  %3371 = vmatmul.bf16.gmra.mxu2 %v6897_v44  ;;  %v1728_v34 = vadd.f32 %v8075_v25, %v9115_v10  ;;  %v1731_v8 = vadd.f32 %v8112_v7, %v9118_v57  ;;  %v8247_v42 = vld [vmem:[#allocation5 + $0x20] sm:$0xff] }
 0x32d   : > { %v2924_v58 = vadd.f32 %v8100_v48, %v2892_v41  ;;  %3530 = vmatmul.bf16.gmra.mxu3 %v6897_v44 }
 0x32e   : > { %v2923_v20 = vadd.f32 %v8100_v48, %v2891_v32  ;;  %v2447_v1 = vpop.f32.mrf.mxu0 }
 0x32f   : > { %v2952_v39 = vmax.f32 %v2924_v58, 0.0  ;;  %v2527_v56 = vadd.f32 %v2447_v1, %v1728_v34 }
 0x330   : > { %v2951_v40 = vmax.f32 %v2923_v20, 0.0 }
 0x331   : > { %v2980_v35 = vpack.c.bf16 %v2952_v39, %v2952_v39  ;;  %4481 = vmatmul.bf16.vlgmr.msra.gmra.mxu0 %v8209_v30  ;;  %v2829_v9 = vrot.slane %v2527_v56, 2  ;;  %v6951_v56 = vld [vmem:[%s8961_s3 + $0x110] sm:$0xff] }
 0x332   : > { %v2979_v62 = vpack.c.bf16 %v2951_v40, %v2951_v40  ;;  %3969 = vmatpush.bf16.msrb.mxu2 %v6951_v56 }
 0x333   : > { %3008 = vst [vmem:[#allocation5 + $0x2c] sm:$0x7] %v2980_v35 }
 0x334   : > { %3007 = vst [vmem:[#allocation5 + $0x28] sm:$0xf] %v2979_v62 }
 0x336   : > { %v2449_v27 = vpop.f32.mrf.mxu0 }
 0x337   : > { %v2528_v17 = vadd.f32 %v2449_v27, %v1729_v0  ;;  %v9119_v0 = vld [vmem:[#allocation26_spill] sm:$0xff] }
 0x338   : > { %v6943_v27 = vld [vmem:[%s8961_s3 + $0xd0] sm:$0xff] }
 0x339   : > { %v2830_v25 = vrot.slane %v2528_v17, 2  ;;  %v9120_v17 = vld [vmem:[#allocation28_spill] sm:$0xff]  ;;  %3763 = vmatpush.bf16.msrb.mxu1 %v6943_v27 }
 0x33b   : > { %v2831_v18 = vsel %vm2810_vm1, %v2829_v9, %v2830_v25  ;;  %v2894_v21 = vadd.f32 %v2830_v25, %v7942_v33  ;;  %v6898_v52 = vld [vmem:[#allocation5 + $0x28] sm:$0xff]  ;;  %v1733_v9 = vadd.f32 %v8147_v13, %v9120_v17  ;;  %v6963_v17 = vld [vmem:[%s8961_s3 + $0x170] sm:$0xff] }
 0x33c   : > { %v2893_v51 = vadd.f32 %v2831_v18, %v7946_v59  ;;  %3218 = vmatmul.bf16.gmra.mxu1 %v6898_v52  ;;  %3376 = vmatmul.bf16.gmra.mxu2 %v6898_v52  ;;  %v9117_v33 = vld [vmem:[#allocation21_spill] sm:$0xff]  ;;  %v8236_v59 = vpop.f32.mrf.mxu1 }
 0x33d   : > { %v2926_v47 = vadd.f32 %v8100_v48, %v2894_v21  ;;  %3535 = vmatmul.bf16.gmra.mxu3 %v6898_v52  ;;  %v1730_v53 = vadd.f32 %v8107_v54, %v9117_v33  ;;  %v8267_v33 = vld [vmem:[#allocation5 + $0x28] sm:$0xff] }
 0x33e   : > { %v2925_v5 = vadd.f32 %v8100_v48, %v2893_v51  ;;  %v2452_v43 = vpop.f32.mrf.mxu0 }
 0x33f   : > { %v2954_v24 = vmax.f32 %v2926_v47, 0.0  ;;  %v2529_v41 = vadd.f32 %v2452_v43, %v1730_v53 }
 0x340   : > { %v2953_v63 = vmax.f32 %v2925_v5, 0.0 }
 0x341   : > { %v2982_v15 = vpack.c.bf16 %v2954_v24, %v2954_v24  ;;  %4486 = vmatmul.bf16.gmra.mxu0 %v8231_v16  ;;  %v2832_v58 = vrot.slane %v2529_v41, 2  ;;  %v9121_v41 = vld [vmem:[#allocation31_spill] sm:$0xff] }
 0x342   : > { %v2981_v23 = vpack.c.bf16 %v2953_v63, %v2953_v63 }
 0x343   : > { %3010 = vst [vmem:[#allocation5 + $0x34] sm:$0x7] %v2982_v15 }
 0x344   : > { %3009 = vst [vmem:[#allocation5 + $0x30] sm:$0xf] %v2981_v23  ;;  %v8244_v62 = vpop.f32.mrf.mxu1 }
 0x346   : > { %v2454_v44 = vpop.f32.mrf.mxu0 }
 0x347   : > { %v2530_v32 = vadd.f32 %v2454_v44, %v1731_v8  ;;  %v6950_v44 = vld [vmem:[%s8961_s3 + $0x108] sm:$0xff] }
 0x348   : > { %3970 = vmatpush.bf16.msrb.mxu2 %v6950_v44  ;;  %v6960_v44 = vld [vmem:[%s8961_s3 + $0x158] sm:$0xff] }
 0x349   : > { %v2833_v20 = vrot.slane %v2530_v32, 2  ;;  %v6942_v32 = vld [vmem:[%s8961_s3 + $0xc8] sm:$0xff] }
 0x34a   : > { %3764 = vmatpush.bf16.msrb.mxu1 %v6942_v32 }
 0x34b   : > { %v2834_v1 = vsel %vm2810_vm1, %v2832_v58, %v2833_v20  ;;  %v2896_v39 = vadd.f32 %v2833_v20, %v7960_v60  ;;  %v6899_v40 = vld [vmem:[#allocation5 + $0x30] sm:$0xff] }
 0x34c   : > { %v2895_v35 = vadd.f32 %v2834_v1, %v7964_v45  ;;  %3223 = vmatmul.bf16.gmra.mxu1 %v6899_v40  ;;  %3381 = vmatmul.bf16.gmra.mxu2 %v6899_v40  ;;  %v1732_v45 = vadd.f32 %v8123_v61, %v9119_v0  ;;  %v8260_v52 = vpop.f32.mrf.mxu1  ;;  %v9122_v58 = vld [vmem:[#allocation34_spill] sm:$0xff] }
 0x34d   : > { %v2928_v54 = vadd.f32 %v8100_v48, %v2896_v39  ;;  %3540 = vmatmul.bf16.gmra.mxu3 %v6899_v40  ;;  %v1735_v20 = vadd.f32 %v8180_v46, %v9122_v58  ;;  %v6964_v46 = vld [vmem:[%s8961_s3 + $0x178] sm:$0xff]  ;;  %v8292_v56 = vld [vmem:[#allocation5 + $0x30] sm:$0xff] }
 0x34e   : > { %v2927_v7 = vadd.f32 %v8100_v48, %v2895_v35  ;;  %v2457_v10 = vpop.f32.mrf.mxu0  ;;  %4170 = vmatpush.bf16.msra.mxu3 %v6964_v46  ;;  %v9126_v46 = vld [vmem:[#allocation40_spill] sm:$0xff] }
 0x34f   : > { %v2956_v34 = vmax.f32 %v2928_v54, 0.0  ;;  %v2531_v25 = vadd.f32 %v2457_v10, %v1732_v45 }
 0x350   : > { %v2955_v28 = vmax.f32 %v2927_v7, 0.0 }
 0x351   : > { %v2984_v14 = vpack.c.bf16 %v2956_v34, %v2956_v34  ;;  %4491 = vmatmul.bf16.gmra.mxu0 %v8247_v42  ;;  %v2835_v61 = vrot.slane %v2531_v25, 2 }
 0x352   : > { %v2983_v60 = vpack.c.bf16 %v2955_v28, %v2955_v28  ;;  %4171 = vmatpush.bf16.msra.mxu3 %v6963_v17 }
 0x353   : > { %3012 = vst [vmem:[#allocation5 + $0x3c] sm:$0x7] %v2984_v14 }
 0x354   : > { %3011 = vst [vmem:[#allocation5 + $0x38] sm:$0xf] %v2983_v60  ;;  %v8270_v8 = vpop.f32.mrf.mxu1 }
 0x356   : > { %v2459_v18 = vpop.f32.mrf.mxu0 }
 0x357   : > { %v2532_v21 = vadd.f32 %v2459_v18, %v1733_v9  ;;  %v9123_v18 = vld [vmem:[#allocation35_spill] sm:$0xff] }
 0x359   : > { %v2836_v51 = vrot.slane %v2532_v21, 2  ;;  %v1736_v21 = vadd.f32 %v8187_v36, %v9123_v18  ;;  %v6957_v18 = vld [vmem:[%s8961_s3 + $0x140] sm:$0xff] }
 0x35b   : > { %v2837_v47 = vsel %vm2810_vm1, %v2835_v61, %v2836_v51  ;;  %v2898_v5 = vadd.f32 %v2836_v51, %v7975_v11  ;;  %v6900_v43 = vld [vmem:[#allocation5 + $0x38] sm:$0xff]  ;;  %v9124_v61 = vld [vmem:[#allocation37_spill] sm:$0xff] }
 0x35c   : > { %v2897_v24 = vadd.f32 %v2837_v47, %v7979_v22  ;;  %3228 = vmatmul.bf16.gmra.mxu1 %v6900_v43  ;;  %3386 = vmatmul.bf16.gmra.mxu2 %v6900_v43  ;;  %v1734_v22 = vadd.f32 %v8166_v3, %v9121_v41  ;;  %v1737_v51 = vadd.f32 %v8202_v2, %v9124_v61 }
 0x35d   : > { %v2930_v63 = vadd.f32 %v8100_v48, %v2898_v5  ;;  %3545 = vmatmul.bf16.gmra.mxu3 %v6900_v43  ;;  %v6962_v5 = vld [vmem:[%s8961_s3 + $0x168] sm:$0xff] }
 0x35e   : > { %v2929_v13 = vadd.f32 %v8100_v48, %v2897_v24  ;;  %v2462_v15 = vpop.f32.mrf.mxu0  ;;  %4172 = vmatpush.bf16.msra.mxu3 %v6962_v5 }
 0x35f   : > { %v2958_v23 = vmax.f32 %v2930_v63, 0.0  ;;  %v2533_v1 = vadd.f32 %v2462_v15, %v1734_v22 }
 0x360   : > { %v2957_v53 = vmax.f32 %v2929_v13, 0.0 }
 0x361   : > { %v2986_v57 = vpack.c.bf16 %v2958_v23, %v2958_v23  ;;  %4496 = vmatmul.bf16.gmra.mxu0 %v8267_v33  ;;  %v2838_v35 = vrot.slane %v2533_v1, 2  ;;  %v6961_v23 = vld [vmem:[%s8961_s3 + $0x160] sm:$0xff]  ;;  %v8326_v1 = vld [vmem:[#allocation5 + $0x38] sm:$0xff] }
 0x362   : > { %v2985_v11 = vpack.c.bf16 %v2957_v53, %v2957_v53  ;;  %4173 = vmatpush.bf16.msra.mxu3 %v6961_v23 }
 0x363   : > { %3014 = vst [vmem:[#allocation5 + $0x44] sm:$0x7] %v2986_v57 }
 0x364   : > { %3013 = vst [vmem:[#allocation5 + $0x40] sm:$0xf] %v2985_v11 }
 0x366   : > { %v2464_v39 = vpop.f32.mrf.mxu0  ;;  %4174 = vmatpush.bf16.msra.mxu3 %v6960_v44  ;;  %v7000_v44 = vld [vmem:[%s8961_s3 + $0x238] sm:$0xff] }
 0x367   : > { %v2534_v40 = vadd.f32 %v2464_v39, %v1735_v20 }
 0x369   : > { %v2839_v3 = vrot.slane %v2534_v40, 2  ;;  %v8282_v54 = vpop.f32.mrf.mxu1  ;;  %v6959_v40 = vld [vmem:[%s8961_s3 + $0x150] sm:$0xff] }
 0x36a   : > { %4175 = vmatpush.bf16.msra.mxu3 %v6959_v40 }
 0x36b   : > { %v2840_v7 = vsel %vm2810_vm1, %v2838_v35, %v2839_v3  ;;  %v2900_v10 = vadd.f32 %v2839_v3, %v7990_v12  ;;  %v6901_v34 = vld [vmem:[#allocation5 + $0x40] sm:$0xff] }
 0x36c   : > { %v2899_v28 = vadd.f32 %v2840_v7, %v7994_v50  ;;  %3233 = vmatmul.bf16.gmra.mxu1 %v6901_v34  ;;  %3391 = vmatmul.bf16.gmra.mxu2 %v6901_v34  ;;  %v8365_v23 = vld [vmem:[#allocation5 + $0x40] sm:$0xff] }
 0x36d   : > { %v2932_v14 = vadd.f32 %v8100_v48, %v2900_v10  ;;  %3550 = vmatmul.bf16.gmra.mxu3 %v6901_v34  ;;  %v9125_v10 = vld [vmem:[#allocation38_spill] sm:$0xff] }
 0x36e   : > { %v2931_v60 = vadd.f32 %v8100_v48, %v2899_v28  ;;  %v2467_v0 = vpop.f32.mrf.mxu0  ;;  %v1738_v34 = vadd.f32 %v8211_v37, %v9125_v10  ;;  %v6949_v28 = vld [vmem:[%s8961_s3 + $0x100] sm:$0xff] }
 0x36f   : > { %v2960_v45 = vmax.f32 %v2932_v14, 0.0  ;;  %v8294_v27 = vpop.f32.mrf.mxu2  ;;  %v2535_v47 = vadd.f32 %v2467_v0, %v1736_v21  ;;  %v6941_v14 = vld [vmem:[%s8961_s3 + $0xc0] sm:$0xff]  ;;  %3971 = vmatpush.bf16.msrb.mxu2 %v6949_v28 }
 0x370   : > { %v2959_v12 = vmax.f32 %v2931_v60, 0.0  ;;  %v8309_v63 = vpop.f32.mrf.mxu3  ;;  %v1739_v60 = vadd.f32 %v8224_v4, %v9126_v46  ;;  %3765 = vmatpush.bf16.msrb.mxu1 %v6941_v14 }
 0x371   : > { %v2988_v50 = vpack.c.bf16 %v2960_v45, %v2960_v45  ;;  %4501 = vmatmul.bf16.gmra.mxu0 %v8292_v56  ;;  %v8300_v25 = vpop.f32.mrf.mxu1  ;;  %v2841_v15 = vrot.slane %v2535_v47, 2  ;;  %v6958_v45 = vld [vmem:[%s8961_s3 + $0x148] sm:$0xff] }
 0x372   : > { %v2987_v9 = vpack.c.bf16 %v2959_v12, %v2959_v12  ;;  %4176 = vmatpush.bf16.msra.mxu3 %v6958_v45 }
 0x373   : > { %3016 = vst [vmem:[#allocation5 + $0x4c] sm:$0x7] %v2988_v50  ;;  %4885 = vmatpush.bf16.msra.mxu2 %v7000_v44 }
 0x374   : > { %3015 = vst [vmem:[#allocation5 + $0x48] sm:$0xf] %v2987_v9 }
 0x376   : > { %v2469_v43 = vpop.f32.mrf.mxu0  ;;  %4177 = vmatpush.bf16.msra.mxu3 %v6957_v18 }
 0x377   : > { %v2536_v24 = vadd.f32 %v2469_v43, %v1737_v51  ;;  %v8311_v13 = vpop.f32.mrf.mxu2 }
 0x378   : > { %v8334_v3 = vpop.f32.mrf.mxu3 }
 0x379   : > { %v2842_v36 = vrot.slane %v2536_v24, 2  ;;  %v8316_v53 = vpop.f32.mrf.mxu1 }
 0x37b   : > { %v2843_v2 = vsel %vm2810_vm1, %v2841_v15, %v2842_v36  ;;  %v2902_v57 = vadd.f32 %v2842_v36, %v8008_v29  ;;  %v6902_v11 = vld [vmem:[#allocation5 + $0x48] sm:$0xff] }
 0x37c   : > { %v2901_v41 = vadd.f32 %v2843_v2, %v8012_v55  ;;  %3238 = vmatmul.bf16.gmra.mxu1 %v6902_v11  ;;  %3396 = vmatmul.bf16.gmra.mxu2 %v6902_v11 }
 0x37d   : > { %v2934_v22 = vadd.f32 %v8100_v48, %v2902_v57  ;;  %3555 = vmatmul.bf16.gmra.mxu3 %v6902_v11 }
 0x37e   : > { %v2933_v32 = vadd.f32 %v8100_v48, %v2901_v41  ;;  %v2472_v58 = vpop.f32.mrf.mxu0 }
 0x37f   : > { %v2962_v20 = vmax.f32 %v2934_v22, 0.0  ;;  %v8328_v39 = vpop.f32.mrf.mxu2  ;;  %v2537_v0 = vadd.f32 %v2472_v58, %v1738_v34  ;;  %v9128_v58 = vld [vmem:[#allocation46_spill] sm:$0xff] }
 0x380   : > { %v2961_v29 = vmax.f32 %v2933_v32, 0.0  ;;  %v8360_v47 = vpop.f32.mrf.mxu3  ;;  %v6992_v32 = vld [vmem:[%s8961_s3 + $0x1f8] sm:$0xff] }
 0x381   : > { %v2990_v55 = vpack.c.bf16 %v2962_v20, %v2962_v20  ;;  %4506 = vmatmul.bf16.gmra.mxu0 %v8326_v1  ;;  %v8336_v7 = vpop.f32.mrf.mxu1  ;;  %v2844_v17 = vrot.slane %v2537_v0, 2  ;;  %v1741_v20 = vadd.f32 %v8244_v62, %v9128_v58  ;;  %4679 = vmatpush.bf16.msra.mxu1 %v6992_v32 }
 0x382   : > { %v2989_v35 = vpack.c.bf16 %v2961_v29, %v2961_v29 }
 0x383   : > { %3018 = vst [vmem:[#allocation5 + $0x54] sm:$0x7] %v2990_v55 }
 0x384   : > { %3017 = vst [vmem:[#allocation5 + $0x50] sm:$0xf] %v2989_v35 }
 0x386   : > { %v2474_v37 = vpop.f32.mrf.mxu0 }
 0x387   : > { %v2538_v12 = vadd.f32 %v2474_v37, %v1739_v60  ;;  %v8351_v50 = vpop.f32.mrf.mxu2 }
 0x388   : > { %v8382_v55 = vpop.f32.mrf.mxu3 }
 0x389   : > { %v2845_v9 = vrot.slane %v2538_v12, 2  ;;  %v8356_v21 = vpop.f32.mrf.mxu1 }
 0x38b   : > { %v2846_v4 = vsel %vm2810_vm1, %v2844_v17, %v2845_v9  ;;  %v2904_v61 = vadd.f32 %v2845_v9, %v8025_v31  ;;  %v6903_v51 = vld [vmem:[#allocation5 + $0x50] sm:$0xff]  ;;  %v8393_v17 = vld [vmem:[#allocation5 + $0x48] sm:$0xff] }
 0x38c   : > { %v2903_v5 = vadd.f32 %v2846_v4, %v8032_v49  ;;  %3243 = vmatmul.bf16.gmra.mxu1 %v6903_v51  ;;  %3401 = vmatmul.bf16.gmra.mxu2 %v6903_v51  ;;  %v9127_v49 = vld [vmem:[#allocation43_spill] sm:$0xff] }
 0x38d   : > { %v2936_v43 = vadd.f32 %v8100_v48, %v2904_v61  ;;  %3560 = vmatmul.bf16.gmra.mxu3 %v6903_v51  ;;  %v1740_v22 = vadd.f32 %v8236_v59, %v9127_v49  ;;  %v9130_v51 = vld [vmem:[#allocation49_spill] sm:$0xff] }
 0x38e   : > { %v2935_v24 = vadd.f32 %v8100_v48, %v2903_v5  ;;  %v2477_v15 = vpop.f32.mrf.mxu0  ;;  %v1742_v5 = vadd.f32 %v8260_v52, %v9130_v51  ;;  %v6991_v52 = vld [vmem:[%s8961_s3 + $0x1f0] sm:$0xff] }
 0x38f   : > { %v2964_v36 = vmax.f32 %v2936_v43, 0.0  ;;  %v8367_v57 = vpop.f32.mrf.mxu2  ;;  %v2539_v29 = vadd.f32 %v2477_v15, %v1740_v22  ;;  %v9131_v43 = vld [vmem:[#allocation53_spill] sm:$0xff]  ;;  %4680 = vmatpush.bf16.msra.mxu1 %v6991_v52 }
 0x390   : > { %v2963_v2 = vmax.f32 %v2935_v24, 0.0  ;;  %v8395_v9 = vpop.f32.mrf.mxu3  ;;  %v1743_v24 = vadd.f32 %v8270_v8, %v9131_v43 }
 0x391   : > { %v2992_v31 = vpack.c.bf16 %v2964_v36, %v2964_v36  ;;  %4511 = vmatmul.bf16.gmra.mxu0 %v8365_v23  ;;  %v8370_v41 = vpop.f32.mrf.mxu1  ;;  %v2847_v10 = vrot.slane %v2539_v29, 2 }
 0x392   : > { %v2991_v11 = vpack.c.bf16 %v2963_v2, %v2963_v2  ;;  %v6999_v2 = vld [vmem:[%s8961_s3 + $0x230] sm:$0xff] }
 0x393   : > { %3020 = vst [vmem:[#allocation5 + $0x5c] sm:$0x7] %v2992_v31  ;;  %4886 = vmatpush.bf16.msra.mxu2 %v6999_v2 }
 0x394   : > { %3019 = vst [vmem:[#allocation5 + $0x58] sm:$0xf] %v2991_v11 }
 0x396   : > { %v2479_v40 = vpop.f32.mrf.mxu0 }
 0x397   : > { %v2540_v59 = vadd.f32 %v2479_v40, %v1741_v20  ;;  %v8384_v35 = vpop.f32.mrf.mxu2  ;;  %v6929_v20 = vld [vmem:[#allocation5 + $0x8] sm:$0xff] }
 0x398   : > { %v8414_v44 = vpop.f32.mrf.mxu3 }
 0x399   : > { %v2848_v34 = vrot.slane %v2540_v59, 2  ;;  %v8386_v28 = vpop.f32.mrf.mxu1 }
 0x39a   : > { %9129 = vst [vmem:[#allocation52_spill] sm:$0xff] %v8386_v28 }
 0x39b   : > { %v2849_v14 = vsel %vm2810_vm1, %v2847_v10, %v2848_v34  ;;  %v2906_v46 = vadd.f32 %v2848_v34, %v8056_v19  ;;  %v6904_v60 = vld [vmem:[#allocation5 + $0x58] sm:$0xff]  ;;  %v8423_v34 = vld [vmem:[#allocation5 + $0x50] sm:$0xff] }
 0x39c   : > { %v2905_v62 = vadd.f32 %v2849_v14, %v8063_v6  ;;  %3248 = vmatmul.bf16.gmra.mxu1 %v6904_v60  ;;  %3406 = vmatmul.bf16.gmra.mxu2 %v6904_v60 }
 0x39d   : > { %v2938_v0 = vadd.f32 %v8100_v48, %v2906_v46  ;;  %3565 = vmatmul.bf16.gmra.mxu3 %v6904_v60 }
 0x39e   : > { %v2937_v45 = vadd.f32 %v8100_v48, %v2905_v62  ;;  %v2482_v37 = vpop.f32.mrf.mxu0 }
 0x39f   : > { %v2966_v12 = vmax.f32 %v2938_v0, 0.0  ;;  %v8397_v4 = vpop.f32.mrf.mxu2  ;;  %v2541_v15 = vadd.f32 %v2482_v37, %v1742_v5 }
 0x3a0   : > { %v2965_v18 = vmax.f32 %v2937_v45, 0.0  ;;  %v6930_v45 = vld [vmem:[#allocation5 + $0x10] sm:$0xff] }
 0x3a1   : > { %v2994_v19 = vpack.c.bf16 %v2966_v12, %v2966_v12  ;;  %4516 = vmatmul.bf16.gmra.mxu0 %v8393_v17  ;;  %v8400_v61 = vpop.f32.mrf.mxu1  ;;  %v2850_v49 = vrot.slane %v2541_v15, 2  ;;  %v6998_v12 = vld [vmem:[%s8961_s3 + $0x228] sm:$0xff]  ;;  %v6931_v15 = vld [vmem:[#allocation5 + $0x18] sm:$0xff] }
 0x3a2   : > { %v2993_v6 = vpack.c.bf16 %v2965_v18, %v2965_v18  ;;  %v8441_v18 = vld [vmem:[#allocation5 + $0x58] sm:$0xff]  ;;  %4887 = vmatpush.bf16.msra.mxu2 %v6998_v12 }
 0x3a3   : > { %3022 = vst [vmem:[#allocation5 + $0x64] sm:$0x7] %v2994_v19  ;;  %v6996_v12 = vld [vmem:[%s8961_s3 + $0x218] sm:$0xff] }
 0x3a4   : > { %3021 = vst [vmem:[#allocation5 + $0x60] sm:$0xf] %v2993_v6  ;;  %v6990_v6 = vld [vmem:[%s8961_s3 + $0x1e8] sm:$0xff] }
 0x3a5   : > { %4681 = vmatpush.bf16.msra.mxu1 %v6990_v6 }
 0x3a6   : > { %v2484_v36 = vpop.f32.mrf.mxu0 }
 0x3a7   : > { %v2542_v31 = vadd.f32 %v2484_v36, %v1743_v24  ;;  %v8409_v11 = vpop.f32.mrf.mxu2 }
 0x3a8   : > { %9132 = vst [vmem:[#allocation70_spill] sm:$0xff] %v8409_v11 }
 0x3a9   : > { %v2851_v22 = vrot.slane %v2542_v31, 2  ;;  %v8416_v32 = vpop.f32.mrf.mxu1 }
 0x3aa   : > { %9133 = vst [vmem:[#allocation71_spill] sm:$0xff] %v8416_v32 }
 0x3ab   : > { %v2852_v8 = vsel %vm2810_vm1, %v2850_v49, %v2851_v22  ;;  %v2908_v58 = vadd.f32 %v2851_v22, %v8081_v26  ;;  %v8457_v36 = vld [vmem:[#allocation5 + $0x60] sm:$0xff] }
 0x3ac   : > { %v2907_v29 = vadd.f32 %v2852_v8, %v8085_v38  ;;  %3766 = vmatmul.bf16.vlgmr.msrb.gmra.mxu1 %v6929_v20  ;;  %3972 = vmatmul.bf16.vlgmr.msrb.gmra.mxu2 %v6929_v20  ;;  %v8430_v38 = vpop.f32.mrf.mxu3  ;;  %v6997_v22 = vld [vmem:[%s8961_s3 + $0x220] sm:$0xff] }
 0x3ad   : > { %v2940_v40 = vadd.f32 %v8100_v48, %v2908_v58  ;;  %4178 = vmatmul.bf16.vlgmr.msra.gmra.mxu3 %v6929_v20  ;;  %9136 = vst [vmem:[#allocation45_spill] sm:$0xff] %v8430_v38  ;;  %4888 = vmatpush.bf16.msra.mxu2 %v6997_v22  ;;  %v6989_v8 = vld [vmem:[%s8961_s3 + $0x1e0] sm:$0xff]  ;;  %v6988_v22 = vld [vmem:[%s8961_s3 + $0x1d8] sm:$0xff] }
 0x3ae   : > { %v2939_v59 = vadd.f32 %v8100_v48, %v2907_v29  ;;  %v6932_v20 = vld [vmem:[#allocation5 + $0x20] sm:$0xff]  ;;  %4682 = vmatpush.bf16.msra.mxu1 %v6989_v8 }
 0x3af   : > { %v2968_v10 = vmax.f32 %v2940_v40, 0.0  ;;  %v8425_v46 = vpop.f32.mrf.mxu2 }
 0x3b0   : > { %v2967_v14 = vmax.f32 %v2939_v59, 0.0  ;;  %9134 = vst [vmem:[#allocation67_spill] sm:$0xff] %v8425_v46 }
 0x3b1   : > { %v2996_v60 = vpack.c.bf16 %v2968_v10, %v2968_v10  ;;  %4521 = vmatmul.bf16.gmra.mxu0 %v8423_v34  ;;  %v8428_v62 = vpop.f32.mrf.mxu1  ;;  %4889 = vmatpush.bf16.msra.mxu2 %v6996_v12 }
 0x3b2   : > { %v2995_v26 = vpack.c.bf16 %v2967_v14, %v2967_v14  ;;  %9135 = vst [vmem:[#allocation42_spill] sm:$0xff] %v8428_v62  ;;  %4683 = vmatpush.bf16.msra.mxu1 %v6988_v22  ;;  %v6995_v22 = vld [vmem:[%s8961_s3 + $0x210] sm:$0xff] }
 0x3b3   : > { %3024 = vst [vmem:[#allocation5 + $0x6c] sm:$0x7] %v2996_v60 }
 0x3b4   : > { %3023 = vst [vmem:[#allocation5 + $0x68] sm:$0xf] %v2995_v26  ;;  %v8436_v37 = vpop.f32.mrf.mxu3 }
 0x3b5   : > { %9139 = vst [vmem:[#allocation72_spill] sm:$0xff] %v8436_v37  ;;  %4890 = vmatpush.bf16.msra.mxu2 %v6995_v22 }
 0x3b7   : > { %v8432_v0 = vpop.f32.mrf.mxu2 }
 0x3b8   : > { %9137 = vst [vmem:[#allocation32_spill] sm:$0xff] %v8432_v0 }
 0x3b9   : > { %v8434_v48 = vpop.f32.mrf.mxu1 }
 0x3ba   : > { %9138 = vst [vmem:[#allocation58_spill] sm:$0xff] %v8434_v48 }
 0x3bb   : > { %v8478_v40 = vld [vmem:[#allocation5 + $0x68] sm:$0xff] }
 0x3bc   : > { %3771 = vmatmul.bf16.gmra.mxu1 %v6930_v45  ;;  %3977 = vmatmul.bf16.gmra.mxu2 %v6930_v45  ;;  %v8451_v5 = vpop.f32.mrf.mxu3 }
 0x3bd   : > { %4183 = vmatmul.bf16.gmra.mxu3 %v6930_v45  ;;  %9142 = vst [vmem:[#allocation36_spill] sm:$0xff] %v8451_v5  ;;  %v6933_v45 = vld [vmem:[#allocation5 + $0x28] sm:$0xff] }
 0x3bf   : > { %v8443_v19 = vpop.f32.mrf.mxu2 }
 0x3c0   : > { %9140 = vst [vmem:[#allocation48_spill] sm:$0xff] %v8443_v19 }
 0x3c1   : > { %4526 = vmatmul.bf16.gmra.mxu0 %v8441_v18  ;;  %v8449_v51 = vpop.f32.mrf.mxu1 }
 0x3c2   : > { %9141 = vst [vmem:[#allocation51_spill] sm:$0xff] %v8449_v51 }
 0x3c4   : > { %v8462_v31 = vpop.f32.mrf.mxu3 }
 0x3c5   : > { %9146 = vst [vmem:[#allocation57_spill] sm:$0xff] %v8462_v31 }
 0x3c7   : > { %v8453_v43 = vpop.f32.mrf.mxu2 }
 0x3c8   : > { %9143 = vst [vmem:[#allocation61_spill] sm:$0xff] %v8453_v43 }
 0x3c9   : > { %v8455_v24 = vpop.f32.mrf.mxu1 }
 0x3ca   : > { %9144 = vst [vmem:[#allocation14_spill] sm:$0xff] %v8455_v24 }
 0x3cc   : > { %3776 = vmatmul.bf16.gmra.mxu1 %v6931_v15  ;;  %3982 = vmatmul.bf16.gmra.mxu2 %v6931_v15  ;;  %v8476_v29 = vpop.f32.mrf.mxu3 }
 0x3cd   : > { %4188 = vmatmul.bf16.gmra.mxu3 %v6931_v15  ;;  %9150 = vst [vmem:[#allocation59_spill] sm:$0xff] %v8476_v29 }
 0x3cf   : > { %v8459_v2 = vpop.f32.mrf.mxu2 }
 0x3d0   : > { %9145 = vst [vmem:[#allocation55_spill] sm:$0xff] %v8459_v2 }
 0x3d1   : > { %4531 = vmatmul.bf16.gmra.mxu0 %v8457_v36  ;;  %v8464_v49 = vpop.f32.mrf.mxu1 }
 0x3d2   : > { %9147 = vst [vmem:[#allocation39_spill] sm:$0xff] %v8464_v49 }
 0x3d4   : > { %v8485_v14 = vpop.f32.mrf.mxu3 }
 0x3d5   : > { %9153 = vst [vmem:[#allocation69_spill] sm:$0xff] %v8485_v14  ;;  %v6940_v14 = vld [vmem:[#allocation5 + $0x60] sm:$0xff] }
 0x3d7   : > { %v8469_v52 = vpop.f32.mrf.mxu2 }
 0x3d8   : > { %9148 = vst [vmem:[#allocation65_spill] sm:$0xff] %v8469_v52  ;;  %v6939_v52 = vld [vmem:[#allocation5 + $0x58] sm:$0xff] }
 0x3d9   : > { %v8474_v58 = vpop.f32.mrf.mxu1 }
 0x3da   : > { %9149 = vst [vmem:[#allocation19_spill] sm:$0xff] %v8474_v58  ;;  %v6934_v58 = vld [vmem:[#allocation5 + $0x30] sm:$0xff] }
 0x3dc   : > { %3781 = vmatmul.bf16.gmra.mxu1 %v6932_v20  ;;  %3987 = vmatmul.bf16.gmra.mxu2 %v6932_v20  ;;  %v8494_v6 = vpop.f32.mrf.mxu3 }
 0x3dd   : > { %4193 = vmatmul.bf16.gmra.mxu3 %v6932_v20  ;;  %9156 = vst [vmem:[#allocation66_spill] sm:$0xff] %v8494_v6 }
 0x3df   : > { %v8480_v59 = vpop.f32.mrf.mxu2 }
 0x3e0   : > { %9151 = vst [vmem:[#allocation62_spill] sm:$0xff] %v8480_v59  ;;  %v6936_v59 = vld [vmem:[#allocation5 + $0x40] sm:$0xff] }
 0x3e1   : > { %4536 = vmatmul.bf16.gmra.mxu0 %v8478_v40  ;;  %v8483_v10 = vpop.f32.mrf.mxu1 }
 0x3e2   : > { %9152 = vst [vmem:[#allocation44_spill] sm:$0xff] %v8483_v10 }
 0x3e7   : > { %v8487_v60 = vpop.f32.mrf.mxu2 }
 0x3e8   : > { %9154 = vst [vmem:[#allocation24_spill] sm:$0xff] %v8487_v60 }
 0x3e9   : > { %v8489_v26 = vpop.f32.mrf.mxu1 }
 0x3ea   : > { %9155 = vst [vmem:[#allocation64_spill] sm:$0xff] %v8489_v26  ;;  %v8505_v26 = vpop.f32.mrf.mxu3 }
 0x3eb   : > { %9160 = vst [vmem:[#allocation10_spill] sm:$0xff] %v8505_v26 }
 0x3ec   : > { %3786 = vmatmul.bf16.gmra.mxu1 %v6933_v45  ;;  %3992 = vmatmul.bf16.gmra.mxu2 %v6933_v45 }
 0x3ed   : > { %4198 = vmatmul.bf16.gmra.mxu3 %v6933_v45 }
 0x3ef   : > { %v8496_v15 = vpop.f32.mrf.mxu2 }
 0x3f0   : > { %9157 = vst [vmem:[#allocation50_spill] sm:$0xff] %v8496_v15 }
 0x3f1   : > { %v8501_v8 = vpop.f32.mrf.mxu1 }
 0x3f2   : > { %9158 = vst [vmem:[#allocation74_spill] sm:$0xff] %v8501_v8  ;;  %v8513_v15 = vpop.f32.mrf.mxu3 }
 0x3f3   : > { %9164 = vst [vmem:[#allocation17_spill] sm:$0xff] %v8513_v15 }
 0x3f7   : > { %v8503_v20 = vpop.f32.mrf.mxu2 }
 0x3f8   : > { %9159 = vst [vmem:[#allocation29_spill] sm:$0xff] %v8503_v20 }
 0x3f9   : > { %v8507_v45 = vpop.f32.mrf.mxu1 }
 0x3fa   : > { %9161 = vst [vmem:[#allocation12_spill] sm:$0xff] %v8507_v45  ;;  %v6987_v45 = vld [vmem:[%s8961_s3 + $0x1d0] sm:$0xff] }
 0x3fb   : > { %4684 = vmatpush.bf16.msra.mxu1 %v6987_v45  ;;  %v6994_v45 = vld [vmem:[%s8961_s3 + $0x208] sm:$0xff] }
 0x3fc   : > { %3791 = vmatmul.bf16.gmra.mxu1 %v6934_v58  ;;  %3997 = vmatmul.bf16.gmra.mxu2 %v6934_v58 }
 0x3fd   : > { %4203 = vmatmul.bf16.gmra.mxu3 %v6934_v58  ;;  %v6935_v58 = vld [vmem:[#allocation5 + $0x38] sm:$0xff]  ;;  %4891 = vmatpush.bf16.msra.mxu2 %v6994_v45 }
 0x3ff   : > { %v8509_v60 = vpop.f32.mrf.mxu2 }
 0x400   : > { %9162 = vst [vmem:[#allocation56_spill] sm:$0xff] %v8509_v60 }
 0x401   : > { %v8511_v12 = vpop.f32.mrf.mxu1 }
 0x402   : > { %9163 = vst [vmem:[#allocation15_spill] sm:$0xff] %v8511_v12  ;;  %v8525_v12 = vpop.f32.mrf.mxu3 }
 0x403   : > { %9167 = vst [vmem:[#allocation22_spill] sm:$0xff] %v8525_v12 }
 0x407   : > { %v8518_v8 = vpop.f32.mrf.mxu2 }
 0x408   : > { %9165 = vst [vmem:[#allocation60_spill] sm:$0xff] %v8518_v8 }
 0x409   : > { %v8523_v20 = vpop.f32.mrf.mxu1 }
 0x40a   : > { %9166 = vst [vmem:[#allocation20_spill] sm:$0xff] %v8523_v20  ;;  %v8531_v10 = vpop.f32.mrf.mxu3 }
 0x40b   : > { %9170 = vst [vmem:[#allocation25_spill] sm:$0xff] %v8531_v10 }
 0x40c   : > { %3796 = vmatmul.bf16.gmra.mxu1 %v6935_v58  ;;  %4002 = vmatmul.bf16.gmra.mxu2 %v6935_v58 }
 0x40d   : > { %4208 = vmatmul.bf16.gmra.mxu3 %v6935_v58 }
 0x40f   : > { %v8527_v60 = vpop.f32.mrf.mxu2 }
 0x410   : > { %9168 = vst [vmem:[#allocation63_spill] sm:$0xff] %v8527_v60 }
 0x411   : > { %v8529_v15 = vpop.f32.mrf.mxu1 }
 0x412   : > { %9169 = vst [vmem:[#allocation41_spill] sm:$0xff] %v8529_v15  ;;  %v8542_v58 = vpop.f32.mrf.mxu3 }
 0x413   : > { %9174 = vst [vmem:[#allocation47_spill] sm:$0xff] %v8542_v58 }
 0x417   : > { %v8533_v22 = vpop.f32.mrf.mxu2 }
 0x418   : > { %9171 = vst [vmem:[#allocation27_spill] sm:$0xff] %v8533_v22  ;;  %v6986_v22 = vld [vmem:[%s8961_s3 + $0x1c8] sm:$0xff] }
 0x419   : > { %v8535_v8 = vpop.f32.mrf.mxu1  ;;  %4685 = vmatpush.bf16.msra.mxu1 %v6986_v22  ;;  %v6993_v22 = vld [vmem:[%s8961_s3 + $0x200] sm:$0xff] }
 0x41a   : > { %9172 = vst [vmem:[#allocation68_spill] sm:$0xff] %v8535_v8  ;;  %v8553_v10 = vpop.f32.mrf.mxu3  ;;  %4892 = vmatpush.bf16.msra.mxu2 %v6993_v22 }
 0x41b   : > { %9177 = vst [vmem:[#allocation73_spill] sm:$0xff] %v8553_v10  ;;  %v6985_v10 = vld [vmem:[%s8961_s3 + $0x1c0] sm:$0xff] }
 0x41c   : > { %3801 = vmatmul.bf16.gmra.mxu1 %v6936_v59  ;;  %4007 = vmatmul.bf16.gmra.mxu2 %v6936_v59 }
 0x41d   : > { %4213 = vmatmul.bf16.gmra.mxu3 %v6936_v59  ;;  %v6937_v59 = vld [vmem:[#allocation5 + $0x48] sm:$0xff]  ;;  %4686 = vmatpush.bf16.msra.mxu1 %v6985_v10 }
 0x41f   : > { %v8540_v20 = vpop.f32.mrf.mxu2 }
 0x420   : > { %9173 = vst [vmem:[#allocation85_spill] sm:$0xff] %v8540_v20 }
 0x421   : > { %v8544_v15 = vpop.f32.mrf.mxu1 }
 0x422   : > { %9175 = vst [vmem:[#allocation30_spill] sm:$0xff] %v8544_v15  ;;  %v8559_v15 = vpop.f32.mrf.mxu3 }
 0x423   : > { %9178 = vst [vmem:[#allocation88_spill] sm:$0xff] %v8559_v15 }
 0x427   : > { %v8549_v8 = vpop.f32.mrf.mxu2 }
 0x428   : > { %9176 = vst [vmem:[#allocation33_spill] sm:$0xff] %v8549_v8 }
 0x429   : > { %v8551_v60 = vpop.f32.mrf.mxu1 }
 0x42a   : > { %v8571_v12 = vpop.f32.mrf.mxu3 }
 0x42b   : > { %9179 = vst [vmem:[#allocation54_spill] sm:$0xff] %v8571_v12 }
 0x42c   : > { %3806 = vmatmul.bf16.gmra.mxu1 %v6937_v59  ;;  %4012 = vmatmul.bf16.gmra.mxu2 %v6937_v59 }
 0x42d   : > { %4218 = vmatmul.bf16.gmra.mxu3 %v6937_v59  ;;  %v6938_v59 = vld [vmem:[#allocation5 + $0x50] sm:$0xff] }
 0x42f   : > { %v8555_v45 = vpop.f32.mrf.mxu2 }
 0x431   : > { %v8557_v20 = vpop.f32.mrf.mxu1 }
 0x432   : > { %v8579_v22 = vpop.f32.mrf.mxu3 }
 0x433   : > { %9180 = vst [vmem:[#allocation75_spill] sm:$0xff] %v8579_v22 }
 0x437   : > { %v8564_v58 = vpop.f32.mrf.mxu2 }
 0x438   : > { %v4058_v62 = vadd.f32 %v8564_v58, %v8311_v13 }
 0x439   : > { %v8566_v8 = vpop.f32.mrf.mxu1 }
 0x43c   : > { %3811 = vmatmul.bf16.gmra.mxu1 %v6938_v59  ;;  %4017 = vmatmul.bf16.gmra.mxu2 %v6938_v59 }
 0x43d   : > { %4223 = vmatmul.bf16.gmra.mxu3 %v6938_v59  ;;  %v8587_v59 = vpop.f32.mrf.mxu3 }
 0x43e   : > { %9181 = vst [vmem:[#allocation76_spill] sm:$0xff] %v8587_v59 }
 0x43f   : > { %v8573_v15 = vpop.f32.mrf.mxu2 }
 0x441   : > { %v8575_v26 = vpop.f32.mrf.mxu1 }
 0x445   : > { %v8593_v22 = vpop.f32.mrf.mxu3 }
 0x446   : > { %9183 = vst [vmem:[#allocation78_spill] sm:$0xff] %v8593_v22 }
 0x447   : > { %v8577_v6 = vpop.f32.mrf.mxu2 }
 0x449   : > { %v8581_v24 = vpop.f32.mrf.mxu1 }
 0x44c   : > { %3816 = vmatmul.bf16.gmra.mxu1 %v6939_v52  ;;  %4022 = vmatmul.bf16.gmra.mxu2 %v6939_v52 }
 0x44d   : > { %4228 = vmatmul.bf16.gmra.mxu3 %v6939_v52 }
 0x44f   : > { %v8583_v10 = vpop.f32.mrf.mxu2 }
 0x451   : > { %v8585_v49 = vpop.f32.mrf.mxu1 }
 0x457   : > { %v8589_v12 = vpop.f32.mrf.mxu2 }
 0x459   : > { %v8591_v2 = vpop.f32.mrf.mxu1 }
 0x45a   : > { %9182 = vst [vmem:[#allocation77_spill] sm:$0xff] %v8591_v2 }
 0x45c   : > { %3821 = vmatmul.bf16.gmra.mxu1 %v6940_v14  ;;  %4027 = vmatmul.bf16.gmra.mxu2 %v6940_v14 }
 0x45d   : > { %4233 = vmatmul.bf16.gmra.mxu3 %v6940_v14 }
 0x45f   : > { %v8595_v29 = vpop.f32.mrf.mxu2 }
 0x461   : > { %v8597_v48 = vpop.f32.mrf.mxu1 }
 0x467   : > { %v8599_v52 = vpop.f32.mrf.mxu2 }
 0x468   : > { %9184 = vst [vmem:[#allocation81_spill] sm:$0xff] %v8599_v52 }
 0x469   : > { %v8601_v43 = vpop.f32.mrf.mxu1 }
 0x46a   : > { %9185 = vst [vmem:[#allocation79_spill] sm:$0xff] %v8601_v43 }
 0x46c   : > { %4687 = vmatmul.bf16.vlgmr.msra.gmra.mxu1 %v8209_v30  ;;  %4893 = vmatmul.bf16.vlgmr.msra.gmra.mxu2 %v8209_v30 }
 0x46f   : > { %v8605_v59 = vpop.f32.mrf.mxu2 }
 0x470   : > { %9186 = vst [vmem:[#allocation80_spill] sm:$0xff] %v8605_v59  ;;  %v3851_v59 = vadd.f32 %v8551_v60, %v8282_v54 }
 0x471   : > { %v8607_v51 = vpop.f32.mrf.mxu1 }
 0x472   : > { %9187 = vst [vmem:[#allocation84_spill] sm:$0xff] %v8607_v51 }
 0x477   : > { %v8609_v19 = vpop.f32.mrf.mxu2 }
 0x478   : > { %9188 = vst [vmem:[#allocation83_spill] sm:$0xff] %v8609_v19 }
 0x479   : > { %v8611_v22 = vpop.f32.mrf.mxu1 }
 0x47a   : > { %9189 = vst [vmem:[#allocation82_spill] sm:$0xff] %v8611_v22 }
 0x47c   : > { %4692 = vmatmul.bf16.gmra.mxu1 %v8231_v16  ;;  %4898 = vmatmul.bf16.gmra.mxu2 %v8231_v16 }
 0x47f   : > { %v8615_v14 = vpop.f32.mrf.mxu2 }
 0x480   : > { %9190 = vst [vmem:[#allocation87_spill] sm:$0xff] %v8615_v14 }
 0x481   : > { %v8617_v31 = vpop.f32.mrf.mxu1 }
 0x482   : > { %9191 = vst [vmem:[#allocation86_spill] sm:$0xff] %v8617_v31 }
 0x487   : > { %v8619_v5 = vpop.f32.mrf.mxu2 }
 0x488   : > { %9192 = vst [vmem:[#allocation11_spill] sm:$0xff] %v8619_v5 }
 0x489   : > { %v8621_v43 = vpop.f32.mrf.mxu1 }
 0x48a   : > { %9193 = vst [vmem:[#allocation13_spill] sm:$0xff] %v8621_v43 }
 0x48c   : > { %4697 = vmatmul.bf16.gmra.mxu1 %v8247_v42  ;;  %4903 = vmatmul.bf16.gmra.mxu2 %v8247_v42 }
 0x48f   : > { %v8625_v30 = vpop.f32.mrf.mxu2 }
 0x490   : > { %9194 = vst [vmem:[#allocation16_spill] sm:$0xff] %v8625_v30 }
 0x491   : > { %v8627_v32 = vpop.f32.mrf.mxu1 }
 0x492   : > { %9195 = vst [vmem:[#allocation18_spill] sm:$0xff] %v8627_v32 }
 0x497   : > { %v8629_v22 = vpop.f32.mrf.mxu2 }
 0x498   : > { %9196 = vst [vmem:[#allocation21_spill] sm:$0xff] %v8629_v22 }
 0x499   : > { %v8631_v19 = vpop.f32.mrf.mxu1 }
 0x49a   : > { %9197 = vst [vmem:[#allocation23_spill] sm:$0xff] %v8631_v19 }
 0x49c   : > { %4702 = vmatmul.bf16.gmra.mxu1 %v8267_v33  ;;  %4908 = vmatmul.bf16.gmra.mxu2 %v8267_v33  ;;  %v4482_v33 = vpop.f32.mrf.mxu0 }
 0x49f   : > { %v8635_v16 = vpop.f32.mrf.mxu2 }
 0x4a0   : > { %9198 = vst [vmem:[#allocation26_spill] sm:$0xff] %v8635_v16 }
 0x4a1   : > { %v8637_v5 = vpop.f32.mrf.mxu1 }
 0x4a2   : > { %9199 = vst [vmem:[#allocation28_spill] sm:$0xff] %v8637_v5 }
 0x4a4   : > { %v4484_v16 = vpop.f32.mrf.mxu0 }
 0x4a7   : > { %v8639_v43 = vpop.f32.mrf.mxu2 }
 0x4a8   : > { %9200 = vst [vmem:[#allocation31_spill] sm:$0xff] %v8639_v43  ;;  %v4179_v43 = vpop.f32.mrf.mxu3 }
 0x4a9   : > { %v8641_v31 = vpop.f32.mrf.mxu1  ;;  %v4263_v37 = vadd.f32 %v4179_v43, %v8309_v63  ;;  %v8715_v43 = vld [vmem:[%s8962_s4] ss:$0 sm:$0xff] }
 0x4aa   : > { %9201 = vst [vmem:[#allocation34_spill] sm:$0xff] %v8641_v31 }
 0x4ac   : > { %4707 = vmatmul.bf16.gmra.mxu1 %v8292_v56  ;;  %4913 = vmatmul.bf16.gmra.mxu2 %v8292_v56 }
 0x4af   : > { %v8645_v42 = vpop.f32.mrf.mxu2 }
 0x4b0   : > { %9202 = vst [vmem:[#allocation35_spill] sm:$0xff] %v8645_v42  ;;  %v4181_v56 = vpop.f32.mrf.mxu3 }
 0x4b1   : > { %v8647_v22 = vpop.f32.mrf.mxu1  ;;  %v4264_v28 = vadd.f32 %v4181_v56, %v8334_v3 }
 0x4b2   : > { %9203 = vst [vmem:[#allocation37_spill] sm:$0xff] %v8647_v22 }
 0x4b7   : > { %v8649_v19 = vpop.f32.mrf.mxu2 }
 0x4b8   : > { %9204 = vst [vmem:[#allocation38_spill] sm:$0xff] %v8649_v19  ;;  %v8667_v19 = vpop.f32.mrf.mxu0 }
 0x4b9   : > { %v8651_v32 = vpop.f32.mrf.mxu1 }
 0x4ba   : > { %9205 = vst [vmem:[#allocation40_spill] sm:$0xff] %v8651_v32 }
 0x4bc   : > { %4712 = vmatmul.bf16.gmra.mxu1 %v8326_v1  ;;  %4918 = vmatmul.bf16.gmra.mxu2 %v8326_v1  ;;  %v8669_v1 = vpop.f32.mrf.mxu3 }
 0x4bf   : > { %v8655_v5 = vpop.f32.mrf.mxu2 }
 0x4c0   : > { %9206 = vst [vmem:[#allocation43_spill] sm:$0xff] %v8655_v5  ;;  %v4489_v14 = vpop.f32.mrf.mxu0 }
 0x4c1   : > { %v8657_v31 = vpop.f32.mrf.mxu1 }
 0x4c2   : > { %9207 = vst [vmem:[#allocation46_spill] sm:$0xff] %v8657_v31 }
 0x4c7   : > { %v8659_v30 = vpop.f32.mrf.mxu2 }
 0x4c8   : > { %9208 = vst [vmem:[#allocation49_spill] sm:$0xff] %v8659_v30  ;;  %v8677_v30 = vpop.f32.mrf.mxu3 }
 0x4c9   : > { %v8661_v42 = vpop.f32.mrf.mxu1 }
 0x4ca   : > { %9209 = vst [vmem:[#allocation53_spill] sm:$0xff] %v8661_v42 }
 0x4cc   : > { %4717 = vmatmul.bf16.gmra.mxu1 %v8365_v23  ;;  %4923 = vmatmul.bf16.gmra.mxu2 %v8365_v23 }
 0x4cf   : > { %v8665_v32 = vpop.f32.mrf.mxu2 }
 0x4d0   : > { %9210 = vst [vmem:[#allocation89_spill] sm:$0xff] %v8665_v32  ;;  %v8685_v32 = vpop.f32.mrf.mxu0  ;;  %v8687_v0 = vpop.f32.mrf.mxu3 }
 0x4d1   : > { %v8671_v22 = vpop.f32.mrf.mxu1 }
 0x4d2   : > { %9211 = vst [vmem:[#allocation90_spill] sm:$0xff] %v8671_v22 }
 0x4d7   : > { %v8673_v5 = vpop.f32.mrf.mxu2 }
 0x4d8   : > { %9212 = vst [vmem:[#allocation91_spill] sm:$0xff] %v8673_v5  ;;  %v8697_v51 = vpop.f32.mrf.mxu3 }
 0x4d9   : > { %v8675_v31 = vpop.f32.mrf.mxu1 }
 0x4da   : > { %9213 = vst [vmem:[#allocation92_spill] sm:$0xff] %v8675_v31  ;;  %v8693_v31 = vpop.f32.mrf.mxu0 }
 0x4dc   : > { %4722 = vmatmul.bf16.gmra.mxu1 %v8393_v17  ;;  %4928 = vmatmul.bf16.gmra.mxu2 %v8393_v17  ;;  %v4057_v17 = vadd.f32 %v8555_v45, %v8294_v27  ;;  %v4566_v45 = vadd.f32 %v4482_v33, %v3851_v59  ;;  %v3854_v59 = vadd.f32 %v8575_v26, %v8336_v7 }
 0x4dd   : > { %v4265_v7 = vadd.f32 %v8669_v1, %v8360_v47 }
 0x4de   : > { %v4569_v26 = vadd.f32 %v4489_v14, %v3854_v59 }
 0x4df   : > { %v8681_v23 = vpop.f32.mrf.mxu2 }
 0x4e0   : > { %9214 = vst [vmem:[#allocation93_spill] sm:$0xff] %v8681_v23  ;;  %v8710_v54 = vpop.f32.mrf.mxu3 }
 0x4e1   : > { %v8683_v42 = vpop.f32.mrf.mxu1 }
 0x4e2   : > { %9215 = vst [vmem:[#allocation94_spill] sm:$0xff] %v8683_v42  ;;  %v3852_v42 = vadd.f32 %v8557_v20, %v8300_v25 }
 0x4e4   : > { %v4567_v38 = vadd.f32 %v4484_v16, %v3852_v42 }
 0x4e7   : > { %v8689_v22 = vpop.f32.mrf.mxu2 }
 0x4e8   : > { %9216 = vst [vmem:[#allocation95_spill] sm:$0xff] %v8689_v22 }
 0x4e9   : > { %v4688_v5 = vpop.f32.mrf.mxu1 }
 0x4ea   : > { %v4772_v22 = vadd.f32 %v4688_v5, %v4057_v17  ;;  %v8708_v5 = vpop.f32.mrf.mxu0 }
 0x4ec   : > { %4727 = vmatmul.bf16.gmra.mxu1 %v8423_v34  ;;  %4933 = vmatmul.bf16.gmra.mxu2 %v8423_v34  ;;  %v5098_v2 = vrot.slane %v4772_v22, 1 }
 0x4ef   : > { %v4894_v23 = vpop.f32.mrf.mxu2 }
 0x4f0   : > { %v4978_v52 = vadd.f32 %v4894_v23, %v4263_v37  ;;  %v8732_v23 = vpop.f32.mrf.mxu3 }
 0x4f1   : > { %v4690_v46 = vpop.f32.mrf.mxu1 }
 0x4f2   : > { %v4773_v34 = vadd.f32 %v4690_v46, %v4058_v62  ;;  %v5230_v62 = vrot.slane %v4978_v52, 2  ;;  %v4060_v52 = vadd.f32 %v8577_v6, %v8351_v50 }
 0x4f4   : > { %v5099_v27 = vrot.slane %v4773_v34, 1 }
 0x4f6   : > { %v5100_v25 = vsel %vm2655_vm0, %v5098_v2, %v5099_v27  ;;  %v5159_v20 = vadd.f32 %v5099_v27, %v4567_v38 }
 0x4f7   : > { %v5158_v11 = vadd.f32 %v5100_v25, %v4566_v45  ;;  %v4896_v13 = vpop.f32.mrf.mxu2 }
 0x4f8   : > { %v4979_v58 = vadd.f32 %v4896_v13, %v4264_v28  ;;  %v4059_v28 = vadd.f32 %v8573_v15, %v8328_v39  ;;  %v8730_v15 = vpop.f32.mrf.mxu0 }
 0x4f9   : > { %v4693_v46 = vpop.f32.mrf.mxu1 }
 0x4fa   : > { %v5231_v63 = vrot.slane %v4979_v58, 2  ;;  %v4774_v42 = vadd.f32 %v4693_v46, %v4059_v28  ;;  %v4062_v28 = vadd.f32 %v8589_v12, %v8384_v35 }
 0x4fc   : > { %v5232_v3 = vsel %vm2810_vm1, %v5230_v62, %v5231_v63  ;;  %v5291_v37 = vadd.f32 %v5231_v63, %v5159_v20  ;;  %4732 = vmatmul.bf16.gmra.mxu1 %v8441_v18  ;;  %4938 = vmatmul.bf16.gmra.mxu2 %v8441_v18  ;;  %v5101_v50 = vrot.slane %v4774_v42, 1 }
 0x4fd   : > { %v5290_v38 = vadd.f32 %v5232_v3, %v5158_v11  ;;  %v3853_v11 = vadd.f32 %v8566_v8, %v8316_v53  ;;  %v4266_v53 = vadd.f32 %v8677_v30, %v8382_v55  ;;  %v8747_v55 = vpop.f32.mrf.mxu3  ;;  %v4061_v30 = vadd.f32 %v8583_v10, %v8367_v57 }
 0x4fe   : > { %v5319_v2 = vadd.f32 %v8715_v43, %v5291_v37 }
 0x4ff   : > { %v5318_v60 = vadd.f32 %v8715_v43, %v5290_v38  ;;  %v4899_v22 = vpop.f32.mrf.mxu2  ;;  %v4568_v34 = vadd.f32 %v8667_v19, %v3853_v11  ;;  %v3856_v38 = vadd.f32 %v8585_v49, %v8370_v41 }
 0x500   : > { %v5343_v16 = vmax.f32 %v5319_v2, 0.0  ;;  %v4980_v8 = vadd.f32 %v4899_v22, %v4265_v7  ;;  %v8742_v14 = vpop.f32.mrf.mxu0 }
 0x501   : > { %v5342_v18 = vmax.f32 %v5318_v60, 0.0  ;;  %v4695_v39 = vpop.f32.mrf.mxu1  ;;  %v3855_v60 = vadd.f32 %v8581_v24, %v8356_v21  ;;  %v4571_v42 = vadd.f32 %v8693_v31, %v3856_v38  ;;  %v4268_v21 = vadd.f32 %v8697_v51, %v8414_v44 }
 0x502   : > { %v5367_v33 = vpack.c.bf16 %v5343_v16, %v5343_v16  ;;  %v4775_v56 = vadd.f32 %v4695_v39, %v4060_v52  ;;  %v5233_v46 = vrot.slane %v4980_v8, 2  ;;  %v4267_v16 = vadd.f32 %v8687_v0, %v8395_v9  ;;  %v9217_v8 = vld [vmem:[#allocation70_spill] sm:$0xff] }
 0x503   : > { %v5366_v17 = vpack.c.bf16 %v5342_v18, %v5342_v18  ;;  %v4570_v35 = vadd.f32 %v8685_v32, %v3855_v60  ;;  %v4063_v51 = vadd.f32 %v8595_v29, %v8397_v4 }
 0x504   : > { %5391 = vst [vmem:[%s7133_s29 + $0x4] sm:$0x3] %v5367_v33  ;;  %v5102_v6 = vrot.slane %v4775_v56, 1 }
 0x505   : > { %5390 = vst [vmem:[%s7133_s29] sm:$0xf] %v5366_v17  ;;  %v8770_v39 = vpop.f32.mrf.mxu3 }
 0x506   : > { %v5103_v27 = vsel %vm2655_vm0, %v5101_v50, %v5102_v6  ;;  %v5161_v45 = vadd.f32 %v5102_v6, %v4569_v26 }
 0x507   : > { %v5160_v25 = vadd.f32 %v5103_v27, %v4568_v34  ;;  %v4901_v20 = vpop.f32.mrf.mxu2  ;;  %v9218_v27 = vld [vmem:[#allocation81_spill] sm:$0xff] }
 0x508   : > { %v4981_v13 = vadd.f32 %v4901_v20, %v4266_v53  ;;  %v8765_v12 = vpop.f32.mrf.mxu0  ;;  %v3858_v53 = vadd.f32 %v8597_v48, %v8400_v61  ;;  %v9219_v20 = vld [vmem:[#allocation52_spill] sm:$0xff] }
 0x509   : > { %v4698_v58 = vpop.f32.mrf.mxu1 }
 0x50a   : > { %v5234_v47 = vrot.slane %v4981_v13, 2  ;;  %v4776_v2 = vadd.f32 %v4698_v58, %v4061_v30  ;;  %v9220_v13 = vld [vmem:[#allocation77_spill] sm:$0xff]  ;;  %v4573_v61 = vadd.f32 %v8730_v15, %v3858_v53 }
 0x50b   : > { %v3857_v4 = vadd.f32 %v9220_v13, %v9219_v20 }
 0x50c   : > { %v5235_v1 = vsel %vm2810_vm1, %v5233_v46, %v5234_v47  ;;  %v5293_v62 = vadd.f32 %v5234_v47, %v5161_v45  ;;  %4737 = vmatmul.bf16.gmra.mxu1 %v8457_v36  ;;  %4943 = vmatmul.bf16.gmra.mxu2 %v8457_v36  ;;  %v5104_v41 = vrot.slane %v4776_v2, 1  ;;  %v4064_v45 = vadd.f32 %v9218_v27, %v9217_v8  ;;  %v9231_v27 = vld [vmem:[#allocation36_spill] sm:$0xff] }
 0x50d   : > { %v5292_v19 = vadd.f32 %v5235_v1, %v5160_v25  ;;  %v8787_v29 = vpop.f32.mrf.mxu3 }
 0x50e   : > { %v5321_v63 = vadd.f32 %v8715_v43, %v5293_v62 }
 0x50f   : > { %v5320_v3 = vadd.f32 %v8715_v43, %v5292_v19  ;;  %v4904_v37 = vpop.f32.mrf.mxu2  ;;  %v9221_v19 = vld [vmem:[#allocation45_spill] sm:$0xff] }
 0x510   : > { %v5345_v36 = vmax.f32 %v5321_v63, 0.0  ;;  %v4982_v24 = vadd.f32 %v4904_v37, %v4267_v16  ;;  %v8779_v34 = vpop.f32.mrf.mxu0  ;;  %v4269_v30 = vadd.f32 %v8710_v54, %v9221_v19  ;;  %v9222_v37 = vld [vmem:[#allocation72_spill] sm:$0xff] }
 0x511   : > { %v5344_v22 = vmax.f32 %v5320_v3, 0.0  ;;  %v4700_v57 = vpop.f32.mrf.mxu1  ;;  %v4572_v3 = vadd.f32 %v8708_v5, %v3857_v4  ;;  %v4270_v38 = vadd.f32 %v8732_v23, %v9222_v37 }
 0x512   : > { %v5369_v10 = vpack.c.bf16 %v5345_v36, %v5345_v36  ;;  %v4777_v59 = vadd.f32 %v4700_v57, %v4062_v28  ;;  %v5236_v56 = vrot.slane %v4982_v24, 2 }
 0x513   : > { %v5368_v52 = vpack.c.bf16 %v5344_v22, %v5344_v22 }
 0x514   : > { %5393 = vst [vmem:[%s7133_s29 + $0xc] sm:$0x3] %v5369_v10  ;;  %v5105_v49 = vrot.slane %v4777_v59, 1 }
 0x515   : > { %5392 = vst [vmem:[%s7133_s29 + $0x8] sm:$0xf] %v5368_v52  ;;  %v8798_v52 = vpop.f32.mrf.mxu3 }
 0x516   : > { %v5106_v11 = vsel %vm2655_vm0, %v5104_v41, %v5105_v49  ;;  %v5163_v18 = vadd.f32 %v5105_v49, %v4571_v42  ;;  %v9223_v41 = vld [vmem:[#allocation67_spill] sm:$0xff]  ;;  %v9224_v49 = vld [vmem:[#allocation80_spill] sm:$0xff] }
 0x517   : > { %v5162_v9 = vadd.f32 %v5106_v11, %v4570_v35  ;;  %v4906_v0 = vpop.f32.mrf.mxu2  ;;  %v4065_v23 = vadd.f32 %v9224_v49, %v9223_v41  ;;  %v9225_v11 = vld [vmem:[#allocation42_spill] sm:$0xff] }
 0x518   : > { %v4983_v31 = vadd.f32 %v4906_v0, %v4268_v21  ;;  %v4509_v54 = vpop.f32.mrf.mxu0  ;;  %v9227_v0 = vld [vmem:[#allocation32_spill] sm:$0xff]  ;;  %v9239_v49 = vld [vmem:[#allocation58_spill] sm:$0xff] }
 0x519   : > { %v4703_v33 = vpop.f32.mrf.mxu1 }
 0x51a   : > { %v5237_v17 = vrot.slane %v4983_v31, 2  ;;  %v4778_v25 = vadd.f32 %v4703_v33, %v4063_v51  ;;  %v9228_v31 = vld [vmem:[#allocation83_spill] sm:$0xff] }
 0x51b   : > { %v4066_v33 = vadd.f32 %v9228_v31, %v9227_v0  ;;  %v9241_v0 = vld [vmem:[#allocation59_spill] sm:$0xff] }
 0x51c   : > { %v5238_v32 = vsel %vm2810_vm1, %v5236_v56, %v5237_v17  ;;  %v5295_v7 = vadd.f32 %v5237_v17, %v5163_v18  ;;  %4742 = vmatmul.bf16.gmra.mxu1 %v8478_v40  ;;  %4948 = vmatmul.bf16.gmra.mxu2 %v8478_v40  ;;  %v5107_v48 = vrot.slane %v4778_v25, 1  ;;  %v9226_v18 = vld [vmem:[#allocation84_spill] sm:$0xff]  ;;  %v4273_v31 = vadd.f32 %v8787_v29, %v9241_v0 }
 0x51d   : > { %v5294_v44 = vadd.f32 %v5238_v32, %v5162_v9  ;;  %v3860_v9 = vadd.f32 %v9226_v18, %v9225_v11  ;;  %v9229_v32 = vld [vmem:[#allocation71_spill] sm:$0xff]  ;;  %v8818_v4 = vpop.f32.mrf.mxu3 }
 0x51e   : > { %v5323_v26 = vadd.f32 %v8715_v43, %v5295_v7  ;;  %v9230_v7 = vld [vmem:[#allocation79_spill] sm:$0xff] }
 0x51f   : > { %v5322_v50 = vadd.f32 %v8715_v43, %v5294_v44  ;;  %v4909_v6 = vpop.f32.mrf.mxu2  ;;  %v3859_v44 = vadd.f32 %v9230_v7, %v9229_v32  ;;  %v9242_v7 = vld [vmem:[#allocation69_spill] sm:$0xff] }
 0x520   : > { %v5347_v40 = vmax.f32 %v5323_v26, 0.0  ;;  %v4984_v28 = vadd.f32 %v4909_v6, %v4269_v30  ;;  %v8811_v8 = vpop.f32.mrf.mxu0 }
 0x521   : > { %v5346_v58 = vmax.f32 %v5322_v50, 0.0  ;;  %v4705_v46 = vpop.f32.mrf.mxu1  ;;  %v4574_v13 = vadd.f32 %v8742_v14, %v3859_v44  ;;  %v4274_v44 = vadd.f32 %v8798_v52, %v9242_v7 }
 0x522   : > { %v5371_v47 = vpack.c.bf16 %v5347_v40, %v5347_v40  ;;  %v4779_v1 = vadd.f32 %v4705_v46, %v4064_v45  ;;  %v5239_v59 = vrot.slane %v4984_v28, 2  ;;  %v4271_v45 = vadd.f32 %v8747_v55, %v9231_v27  ;;  %v9234_v28 = vld [vmem:[#allocation87_spill] sm:$0xff] }
 0x523   : > { %v5370_v62 = vpack.c.bf16 %v5346_v58, %v5346_v58  ;;  %v4575_v40 = vadd.f32 %v8765_v12, %v3860_v9  ;;  %v9232_v58 = vld [vmem:[#allocation57_spill] sm:$0xff] }
 0x524   : > { %5395 = vst [vmem:[%s7133_s29 + $0x14] sm:$0x3] %v5371_v47  ;;  %v5108_v63 = vrot.slane %v4779_v1, 1  ;;  %v4272_v46 = vadd.f32 %v8770_v39, %v9232_v58  ;;  %v9243_v58 = vld [vmem:[#allocation55_spill] sm:$0xff] }
 0x525   : > { %5394 = vst [vmem:[%s7133_s29 + $0x10] sm:$0xf] %v5370_v62 }
 0x526   : > { %v5109_v36 = vsel %vm2655_vm0, %v5107_v48, %v5108_v63  ;;  %v5165_v2 = vadd.f32 %v5108_v63, %v4573_v61 }
 0x527   : > { %v5164_v60 = vadd.f32 %v5109_v36, %v4572_v3  ;;  %v4911_v22 = vpop.f32.mrf.mxu2 }
 0x528   : > { %v4985_v57 = vadd.f32 %v4911_v22, %v4270_v38  ;;  %v4514_v37 = vpop.f32.mrf.mxu0  ;;  %v9233_v38 = vld [vmem:[#allocation48_spill] sm:$0xff] }
 0x529   : > { %v4708_v10 = vpop.f32.mrf.mxu1  ;;  %v4067_v36 = vadd.f32 %v9234_v28, %v9233_v38  ;;  %v9250_v38 = vld [vmem:[#allocation13_spill] sm:$0xff] }
 0x52a   : > { %v5240_v15 = vrot.slane %v4985_v57, 2  ;;  %v4780_v17 = vadd.f32 %v4708_v10, %v4065_v23  ;;  %v9235_v57 = vld [vmem:[#allocation51_spill] sm:$0xff]  ;;  %v9236_v10 = vld [vmem:[#allocation86_spill] sm:$0xff] }
 0x52b   : > { %v9240_v23 = vld [vmem:[#allocation82_spill] sm:$0xff] }
 0x52c   : > { %v5241_v16 = vsel %vm2810_vm1, %v5239_v59, %v5240_v15  ;;  %v5297_v5 = vadd.f32 %v5240_v15, %v5165_v2  ;;  %v5110_v25 = vrot.slane %v4780_v17, 1  ;;  %v4211_v2 = vpop.f32.mrf.mxu3  ;;  %v3862_v59 = vadd.f32 %v9236_v10, %v9235_v57  ;;  %v9237_v15 = vld [vmem:[#allocation61_spill] sm:$0xff] }
 0x52d   : > { %v5296_v42 = vadd.f32 %v5241_v16, %v5164_v60  ;;  %v9238_v16 = vld [vmem:[#allocation11_spill] sm:$0xff] }
 0x52e   : > { %v5325_v35 = vadd.f32 %v8715_v43, %v5297_v5  ;;  %v4068_v5 = vadd.f32 %v9238_v16, %v9237_v15  ;;  %v9251_v15 = vld [vmem:[#allocation66_spill] sm:$0xff] }
 0x52f   : > { %v5324_v21 = vadd.f32 %v8715_v43, %v5296_v42  ;;  %v4914_v24 = vpop.f32.mrf.mxu2  ;;  %v4275_v16 = vadd.f32 %v8818_v4, %v9251_v15 }
 0x530   : > { %v5349_v56 = vmax.f32 %v5325_v35, 0.0  ;;  %v4986_v47 = vadd.f32 %v4914_v24, %v4271_v45  ;;  %v3861_v35 = vadd.f32 %v9240_v23, %v9239_v49  ;;  %v8843_v27 = vpop.f32.mrf.mxu0  ;;  %v9252_v23 = vld [vmem:[#allocation10_spill] sm:$0xff] }
 0x531   : > { %v5348_v51 = vmax.f32 %v5324_v21, 0.0  ;;  %v4710_v26 = vpop.f32.mrf.mxu1 }
 0x532   : > { %v5373_v50 = vpack.c.bf16 %v5349_v56, %v5349_v56  ;;  %v4781_v6 = vadd.f32 %v4710_v26, %v4066_v33  ;;  %v5242_v12 = vrot.slane %v4986_v47, 2  ;;  %v4577_v33 = vadd.f32 %v4509_v54, %v3862_v59 }
 0x533   : > { %v5372_v53 = vpack.c.bf16 %v5348_v51, %v5348_v51  ;;  %v4576_v32 = vadd.f32 %v8779_v34, %v3861_v35  ;;  %v4276_v35 = vadd.f32 %v4211_v2, %v9252_v23 }
 0x534   : > { %5397 = vst [vmem:[%s7133_s29 + $0x1c] sm:$0x3] %v5373_v50  ;;  %v5111_v20 = vrot.slane %v4781_v6, 1  ;;  %v4214_v29 = vpop.f32.mrf.mxu3 }
 0x535   : > { %5396 = vst [vmem:[%s7133_s29 + $0x18] sm:$0xf] %v5372_v53 }
 0x536   : > { %v5112_v1 = vsel %vm2655_vm0, %v5110_v25, %v5111_v20  ;;  %v5167_v62 = vadd.f32 %v5111_v20, %v4575_v40 }
 0x537   : > { %v5166_v19 = vadd.f32 %v5112_v1, %v4574_v13  ;;  %v4916_v30 = vpop.f32.mrf.mxu2 }
 0x538   : > { %v4987_v55 = vadd.f32 %v4916_v30, %v4272_v46  ;;  %v9244_v46 = vld [vmem:[#allocation16_spill] sm:$0xff]  ;;  %v9246_v30 = vld [vmem:[#allocation18_spill] sm:$0xff] }
 0x539   : > { %v4713_v61 = vpop.f32.mrf.mxu1  ;;  %v4069_v52 = vadd.f32 %v9244_v46, %v9243_v58  ;;  %v9260_v58 = vld [vmem:[#allocation23_spill] sm:$0xff] }
 0x53a   : > { %v5243_v48 = vrot.slane %v4987_v55, 2  ;;  %v4782_v41 = vadd.f32 %v4713_v61, %v4067_v36  ;;  %v9247_v61 = vld [vmem:[#allocation65_spill] sm:$0xff] }
 0x53c   : > { %v5244_v63 = vsel %vm2810_vm1, %v5242_v12, %v5243_v48  ;;  %v5299_v3 = vadd.f32 %v5243_v48, %v5167_v62  ;;  %v5113_v56 = vrot.slane %v4782_v41, 1  ;;  %v9248_v12 = vld [vmem:[#allocation21_spill] sm:$0xff]  ;;  %v4216_v10 = vpop.f32.mrf.mxu3 }
 0x53d   : > { %v5298_v14 = vadd.f32 %v5244_v63, %v5166_v19  ;;  %v9245_v19 = vld [vmem:[#allocation39_spill] sm:$0xff]  ;;  %v4070_v48 = vadd.f32 %v9248_v12, %v9247_v61 }
 0x53e   : > { %v5327_v39 = vadd.f32 %v8715_v43, %v5299_v3  ;;  %v3864_v55 = vadd.f32 %v9246_v30, %v9245_v19  ;;  %v9261_v30 = vld [vmem:[#allocation17_spill] sm:$0xff] }
 0x53f   : > { %v5326_v60 = vadd.f32 %v8715_v43, %v5298_v14  ;;  %v4919_v22 = vpop.f32.mrf.mxu2  ;;  %v9249_v14 = vld [vmem:[#allocation14_spill] sm:$0xff] }
 0x540   : > { %v5351_v42 = vmax.f32 %v5327_v39, 0.0  ;;  %v4988_v51 = vadd.f32 %v4919_v22, %v4273_v31  ;;  %v3863_v28 = vadd.f32 %v9250_v38, %v9249_v14  ;;  %v9262_v14 = vld [vmem:[#allocation22_spill] sm:$0xff] }
 0x541   : > { %v5350_v21 = vmax.f32 %v5326_v60, 0.0  ;;  %v4715_v24 = vpop.f32.mrf.mxu1  ;;  %v4519_v60 = vpop.f32.mrf.mxu0  ;;  %v4278_v38 = vadd.f32 %v4216_v10, %v9262_v14 }
 0x542   : > { %v5375_v11 = vpack.c.bf16 %v5351_v42, %v5351_v42  ;;  %v4783_v18 = vadd.f32 %v4715_v24, %v4068_v5  ;;  %v5245_v40 = vrot.slane %v4988_v51, 2  ;;  %v4579_v5 = vadd.f32 %v4514_v37, %v3864_v55 }
 0x543   : > { %v5374_v9 = vpack.c.bf16 %v5350_v21, %v5350_v21  ;;  %v4578_v49 = vadd.f32 %v8811_v8, %v3863_v28  ;;  %v9253_v8 = vld [vmem:[#allocation62_spill] sm:$0xff]  ;;  %v4277_v55 = vadd.f32 %v4214_v29, %v9261_v30 }
 0x544   : > { %5399 = vst [vmem:[%s7133_s29 + $0x24] sm:$0x3] %v5375_v11  ;;  %v5114_v17 = vrot.slane %v4783_v18, 1 }
 0x545   : > { %5398 = vst [vmem:[%s7133_s29 + $0x20] sm:$0xf] %v5374_v9 }
 0x546   : > { %v5115_v26 = vsel %vm2655_vm0, %v5113_v56, %v5114_v17  ;;  %v5169_v50 = vadd.f32 %v5114_v17, %v4577_v33 }
 0x547   : > { %v5168_v6 = vadd.f32 %v5115_v26, %v4576_v32  ;;  %v4921_v53 = vpop.f32.mrf.mxu2  ;;  %v4219_v32 = vpop.f32.mrf.mxu3 }
 0x548   : > { %v4989_v45 = vadd.f32 %v4921_v53, %v4274_v44  ;;  %v9254_v44 = vld [vmem:[#allocation26_spill] sm:$0xff]  ;;  %v9256_v53 = vld [vmem:[#allocation28_spill] sm:$0xff] }
 0x549   : > { %v4718_v54 = vpop.f32.mrf.mxu1  ;;  %v4522_v4 = vpop.f32.mrf.mxu0  ;;  %v4071_v51 = vadd.f32 %v9254_v44, %v9253_v8 }
 0x54a   : > { %v5246_v25 = vrot.slane %v4989_v45, 2  ;;  %v4784_v3 = vadd.f32 %v4718_v54, %v4069_v52  ;;  %v9257_v54 = vld [vmem:[#allocation24_spill] sm:$0xff] }
 0x54c   : > { %v5247_v20 = vsel %vm2810_vm1, %v5245_v40, %v5246_v25  ;;  %v5301_v34 = vadd.f32 %v5246_v25, %v5169_v50  ;;  %v5116_v42 = vrot.slane %v4784_v3, 1  ;;  %v9258_v40 = vld [vmem:[#allocation31_spill] sm:$0xff] }
 0x54d   : > { %v5300_v13 = vadd.f32 %v5247_v20, %v5168_v6  ;;  %v9255_v6 = vld [vmem:[#allocation44_spill] sm:$0xff]  ;;  %v4072_v25 = vadd.f32 %v9258_v40, %v9257_v54 }
 0x54e   : > { %v5329_v47 = vadd.f32 %v8715_v43, %v5301_v34  ;;  %v3866_v45 = vadd.f32 %v9256_v53, %v9255_v6  ;;  %v9271_v53 = vld [vmem:[#allocation25_spill] sm:$0xff] }
 0x54f   : > { %v5328_v1 = vadd.f32 %v8715_v43, %v5300_v13  ;;  %v4924_v62 = vpop.f32.mrf.mxu2  ;;  %v9259_v13 = vld [vmem:[#allocation19_spill] sm:$0xff] }
 0x550   : > { %v5353_v63 = vmax.f32 %v5329_v47, 0.0  ;;  %v4990_v21 = vadd.f32 %v4924_v62, %v4275_v16  ;;  %v3865_v46 = vadd.f32 %v9260_v58, %v9259_v13  ;;  %v4581_v61 = vadd.f32 %v4519_v60, %v3866_v45 }
 0x551   : > { %v5352_v36 = vmax.f32 %v5328_v1, 0.0  ;;  %v4720_v39 = vpop.f32.mrf.mxu1  ;;  %v4524_v3 = vpop.f32.mrf.mxu0  ;;  %v4279_v45 = vadd.f32 %v4219_v32, %v9271_v53 }
 0x552   : > { %v5377_v22 = vpack.c.bf16 %v5353_v63, %v5353_v63  ;;  %v4785_v57 = vadd.f32 %v4720_v39, %v4070_v48  ;;  %v5248_v33 = vrot.slane %v4990_v21, 2  ;;  %v4580_v63 = vadd.f32 %v8843_v27, %v3865_v46  ;;  %v9263_v27 = vld [vmem:[#allocation50_spill] sm:$0xff] }
 0x553   : > { %v5376_v59 = vpack.c.bf16 %v5352_v36, %v5352_v36 }
 0x554   : > { %5401 = vst [vmem:[%s7133_s29 + $0x2c] sm:$0x3] %v5377_v22  ;;  %v5117_v41 = vrot.slane %v4785_v57, 1  ;;  %v4221_v22 = vpop.f32.mrf.mxu3 }
 0x555   : > { %5400 = vst [vmem:[%s7133_s29 + $0x28] sm:$0xf] %v5376_v59 }
 0x556   : > { %v5118_v24 = vsel %vm2655_vm0, %v5116_v42, %v5117_v41  ;;  %v5171_v11 = vadd.f32 %v5117_v41, %v4579_v5 }
 0x557   : > { %v5170_v18 = vadd.f32 %v5118_v24, %v4578_v49  ;;  %v4926_v9 = vpop.f32.mrf.mxu2  ;;  %v9264_v49 = vld [vmem:[#allocation35_spill] sm:$0xff] }
 0x558   : > { %v4991_v0 = vadd.f32 %v4926_v9, %v4276_v35  ;;  %v4073_v23 = vadd.f32 %v9264_v49, %v9263_v27 }
 0x559   : > { %v4723_v31 = vpop.f32.mrf.mxu1  ;;  %v4527_v24 = vpop.f32.mrf.mxu0 }
 0x55a   : > { %v5249_v56 = vrot.slane %v4991_v0, 2  ;;  %v4786_v34 = vadd.f32 %v4723_v31, %v4071_v51  ;;  %v9267_v0 = vld [vmem:[#allocation29_spill] sm:$0xff]  ;;  %v9268_v31 = vld [vmem:[#allocation38_spill] sm:$0xff] }
 0x55c   : > { %v5250_v37 = vsel %vm2810_vm1, %v5248_v33, %v5249_v56  ;;  %v5303_v17 = vadd.f32 %v5249_v56, %v5171_v11  ;;  %v5119_v12 = vrot.slane %v4786_v34, 1  ;;  %v9265_v11 = vld [vmem:[#allocation74_spill] sm:$0xff]  ;;  %v4074_v33 = vadd.f32 %v9268_v31, %v9267_v0  ;;  %v4224_v44 = vpop.f32.mrf.mxu3  ;;  %v9272_v34 = vld [vmem:[#allocation47_spill] sm:$0xff] }
 0x55d   : > { %v5302_v7 = vadd.f32 %v5250_v37, %v5170_v18  ;;  %v9266_v18 = vld [vmem:[#allocation37_spill] sm:$0xff]  ;;  %v4280_v13 = vadd.f32 %v4221_v22, %v9272_v34  ;;  %v9276_v22 = vld [vmem:[#allocation46_spill] sm:$0xff] }
 0x55e   : > { %v5331_v2 = vadd.f32 %v8715_v43, %v5303_v17  ;;  %v3868_v9 = vadd.f32 %v9266_v18, %v9265_v11  ;;  %v9269_v17 = vld [vmem:[#allocation64_spill] sm:$0xff]  ;;  %v9281_v11 = vld [vmem:[#allocation73_spill] sm:$0xff] }
 0x55f   : > { %v5330_v26 = vadd.f32 %v8715_v43, %v5302_v7  ;;  %v4929_v50 = vpop.f32.mrf.mxu2  ;;  %v9270_v7 = vld [vmem:[#allocation34_spill] sm:$0xff]  ;;  %v4281_v18 = vadd.f32 %v4224_v44, %v9281_v11 }
 0x560   : > { %v5355_v20 = vmax.f32 %v5331_v2, 0.0  ;;  %v4992_v28 = vadd.f32 %v4929_v50, %v4277_v55  ;;  %v3867_v8 = vadd.f32 %v9270_v7, %v9269_v17  ;;  %v4583_v54 = vadd.f32 %v4524_v3, %v3868_v9  ;;  %v9274_v3 = vld [vmem:[#allocation43_spill] sm:$0xff] }
 0x561   : > { %v5354_v52 = vmax.f32 %v5330_v26, 0.0  ;;  %v4725_v47 = vpop.f32.mrf.mxu1  ;;  %v4529_v30 = vpop.f32.mrf.mxu0 }
 0x562   : > { %v5379_v1 = vpack.c.bf16 %v5355_v20, %v5355_v20  ;;  %v4787_v62 = vadd.f32 %v4725_v47, %v4072_v25  ;;  %v5251_v29 = vrot.slane %v4992_v28, 2  ;;  %v4582_v20 = vadd.f32 %v4522_v4, %v3867_v8  ;;  %v9273_v4 = vld [vmem:[#allocation56_spill] sm:$0xff] }
 0x563   : > { %v5378_v19 = vpack.c.bf16 %v5354_v52, %v5354_v52  ;;  %v4075_v14 = vadd.f32 %v9274_v3, %v9273_v4 }
 0x564   : > { %5403 = vst [vmem:[%s7133_s29 + $0x34] sm:$0x3] %v5379_v1  ;;  %v5120_v48 = vrot.slane %v4787_v62, 1  ;;  %v4226_v32 = vpop.f32.mrf.mxu3 }
 0x565   : > { %5402 = vst [vmem:[%s7133_s29 + $0x30] sm:$0xf] %v5378_v19 }
 0x566   : > { %v5121_v36 = vsel %vm2655_vm0, %v5119_v12, %v5120_v48  ;;  %v5173_v39 = vadd.f32 %v5120_v48, %v4581_v61 }
 0x567   : > { %v5172_v57 = vadd.f32 %v5121_v36, %v4580_v63  ;;  %v4931_v59 = vpop.f32.mrf.mxu2 }
 0x568   : > { %v4993_v15 = vadd.f32 %v4931_v59, %v4278_v38  ;;  %v9277_v59 = vld [vmem:[#allocation60_spill] sm:$0xff] }
 0x569   : > { %v4728_v16 = vpop.f32.mrf.mxu1 }
 0x56a   : > { %v5252_v60 = vrot.slane %v4993_v15, 2  ;;  %v4788_v37 = vadd.f32 %v4728_v16, %v4073_v23  ;;  %v9278_v15 = vld [vmem:[#allocation49_spill] sm:$0xff] }
 0x56b   : > { %v4076_v16 = vadd.f32 %v9278_v15, %v9277_v59 }
 0x56c   : > { %v5253_v5 = vsel %vm2810_vm1, %v5251_v29, %v5252_v60  ;;  %v5305_v42 = vadd.f32 %v5252_v60, %v5173_v39  ;;  %v5122_v40 = vrot.slane %v4788_v37, 1  ;;  %v9275_v39 = vld [vmem:[#allocation15_spill] sm:$0xff]  ;;  %v9282_v37 = vld [vmem:[#allocation88_spill] sm:$0xff] }
 0x56d   : > { %v5304_v41 = vadd.f32 %v5253_v5, %v5172_v57  ;;  %v3870_v57 = vadd.f32 %v9276_v22, %v9275_v39  ;;  %v9279_v5 = vld [vmem:[#allocation12_spill] sm:$0xff]  ;;  %v4282_v17 = vadd.f32 %v4226_v32, %v9282_v37 }
 0x56e   : > { %v5333_v10 = vadd.f32 %v8715_v43, %v5305_v42  ;;  %v9280_v42 = vld [vmem:[#allocation40_spill] sm:$0xff] }
 0x56f   : > { %v5332_v35 = vadd.f32 %v8715_v43, %v5304_v41  ;;  %v4934_v21 = vpop.f32.mrf.mxu2  ;;  %v3869_v41 = vadd.f32 %v9280_v42, %v9279_v5  ;;  %v4585_v9 = vadd.f32 %v4529_v30, %v3870_v57  ;;  %v9288_v30 = vld [vmem:[#allocation91_spill] sm:$0xff] }
 0x570   : > { %v5357_v56 = vmax.f32 %v5333_v10, 0.0  ;;  %v4994_v58 = vadd.f32 %v4934_v21, %v4279_v45  ;;  %v4532_v21 = vpop.f32.mrf.mxu0 }
 0x571   : > { %v5356_v51 = vmax.f32 %v5332_v35, 0.0  ;;  %v4730_v2 = vpop.f32.mrf.mxu1 }
 0x572   : > { %v5381_v26 = vpack.c.bf16 %v5357_v56, %v5357_v56  ;;  %v4789_v50 = vadd.f32 %v4730_v2, %v4074_v33  ;;  %v5254_v55 = vrot.slane %v4994_v58, 2  ;;  %v4584_v33 = vadd.f32 %v4527_v24, %v3869_v41  ;;  %v4229_v56 = vpop.f32.mrf.mxu3  ;;  %v9283_v24 = vld [vmem:[#allocation63_spill] sm:$0xff] }
 0x573   : > { %v5380_v6 = vpack.c.bf16 %v5356_v51, %v5356_v51 }
 0x574   : > { %5405 = vst [vmem:[%s7133_s29 + $0x3c] sm:$0x3] %v5381_v26  ;;  %v5123_v25 = vrot.slane %v4789_v50, 1 }
 0x575   : > { %5404 = vst [vmem:[%s7133_s29 + $0x38] sm:$0xf] %v5380_v6 }
 0x576   : > { %v5124_v46 = vsel %vm2655_vm0, %v5122_v40, %v5123_v25  ;;  %v5175_v52 = vadd.f32 %v5123_v25, %v4583_v54 }
 0x577   : > { %v5174_v47 = vadd.f32 %v5124_v46, %v4582_v20  ;;  %v4936_v1 = vpop.f32.mrf.mxu2  ;;  %v9284_v20 = vld [vmem:[#allocation89_spill] sm:$0xff] }
 0x578   : > { %v4995_v62 = vadd.f32 %v4936_v1, %v4280_v13  ;;  %v4534_v25 = vpop.f32.mrf.mxu0  ;;  %v4077_v34 = vadd.f32 %v9284_v20, %v9283_v24  ;;  %v9286_v1 = vld [vmem:[#allocation90_spill] sm:$0xff] }
 0x579   : > { %v4733_v19 = vpop.f32.mrf.mxu1 }
 0x57a   : > { %v5255_v61 = vrot.slane %v4995_v62, 2  ;;  %v4790_v60 = vadd.f32 %v4733_v19, %v4075_v14  ;;  %v4231_v58 = vpop.f32.mrf.mxu3  ;;  %v9287_v19 = vld [vmem:[#allocation27_spill] sm:$0xff] }
 0x57c   : > { %v5256_v12 = vsel %vm2810_vm1, %v5254_v55, %v5255_v61  ;;  %v5307_v48 = vadd.f32 %v5255_v61, %v5175_v52  ;;  %v5125_v0 = vrot.slane %v4790_v60, 1  ;;  %v4078_v55 = vadd.f32 %v9288_v30, %v9287_v19 }
 0x57d   : > { %v5306_v63 = vadd.f32 %v5256_v12, %v5174_v47  ;;  %v9285_v47 = vld [vmem:[#allocation41_spill] sm:$0xff]  ;;  %v9289_v12 = vld [vmem:[#allocation20_spill] sm:$0xff] }
 0x57e   : > { %v5335_v38 = vadd.f32 %v8715_v43, %v5307_v48  ;;  %v3872_v62 = vadd.f32 %v9286_v1, %v9285_v47  ;;  %v9290_v48 = vld [vmem:[#allocation53_spill] sm:$0xff] }
 0x57f   : > { %v5334_v28 = vadd.f32 %v8715_v43, %v5306_v63  ;;  %v4939_v36 = vpop.f32.mrf.mxu2  ;;  %v3871_v63 = vadd.f32 %v9290_v48, %v9289_v12 }
 0x580   : > { %v5359_v29 = vmax.f32 %v5335_v38, 0.0  ;;  %v4996_v7 = vadd.f32 %v4939_v36, %v4281_v18  ;;  %v9291_v36 = vld [vmem:[#allocation54_spill] sm:$0xff]  ;;  %v4587_v22 = vadd.f32 %v4534_v25, %v3872_v62 }
 0x581   : > { %v5358_v27 = vmax.f32 %v5334_v28, 0.0  ;;  %v4735_v49 = vpop.f32.mrf.mxu1  ;;  %v4283_v39 = vadd.f32 %v4229_v56, %v9291_v36  ;;  %v4586_v15 = vadd.f32 %v4532_v21, %v3871_v63  ;;  %v9293_v21 = vld [vmem:[#allocation85_spill] sm:$0xff] }
 0x582   : > { %v5383_v23 = vpack.c.bf16 %v5359_v29, %v5359_v29  ;;  %v4791_v10 = vadd.f32 %v4735_v49, %v4076_v16  ;;  %v5257_v53 = vrot.slane %v4996_v7, 2  ;;  %v9292_v16 = vld [vmem:[#allocation75_spill] sm:$0xff]  ;;  %v4537_v49 = vpop.f32.mrf.mxu0 }
 0x583   : > { %v5382_v35 = vpack.c.bf16 %v5358_v27, %v5358_v27  ;;  %v4284_v29 = vadd.f32 %v4231_v58, %v9292_v16 }
 0x584   : > { %5407 = vst [vmem:[%s7133_s29 + $0x44] sm:$0x3] %v5383_v23  ;;  %v5126_v31 = vrot.slane %v4791_v10, 1  ;;  %v4234_v10 = vpop.f32.mrf.mxu3 }
 0x585   : > { %5406 = vst [vmem:[%s7133_s29 + $0x40] sm:$0xf] %v5382_v35 }
 0x586   : > { %v5127_v8 = vsel %vm2655_vm0, %v5125_v0, %v5126_v31  ;;  %v5177_v51 = vadd.f32 %v5126_v31, %v4585_v9 }
 0x587   : > { %v5176_v2 = vadd.f32 %v5127_v8, %v4584_v33  ;;  %v4941_v26 = vpop.f32.mrf.mxu2  ;;  %v9294_v33 = vld [vmem:[#allocation93_spill] sm:$0xff]  ;;  %v9295_v8 = vld [vmem:[#allocation30_spill] sm:$0xff] }
 0x588   : > { %v4997_v50 = vadd.f32 %v4941_v26, %v4282_v17  ;;  %v4079_v56 = vadd.f32 %v9294_v33, %v9293_v21  ;;  %v9297_v26 = vld [vmem:[#allocation33_spill] sm:$0xff] }
 0x589   : > { %v4738_v6 = vpop.f32.mrf.mxu1 }
 0x58a   : > { %v5258_v45 = vrot.slane %v4997_v50, 2  ;;  %v4792_v32 = vadd.f32 %v4738_v6, %v4077_v34  ;;  %v9298_v50 = vld [vmem:[#allocation95_spill] sm:$0xff] }
 0x58b   : > { %v4080_v6 = vadd.f32 %v9298_v50, %v9297_v26 }
 0x58c   : > { %v5259_v44 = vsel %vm2810_vm1, %v5257_v53, %v5258_v45  ;;  %v5309_v54 = vadd.f32 %v5258_v45, %v5177_v51  ;;  %v5128_v57 = vrot.slane %v4792_v32, 1  ;;  %v9296_v51 = vld [vmem:[#allocation94_spill] sm:$0xff]  ;;  %v4236_v58 = vpop.f32.mrf.mxu3 }
 0x58d   : > { %v5308_v40 = vadd.f32 %v5259_v44, %v5176_v2  ;;  %v3874_v2 = vadd.f32 %v9296_v51, %v9295_v8  ;;  %v9299_v44 = vld [vmem:[#allocation68_spill] sm:$0xff] }
 0x58e   : > { %v5337_v13 = vadd.f32 %v8715_v43, %v5309_v54  ;;  %v9300_v54 = vld [vmem:[#allocation92_spill] sm:$0xff] }
 0x58f   : > { %v5336_v46 = vadd.f32 %v8715_v43, %v5308_v40  ;;  %v4944_v52 = vpop.f32.mrf.mxu2  ;;  %v3873_v40 = vadd.f32 %v9300_v54, %v9299_v44 }
 0x590   : > { %v5361_v61 = vmax.f32 %v5337_v13, 0.0  ;;  %v4998_v60 = vadd.f32 %v4944_v52, %v4283_v39  ;;  %v4539_v13 = vpop.f32.mrf.mxu0  ;;  %v9301_v52 = vld [vmem:[#allocation76_spill] sm:$0xff] }
 0x591   : > { %v5360_v4 = vmax.f32 %v5336_v46, 0.0  ;;  %v4740_v3 = vpop.f32.mrf.mxu1  ;;  %v4285_v47 = vadd.f32 %v4234_v10, %v9301_v52  ;;  %v4589_v1 = vadd.f32 %v4539_v13, %v3874_v2  ;;  %v4588_v30 = vadd.f32 %v4537_v49, %v3873_v40 }
 0x592   : > { %v5385_v14 = vpack.c.bf16 %v5361_v61, %v5361_v61  ;;  %v4793_v38 = vadd.f32 %v4740_v3, %v4078_v55  ;;  %v5260_v11 = vrot.slane %v4998_v60, 2  ;;  %v9302_v55 = vld [vmem:[#allocation78_spill] sm:$0xff] }
 0x593   : > { %v5384_v28 = vpack.c.bf16 %v5360_v4, %v5360_v4  ;;  %v4286_v61 = vadd.f32 %v4236_v58, %v9302_v55 }
 0x594   : > { %5409 = vst [vmem:[%s7133_s29 + $0x4c] sm:$0x3] %v5385_v14  ;;  %v5129_v59 = vrot.slane %v4793_v38, 1 }
 0x595   : > { %5408 = vst [vmem:[%s7133_s29 + $0x48] sm:$0xf] %v5384_v28 }
 0x596   : > { %v5130_v5 = vsel %vm2655_vm0, %v5128_v57, %v5129_v59  ;;  %v5179_v42 = vadd.f32 %v5129_v59, %v4587_v22 }
 0x597   : > { %v5178_v41 = vadd.f32 %v5130_v5, %v4586_v15  ;;  %v4946_v27 = vpop.f32.mrf.mxu2 }
 0x598   : > { %v4999_v23 = vadd.f32 %v4946_v27, %v4284_v29 }
 0x599   : > { %v4743_v35 = vpop.f32.mrf.mxu1 }
 0x59a   : > { %v5261_v18 = vrot.slane %v4999_v23, 2  ;;  %v4794_v45 = vadd.f32 %v4743_v35, %v4079_v56 }
 0x59c   : > { %v5262_v9 = vsel %vm2810_vm1, %v5260_v11, %v5261_v18  ;;  %v5311_v0 = vadd.f32 %v5261_v18, %v5179_v42  ;;  %v5131_v62 = vrot.slane %v4794_v45, 1 }
 0x59d   : > { %v5310_v31 = vadd.f32 %v5262_v9, %v5178_v41 }
 0x59e   : > { %v5339_v37 = vadd.f32 %v8715_v43, %v5311_v0 }
 0x59f   : > { %v5338_v17 = vadd.f32 %v8715_v43, %v5310_v31  ;;  %v4949_v7 = vpop.f32.mrf.mxu2 }
 0x5a0   : > { %v5363_v53 = vmax.f32 %v5339_v37, 0.0  ;;  %v5000_v32 = vadd.f32 %v4949_v7, %v4285_v47 }
 0x5a1   : > { %v5362_v25 = vmax.f32 %v5338_v17, 0.0  ;;  %v4745_v24 = vpop.f32.mrf.mxu1 }
 0x5a2   : > { %v5387_v20 = vpack.c.bf16 %v5363_v53, %v5363_v53  ;;  %v4795_v34 = vadd.f32 %v4745_v24, %v4080_v6  ;;  %v5263_v14 = vrot.slane %v5000_v32, 2 }
 0x5a3   : > { %v5386_v46 = vpack.c.bf16 %v5362_v25, %v5362_v25 }
 0x5a4   : > { %5411 = vst [vmem:[%s7133_s29 + $0x54] sm:$0x3] %v5387_v20  ;;  %v5132_v19 = vrot.slane %v4795_v34, 1 }
 0x5a5   : > { %5410 = vst [vmem:[%s7133_s29 + $0x50] sm:$0xf] %v5386_v46 }
 0x5a6   : > { %v5133_v12 = vsel %vm2655_vm0, %v5131_v62, %v5132_v19  ;;  %v5181_v48 = vadd.f32 %v5132_v19, %v4589_v1 }
 0x5a7   : > { %v5180_v63 = vadd.f32 %v5133_v12, %v4588_v30  ;;  %v4951_v4 = vpop.f32.mrf.mxu2 }
 0x5a8   : > { %v5001_v3 = vadd.f32 %v4951_v4, %v4286_v61 }
 0x5aa   : > { %v5264_v38 = vrot.slane %v5001_v3, 2 }
 0x5ac   : > { %v5265_v28 = vsel %vm2810_vm1, %v5263_v14, %v5264_v38  ;;  %v5313_v36 = vadd.f32 %v5264_v38, %v5181_v48 }
 0x5ad   : > { %v5312_v39 = vadd.f32 %v5265_v28, %v5180_v63 }
 0x5ae   : > { %v5341_v22 = vadd.f32 %v8715_v43, %v5313_v36 }
 0x5af   : > { %v5340_v57 = vadd.f32 %v8715_v43, %v5312_v39 }
 0x5b0   : > { %v5365_v59 = vmax.f32 %v5341_v22, 0.0 }
 0x5b1   : > { %v5364_v15 = vmax.f32 %v5340_v57, 0.0 }
 0x5b2   : > { %v5389_v16 = vpack.c.bf16 %v5365_v59, %v5365_v59 }
 0x5b3   : > { %v5388_v29 = vpack.c.bf16 %v5364_v15, %v5364_v15 }
 0x5b4   : > { %5413 = vst [vmem:[%s7133_s29 + $0x5c] sm:$0x3] %v5389_v16 }
 0x5b5   : > { %5412 = vst [vmem:[%s7133_s29 + $0x58] sm:$0xf] %v5388_v29 }
 0x5b6 PF: > { %s15_s20 = sadd.s32 1, %s7069_s20   ;;  %s9303_s18 = smov %s7065_s19 }
 0x5b7   : > { %p12_p5 = scmp.ge.s32.totalorder %s15_s20, 4   ;;  %s9304_s19 = smov %s9306_s21 }
 0x5b9   :  { %14 = sbr.rel (!%p12_p5) target bundleno = 2 (0x2), region = 148 }
 0x5be   :  { %5446 = vsyncmov [#allocation3] }
 0x5c1   :  { %s5447_s27 = vpop.sfrf %5446 }
 0x5c2   :  { %p6775_p6 = scmp.ne.s32.totalorder %s5447_s27, 0 }
 0x5c4   :  { %5451 = shalt.err (%p6775_p6)  }
 0x5c5   :  { %5453 = vsyncmov [#allocation3 + $0x1] }
 0x5c8   :  { %s5454_s28 = vpop.sfrf %5453 }
 0x5c9   :  { %p6776_p7 = scmp.ne.s32.totalorder %s5454_s28, 0 }
 0x5cb   :  { %5458 = shalt.err (%p6776_p7)  }

</bundles_post_ra>
